<compile_context>
chip_gen: v6e
topology: v6e:2x2x1
jax: 0.10.0
libtpu: 0.0.40
codegen_flags: <defaults>
</compile_context>

<pallas_src>
import functools
import numpy as np
import jax
import jax.numpy as jnp
from jax.experimental import pallas as pl
from jax.experimental.pallas import tpu as pltpu


# ----------------------------------------------------------------------------
# Pallas kernel: one grid step == TB windows (TB*N token rows)
# ----------------------------------------------------------------------------
def _window_attn_kernel(x_ref, wqkv_ref, bqkv_ref, bias_ref, wp_ref, bp_ref,
                        *rest, tb, n, heads, hd, scale, has_mask):
    if has_mask:
        mask_ref, o_ref = rest
    else:
        (o_ref,) = rest

    c = heads * hd
    x = x_ref[...]                                           # (tb*n, c)
    in_dt = x.dtype

    # ---- fused QKV projection on the whole slab (one MXU push, f32 accum) ----
    qkv = jnp.dot(x, wqkv_ref[...],
                  preferred_element_type=jnp.float32) + bqkv_ref[...]   # (tb*n, 3c)

    def to_heads(t2):                                        # (tb*n, c) -> (heads*tb, n, hd)
        t3 = t2.reshape(tb * n, heads, hd)
        t3 = pltpu.einshape("mhd->hmd", t3)                  # (heads, tb*n, hd)
        return t3.reshape(heads * tb, n, hd)

    q = to_heads((qkv[:, 0 * c:1 * c] * scale).astype(in_dt))
    k = to_heads(qkv[:, 1 * c:2 * c].astype(in_dt))
    v = to_heads(qkv[:, 2 * c:3 * c].astype(in_dt))

    # ---- batched attention scores over (heads*tb) slices ----
    attn = jnp.einsum('bqd,bkd->bqk', q, k,
                      preferred_element_type=jnp.float32)    # (heads*tb, n, n) f32
    attn = attn.reshape(heads, tb, n, n)
    attn = attn + bias_ref[...][:, None, :, :]               # resident rel-pos bias
    if has_mask:
        attn = attn + mask_ref[...][None, :, :, :]           # per-window additive mask

    # ---- softmax (f32), reciprocal on the EUP slot ----
    attn = attn - jnp.max(attn, axis=-1, keepdims=True)
    p = jnp.exp(attn)
    p = p * pl.reciprocal(jnp.sum(p, axis=-1, keepdims=True), approx=True)
    p = p.reshape(heads * tb, n, n).astype(in_dt)

    # ---- attention @ V, merge heads back to channel-contiguous layout ----
    ctx = jnp.einsum('bqk,bkd->bqd', p, v,
                     preferred_element_type=jnp.float32)     # (heads*tb, n, hd)
    ctx = ctx.reshape(heads, tb * n, hd)
    ctx = pltpu.einshape("hmd->mhd", ctx).reshape(tb * n, c)  # (tb*n, c)

    # ---- output projection on the full slab, single lane-dense store ----
    wp = wp_ref[...]
    out = jnp.dot(ctx.astype(wp.dtype), wp,
                  preferred_element_type=jnp.float32) + bp_ref[...]
    o_ref[...] = out.astype(o_ref.dtype)


# ----------------------------------------------------------------------------
# Wrapper
# ----------------------------------------------------------------------------
def _pick_window_tile(b_windows, n_tokens, target_rows=1024):
    """Largest divisor TB of B_ with TB*N <= target_rows (>=512 rows preferred)."""
    cap = max(1, target_rows // n_tokens)
    tb = 1
    for t in range(1, b_windows + 1):
        if b_windows % t == 0 and t <= cap:
            tb = t
    return tb


def window_attention_pallas(x, params, rel_index, num_heads, mask=None,
                            compute_dtype=None, tb=None):
    B_, N, C = x.shape
    hd = C // num_heads
    scale = hd ** (-0.5)
    cdt = compute_dtype if compute_dtype is not None else x.dtype

    # relative position bias: gather from table -> (H, N, N), kept f32 & resident
    table = params["rel_pos_bias_table"]                           # ((2Wh-1)(2Ww-1), H)
    rel_bias = table[rel_index.reshape(-1)].reshape(N, N, num_heads)
    rel_bias = jnp.transpose(rel_bias, (2, 0, 1)).astype(jnp.float32)   # (H, N, N)

    # PyTorch Linear: y = x @ W.T + b  ->  pre-transpose; fuse QKV to (C, 3C)
    w_qkv_t = jnp.transpose(params["w_qkv"]).astype(cdt)           # (C, 3C)
    b_qkv = params["b_qkv"].reshape(1, 3 * C).astype(jnp.float32)  # (1, 3C)
    w_p_t = jnp.transpose(params["w_proj"]).astype(cdt)            # (C, C)
    b_p = params["b_proj"].reshape(1, C).astype(jnp.float32)       # (1, C)

    # flatten tokens so each grid step works on a (TB*N, C) slab
    x2 = x.reshape(B_ * N, C).astype(cdt)

    if tb is None:
        tb = _pick_window_tile(B_, N)
    assert B_ % tb == 0
    grid = (B_ // tb,)

    has_mask = mask is not None
    inputs = [x2, w_qkv_t, b_qkv, rel_bias, w_p_t, b_p]
    in_specs = [
        pl.BlockSpec((tb * N, C), lambda b: (b, 0)),                       # x slab
        pl.BlockSpec((C, 3 * C), lambda b: (0, 0)),                        # fused W_qkv (resident)
        pl.BlockSpec((1, 3 * C), lambda b: (0, 0)),                        # b_qkv
        pl.BlockSpec((num_heads, N, N), lambda b: (0, 0, 0)),              # rel-pos bias (resident)
        pl.BlockSpec((C, C), lambda b: (0, 0)),                            # W_proj (resident)
        pl.BlockSpec((1, C), lambda b: (0, 0)),                            # b_proj
    ]
    if has_mask:
        nW = mask.shape[0]
        # replicate per-window mask across the batch so window b uses mask[b % nW]
        mask_full = jnp.tile(mask.astype(jnp.float32), (B_ // nW, 1, 1))   # (B_, N, N)
        inputs.append(mask_full)
        in_specs.append(pl.BlockSpec((tb, N, N), lambda b: (b, 0, 0)))

    kernel = functools.partial(_window_attn_kernel, tb=tb, n=N,
                               heads=num_heads, hd=hd, scale=scale,
                               has_mask=has_mask)

    out2 = pl.pallas_call(
        kernel,
        out_shape=jax.ShapeDtypeStruct((B_ * N, C), cdt),
        grid_spec=pl.GridSpec(
            grid=grid,
            in_specs=in_specs,
            out_specs=pl.BlockSpec((tb * N, C), lambda b: (b, 0)),
        ),
        # window axis is fully independent -> "parallel" (uses both TCs on v7x).
        # For real Swin channel sizes, size `tb` / vmem_limit_bytes per chip
        # generation (v7x has 64 MiB VMEM vs 128 MiB on v5e/v6e).
        compiler_params=pltpu.CompilerParams(dimension_semantics=("parallel",)),
    )(*inputs)
    return out2.reshape(B_, N, C)


# ----------------------------------------------------------------------------
# Pure-JAX reference (mirrors the PyTorch forward exactly)
# ----------------------------------------------------------------------------
def window_attention_ref(x, params, rel_index, num_heads, mask=None):
    B_, N, C = x.shape
    hd = C // num_heads
    scale = hd ** (-0.5)
    qkv = x @ params["w_qkv"].T + params["b_qkv"]
    qkv = qkv.reshape(B_, N, 3, num_heads, hd).transpose(2, 0, 3, 1, 4)
    q, k, v = qkv[0], qkv[1], qkv[2]
    q = q * scale
    attn = q @ jnp.swapaxes(k, -2, -1)
    bias = params["rel_pos_bias_table"][rel_index.reshape(-1)]
    bias = bias.reshape(N, N, num_heads).transpose(2, 0, 1)
    attn = attn + bias[None]
    if mask is not None:
        nW = mask.shape[0]
        attn = attn.reshape(B_ // nW, nW, num_heads, N, N) + mask[None, :, None]
        attn = attn.reshape(-1, num_heads, N, N)
    attn = jax.nn.softmax(attn, axis=-1)
    out = (attn @ v).transpose(0, 2, 1, 3).reshape(B_, N, C)
    out = out @ params["w_proj"].T + params["b_proj"]
    return out


# ----------------------------------------------------------------------------
# Parameter / buffer construction (deterministic, mimics module __init__)
# ----------------------------------------------------------------------------
def make_relative_position_index(window_size):
    Wh, Ww = window_size
    coords_h = np.arange(Wh)
    coords_w = np.arange(Ww)
    coords = np.stack(np.meshgrid(coords_h, coords_w, indexing="ij"))   # (2, Wh, Ww)
    coords_flatten = coords.reshape(2, -1)                              # (2, N)
    rel = coords_flatten[:, :, None] - coords_flatten[:, None, :]       # (2, N, N)
    rel = rel.transpose(1, 2, 0).astype(np.int32)                       # (N, N, 2)
    rel[:, :, 0] += Wh - 1
    rel[:, :, 1] += Ww - 1
    rel[:, :, 0] *= 2 * Ww - 1
    return jnp.asarray(rel.sum(-1))                                      # (N, N)


def make_params(key, dim, window_size, num_heads):
    Wh, Ww = window_size
    k1, k2, k3, k4, k5 = jax.random.split(key, 5)
    bound = 1.0 / np.sqrt(dim)
    return {
        "rel_pos_bias_table": 0.02 * jax.random.truncated_normal(
            k1, -2.0, 2.0, ((2 * Wh - 1) * (2 * Ww - 1), num_heads), jnp.float32),
        "w_qkv": jax.random.uniform(k2, (3 * dim, dim), jnp.float32, -bound, bound),
        "b_qkv": jax.random.uniform(k3, (3 * dim,), jnp.float32, -bound, bound),
        "w_proj": jax.random.uniform(k4, (dim, dim), jnp.float32, -bound, bound),
        "b_proj": jax.random.uniform(k5, (dim,), jnp.float32, -bound, bound),
    }


if __name__ == "__main__":
    dim = 32
    window_size = (4, 4)
    num_heads = 4
    batch = 2
    nW = 4                              # number of windows per image
    B_ = batch * nW                     # num_windows * B
    N = window_size[0] * window_size[1]

    key = jax.random.PRNGKey(0)
    kp, kx, km = jax.random.split(key, 3)

    params = make_params(kp, dim, window_size, num_heads)
    rel_index = make_relative_position_index(window_size)

    x = jax.random.normal(kx, (B_, N, dim), jnp.float32)
    # 0 / -100 shifted-window style mask, shape (nW, N, N)
    mask = jnp.where(jax.random.bernoulli(km, 0.2, (nW, N, N)), -100.0, 0.0).astype(jnp.float32)

    # f32, mask=None
    out_nomask = jax.block_until_ready(
        window_attention_pallas(x, params, rel_index, num_heads, mask=None))
    ref_nomask = window_attention_ref(x, params, rel_index, num_heads, mask=None)
    assert np.allclose(np.asarray(out_nomask), np.asarray(ref_nomask), atol=5e-3, rtol=5e-3)

    # f32, masked
    out_mask = jax.block_until_ready(
        window_attention_pallas(x, params, rel_index, num_heads, mask=mask))
    ref_mask = window_attention_ref(x, params, rel_index, num_heads, mask=mask)
    assert np.allclose(np.asarray(out_mask), np.asarray(ref_mask), atol=5e-3, rtol=5e-3)

    # bf16 operands (v6e/v7x path): f32 accumulation + f32 softmax inside kernel
    out_bf16 = jax.block_until_ready(
        window_attention_pallas(x, params, rel_index, num_heads, mask=mask,
                                compute_dtype=jnp.bfloat16))
    assert np.allclose(np.asarray(out_bf16).astype(np.float32), np.asarray(ref_mask),
                       atol=1e-1, rtol=1e-1)

    print("KERNEL_OK")
</pallas_src>

<mosaic_0001>
module attributes {stable_mosaic.version = 11 : i64} {
  func.func @_window_attn_kernel(%arg0: i32, %arg1: memref<128x32xf32, #tpu.memory_space<vmem>>, %arg2: memref<32x96xf32, #tpu.memory_space<vmem>>, %arg3: memref<1x96xf32, #tpu.memory_space<vmem>>, %arg4: memref<4x16x16xf32, #tpu.memory_space<vmem>>, %arg5: memref<32x32xf32, #tpu.memory_space<vmem>>, %arg6: memref<1x32xf32, #tpu.memory_space<vmem>>, %arg7: memref<128x32xf32, #tpu.memory_space<vmem>>) attributes {dimension_semantics = [#tpu.dimension_semantics<parallel>], iteration_bounds = array<i64: 1>, scalar_prefetch = 0 : i64, scratch_operands = 0 : i64, tpu.core_type = #tpu.core_type<tc>, window_params = [{transform_indices = @transform_0, window_bounds = array<i64: 128, 32>}, {pipeline_mode = #tpu.pipeline_mode<synchronous>, transform_indices = @transform_1, window_bounds = array<i64: 32, 96>}, {pipeline_mode = #tpu.pipeline_mode<synchronous>, transform_indices = @transform_2, window_bounds = array<i64: 1, 96>}, {pipeline_mode = #tpu.pipeline_mode<synchronous>, transform_indices = @transform_3, window_bounds = array<i64: 4, 16, 16>}, {pipeline_mode = #tpu.pipeline_mode<synchronous>, transform_indices = @transform_4, window_bounds = array<i64: 32, 32>}, {pipeline_mode = #tpu.pipeline_mode<synchronous>, transform_indices = @transform_5, window_bounds = array<i64: 1, 32>}, {transform_indices = @transform_6, window_bounds = array<i64: 128, 32>}]} {
    %c0 = arith.constant 0 : index
    %c0_0 = arith.constant 0 : index
    %0 = vector.load %arg1[%c0, %c0_0] : memref<128x32xf32, #tpu.memory_space<vmem>>, vector<128x32xf32>
    %c0_1 = arith.constant 0 : index
    %c0_2 = arith.constant 0 : index
    %1 = vector.load %arg2[%c0_1, %c0_2] : memref<32x96xf32, #tpu.memory_space<vmem>>, vector<32x96xf32>
    %cst = arith.constant dense<0.000000e+00> : vector<128x96xf32>
    %2 = tpu.matmul %0, %1, %cst {dimension_numbers = #tpu.dot_dimension_numbers<[1], [0], [0], [1], [0, 0, 1, 1], [], []>} : vector<128x32xf32>, vector<32x96xf32>, vector<128x96xf32> -> vector<128x96xf32>
    %c0_3 = arith.constant 0 : index
    %c0_4 = arith.constant 0 : index
    %3 = vector.load %arg3[%c0_3, %c0_4] : memref<1x96xf32, #tpu.memory_space<vmem>>, vector<1x96xf32>
    %4 = vector.broadcast %3 : vector<1x96xf32> to vector<128x96xf32>
    %5 = arith.addf %2, %4 : vector<128x96xf32>
    %6 = vector.extract_strided_slice %5 {offsets = [0, 0], sizes = [128, 32], strides = [1, 1]} : vector<128x96xf32> to vector<128x32xf32>
    %cst_5 = arith.constant 0.353553385 : f32
    %7 = vector.broadcast %cst_5 : f32 to vector<128x32xf32>
    %8 = arith.mulf %6, %7 : vector<128x32xf32>
    %9 = vector.shape_cast %8 : vector<128x32xf32> to vector<128x4x8xf32>
    %10 = tpu.transpose %9, [1, 0, 2] : vector<128x4x8xf32> -> vector<4x128x8xf32>
    %11 = vector.shape_cast %10 : vector<4x128x8xf32> to vector<32x16x8xf32>
    %12 = vector.extract_strided_slice %5 {offsets = [0, 32], sizes = [128, 32], strides = [1, 1]} : vector<128x96xf32> to vector<128x32xf32>
    %13 = vector.shape_cast %12 : vector<128x32xf32> to vector<128x4x8xf32>
    %14 = tpu.transpose %13, [1, 0, 2] : vector<128x4x8xf32> -> vector<4x128x8xf32>
    %15 = vector.shape_cast %14 : vector<4x128x8xf32> to vector<32x16x8xf32>
    %16 = vector.extract_strided_slice %5 {offsets = [0, 64], sizes = [128, 32], strides = [1, 1]} : vector<128x96xf32> to vector<128x32xf32>
    %17 = vector.shape_cast %16 : vector<128x32xf32> to vector<128x4x8xf32>
    %18 = tpu.transpose %17, [1, 0, 2] : vector<128x4x8xf32> -> vector<4x128x8xf32>
    %19 = vector.shape_cast %18 : vector<4x128x8xf32> to vector<32x16x8xf32>
    "tpu.trace_start"() <{level = 10 : i32, message = "bqd,bkd->bqk"}> : () -> ()
    %cst_6 = arith.constant dense<0.000000e+00> : vector<32x16x16xf32>
    %20 = tpu.matmul %11, %15, %cst_6 {dimension_numbers = #tpu.dot_dimension_numbers<[2], [2], [1], [1], [0, 0, 0, 1, 1, 1], [0], [0]>} : vector<32x16x8xf32>, vector<32x16x8xf32>, vector<32x16x16xf32> -> vector<32x16x16xf32>
    "tpu.trace_stop"() : () -> ()
    %21 = vector.shape_cast %20 : vector<32x16x16xf32> to vector<4x8x16x16xf32>
    %c0_7 = arith.constant 0 : index
    %c0_8 = arith.constant 0 : index
    %c0_9 = arith.constant 0 : index
    %22 = vector.load %arg4[%c0_7, %c0_8, %c0_9] : memref<4x16x16xf32, #tpu.memory_space<vmem>>, vector<4x16x16xf32>
    %23 = vector.shape_cast %22 : vector<4x16x16xf32> to vector<4x1x16x16xf32>
    %24 = vector.broadcast %23 : vector<4x1x16x16xf32> to vector<4x8x16x16xf32>
    %25 = arith.addf %21, %24 : vector<4x8x16x16xf32>
    %cst_10 = arith.constant dense<0xFF800000> : vector<4x8x16xf32>
    %26 = vector.multi_reduction <maximumf>, %25, %cst_10 [3] : vector<4x8x16x16xf32> to vector<4x8x16xf32>
    %27 = vector.shape_cast %26 : vector<4x8x16xf32> to vector<4x8x16x1xf32>
    %28 = vector.broadcast %27 : vector<4x8x16x1xf32> to vector<4x8x16x16xf32>
    %29 = arith.subf %25, %28 : vector<4x8x16x16xf32>
    %30 = math.exp %29 : vector<4x8x16x16xf32>
    %cst_11 = arith.constant dense<0.000000e+00> : vector<4x8x16xf32>
    %31 = vector.multi_reduction <add>, %30, %cst_11 [3] : vector<4x8x16x16xf32> to vector<4x8x16xf32>
    %32 = vector.shape_cast %31 : vector<4x8x16xf32> to vector<4x8x16x1xf32>
    %33 = tpu.reciprocal %32 {approx = true} : vector<4x8x16x1xf32> -> vector<4x8x16x1xf32>
    %34 = vector.broadcast %33 : vector<4x8x16x1xf32> to vector<4x8x16x16xf32>
    %35 = arith.mulf %30, %34 : vector<4x8x16x16xf32>
    %36 = vector.shape_cast %35 : vector<4x8x16x16xf32> to vector<32x16x16xf32>
    "tpu.trace_start"() <{level = 10 : i32, message = "bqk,bkd->bqd"}> : () -> ()
    %cst_12 = arith.constant dense<0.000000e+00> : vector<32x16x8xf32>
    %37 = tpu.matmul %36, %19, %cst_12 {dimension_numbers = #tpu.dot_dimension_numbers<[2], [1], [1], [2], [0, 0, 0, 1, 1, 2], [0], [0]>} : vector<32x16x16xf32>, vector<32x16x8xf32>, vector<32x16x8xf32> -> vector<32x16x8xf32>
    "tpu.trace_stop"() : () -> ()
    %38 = vector.shape_cast %37 : vector<32x16x8xf32> to vector<4x128x8xf32>
    %39 = tpu.transpose %38, [1, 0, 2] : vector<4x128x8xf32> -> vector<128x4x8xf32>
    %40 = vector.shape_cast %39 : vector<128x4x8xf32> to vector<128x32xf32>
    %c0_13 = arith.constant 0 : index
    %c0_14 = arith.constant 0 : index
    %41 = vector.load %arg5[%c0_13, %c0_14] : memref<32x32xf32, #tpu.memory_space<vmem>>, vector<32x32xf32>
    %cst_15 = arith.constant dense<0.000000e+00> : vector<128x32xf32>
    %42 = tpu.matmul %40, %41, %cst_15 {dimension_numbers = #tpu.dot_dimension_numbers<[1], [0], [0], [1], [0, 0, 1, 1], [], []>} : vector<128x32xf32>, vector<32x32xf32>, vector<128x32xf32> -> vector<128x32xf32>
    %c0_16 = arith.constant 0 : index
    %c0_17 = arith.constant 0 : index
    %43 = vector.load %arg6[%c0_16, %c0_17] : memref<1x32xf32, #tpu.memory_space<vmem>>, vector<1x32xf32>
    %44 = vector.broadcast %43 : vector<1x32xf32> to vector<128x32xf32>
    %45 = arith.addf %42, %44 : vector<128x32xf32>
    %c0_18 = arith.constant 0 : index
    %c0_19 = arith.constant 0 : index
    %46 = vector.load %arg7[%c0_18, %c0_19] : memref<128x32xf32, #tpu.memory_space<vmem>>, vector<128x32xf32>
    tpu.vector_store %arg7[%c0_18, %c0_19], %45 {strides = array<i32>} : memref<128x32xf32, #tpu.memory_space<vmem>>, vector<128x32xf32>,
    return
  }
  func.func @transform_0(%arg0: i32) -> (i32, i32) {
    %c0_i32 = arith.constant 0 : i32
    %c0_i32_0 = arith.constant 0 : i32
    return %arg0, %c0_i32 : i32, i32
  }
  func.func @transform_1(%arg0: i32) -> (i32, i32) {
    %c0_i32 = arith.constant 0 : i32
    %c0_i32_0 = arith.constant 0 : i32
    %c0_i32_1 = arith.constant 0 : i32
    return %c0_i32, %c0_i32_0 : i32, i32
  }
  func.func @transform_2(%arg0: i32) -> (i32, i32) {
    %c0_i32 = arith.constant 0 : i32
    %c0_i32_0 = arith.constant 0 : i32
    %c0_i32_1 = arith.constant 0 : i32
    return %c0_i32, %c0_i32_0 : i32, i32
  }
  func.func @transform_3(%arg0: i32) -> (i32, i32, i32) {
    %c0_i32 = arith.constant 0 : i32
    %c0_i32_0 = arith.constant 0 : i32
    %c0_i32_1 = arith.constant 0 : i32
    %c0_i32_2 = arith.constant 0 : i32
    return %c0_i32, %c0_i32_0, %c0_i32_1 : i32, i32, i32
  }
  func.func @transform_4(%arg0: i32) -> (i32, i32) {
    %c0_i32 = arith.constant 0 : i32
    %c0_i32_0 = arith.constant 0 : i32
    %c0_i32_1 = arith.constant 0 : i32
    return %c0_i32, %c0_i32_0 : i32, i32
  }
  func.func @transform_5(%arg0: i32) -> (i32, i32) {
    %c0_i32 = arith.constant 0 : i32
    %c0_i32_0 = arith.constant 0 : i32
    %c0_i32_1 = arith.constant 0 : i32
    return %c0_i32, %c0_i32_0 : i32, i32
  }
  func.func @transform_6(%arg0: i32) -> (i32, i32) {
    %c0_i32 = arith.constant 0 : i32
    %c0_i32_0 = arith.constant 0 : i32
    return %arg0, %c0_i32 : i32, i32
  }
}

</mosaic_0001>

<bundles_post_ra>
// kernel: tpu_custom_call.1
= control target key start
LH: loop header
LB: loop body
LE: loop exit
PB: predicated region body
PF: predicated region fallthrough
CT: control target
= control target key end

     0   :  { %vm50_vm0 = vcmask 261120   ;;  %s17675_s13 = smov 104   ;;  %s17677_s14 = smov 96   ;;  %vm7444_vm1 = vcmask 64512   ;;  %vm10301_vm2 = vcmask 130048   ;;  %vm15998_vm3 = vcmask 195584   ;;  %s23837_s1 = inlined_call_operand.vmem [shape: f32[32,96], index: 1, kind: input, shape index: {}]   ;;  %s23838_s0 = inlined_call_operand.vmem [shape: f32[128,32], index: 0, kind: input, shape index: {}]   ;;  %s23839_s2 = inlined_call_operand.vmem [shape: f32[1,96], index: 2, kind: input, shape index: {}]   ;;  %s23840_s3 = inlined_call_operand.vmem [shape: f32[4,16,16], index: 3, kind: input, shape index: {}]   ;;  %s23841_s4 = inlined_call_operand.vmem [shape: f32[32,32], index: 4, kind: input, shape index: {}]   ;;  %s23842_s5 = inlined_call_operand.vmem [shape: f32[1,32], index: 5, kind: input, shape index: {}]   ;;  %s23843_s6 = inlined_call_operand.vmem [shape: f32[128,32], index: 6, kind: output, shape index: {}]  }
   0x1   :  { %v42_v0 = vld [vmem:[%s23837_s1 + $0x18] sm:$0xff]  ;;  %v41_v1 = vld [vmem:[%s23837_s1 + $0x10] sm:$0xff]  ;;  %v40_v2 = vld [vmem:[%s23837_s1 + $0x8] sm:$0xff]  ;;  %s17681_s15 = smov 64   ;;  %s17683_s8 = smov 8  }
   0x2   :  { %16889 = vmatprep.subr.mxu0 %v42_v0  ;;  %17401 = vmatprep.subr.mxu1 %v42_v0  ;;  %v39_v3 = vld [vmem:[%s23837_s1] sm:$0xff]  ;;  %v24_v5 = vld [vmem:[%s23838_s0 + $0x8] sm:$0xff]  ;;  %v25_v7 = vld [vmem:[%s23838_s0 + $0x10] sm:$0xff]  ;;  %s17684_s9 = smov 24  }
   0x3   :  { %16890 = vmatpush3.msra.mxu0 %v42_v0  ;;  %17405 = vmatpush3.msra.mxu1 %v42_v0  ;;  %v23_v4 = vld [vmem:[%s23838_s0] sm:$0xff]  ;;  %v32_v8 = vld [vmem:[%s23838_s0 + $0x48] sm:$0xff]  ;;  %v33_v9 = vld [vmem:[%s23838_s0 + $0x50] sm:$0xff] }
   0x4   :  { %16891 = vmatprep.subr.mxu0 %v41_v1  ;;  %17402 = vmatprep.subr.mxu1 %v41_v1  ;;  %v31_v6 = vld [vmem:[%s23838_s0 + $0x40] sm:$0xff]  ;;  %v26_v10 = vld [vmem:[%s23838_s0 + $0x18] sm:$0xff]  ;;  %v28_v14 = vld [vmem:[%s23838_s0 + $0x28] sm:$0xff] }
   0x5   :  { %16892 = vmatpush3.msra.mxu0 %v41_v1  ;;  %17406 = vmatpush3.msra.mxu1 %v41_v1  ;;  %v27_v11 = vld [vmem:[%s23838_s0 + $0x20] sm:$0xff]  ;;  %v34_v12 = vld [vmem:[%s23838_s0 + $0x58] sm:$0xff]  ;;  %v29_v15 = vld [vmem:[%s23838_s0 + $0x30] sm:$0xff]  ;;  %v17679_v1 = vmov 1983009808  }
   0x6   :  { %16893 = vmatprep.subr.mxu0 %v40_v2  ;;  %17403 = vmatprep.subr.mxu1 %v40_v2  ;;  %v35_v13 = vld [vmem:[%s23838_s0 + $0x60] sm:$0xff]  ;;  %v36_v16 = vld [vmem:[%s23838_s0 + $0x68] sm:$0xff]  ;;  %v37_v17 = vld [vmem:[%s23838_s0 + $0x70] sm:$0xff] }
   0x7   :  { %16894 = vmatpush3.msra.mxu0 %v40_v2  ;;  %17407 = vmatpush3.msra.mxu1 %v40_v2  ;;  %v30_v18 = vld [vmem:[%s23838_s0 + $0x38] sm:$0xff]  ;;  %v17799_v20 = vld [vmem:[%s23839_s2] ss:$0 sm:$0xff]  ;;  %s17678_s2 = smov 112   ;;  %v423_v2 = vunpack.c.l.s4 %v17679_v1 }
   0x8   :  { %16895 = vmatprep.subr.mxu0 %v39_v3  ;;  %16897 = vmatprep.mubr.msk.f32.mxu0 %vm50_vm0, %v23_v4  ;;  %v38_v19 = vld [vmem:[%s23838_s0 + $0x78] sm:$0xff]  ;;  %s17676_s0 = smov 120  }
   0x9   :  { %16896 = vmatpush3.msra.mxu0 %v39_v3  ;;  %17404 = vmatprep.subr.mxu1 %v39_v3 }
   0xa   :  { %16898 = vmatmul.mubr.msk.f32.vlgmr.msra.gmra.mxu0 %vm50_vm0, %v24_v5  ;;  %17408 = vmatpush3.msra.mxu1 %v39_v3  ;;  %v425_v3 = vlaneseq }
   0xb   :  { %16909 = vmatprep.mubr.msk.f32.mxu1 %vm50_vm0, %v31_v6  ;;  %16900 = vmatprep.mubr.msk.f32.mxu0 %vm50_vm0, %v25_v7  ;;  %v17680_v7 = vmov 1934713408  }
   0xc   :  { %16910 = vmatmul.mubr.msk.f32.vlgmr.msra.gmra.mxu1 %vm50_vm0, %v32_v8  ;;  %v455_v8 = vunpack.c.l.s4 %v17680_v7 }
   0xd   :  { %16912 = vmatprep.mubr.msk.f32.mxu1 %vm50_vm0, %v33_v9  ;;  %v424_v9 = vunpack.c.0.s8 %v423_v2 }
   0xe   :  { %16901 = vmatmul.mubr.msk.f32.gmra.mxu0 %vm50_vm0, %v26_v10  ;;  %v426_v10 = vshrl.u32 %v425_v3, 7 }
   0xf   :  { %16903 = vmatprep.mubr.msk.f32.mxu0 %vm50_vm0, %v27_v11 }
  0x10   :  { %16913 = vmatmul.mubr.msk.f32.gmra.mxu1 %vm50_vm0, %v34_v12 }
  0x11   :  { %16915 = vmatprep.mubr.msk.f32.mxu1 %vm50_vm0, %v35_v13  ;;  %v456_v13 = vunpack.c.0.s8 %v455_v8 }
  0x12   :  { %16904 = vmatmul.mubr.msk.f32.gmra.mxu0 %vm50_vm0, %v28_v14  ;;  %v18042_v14 = vsub.s32 %v424_v9, %v426_v10 }
  0x13   :  { %16906 = vmatprep.mubr.msk.f32.mxu0 %vm50_vm0, %v29_v15 }
  0x14   :  { %16916 = vmatmul.mubr.msk.f32.gmra.mxu1 %vm50_vm0, %v36_v16  ;;  %24257 = vst [vmem:[#allocation23_spill] sm:$0xff] %v18042_v14 }
  0x15   :  { %16918 = vmatprep.mubr.msk.f32.mxu1 %vm50_vm0, %v37_v17 }
  0x16   :  { %16907 = vmatmul.mubr.msk.f32.gmra.mxu0 %vm50_vm0, %v30_v18 }
  0x18   :  { %16919 = vmatmul.mubr.msk.f32.gmra.mxu1 %vm50_vm0, %v38_v19 }
  0xca   :  { %v16899_v21 = vpop.f32.mrf.mxu0 }
  0xcb   :  { %v17802_v22 = vadd.f32 %v16899_v21, %v17799_v20 }
  0xcc   :  { %v16911_v23 = vpop.f32.mrf.mxu1  ;;  %v165_v25 = vpop.f32.mrf.mxu0 }
  0xcd   :  { %v17805_v24 = vadd.f32 %v16911_v23, %v17799_v20  ;;  %2678 = vrot.lane.b32.xlu1 %v17802_v22, %s17675_s13  ;;  %2614 = vrot.lane.b32.xlu0 %v17802_v22, %s17676_s0  ;;  %v17816_v26 = vadd.f32 %v17799_v20, %v165_v25  ;;  %v17842_v29 = vmul.f32 0.35355338, %v17802_v22 }
  0xce   :  { %v205_v27 = vpop.f32.mrf.mxu1  ;;  %v16902_v30 = vpop.f32.mrf.mxu0 }
  0xcf   :  { %24236 = vst [vmem:[#allocation2_spill] sm:$0xff] %v17805_v24  ;;  %24237 = vst [vmem:[#allocation3_spill] sm:$0xff] %v17816_v26  ;;  %v17827_v28 = vadd.f32 %v17799_v20, %v205_v27  ;;  %v17853_v31 = vmul.f32 0.35355338, %v17805_v24  ;;  %v17860_v32 = vadd.f32 %v16902_v30, %v17799_v20  ;;  %v17878_v35 = vmul.f32 0.35355338, %v17816_v26 }
  0xd0   :  { %v16914_v33 = vpop.f32.mrf.mxu1  ;;  %v175_v37 = vpop.f32.mrf.mxu0  ;;  %v18049_v27 = vsub.s32 %v456_v13, %v426_v10 }
  0xd1   :  { %2726 = vrot.lane.b32.xlu1 %v17805_v24, %s17677_s14  ;;  %2646 = vrot.lane.b32.xlu0 %v17802_v22, %s17678_s2  ;;  %24238 = vst [vmem:[#allocation4_spill] sm:$0xff] %v17827_v28  ;;  %24239 = vst [vmem:[#allocation5_spill] sm:$0xff] %v17860_v32  ;;  %v17871_v34 = vadd.f32 %v16914_v33, %v17799_v20  ;;  %v17889_v36 = vmul.f32 0.35355338, %v17827_v28  ;;  %v17896_v38 = vadd.f32 %v17799_v20, %v175_v37 }
  0xd2   :  { %v215_v39 = vpop.f32.mrf.mxu1  ;;  %v17922_v41 = vmul.f32 0.35355338, %v17860_v32  ;;  %v16905_v42 = vpop.f32.mrf.mxu0 }
  0xd3   :  { %24240 = vst [vmem:[#allocation6_spill] sm:$0xff] %v17871_v34  ;;  %24241 = vst [vmem:[#allocation7_spill] sm:$0xff] %v17896_v38  ;;  %v17907_v40 = vadd.f32 %v17799_v20, %v215_v39  ;;  %v17933_v43 = vmul.f32 0.35355338, %v17871_v34  ;;  %v17940_v44 = vadd.f32 %v16905_v42, %v17799_v20  ;;  %v17958_v47 = vmul.f32 0.35355338, %v17896_v38 }
  0xd4   :  { %v16917_v45 = vpop.f32.mrf.mxu1  ;;  %v185_v51 = vpop.f32.mrf.mxu0 }
  0xd5   :  { %2630 = vrot.lane.b32.xlu0 %v17805_v24, %s17676_s0  ;;  %2612 = vrot.lane.b32.xlu1 %v17816_v26, %s17676_s0  ;;  %24242 = vst [vmem:[#allocation8_spill] sm:$0xff] %v17907_v40  ;;  %24243 = vst [vmem:[#allocation9_spill] sm:$0xff] %v17940_v44  ;;  %v17951_v46 = vadd.f32 %v16917_v45, %v17799_v20  ;;  %v17973_v50 = vmul.f32 0.35355338, %v17907_v40  ;;  %v17980_v52 = vadd.f32 %v17799_v20, %v185_v51 }
  0xd6   :  { %v225_v57 = vpop.f32.mrf.mxu1  ;;  %v18030_v6 = vmul.f32 0.35355338, %v17940_v44  ;;  %v16908_v15 = vpop.f32.mrf.mxu0 }
  0xd7   :  { %24244 = vst [vmem:[#allocation10_spill] sm:$0xff] %v17951_v46  ;;  %24245 = vst [vmem:[#allocation11_spill] sm:$0xff] %v17973_v50  ;;  %v17999_v58 = vadd.f32 %v17799_v20, %v225_v57  ;;  %v18045_v18 = vmul.f32 0.35355338, %v17951_v46  ;;  %v18056_v30 = vadd.f32 %v16908_v15, %v17799_v20 }
  0xd8   :  { %24246 = vst [vmem:[#allocation12_spill] sm:$0xff] %v17980_v52  ;;  %v16920_v10 = vpop.f32.mrf.mxu1 }
  0xd9   :  { %2662 = vrot.lane.b32.xlu0 %v17805_v24, %s17678_s2  ;;  %2676 = vrot.lane.b32.xlu1 %v17816_v26, %s17675_s13  ;;  %24249 = vst [vmem:[#allocation15_spill] sm:$0xff] %v17999_v58  ;;  %24258 = vst [vmem:[#allocation24_spill] sm:$0xff] %v18056_v30 }
  0xdd   :  { %2694 = vrot.lane.b32.xlu0 %v17805_v24, %s17675_s13  ;;  %2628 = vrot.lane.b32.xlu1 %v17827_v28, %s17676_s0 }
  0xe1   :  { %2710 = vrot.lane.b32.xlu0 %v17802_v22, %s17677_s14  ;;  %2660 = vrot.lane.b32.xlu1 %v17827_v28, %s17678_s2 }
  0xe5   :  { %2644 = vrot.lane.b32.xlu0 %v17816_v26, %s17678_s2  ;;  %2692 = vrot.lane.b32.xlu1 %v17827_v28, %s17675_s13 }
  0xe9   :  { %2708 = vrot.lane.b32.xlu0 %v17816_v26, %s17677_s14  ;;  %278 = vrot.lane.b32.xlu1 %v17842_v29, %s17676_s0 }
  0xed   :  { %326 = vrot.lane.b32.xlu0 %v17842_v29, %s17678_s2  ;;  %374 = vrot.lane.b32.xlu1 %v17842_v29, %s17675_s13 }
  0xf1   :  { %342 = vrot.lane.b32.xlu0 %v17853_v31, %s17678_s2  ;;  %2724 = vrot.lane.b32.xlu1 %v17827_v28, %s17677_s14 }
  0xf5   :  { %2618 = vrot.lane.b32.xlu0 %v17860_v32, %s17676_s0  ;;  %294 = vrot.lane.b32.xlu1 %v17853_v31, %s17676_s0 }
  0xf9   :  { %2682 = vrot.lane.b32.xlu0 %v17860_v32, %s17675_s13  ;;  %390 = vrot.lane.b32.xlu1 %v17853_v31, %s17675_s13 }
  0xfd   :  { %2634 = vrot.lane.b32.xlu0 %v17871_v34, %s17676_s0  ;;  %2650 = vrot.lane.b32.xlu1 %v17860_v32, %s17678_s2 }
 0x101   :  { %2666 = vrot.lane.b32.xlu0 %v17871_v34, %s17678_s2  ;;  %324 = vrot.lane.b32.xlu1 %v17878_v35, %s17678_s2 }
 0x105   :  { %2698 = vrot.lane.b32.xlu0 %v17871_v34, %s17675_s13  ;;  %2714 = vrot.lane.b32.xlu1 %v17860_v32, %s17677_s14 }
 0x109   :  { %340 = vrot.lane.b32.xlu1 %v17889_v36, %s17678_s2  ;;  %276 = vrot.lane.b32.xlu0 %v17878_v35, %s17676_s0 }
 0x10d   :  { %2616 = vrot.lane.b32.xlu1 %v17896_v38, %s17676_s0  ;;  %372 = vrot.lane.b32.xlu0 %v17878_v35, %s17675_s13 }
 0x111   :  { %2680 = vrot.lane.b32.xlu1 %v17896_v38, %s17675_s13  ;;  %2730 = vrot.lane.b32.xlu0 %v17871_v34, %s17677_s14 }
 0x115   :  { %2632 = vrot.lane.b32.xlu1 %v17907_v40, %s17676_s0  ;;  %292 = vrot.lane.b32.xlu0 %v17889_v36, %s17676_s0 }
 0x119   :  { %2664 = vrot.lane.b32.xlu1 %v17907_v40, %s17678_s2  ;;  %388 = vrot.lane.b32.xlu0 %v17889_v36, %s17675_s13 }
 0x11d   :  { %2696 = vrot.lane.b32.xlu1 %v17907_v40, %s17675_s13  ;;  %2648 = vrot.lane.b32.xlu0 %v17896_v38, %s17678_s2 }
 0x121   :  { %282 = vrot.lane.b32.xlu1 %v17922_v41, %s17676_s0  ;;  %2712 = vrot.lane.b32.xlu0 %v17896_v38, %s17677_s14 }
 0x125   :  { %378 = vrot.lane.b32.xlu1 %v17922_v41, %s17675_s13  ;;  %330 = vrot.lane.b32.xlu0 %v17922_v41, %s17678_s2 }
 0x129   :  { %2728 = vrot.lane.b32.xlu1 %v17907_v40, %s17677_s14  ;;  %346 = vrot.lane.b32.xlu0 %v17933_v43, %s17678_s2 }
 0x12d   :  { %298 = vrot.lane.b32.xlu1 %v17933_v43, %s17676_s0  ;;  %2622 = vrot.lane.b32.xlu0 %v17940_v44, %s17676_s0 }
 0x131   :  { %394 = vrot.lane.b32.xlu1 %v17933_v43, %s17675_s13  ;;  %2686 = vrot.lane.b32.xlu0 %v17940_v44, %s17675_s13 }
 0x135   :  { %2654 = vrot.lane.b32.xlu1 %v17940_v44, %s17678_s2  ;;  %2638 = vrot.lane.b32.xlu0 %v17951_v46, %s17676_s0 }
 0x139   :  { %328 = vrot.lane.b32.xlu1 %v17958_v47, %s17678_s2  ;;  %2670 = vrot.lane.b32.xlu0 %v17951_v46, %s17678_s2 }
 0x13d   :  { %2718 = vrot.lane.b32.xlu1 %v17940_v44, %s17677_s14  ;;  %2702 = vrot.lane.b32.xlu0 %v17951_v46, %s17675_s13 }
 0x13f   :  { %v17968_v48 = vpop.permute.xlu1 %2678  ;;  %v17970_v49 = vpop.permute.xlu0 %2614 }
 0x141   :  { %344 = vrot.lane.b32.xlu1 %v17973_v50, %s17678_s2  ;;  %280 = vrot.lane.b32.xlu0 %v17958_v47, %s17676_s0 }
 0x143   :  { %v17982_v53 = vpop.permute.xlu1 %2726  ;;  %v17984_v54 = vpop.permute.xlu0 %2646 }
 0x144   :  { %24247 = vst [vmem:[#allocation13_spill] sm:$0xff] %v17982_v53 }
 0x145   :  { %2620 = vrot.lane.b32.xlu1 %v17980_v52, %s17676_s0  ;;  %376 = vrot.lane.b32.xlu0 %v17958_v47, %s17675_s13 }
 0x147   :  { %v17990_v55 = vpop.permute.xlu0 %2630  ;;  %v17992_v56 = vpop.permute.xlu1 %2612 }
 0x148   :  { %24248 = vst [vmem:[#allocation14_spill] sm:$0xff] %v17990_v55 }
 0x149   :  { %2684 = vrot.lane.b32.xlu1 %v17980_v52, %s17675_s13  ;;  %2734 = vrot.lane.b32.xlu0 %v17951_v46, %s17677_s14 }
 0x14b   :  { %v18001_v59 = vpop.permute.xlu0 %2662  ;;  %v18003_v60 = vpop.permute.xlu1 %2676 }
 0x14c   :  { %24250 = vst [vmem:[#allocation16_spill] sm:$0xff] %v18001_v59 }
 0x14d   :  { %2636 = vrot.lane.b32.xlu1 %v17999_v58, %s17676_s0  ;;  %296 = vrot.lane.b32.xlu0 %v17973_v50, %s17676_s0 }
 0x14f   :  { %v18009_v61 = vpop.permute.xlu0 %2694  ;;  %v18011_v62 = vpop.permute.xlu1 %2628 }
 0x150   :  { %24251 = vst [vmem:[#allocation17_spill] sm:$0xff] %v18009_v61  ;;  %24252 = vst [vmem:[#allocation18_spill] sm:$0xff] %v18011_v62 }
 0x151   :  { %2668 = vrot.lane.b32.xlu1 %v17999_v58, %s17678_s2  ;;  %392 = vrot.lane.b32.xlu0 %v17973_v50, %s17675_s13 }
 0x153   :  { %v18017_v63 = vpop.permute.xlu0 %2710  ;;  %v18019_v0 = vpop.permute.xlu1 %2660 }
 0x154   :  { %24253 = vst [vmem:[#allocation19_spill] sm:$0xff] %v18017_v63  ;;  %24254 = vst [vmem:[#allocation20_spill] sm:$0xff] %v18019_v0 }
 0x155   :  { %2700 = vrot.lane.b32.xlu1 %v17999_v58, %s17675_s13  ;;  %2652 = vrot.lane.b32.xlu0 %v17980_v52, %s17678_s2 }
 0x157   :  { %v18025_v4 = vpop.permute.xlu0 %2644  ;;  %v18027_v5 = vpop.permute.xlu1 %2692 }
 0x158   :  { %24255 = vst [vmem:[#allocation21_spill] sm:$0xff] %v18027_v5 }
 0x159   :  { %286 = vrot.lane.b32.xlu1 %v18030_v6, %s17676_s0  ;;  %2716 = vrot.lane.b32.xlu0 %v17980_v52, %s17677_s14 }
 0x15b   :  { %v18036_v11 = vpop.permute.xlu0 %2708  ;;  %v279_v12 = vpop.permute.xlu1 %278 }
 0x15c   :  { %24256 = vst [vmem:[#allocation22_spill] sm:$0xff] %v18036_v11 }
 0x15d   :  { %382 = vrot.lane.b32.xlu1 %v18030_v6, %s17675_s13  ;;  %334 = vrot.lane.b32.xlu0 %v18030_v6, %s17678_s2 }
 0x15f   :  { %v327_v16 = vpop.permute.xlu0 %326  ;;  %v375_v17 = vpop.permute.xlu1 %374 }
 0x160   :  { %v488_v19 = vcombine.low %v17842_v29, %v327_v16  ;;  %v489_v21 = vcombine.high %v17842_v29, %v327_v16  ;;  %v504_v23 = vcombine.low %v279_v12, %v375_v17  ;;  %v505_v25 = vcombine.high %v279_v12, %v375_v17 }
 0x161   :  { %2732 = vrot.lane.b32.xlu1 %v17999_v58, %s17677_s14  ;;  %350 = vrot.lane.b32.xlu0 %v18045_v18, %s17678_s2 }
 0x162   :  { %v496_v33 = vrot.slane %v488_v19, %v18042_v14  ;;  %v503_v37 = vrot.slane %v489_v21, %v18042_v14  ;;  %v512_v39 = vrot.slane %v504_v23, %v18042_v14  ;;  %v519_v29 = vrot.slane %v505_v25, %v18042_v14 }
 0x163   :  { %v343_v42 = vpop.permute.xlu0 %342  ;;  %v18062_v45 = vpop.permute.xlu1 %2724  ;;  %v18079_v21 = vadd.f32 %v16920_v10, %v17799_v20  ;;  %v18116_v10 = vmul.f32 0.35355338, %v17980_v52 }
 0x164   :  { %24259 = vst [vmem:[#allocation25_spill] sm:$0xff] %v18062_v45  ;;  %v520_v51 = vcombine.low %v496_v33, %v512_v39  ;;  %v521_v57 = vcombine.high %v496_v33, %v512_v39  ;;  %v536_v1 = vcombine.low %v503_v37, %v519_v29  ;;  %v537_v2 = vcombine.high %v503_v37, %v519_v29 }
 0x165   :  { %302 = vrot.lane.b32.xlu1 %v18045_v18, %s17676_s0  ;;  %2626 = vrot.lane.b32.xlu0 %v18056_v30, %s17676_s0  ;;  %24260 = vst [vmem:[#allocation26_spill] sm:$0xff] %v18079_v21  ;;  %v1032_v39 = vcombine.low %v17853_v31, %v343_v42  ;;  %v1033_v29 = vcombine.high %v17853_v31, %v343_v42  ;;  %24263 = vst [vmem:[#allocation29_spill] sm:$0xff] %v18116_v10 }
 0x166   :  { %v528_v3 = vrot.slane %v520_v51, %v18049_v27  ;;  %v535_v7 = vrot.slane %v521_v57, %v18049_v27  ;;  %v544_v8 = vrot.slane %v536_v1, %v18049_v27  ;;  %v551_v9 = vrot.slane %v537_v2, %v18049_v27 }
 0x167   :  { %v18072_v12 = vpop.permute.xlu0 %2618  ;;  %v295_v13 = vpop.permute.xlu1 %294 }
 0x168   :  { %v1576_v15 = vcombine.low %v528_v3, %v535_v7  ;;  %v16258_v16 = vcombine.high %v528_v3, %v535_v7  ;;  %v1592_v17 = vcombine.low %v544_v8, %v551_v9  ;;  %v16259_v19 = vcombine.high %v544_v8, %v551_v9 }
 0x169   :  { %398 = vrot.lane.b32.xlu1 %v18045_v18, %s17675_s13  ;;  %2690 = vrot.lane.b32.xlu0 %v18056_v30, %s17675_s13 }
 0x16a   :  { %v18082_v23 = vrot.slane %v1576_v15, %v18042_v14  ;;  %v18085_v25 = vrot.slane %v16258_v16, %v18042_v14  ;;  %v18088_v33 = vrot.slane %v1592_v17, %v18042_v14  ;;  %v18091_v37 = vrot.slane %v16259_v19, %v18042_v14 }
 0x16b   :  { %v18095_v51 = vpop.permute.xlu0 %2682  ;;  %v391_v57 = vpop.permute.xlu1 %390  ;;  %v1040_v15 = vrot.slane %v1032_v39, %v18042_v14  ;;  %v1047_v16 = vrot.slane %v1033_v29, %v18042_v14 }
 0x16c   :  { %v1608_v1 = vcombine.low %v18082_v23, %v18085_v25  ;;  %v1624_v3 = vcombine.low %v18088_v33, %v18091_v37  ;;  %v1048_v8 = vcombine.low %v295_v13, %v391_v57  ;;  %v1049_v9 = vcombine.high %v295_v13, %v391_v57 }
 0x16d   :  { %2658 = vrot.lane.b32.xlu1 %v18056_v30, %s17678_s2  ;;  %2642 = vrot.lane.b32.xlu0 %v18079_v21, %s17676_s0 }
 0x16e   :  { %v18110_v31 = vrot.slane %v1608_v1, %v18049_v27  ;;  %v18113_v42 = vrot.slane %v1624_v3, %v18049_v27  ;;  %v1056_v13 = vrot.slane %v1048_v8, %v18042_v14  ;;  %v1063_v17 = vrot.slane %v1049_v9, %v18042_v14 }
 0x16f   :  { %v18122_v19 = vpop.permute.xlu0 %2634  ;;  %v18124_v57 = vpop.permute.xlu1 %2650 }
 0x170   :  { %24261 = vst [vmem:[#allocation27_spill] sm:$0xff] %v18110_v31  ;;  %24262 = vst [vmem:[#allocation28_spill] sm:$0xff] %v18113_v42  ;;  %v1064_v3 = vcombine.low %v1040_v15, %v1056_v13  ;;  %v1065_v7 = vcombine.high %v1040_v15, %v1056_v13  ;;  %v1080_v2 = vcombine.low %v1047_v16, %v1063_v17 }
 0x171   :  { %24264 = vst [vmem:[#allocation30_spill] sm:$0xff] %v18122_v19  ;;  %v1081_v40 = vcombine.high %v1047_v16, %v1063_v17  ;;  %332 = vrot.lane.b32.xlu1 %v18116_v10, %s17678_s2  ;;  %2674 = vrot.lane.b32.xlu0 %v18079_v21, %s17678_s2 }
 0x172   :  { %v1072_v39 = vrot.slane %v1064_v3, %v18049_v27  ;;  %v1079_v29 = vrot.slane %v1065_v7, %v18049_v27  ;;  %v1088_v8 = vrot.slane %v1080_v2, %v18049_v27  ;;  %v18143_v3 = vmul.f32 0.35355338, %v17999_v58 }
 0x173   :  { %v1095_v9 = vrot.slane %v1081_v40, %v18049_v27  ;;  %v18136_v34 = vpop.permute.xlu0 %2666  ;;  %v325_v1 = vpop.permute.xlu1 %324 }
 0x174   :  { %24265 = vst [vmem:[#allocation31_spill] sm:$0xff] %v18136_v34  ;;  %v2120_v15 = vcombine.low %v1072_v39, %v1079_v29  ;;  %v16274_v13 = vcombine.high %v1072_v39, %v1079_v29  ;;  %24266 = vst [vmem:[#allocation32_spill] sm:$0xff] %v18143_v3  ;;  %v420_v45 = vcombine.low %v17878_v35, %v325_v1 }
 0x175   :  { %v2136_v16 = vcombine.low %v1088_v8, %v1095_v9  ;;  %v16275_v17 = vcombine.high %v1088_v8, %v1095_v9  ;;  %2722 = vrot.lane.b32.xlu1 %v18056_v30, %s17677_s14  ;;  %2706 = vrot.lane.b32.xlu0 %v18079_v21, %s17675_s13  ;;  %v195_v9 = vpop.f32.mrf.mxu0  ;;  %v421_v24 = vcombine.high %v17878_v35, %v325_v1 }
 0x176   :  { %v18146_v2 = vrot.slane %v2120_v15, %v18042_v14  ;;  %v18149_v40 = vrot.slane %v16274_v13, %v18042_v14  ;;  %v428_v53 = vrot.slane %v420_v45, %v18042_v14 }
 0x177   :  { %v18152_v7 = vrot.slane %v2136_v16, %v18042_v14  ;;  %v18155_v39 = vrot.slane %v16275_v17, %v18042_v14  ;;  %v18157_v29 = vpop.permute.xlu0 %2698  ;;  %v18159_v8 = vpop.permute.xlu1 %2714  ;;  %v18174_v17 = vadd.f32 %v17799_v20, %v195_v9  ;;  %v435_v52 = vrot.slane %v421_v24, %v18042_v14 }
 0x178   :  { %24268 = vst [vmem:[#allocation34_spill] sm:$0xff] %v18157_v29  ;;  %24269 = vst [vmem:[#allocation35_spill] sm:$0xff] %v18159_v8  ;;  %v2152_v58 = vcombine.low %v18146_v2, %v18149_v40 }
 0x179   :  { %24267 = vst [vmem:[#allocation33_spill] sm:$0xff] %v18155_v39  ;;  %v2168_v13 = vcombine.low %v18152_v7, %v18155_v39  ;;  %348 = vrot.lane.b32.xlu1 %v18143_v3, %s17678_s2  ;;  %284 = vrot.lane.b32.xlu0 %v18116_v10, %s17676_s0  ;;  %24270 = vst [vmem:[#allocation36_spill] sm:$0xff] %v18174_v17 }
 0x17a   :  { %v18177_v46 = vrot.slane %v2152_v58, %v18049_v27 }
 0x17b   :  { %v18180_v15 = vrot.slane %v2168_v13, %v18049_v27  ;;  %v341_v28 = vpop.permute.xlu1 %340  ;;  %v277_v8 = vpop.permute.xlu0 %276 }
 0x17c   :  { %24271 = vst [vmem:[#allocation37_spill] sm:$0xff] %v18177_v46 }
 0x17d   :  { %24272 = vst [vmem:[#allocation38_spill] sm:$0xff] %v18180_v15  ;;  %2624 = vrot.lane.b32.xlu1 %v18174_v17, %s17676_s0  ;;  %380 = vrot.lane.b32.xlu0 %v18116_v10, %s17675_s13  ;;  %v235_v15 = vpop.f32.mrf.mxu1 }
 0x17f   :  { %v18190_v58 = vpop.permute.xlu1 %2616  ;;  %v373_v9 = vpop.permute.xlu0 %372 }
 0x180   :  { %v436_v13 = vcombine.low %v277_v8, %v373_v9  ;;  %v437_v11 = vcombine.high %v277_v8, %v373_v9 }
 0x181   :  { %2656 = vrot.lane.b32.xlu1 %v18174_v17, %s17678_s2  ;;  %2738 = vrot.lane.b32.xlu0 %v18079_v21, %s17677_s14 }
 0x182   :  { %v444_v16 = vrot.slane %v436_v13, %v18042_v14  ;;  %v451_v38 = vrot.slane %v437_v11, %v18042_v14 }
 0x183   :  { %v18200_v35 = vpop.permute.xlu1 %2680  ;;  %v18202_v1 = vpop.permute.xlu0 %2730 }
 0x184   :  { %24273 = vst [vmem:[#allocation39_spill] sm:$0xff] %v18202_v1  ;;  %v452_v63 = vcombine.low %v428_v53, %v444_v16  ;;  %v453_v8 = vcombine.high %v428_v53, %v444_v16  ;;  %v468_v9 = vcombine.low %v435_v52, %v451_v38  ;;  %v469_v46 = vcombine.high %v435_v52, %v451_v38 }
 0x185   :  { %2688 = vrot.lane.b32.xlu1 %v18174_v17, %s17675_s13  ;;  %300 = vrot.lane.b32.xlu0 %v18143_v3, %s17676_s0  ;;  %v18213_v1 = vadd.f32 %v17799_v20, %v235_v15 }
 0x186   :  { %v460_v24 = vrot.slane %v452_v63, %v18049_v27  ;;  %v467_v45 = vrot.slane %v453_v8, %v18049_v27  ;;  %v476_v11 = vrot.slane %v468_v9, %v18049_v27  ;;  %v483_v13 = vrot.slane %v469_v46, %v18049_v27 }
 0x187   :  { %24274 = vst [vmem:[#allocation40_spill] sm:$0xff] %v18213_v1  ;;  %v18215_v53 = vpop.permute.xlu1 %2632  ;;  %v293_v38 = vpop.permute.xlu0 %292  ;;  %v964_v63 = vcombine.low %v17889_v36, %v341_v28  ;;  %v965_v8 = vcombine.high %v17889_v36, %v341_v28 }
 0x188   :  { %24275 = vst [vmem:[#allocation41_spill] sm:$0xff] %v18215_v53  ;;  %v1508_v52 = vcombine.low %v460_v24, %v467_v45  ;;  %v16256_v16 = vcombine.high %v460_v24, %v467_v45  ;;  %v1524_v31 = vcombine.low %v476_v11, %v483_v13  ;;  %v16257_v42 = vcombine.high %v476_v11, %v483_v13 }
 0x189   :  { %2640 = vrot.lane.b32.xlu1 %v18213_v1, %s17676_s0  ;;  %396 = vrot.lane.b32.xlu0 %v18143_v3, %s17675_s13 }
 0x18a   :  { %v18224_v20 = vrot.slane %v1508_v52, %v18042_v14  ;;  %v18227_v46 = vrot.slane %v16256_v16, %v18042_v14  ;;  %v18230_v15 = vrot.slane %v1524_v31, %v18042_v14  ;;  %v18233_v9 = vrot.slane %v16257_v42, %v18042_v14 }
 0x18b   :  { %v18235_v24 = vpop.permute.xlu1 %2664  ;;  %v389_v28 = vpop.permute.xlu0 %388  ;;  %v972_v52 = vrot.slane %v964_v63, %v18042_v14  ;;  %v979_v16 = vrot.slane %v965_v8, %v18042_v14  ;;  %v18260_v8 = vmul.f32 0.35355338, %v18056_v30 }
 0x18c   :  { %24276 = vst [vmem:[#allocation42_spill] sm:$0xff] %v18235_v24  ;;  %v980_v36 = vcombine.low %v293_v38, %v389_v28  ;;  %v981_v45 = vcombine.high %v293_v38, %v389_v28  ;;  %v1540_v11 = vcombine.low %v18224_v20, %v18227_v46  ;;  %v1556_v13 = vcombine.low %v18230_v15, %v18233_v9 }
 0x18d   :  { %2704 = vrot.lane.b32.xlu1 %v18213_v1, %s17675_s13  ;;  %2672 = vrot.lane.b32.xlu0 %v18213_v1, %s17678_s2 }
 0x18e   :  { %v988_v31 = vrot.slane %v980_v36, %v18042_v14  ;;  %v995_v42 = vrot.slane %v981_v45, %v18042_v14  ;;  %v18250_v38 = vrot.slane %v1540_v11, %v18049_v27  ;;  %v18253_v28 = vrot.slane %v1556_v13, %v18049_v27 }
 0x18f   :  { %v18255_v44 = vpop.permute.xlu1 %2696  ;;  %v18257_v63 = vpop.permute.xlu0 %2648 }
 0x190   :  { %24277 = vst [vmem:[#allocation43_spill] sm:$0xff] %v18250_v38  ;;  %24278 = vst [vmem:[#allocation44_spill] sm:$0xff] %v18253_v28  ;;  %v996_v36 = vcombine.low %v972_v52, %v988_v31  ;;  %v997_v32 = vcombine.high %v972_v52, %v988_v31  ;;  %v1012_v45 = vcombine.low %v979_v16, %v995_v42 }
 0x191   :  { %24279 = vst [vmem:[#allocation45_spill] sm:$0xff] %v18255_v44  ;;  %24280 = vst [vmem:[#allocation46_spill] sm:$0xff] %v18257_v63  ;;  %v1013_v26 = vcombine.high %v979_v16, %v995_v42  ;;  %290 = vrot.lane.b32.xlu1 %v18260_v8, %s17676_s0  ;;  %v1572_v11 = vcombine.low %v18250_v38, %v18253_v28  ;;  %2720 = vrot.lane.b32.xlu0 %v18174_v17, %s17677_s14 }
 0x192   :  { %v1004_v10 = vrot.slane %v996_v36, %v18049_v27  ;;  %v1011_v50 = vrot.slane %v997_v32, %v18049_v27  ;;  %v1020_v30 = vrot.slane %v1012_v45, %v18049_v27 }
 0x193   :  { %v1027_v3 = vrot.slane %v1013_v26, %v18049_v27  ;;  %16925 = vmatprep.mubr.msk.f32.mxu1 %vm7444_vm1, %v1572_v11  ;;  %v283_v52 = vpop.permute.xlu1 %282  ;;  %v18275_v16 = vpop.permute.xlu0 %2712 }
 0x194   :  { %24281 = vst [vmem:[#allocation47_spill] sm:$0xff] %v18275_v16  ;;  %v2052_v31 = vcombine.low %v1004_v10, %v1011_v50  ;;  %v16272_v42 = vcombine.high %v1004_v10, %v1011_v50  ;;  %v18294_v10 = vmul.f32 0.35355338, %v18079_v21 }
 0x195   :  { %v2068_v39 = vcombine.low %v1020_v30, %v1027_v3  ;;  %v16273_v13 = vcombine.high %v1020_v30, %v1027_v3  ;;  %386 = vrot.lane.b32.xlu1 %v18260_v8, %s17675_s13  ;;  %338 = vrot.lane.b32.xlu0 %v18260_v8, %s17678_s2 }
 0x196   :  { %v18282_v26 = vrot.slane %v2052_v31, %v18042_v14  ;;  %v18285_v32 = vrot.slane %v16272_v42, %v18042_v14 }
 0x197   :  { %v18288_v36 = vrot.slane %v2068_v39, %v18042_v14  ;;  %v18291_v45 = vrot.slane %v16273_v13, %v18042_v14  ;;  %v379_v50 = vpop.permute.xlu1 %378  ;;  %v331_v30 = vpop.permute.xlu0 %330 }
 0x198   :  { %24282 = vst [vmem:[#allocation48_spill] sm:$0xff] %v18282_v26  ;;  %24283 = vst [vmem:[#allocation49_spill] sm:$0xff] %v18285_v32  ;;  %v640_v3 = vcombine.low %v283_v52, %v379_v50  ;;  %v641_v11 = vcombine.high %v283_v52, %v379_v50  ;;  %v624_v28 = vcombine.low %v17922_v41, %v331_v30 }
 0x199   :  { %24284 = vst [vmem:[#allocation50_spill] sm:$0xff] %v18288_v36  ;;  %24285 = vst [vmem:[#allocation51_spill] sm:$0xff] %v18291_v45  ;;  %v625_v31 = vcombine.high %v17922_v41, %v331_v30  ;;  %2736 = vrot.lane.b32.xlu1 %v18213_v1, %s17677_s14  ;;  %v2084_v39 = vcombine.low %v18282_v26, %v18285_v32  ;;  %v2100_v13 = vcombine.low %v18288_v36, %v18291_v45 }
 0x19a   :  { %v648_v42 = vrot.slane %v640_v3, %v18042_v14  ;;  %v655_v21 = vrot.slane %v641_v11, %v18042_v14  ;;  %v632_v38 = vrot.slane %v624_v28, %v18042_v14  ;;  %354 = vrot.lane.b32.xlu0 %v18294_v10, %s17678_s2  ;;  %v18313_v30 = vmul.f32 0.35355338, %v18174_v17 }
 0x19b   :  { %v639_v52 = vrot.slane %v625_v31, %v18042_v14  ;;  %v18310_v41 = vpop.permute.xlu1 %2728  ;;  %v347_v50 = vpop.permute.xlu0 %346  ;;  %v18316_v26 = vrot.slane %v2084_v39, %v18049_v27  ;;  %v18319_v3 = vrot.slane %v2100_v13, %v18049_v27 }
 0x19c   :  { %24286 = vst [vmem:[#allocation52_spill] sm:$0xff] %v18310_v41  ;;  %v656_v11 = vcombine.low %v632_v38, %v648_v42  ;;  %v657_v36 = vcombine.high %v632_v38, %v648_v42 }
 0x19d   :  { %24287 = vst [vmem:[#allocation53_spill] sm:$0xff] %v18316_v26  ;;  %24288 = vst [vmem:[#allocation54_spill] sm:$0xff] %v18319_v3  ;;  %v672_v28 = vcombine.low %v639_v52, %v655_v21  ;;  %v673_v45 = vcombine.high %v639_v52, %v655_v21  ;;  %306 = vrot.lane.b32.xlu1 %v18294_v10, %s17676_s0  ;;  %v2116_v31 = vcombine.low %v18316_v26, %v18319_v3 }
 0x19e   :  { %v664_v41 = vrot.slane %v656_v11, %v18049_v27  ;;  %v671_v39 = vrot.slane %v657_v36, %v18049_v27  ;;  %288 = vrot.lane.b32.xlu0 %v18313_v30, %s17676_s0  ;;  %v24289_v36 = vcombine.high %v18082_v23, %v18085_v25  ;;  %v24291_v11 = vcombine.high %v18088_v33, %v18091_v37 }
 0x19f   :  { %v680_v13 = vrot.slane %v672_v28, %v18049_v27  ;;  %v687_v16 = vrot.slane %v673_v45, %v18049_v27  ;;  %16953 = vmatprep.mubr.msk.f32.mxu0 %vm7444_vm1, %v2116_v31  ;;  %v299_v21 = vpop.permute.xlu1 %298  ;;  %v18334_v38 = vpop.permute.xlu0 %2622  ;;  %v1168_v23 = vcombine.low %v17933_v43, %v347_v50  ;;  %v1169_v25 = vcombine.high %v17933_v43, %v347_v50 }
 0x1a0   :  { %v1712_v42 = vcombine.low %v664_v41, %v671_v39  ;;  %v16262_v52 = vcombine.high %v664_v41, %v671_v39  ;;  %v18342_v45 = vrot.slane %v24289_v36, %v18049_v27  ;;  %v18348_v28 = vrot.slane %v24291_v11, %v18049_v27 }
 0x1a1   :  { %v1728_v17 = vcombine.low %v680_v13, %v687_v16  ;;  %v16263_v32 = vcombine.high %v680_v13, %v687_v16  ;;  %402 = vrot.lane.b32.xlu1 %v18294_v10, %s17675_s13  ;;  %v1541_v43 = vcombine.high %v18224_v20, %v18227_v46  ;;  %v1557_v50 = vcombine.high %v18230_v15, %v18233_v9 }
 0x1a2   :  { %24290 = vst [vmem:[#allocation55_spill] sm:$0xff] %v18342_v45  ;;  %24292 = vst [vmem:[#allocation56_spill] sm:$0xff] %v18348_v28  ;;  %v18351_v31 = vrot.slane %v1712_v42, %v18042_v14  ;;  %v18354_v16 = vrot.slane %v16262_v52, %v18042_v14  ;;  %384 = vrot.lane.b32.xlu0 %v18313_v30, %s17675_s13  ;;  %v18375_v42 = vmul.f32 0.35355338, %v18213_v1 }
 0x1a3   :  { %v18357_v41 = vrot.slane %v1728_v17, %v18042_v14  ;;  %v18360_v39 = vrot.slane %v16263_v32, %v18042_v14  ;;  %v395_v33 = vpop.permute.xlu1 %394  ;;  %v18366_v37 = vpop.permute.xlu0 %2686  ;;  %v1176_v11 = vrot.slane %v1168_v23, %v18042_v14  ;;  %v1183_v32 = vrot.slane %v1169_v25, %v18042_v14 }
 0x1a4   :  { %24293 = vst [vmem:[#allocation57_spill] sm:$0xff] %v18351_v31  ;;  %24294 = vst [vmem:[#allocation58_spill] sm:$0xff] %v18354_v16  ;;  %v1184_v52 = vcombine.low %v299_v21, %v395_v33  ;;  %v1185_v36 = vcombine.high %v299_v21, %v395_v33  ;;  %v18394_v1 = vrot.slane %v1541_v43, %v18049_v27 }
 0x1a5   :  { %24295 = vst [vmem:[#allocation59_spill] sm:$0xff] %v18357_v41  ;;  %24296 = vst [vmem:[#allocation60_spill] sm:$0xff] %v18360_v39  ;;  %336 = vrot.lane.b32.xlu1 %v18313_v30, %s17678_s2  ;;  %v18397_v20 = vrot.slane %v1557_v50, %v18049_v27  ;;  %v1744_v25 = vcombine.low %v18351_v31, %v18354_v16 }
 0x1a6   :  { %24297 = vst [vmem:[#allocation61_spill] sm:$0xff] %v18375_v42  ;;  %304 = vrot.lane.b32.xlu0 %v18375_v42, %s17676_s0  ;;  %v1192_v17 = vrot.slane %v1184_v52, %v18042_v14  ;;  %v1199_v21 = vrot.slane %v1185_v36, %v18042_v14  ;;  %24299 = vst [vmem:[#allocation63_spill] sm:$0xff] %v18394_v1  ;;  %v1760_v52 = vcombine.low %v18357_v41, %v18360_v39 }
 0x1a7   :  { %v18389_v33 = vpop.permute.xlu1 %2654  ;;  %v18391_v13 = vpop.permute.xlu0 %2638  ;;  %24300 = vst [vmem:[#allocation64_spill] sm:$0xff] %v18397_v20 }
 0x1a8   :  { %24298 = vst [vmem:[#allocation62_spill] sm:$0xff] %v18391_v13  ;;  %v1200_v46 = vcombine.low %v1176_v11, %v1192_v17  ;;  %v1201_v15 = vcombine.high %v1176_v11, %v1192_v17  ;;  %v1216_v9 = vcombine.low %v1183_v32, %v1199_v21  ;;  %v1217_v23 = vcombine.high %v1183_v32, %v1199_v21 }
 0x1a9   :  { %352 = vrot.lane.b32.xlu1 %v18375_v42, %s17678_s2 }
 0x1aa   :  { %400 = vrot.lane.b32.xlu0 %v18375_v42, %s17675_s13  ;;  %v1208_v43 = vrot.slane %v1200_v46, %v18049_v27  ;;  %v1215_v17 = vrot.slane %v1201_v15, %v18049_v27  ;;  %v1224_v32 = vrot.slane %v1216_v9, %v18049_v27  ;;  %v1231_v50 = vrot.slane %v1217_v23, %v18049_v27 }
 0x1ab   :  { %v329_v11 = vpop.permute.xlu1 %328  ;;  %v18413_v21 = vpop.permute.xlu0 %2670  ;;  %v18420_v46 = vrot.slane %v1744_v25, %v18049_v27  ;;  %v18423_v15 = vrot.slane %v1760_v52, %v18049_v27 }
 0x1ac   :  { %24301 = vst [vmem:[#allocation65_spill] sm:$0xff] %v18413_v21  ;;  %v2256_v16 = vcombine.low %v1208_v43, %v1215_v17  ;;  %v16278_v31 = vcombine.high %v1208_v43, %v1215_v17  ;;  %v2272_v39 = vcombine.low %v1224_v32, %v1231_v50  ;;  %v16279_v41 = vcombine.high %v1224_v32, %v1231_v50 }
 0x1ad   :  { %5078 = vrot.lane.b32.xlu1 %v17802_v22, %s17681_s15  ;;  %24302 = vst [vmem:[#allocation66_spill] sm:$0xff] %v18420_v46  ;;  %24303 = vst [vmem:[#allocation67_spill] sm:$0xff] %v18423_v15  ;;  %v556_v52 = vcombine.low %v17958_v47, %v329_v11  ;;  %v557_v50 = vcombine.high %v17958_v47, %v329_v11 }
 0x1ae   :  { %2774 = vrot.lane.b32.xlu0 %v17984_v54, %s17677_s14  ;;  %v18426_v9 = vrot.slane %v2256_v16, %v18042_v14  ;;  %v18429_v23 = vrot.slane %v16278_v31, %v18042_v14  ;;  %v18432_v43 = vrot.slane %v2272_v39, %v18042_v14  ;;  %v18435_v22 = vrot.slane %v16279_v41, %v18042_v14 }
 0x1af   :  { %v18437_v17 = vpop.permute.xlu1 %2718  ;;  %v18439_v32 = vpop.permute.xlu0 %2702  ;;  %v564_v31 = vrot.slane %v556_v52, %v18042_v14  ;;  %v571_v45 = vrot.slane %v557_v50, %v18042_v14 }
 0x1b0   :  { %24304 = vst [vmem:[#allocation68_spill] sm:$0xff] %v18426_v9  ;;  %24305 = vst [vmem:[#allocation69_spill] sm:$0xff] %v18429_v23 }
 0x1b1   :  { %24306 = vst [vmem:[#allocation70_spill] sm:$0xff] %v18432_v43  ;;  %24307 = vst [vmem:[#allocation71_spill] sm:$0xff] %v18435_v22  ;;  %2742 = vrot.lane.b32.xlu1 %v17970_v49, %s17677_s14 }
 0x1b2   :  { %24308 = vst [vmem:[#allocation72_spill] sm:$0xff] %v18437_v17  ;;  %24309 = vst [vmem:[#allocation73_spill] sm:$0xff] %v18439_v32  ;;  %2772 = vrot.lane.b32.xlu0 %v18025_v4, %s17677_s14 }
 0x1b3   :  { %v18451_v41 = vpop.permute.xlu1 %344  ;;  %v281_v39 = vpop.permute.xlu0 %280 }
 0x1b5   :  { %2806 = vrot.lane.b32.xlu1 %v17968_v48, %s17677_s14 }
 0x1b6   :  { %2746 = vrot.lane.b32.xlu0 %v18072_v12, %s17677_s14 }
 0x1b7   :  { %v18459_v16 = vpop.permute.xlu1 %2620  ;;  %v377_v25 = vpop.permute.xlu0 %376 }
 0x1b8   :  { %v572_v36 = vcombine.low %v281_v39, %v377_v25  ;;  %v573_v28 = vcombine.high %v281_v39, %v377_v25 }
 0x1b9   :  { %2758 = vrot.lane.b32.xlu1 %v17990_v55, %s17677_s14 }
 0x1ba   :  { %v580_v20 = vrot.slane %v572_v36, %v18042_v14  ;;  %v587_v1 = vrot.slane %v573_v28, %v18042_v14  ;;  %2810 = vrot.lane.b32.xlu0 %v18095_v51, %s17677_s14 }
 0x1bb   :  { %v18469_v47 = vpop.permute.xlu1 %2684  ;;  %v18471_v11 = vpop.permute.xlu0 %2734 }
 0x1bc   :  { %24310 = vst [vmem:[#allocation74_spill] sm:$0xff] %v18469_v47  ;;  %24311 = vst [vmem:[#allocation75_spill] sm:$0xff] %v18471_v11  ;;  %v588_v3 = vcombine.low %v564_v31, %v580_v20  ;;  %v589_v25 = vcombine.high %v564_v31, %v580_v20  ;;  %v604_v39 = vcombine.low %v571_v45, %v587_v1 }
 0x1bd   :  { %v605_v26 = vcombine.high %v571_v45, %v587_v1  ;;  %2790 = vrot.lane.b32.xlu1 %v18001_v59, %s17677_s14 }
 0x1be   :  { %v596_v52 = vrot.slane %v588_v3, %v18049_v27  ;;  %v603_v36 = vrot.slane %v589_v25, %v18049_v27  ;;  %v612_v28 = vrot.slane %v604_v39, %v18049_v27  ;;  %2762 = vrot.lane.b32.xlu0 %v18122_v19, %s17677_s14 }
 0x1bf   :  { %v619_v50 = vrot.slane %v605_v26, %v18049_v27  ;;  %v18481_v17 = vpop.permute.xlu1 %2636  ;;  %v18483_v11 = vpop.permute.xlu0 %296 }
 0x1c0   :  { %24312 = vst [vmem:[#allocation76_spill] sm:$0xff] %v18481_v17  ;;  %v1644_v20 = vcombine.low %v596_v52, %v603_v36  ;;  %v16260_v1 = vcombine.high %v596_v52, %v603_v36 }
 0x1c1   :  { %v1660_v45 = vcombine.low %v612_v28, %v619_v50  ;;  %v16261_v31 = vcombine.high %v612_v28, %v619_v50  ;;  %2822 = vrot.lane.b32.xlu1 %v18009_v61, %s17677_s14 }
 0x1c2   :  { %2794 = vrot.lane.b32.xlu0 %v18136_v34, %s17677_s14  ;;  %v18490_v3 = vrot.slane %v1644_v20, %v18042_v14  ;;  %v18493_v26 = vrot.slane %v16260_v1, %v18042_v14 }
 0x1c3   :  { %v18496_v25 = vrot.slane %v1660_v45, %v18042_v14  ;;  %v18499_v39 = vrot.slane %v16261_v31, %v18042_v14  ;;  %v18501_v52 = vpop.permute.xlu1 %2668  ;;  %v18503_v36 = vpop.permute.xlu0 %392 }
 0x1c4   :  { %24313 = vst [vmem:[#allocation77_spill] sm:$0xff] %v18490_v3  ;;  %24314 = vst [vmem:[#allocation78_spill] sm:$0xff] %v18493_v26  ;;  %v1676_v28 = vcombine.low %v18490_v3, %v18493_v26 }
 0x1c5   :  { %24315 = vst [vmem:[#allocation79_spill] sm:$0xff] %v18496_v25  ;;  %24316 = vst [vmem:[#allocation80_spill] sm:$0xff] %v18499_v39  ;;  %v1692_v50 = vcombine.low %v18496_v25, %v18499_v39  ;;  %2740 = vrot.lane.b32.xlu1 %v17992_v56, %s17677_s14 }
 0x1c6   :  { %24317 = vst [vmem:[#allocation81_spill] sm:$0xff] %v18501_v52  ;;  %2826 = vrot.lane.b32.xlu0 %v18157_v29, %s17677_s14  ;;  %v18514_v20 = vrot.slane %v1676_v28, %v18049_v27 }
 0x1c7   :  { %v18517_v1 = vrot.slane %v1692_v50, %v18049_v27  ;;  %v18519_v45 = vpop.permute.xlu1 %2700  ;;  %v18521_v31 = vpop.permute.xlu0 %2652 }
 0x1c8   :  { %24318 = vst [vmem:[#allocation82_spill] sm:$0xff] %v18514_v20  ;;  %24320 = vst [vmem:[#allocation84_spill] sm:$0xff] %v18519_v45 }
 0x1c9   :  { %24319 = vst [vmem:[#allocation83_spill] sm:$0xff] %v18517_v1  ;;  %2804 = vrot.lane.b32.xlu1 %v18003_v60, %s17677_s14 }
 0x1ca   :  { %2776 = vrot.lane.b32.xlu0 %v18257_v63, %s17677_s14 }
 0x1cb   :  { %v287_v29 = vpop.permute.xlu1 %286  ;;  %v18529_v19 = vpop.permute.xlu0 %2716 }
 0x1cc   :  { %24321 = vst [vmem:[#allocation85_spill] sm:$0xff] %v18529_v19 }
 0x1cd   :  { %2756 = vrot.lane.b32.xlu1 %v18011_v62, %s17677_s14 }
 0x1ce   :  { %2750 = vrot.lane.b32.xlu0 %v18334_v38, %s17677_s14 }
 0x1cf   :  { %v383_v28 = vpop.permute.xlu1 %382  ;;  %v335_v50 = vpop.permute.xlu0 %334 }
 0x1d0   :  { %v776_v25 = vcombine.low %v287_v29, %v383_v28  ;;  %v777_v39 = vcombine.high %v287_v29, %v383_v28  ;;  %v760_v3 = vcombine.low %v18030_v6, %v335_v50  ;;  %v761_v34 = vcombine.high %v18030_v6, %v335_v50 }
 0x1d1   :  { %2788 = vrot.lane.b32.xlu1 %v18019_v0, %s17677_s14 }
 0x1d2   :  { %v784_v26 = vrot.slane %v776_v25, %v18042_v14  ;;  %v791_v19 = vrot.slane %v777_v39, %v18042_v14  ;;  %v768_v62 = vrot.slane %v760_v3, %v18042_v14  ;;  %v775_v61 = vrot.slane %v761_v34, %v18042_v14  ;;  %2814 = vrot.lane.b32.xlu0 %v18366_v37, %s17677_s14 }
 0x1d3   :  { %v18545_v59 = vpop.permute.xlu1 %2732  ;;  %v351_v29 = vpop.permute.xlu0 %350 }
 0x1d4   :  { %24322 = vst [vmem:[#allocation86_spill] sm:$0xff] %v18545_v59  ;;  %v792_v28 = vcombine.low %v768_v62, %v784_v26  ;;  %v793_v55 = vcombine.high %v768_v62, %v784_v26  ;;  %v808_v6 = vcombine.low %v775_v61, %v791_v19  ;;  %v809_v50 = vcombine.high %v775_v61, %v791_v19 }
 0x1d5   :  { %2820 = vrot.lane.b32.xlu1 %v18027_v5, %s17677_s14 }
 0x1d6   :  { %v800_v25 = vrot.slane %v792_v28, %v18049_v27  ;;  %v807_v39 = vrot.slane %v793_v55, %v18049_v27  ;;  %v816_v3 = vrot.slane %v808_v6, %v18049_v27  ;;  %v823_v34 = vrot.slane %v809_v50, %v18049_v27  ;;  %2766 = vrot.lane.b32.xlu0 %v18391_v13, %s17677_s14 }
 0x1d7   :  { %v303_v59 = vpop.permute.xlu1 %302  ;;  %v18555_v0 = vpop.permute.xlu0 %2626 }
 0x1d8   :  { %24323 = vst [vmem:[#allocation87_spill] sm:$0xff] %v18555_v0  ;;  %v1848_v62 = vcombine.low %v800_v25, %v807_v39  ;;  %v16266_v26 = vcombine.high %v800_v25, %v807_v39  ;;  %v1864_v61 = vcombine.low %v816_v3, %v823_v34  ;;  %v16267_v19 = vcombine.high %v816_v3, %v823_v34 }
 0x1d9   :  { %2778 = vrot.lane.b32.xlu1 %v18124_v57, %s17677_s14  ;;  %v1304_v25 = vcombine.low %v18045_v18, %v351_v29  ;;  %v1305_v39 = vcombine.high %v18045_v18, %v351_v29 }
 0x1da   :  { %v18560_v28 = vrot.slane %v1848_v62, %v18042_v14  ;;  %v18563_v55 = vrot.slane %v16266_v26, %v18042_v14  ;;  %v18566_v6 = vrot.slane %v1864_v61, %v18042_v14  ;;  %v18569_v50 = vrot.slane %v16267_v19, %v18042_v14  ;;  %2798 = vrot.lane.b32.xlu0 %v18413_v21, %s17677_s14 }
 0x1db   :  { %v399_v3 = vpop.permute.xlu1 %398  ;;  %v18575_v34 = vpop.permute.xlu0 %2690  ;;  %v1312_v19 = vrot.slane %v1304_v25, %v18042_v14  ;;  %v1319_v18 = vrot.slane %v1305_v39, %v18042_v14 }
 0x1dc   :  { %24324 = vst [vmem:[#allocation88_spill] sm:$0xff] %v18560_v28  ;;  %24325 = vst [vmem:[#allocation89_spill] sm:$0xff] %v18563_v55  ;;  %v1320_v61 = vcombine.low %v303_v59, %v399_v3  ;;  %v1321_v13 = vcombine.high %v303_v59, %v399_v3 }
 0x1dd   :  { %24326 = vst [vmem:[#allocation90_spill] sm:$0xff] %v18566_v6  ;;  %24327 = vst [vmem:[#allocation91_spill] sm:$0xff] %v18569_v50  ;;  %2744 = vrot.lane.b32.xlu1 %v18190_v58, %s17677_s14 }
 0x1de   :  { %24328 = vst [vmem:[#allocation92_spill] sm:$0xff] %v18575_v34  ;;  %2830 = vrot.lane.b32.xlu0 %v18439_v32, %s17677_s14  ;;  %v1328_v29 = vrot.slane %v1320_v61, %v18042_v14  ;;  %v1335_v21 = vrot.slane %v1321_v13, %v18042_v14 }
 0x1df   :  { %v18589_v62 = vpop.permute.xlu1 %2658  ;;  %v18591_v5 = vpop.permute.xlu0 %2642 }
 0x1e0   :  { %24329 = vst [vmem:[#allocation93_spill] sm:$0xff] %v18589_v62  ;;  %24330 = vst [vmem:[#allocation94_spill] sm:$0xff] %v18591_v5  ;;  %v1336_v26 = vcombine.low %v1312_v19, %v1328_v29  ;;  %v1337_v59 = vcombine.high %v1312_v19, %v1328_v29  ;;  %v1352_v3 = vcombine.low %v1319_v18, %v1335_v21 }
 0x1e1   :  { %v1353_v42 = vcombine.high %v1319_v18, %v1335_v21  ;;  %2808 = vrot.lane.b32.xlu1 %v18200_v35, %s17677_s14 }
 0x1e2   :  { %2780 = vrot.lane.b32.xlu0 %v18521_v31, %s17677_s14  ;;  %v1344_v25 = vrot.slane %v1336_v26, %v18049_v27  ;;  %v1351_v39 = vrot.slane %v1337_v59, %v18049_v27  ;;  %v1360_v13 = vrot.slane %v1352_v3, %v18049_v27 }
 0x1e3   :  { %v1367_v61 = vrot.slane %v1353_v42, %v18049_v27  ;;  %v18601_v32 = vpop.permute.xlu1 %332  ;;  %v18603_v63 = vpop.permute.xlu0 %2674 }
 0x1e4   :  { %24331 = vst [vmem:[#allocation95_spill] sm:$0xff] %v18603_v63  ;;  %v2392_v19 = vcombine.low %v1344_v25, %v1351_v39  ;;  %v16282_v21 = vcombine.high %v1344_v25, %v1351_v39 }
 0x1e5   :  { %v2408_v18 = vcombine.low %v1360_v13, %v1367_v61  ;;  %v16283_v29 = vcombine.high %v1360_v13, %v1367_v61  ;;  %2760 = vrot.lane.b32.xlu1 %v18215_v53, %s17677_s14  ;;  %v24339_v61 = vcombine.high %v18146_v2, %v18149_v40  ;;  %v24347_v40 = vld [vmem:[#allocation32_spill] sm:$0xff] }
 0x1e6   :  { %2754 = vrot.lane.b32.xlu0 %v18555_v0, %s17677_s14  ;;  %v18610_v26 = vrot.slane %v2392_v19, %v18042_v14  ;;  %v18613_v59 = vrot.slane %v16282_v21, %v18042_v14 }
 0x1e7   :  { %v18616_v42 = vrot.slane %v2408_v18, %v18042_v14  ;;  %v18619_v3 = vrot.slane %v16283_v29, %v18042_v14  ;;  %v18621_v25 = vpop.permute.xlu1 %2722  ;;  %v18623_v39 = vpop.permute.xlu0 %2706  ;;  %v18649_v13 = vrot.slane %v24339_v61, %v18049_v27 }
 0x1e8   :  { %24332 = vst [vmem:[#allocation96_spill] sm:$0xff] %v18610_v26  ;;  %24333 = vst [vmem:[#allocation97_spill] sm:$0xff] %v18613_v59 }
 0x1e9   :  { %24334 = vst [vmem:[#allocation98_spill] sm:$0xff] %v18616_v42  ;;  %24335 = vst [vmem:[#allocation99_spill] sm:$0xff] %v18619_v3  ;;  %2792 = vrot.lane.b32.xlu1 %v18235_v24, %s17677_s14  ;;  %v24341_v24 = vld [vmem:[#allocation33_spill] sm:$0xff] }
 0x1ea   :  { %24336 = vst [vmem:[#allocation100_spill] sm:$0xff] %v18621_v25  ;;  %24337 = vst [vmem:[#allocation101_spill] sm:$0xff] %v18623_v39  ;;  %2818 = vrot.lane.b32.xlu0 %v18575_v34, %s17677_s14 }
 0x1eb   :  { %v349_v19 = vpop.permute.xlu1 %348  ;;  %v18633_v21 = vpop.permute.xlu0 %284  ;;  %24340 = vst [vmem:[#allocation103_spill] sm:$0xff] %v18649_v13 }
 0x1ed   :  { %2824 = vrot.lane.b32.xlu1 %v18255_v44, %s17677_s14  ;;  %v24342_v44 = vcombine.high %v18152_v7, %v24341_v24  ;;  %v1236_v7 = vcombine.low %v24347_v40, %v349_v19  ;;  %v1237_v24 = vcombine.high %v24347_v40, %v349_v19 }
 0x1ee   :  { %2770 = vrot.lane.b32.xlu0 %v18591_v5, %s17677_s14 }
 0x1ef   :  { %v18639_v18 = vpop.permute.xlu1 %2624  ;;  %v18641_v29 = vpop.permute.xlu0 %380  ;;  %v18655_v53 = vrot.slane %v24342_v44, %v18049_v27  ;;  %v1251_v13 = vrot.slane %v1237_v24, %v18042_v14 }
 0x1f0   :  { %24338 = vst [vmem:[#allocation102_spill] sm:$0xff] %v18639_v18 }
 0x1f1   :  { %2782 = vrot.lane.b32.xlu1 %v18389_v33, %s17677_s14  ;;  %24343 = vst [vmem:[#allocation33_spill] sm:$0xff] %v18655_v53 }
 0x1f2   :  { %2802 = vrot.lane.b32.xlu0 %v18603_v63, %s17677_s14 }
 0x1f3   :  { %v18659_v5 = vpop.permute.xlu1 %2656  ;;  %v18663_v34 = vpop.permute.xlu0 %2738 }
 0x1f4   :  { %24344 = vst [vmem:[#allocation104_spill] sm:$0xff] %v18659_v5  ;;  %24345 = vst [vmem:[#allocation105_spill] sm:$0xff] %v18663_v34 }
 0x1f5   :  { %2748 = vrot.lane.b32.xlu1 %v18459_v16, %s17677_s14 }
 0x1f6   :  { %2834 = vrot.lane.b32.xlu0 %v18623_v39, %s17677_s14  ;;  %v1244_v39 = vrot.slane %v1236_v7, %v18042_v14 }
 0x1f7   :  { %v18669_v2 = vpop.permute.xlu1 %2688  ;;  %v301_v44 = vpop.permute.xlu0 %300 }
 0x1f8   :  { %24346 = vst [vmem:[#allocation106_spill] sm:$0xff] %v18669_v2 }
 0x1f9   :  { %2812 = vrot.lane.b32.xlu1 %v18469_v47, %s17677_s14 }
 0x1fa   :  { %2752 = vrot.lane.b32.xlu0 %v18639_v18, %s17677_s14 }
 0x1fb   :  { %v18677_v61 = vpop.permute.xlu1 %2640  ;;  %v397_v25 = vpop.permute.xlu0 %396 }
 0x1fc   :  { %24348 = vst [vmem:[#allocation32_spill] sm:$0xff] %v18677_v61  ;;  %v1252_v63 = vcombine.low %v301_v44, %v397_v25  ;;  %v1253_v53 = vcombine.high %v301_v44, %v397_v25 }
 0x1fd   :  { %2764 = vrot.lane.b32.xlu1 %v18481_v17, %s17677_s14 }
 0x1fe   :  { %2784 = vrot.lane.b32.xlu0 %v18659_v5, %s17677_s14  ;;  %v1260_v34 = vrot.slane %v1252_v63, %v18042_v14  ;;  %v1267_v18 = vrot.slane %v1253_v53, %v18042_v14 }
 0x1ff   :  { %v18687_v19 = vpop.permute.xlu1 %2704  ;;  %v18689_v40 = vpop.permute.xlu0 %2672 }
 0x200   :  { %24349 = vst [vmem:[#allocation107_spill] sm:$0xff] %v18687_v19  ;;  %24350 = vst [vmem:[#allocation108_spill] sm:$0xff] %v18689_v40  ;;  %v1268_v0 = vcombine.low %v1244_v39, %v1260_v34  ;;  %v1269_v25 = vcombine.high %v1244_v39, %v1260_v34  ;;  %v1284_v44 = vcombine.low %v1251_v13, %v1267_v18 }
 0x201   :  { %v1285_v47 = vcombine.high %v1251_v13, %v1267_v18  ;;  %2796 = vrot.lane.b32.xlu1 %v18501_v52, %s17677_s14  ;;  %v1116_v34 = vcombine.low %v18483_v11, %v18503_v36 }
 0x202   :  { %2816 = vrot.lane.b32.xlu0 %v18669_v2, %s17677_s14  ;;  %v1276_v7 = vrot.slane %v1268_v0, %v18049_v27  ;;  %v1283_v63 = vrot.slane %v1269_v25, %v18049_v27  ;;  %v1292_v53 = vrot.slane %v1284_v44, %v18049_v27  ;;  %v24352_v0 = vld [vmem:[#allocation11_spill] sm:$0xff]  ;;  %v1117_v44 = vcombine.high %v18483_v11, %v18503_v36 }
 0x203   :  { %v1299_v24 = vrot.slane %v1285_v47, %v18049_v27  ;;  %v291_v17 = vpop.permute.xlu1 %290  ;;  %v18701_v39 = vpop.permute.xlu0 %2720  ;;  %v1100_v25 = vcombine.low %v24352_v0, %v18451_v41  ;;  %v1124_v11 = vrot.slane %v1116_v34, %v18042_v14 }
 0x204   :  { %24351 = vst [vmem:[#allocation109_spill] sm:$0xff] %v18701_v39  ;;  %v2324_v13 = vcombine.low %v1276_v7, %v1283_v63  ;;  %v16280_v18 = vcombine.high %v1276_v7, %v1283_v63  ;;  %v1131_v34 = vrot.slane %v1117_v44, %v18042_v14 }
 0x205   :  { %v2340_v52 = vcombine.low %v1292_v53, %v1299_v24  ;;  %v16281_v5 = vcombine.high %v1292_v53, %v1299_v24  ;;  %2828 = vrot.lane.b32.xlu1 %v18519_v45, %s17677_s14  ;;  %v1101_v24 = vcombine.high %v24352_v0, %v18451_v41  ;;  %v1108_v41 = vrot.slane %v1100_v25, %v18042_v14 }
 0x206   :  { %2768 = vrot.lane.b32.xlu0 %v18677_v61, %s17677_s14  ;;  %v18712_v2 = vrot.slane %v2324_v13, %v18042_v14  ;;  %v18715_v7 = vrot.slane %v16280_v18, %v18042_v14 }
 0x207   :  { %v387_v47 = vpop.permute.xlu1 %386  ;;  %v18718_v63 = vrot.slane %v2340_v52, %v18042_v14  ;;  %v18721_v53 = vrot.slane %v16281_v5, %v18042_v14  ;;  %v339_v45 = vpop.permute.xlu0 %338  ;;  %v1115_v44 = vrot.slane %v1101_v24, %v18042_v14 }
 0x208   :  { %24353 = vst [vmem:[#allocation11_spill] sm:$0xff] %v18712_v2  ;;  %24354 = vst [vmem:[#allocation110_spill] sm:$0xff] %v18715_v7  ;;  %v912_v36 = vcombine.low %v291_v17, %v387_v47  ;;  %v913_v61 = vcombine.high %v291_v17, %v387_v47  ;;  %v896_v13 = vcombine.low %v18260_v8, %v339_v45 }
 0x209   :  { %24355 = vst [vmem:[#allocation111_spill] sm:$0xff] %v18718_v63  ;;  %24356 = vst [vmem:[#allocation112_spill] sm:$0xff] %v18721_v53  ;;  %v897_v39 = vcombine.high %v18260_v8, %v339_v45  ;;  %2786 = vrot.lane.b32.xlu1 %v18589_v62, %s17677_s14  ;;  %v2356_v52 = vcombine.low %v18712_v2, %v18715_v7  ;;  %v2372_v5 = vcombine.low %v18718_v63, %v18721_v53 }
 0x20a   :  { %v920_v17 = vrot.slane %v912_v36, %v18042_v14  ;;  %v927_v18 = vrot.slane %v913_v61, %v18042_v14  ;;  %2832 = vrot.lane.b32.xlu0 %v18687_v19, %s17677_s14  ;;  %v904_v8 = vrot.slane %v896_v13, %v18042_v14  ;;  %v1132_v36 = vcombine.low %v1108_v41, %v1124_v11 }
 0x20b   :  { %v911_v45 = vrot.slane %v897_v39, %v18042_v14  ;;  %v18742_v0 = vpop.permute.xlu1 %2736  ;;  %v18745_v47 = vrot.slane %v2356_v52, %v18049_v27  ;;  %v18748_v25 = vrot.slane %v2372_v5, %v18049_v27  ;;  %v1133_v63 = vcombine.high %v1108_v41, %v1124_v11 }
 0x20c   :  { %24357 = vst [vmem:[#allocation113_spill] sm:$0xff] %v18742_v0  ;;  %v355_v61 = vpop.permute.xlu0 %354  ;;  %v928_v53 = vcombine.low %v904_v8, %v920_v17  ;;  %v929_v2 = vcombine.high %v904_v8, %v920_v17  ;;  %v1148_v39 = vcombine.low %v1115_v44, %v1131_v34  ;;  %v18762_v17 = vrot.slane %v1132_v36, %v18049_v27  ;;  %v24361_v36 = vld [vmem:[#allocation3_spill] sm:$0xff] }
 0x20d   :  { %24358 = vst [vmem:[#allocation114_spill] sm:$0xff] %v18745_v47  ;;  %24359 = vst [vmem:[#allocation115_spill] sm:$0xff] %v18748_v25  ;;  %v944_v19 = vcombine.low %v911_v45, %v927_v18  ;;  %v945_v7 = vcombine.high %v911_v45, %v927_v18  ;;  %2800 = vrot.lane.b32.xlu1 %v18689_v40, %s17677_s14  ;;  %v18765_v18 = vrot.slane %v1133_v63, %v18049_v27 }
 0x20e   :  { %5110 = vrot.lane.b32.xlu0 %v17970_v49, %s17681_s15  ;;  %v936_v52 = vrot.slane %v928_v53, %v18049_v27  ;;  %v943_v24 = vrot.slane %v929_v2, %v18049_v27  ;;  %v1149_v8 = vcombine.high %v1115_v44, %v1131_v34  ;;  %v708_v49 = vcombine.low %v18633_v21, %v18641_v29 }
 0x20f   :  { %v952_v11 = vrot.slane %v944_v19, %v18049_v27  ;;  %v959_v5 = vrot.slane %v945_v7, %v18049_v27  ;;  %v307_v41 = vpop.permute.xlu1 %306  ;;  %v24360_v19 = vld [vmem:[#allocation29_spill] sm:$0xff]  ;;  %v709_v63 = vcombine.high %v18633_v21, %v18641_v29  ;;  %v1440_v34 = vcombine.low %v18294_v10, %v355_v61 }
 0x210   :  { %v18769_v45 = vpop.permute.xlu0 %288  ;;  %v1984_v53 = vcombine.low %v936_v52, %v943_v24  ;;  %v16270_v13 = vcombine.high %v936_v52, %v943_v24  ;;  %v692_v7 = vcombine.low %v24360_v19, %v18601_v32  ;;  %v1441_v44 = vcombine.high %v18294_v10, %v355_v61 }
 0x211   :  { %v2000_v2 = vcombine.low %v952_v11, %v959_v5  ;;  %v16271_v40 = vcombine.high %v952_v11, %v959_v5  ;;  %5142 = vrot.lane.b32.xlu1 %v17984_v54, %s17681_s15  ;;  %v1156_v29 = vrot.slane %v1148_v39, %v18049_v27 }
 0x212   :  { %5076 = vrot.lane.b32.xlu0 %v24361_v36, %s17681_s15  ;;  %v18782_v52 = vrot.slane %v1984_v53, %v18042_v14  ;;  %v18785_v24 = vrot.slane %v16270_v13, %v18042_v14  ;;  %v693_v53 = vcombine.high %v24360_v19, %v18601_v32  ;;  %v716_v36 = vrot.slane %v708_v49, %v18042_v14 }
 0x213   :  { %v18788_v54 = vrot.slane %v2000_v2, %v18042_v14  ;;  %v18791_v11 = vrot.slane %v16271_v40, %v18042_v14  ;;  %v403_v21 = vpop.permute.xlu1 %402  ;;  %v1448_v40 = vrot.slane %v1440_v34, %v18042_v14  ;;  %v1455_v39 = vrot.slane %v1441_v44, %v18042_v14 }
 0x214   :  { %24362 = vst [vmem:[#allocation29_spill] sm:$0xff] %v18782_v52  ;;  %24363 = vst [vmem:[#allocation3_spill] sm:$0xff] %v18785_v24  ;;  %v1456_v5 = vcombine.low %v307_v41, %v403_v21  ;;  %v1457_v10 = vcombine.high %v307_v41, %v403_v21  ;;  %v18794_v61 = vpop.permute.xlu0 %384  ;;  %v1163_v32 = vrot.slane %v1149_v8, %v18049_v27 }
 0x215   :  { %24364 = vst [vmem:[#allocation116_spill] sm:$0xff] %v18788_v54  ;;  %24365 = vst [vmem:[#allocation117_spill] sm:$0xff] %v18791_v11  ;;  %5174 = vrot.lane.b32.xlu1 %v17968_v48, %s17681_s15  ;;  %v2188_v49 = vcombine.low %v18762_v17, %v18765_v18  ;;  %v700_v19 = vrot.slane %v692_v7, %v18042_v14  ;;  %v723_v48 = vrot.slane %v709_v63, %v18042_v14 }
 0x216   :  { %v1464_v41 = vrot.slane %v1456_v5, %v18042_v14  ;;  %v1471_v21 = vrot.slane %v1457_v10, %v18042_v14  ;;  %5140 = vrot.lane.b32.xlu0 %v18025_v4, %s17681_s15  ;;  %v16276_v4 = vcombine.high %v18762_v17, %v18765_v18  ;;  %v707_v8 = vrot.slane %v693_v53, %v18042_v14 }
 0x217   :  { %v18816_v2 = vpop.permute.xlu1 %336  ;;  %v724_v10 = vcombine.low %v700_v19, %v716_v36  ;;  %v725_v62 = vcombine.high %v700_v19, %v716_v36  ;;  %v16277_v17 = vcombine.high %v1156_v29, %v1163_v32 }
 0x218   :  { %v1472_v34 = vcombine.low %v1448_v40, %v1464_v41  ;;  %v1473_v44 = vcombine.high %v1448_v40, %v1464_v41  ;;  %v1488_v13 = vcombine.low %v1455_v39, %v1471_v21  ;;  %v1489_v5 = vcombine.high %v1455_v39, %v1471_v21  ;;  %v18818_v0 = vpop.permute.xlu0 %304  ;;  %v24367_v41 = vld [vmem:[#allocation5_spill] sm:$0xff] }
 0x219   :  { %24366 = vst [vmem:[#allocation118_spill] sm:$0xff] %v18818_v0  ;;  %5108 = vrot.lane.b32.xlu1 %v17992_v56, %s17681_s15  ;;  %v2204_v21 = vcombine.low %v1156_v29, %v1163_v32  ;;  %v740_v18 = vcombine.low %v707_v8, %v723_v48  ;;  %v741_v53 = vcombine.high %v707_v8, %v723_v48 }
 0x21a   :  { %v1480_v7 = vrot.slane %v1472_v34, %v18049_v27  ;;  %v1487_v63 = vrot.slane %v1473_v44, %v18049_v27  ;;  %v1496_v40 = vrot.slane %v1488_v13, %v18049_v27  ;;  %v1503_v39 = vrot.slane %v1489_v5, %v18049_v27  ;;  %5082 = vrot.lane.b32.xlu0 %v24367_v41, %s17681_s15 }
 0x21b   :  { %v18831_v0 = vpop.permute.xlu1 %352  ;;  %v732_v44 = vrot.slane %v724_v10, %v18049_v27  ;;  %v739_v13 = vrot.slane %v725_v62, %v18049_v27  ;;  %v18856_v62 = vrot.slane %v2188_v49, %v18042_v14  ;;  %v18862_v10 = vrot.slane %v2204_v21, %v18042_v14  ;;  %v24379_v49 = vld [vmem:[#allocation27_spill] sm:$0xff] }
 0x21c   :  { %v2528_v36 = vcombine.low %v1480_v7, %v1487_v63  ;;  %v16286_v19 = vcombine.high %v1480_v7, %v1487_v63  ;;  %v2544_v56 = vcombine.low %v1496_v40, %v1503_v39  ;;  %v16287_v47 = vcombine.high %v1496_v40, %v1503_v39  ;;  %v18833_v34 = vpop.permute.xlu0 %400 }
 0x21d   :  { %5172 = vrot.lane.b32.xlu1 %v18003_v60, %s17681_s15  ;;  %24373 = vst [vmem:[#allocation123_spill] sm:$0xff] %v18856_v62  ;;  %v18859_v60 = vrot.slane %v16276_v4, %v18042_v14  ;;  %24375 = vst [vmem:[#allocation125_spill] sm:$0xff] %v18862_v10  ;;  %v18865_v7 = vrot.slane %v16277_v17, %v18042_v14  ;;  %v755_v63 = vrot.slane %v741_v53, %v18049_v27  ;;  %v24377_v4 = vld [vmem:[#allocation9_spill] sm:$0xff] }
 0x21e   :  { %v18840_v5 = vrot.slane %v2528_v36, %v18042_v14  ;;  %v18843_v29 = vrot.slane %v16286_v19, %v18042_v14  ;;  %v18846_v32 = vrot.slane %v2544_v56, %v18042_v14  ;;  %v18849_v48 = vrot.slane %v16287_v47, %v18042_v14  ;;  %5114 = vrot.lane.b32.xlu0 %v18072_v12, %s17681_s15 }
 0x21f   :  { %v18853_v8 = vpop.permute.xlu1 %5078  ;;  %24374 = vst [vmem:[#allocation124_spill] sm:$0xff] %v18859_v60  ;;  %24376 = vst [vmem:[#allocation126_spill] sm:$0xff] %v18865_v7  ;;  %v748_v47 = vrot.slane %v740_v18, %v18049_v27  ;;  %v1780_v39 = vcombine.low %v732_v44, %v739_v13  ;;  %v16264_v41 = vcombine.high %v732_v44, %v739_v13  ;;  %v24378_v13 = vld [vmem:[#allocation28_spill] sm:$0xff] }
 0x220   :  { %24368 = vst [vmem:[#allocation5_spill] sm:$0xff] %v18840_v5  ;;  %24369 = vst [vmem:[#allocation119_spill] sm:$0xff] %v18843_v29  ;;  %v2775_v40 = vpop.permute.xlu0 %2774  ;;  %v2220_v17 = vcombine.low %v18856_v62, %v18859_v60  ;;  %v2236_v18 = vcombine.low %v18862_v10, %v18865_v7  ;;  %v1880_v53 = vcombine.low %v18560_v28, %v18563_v55  ;;  %v24380_v10 = vld [vmem:[#allocation38_spill] sm:$0xff]  ;;  %v24381_v7 = vld [vmem:[#allocation37_spill] sm:$0xff] }
 0x221   :  { %24370 = vst [vmem:[#allocation120_spill] sm:$0xff] %v18846_v32  ;;  %24371 = vst [vmem:[#allocation121_spill] sm:$0xff] %v18849_v48  ;;  %5086 = vrot.lane.b32.xlu1 %v24377_v4, %s17681_s15  ;;  %v1896_v36 = vcombine.low %v18566_v6, %v18569_v50  ;;  %v1796_v19 = vcombine.low %v748_v47, %v755_v63  ;;  %v16265_v56 = vcombine.high %v748_v47, %v755_v63 }
 0x222   :  { %24372 = vst [vmem:[#allocation122_spill] sm:$0xff] %v18853_v8  ;;  %5146 = vrot.lane.b32.xlu0 %v18124_v57, %s17681_s15  ;;  %v2288_v57 = vcombine.low %v18426_v9, %v18429_v23  ;;  %v2304_v44 = vcombine.low %v18432_v43, %v18435_v22  ;;  %v18902_v23 = vrot.slane %v1780_v39, %v18042_v14  ;;  %v24384_v43 = vld [vmem:[#allocation19_spill] sm:$0xff] }
 0x223   :  { %v2743_v21 = vpop.permute.xlu1 %2742  ;;  %v18905_v22 = vrot.slane %v16264_v41, %v18042_v14  ;;  %v2969_v9 = vcombine.high %v24384_v43, %v2775_v40  ;;  %v18910_v62 = vrot.slane %v2220_v17, %v18049_v27  ;;  %v18918_v63 = vrot.slane %v1796_v19, %v18042_v14 }
 0x224   :  { %v18885_v4 = vpop.permute.xlu0 %2772  ;;  %24382 = vst [vmem:[#allocation9_spill] sm:$0xff] %v18902_v23  ;;  %v18921_v39 = vrot.slane %v16265_v56, %v18042_v14  ;;  %v18924_v41 = vrot.slane %v1880_v53, %v18049_v27  ;;  %v18935_v19 = vrot.slane %v2304_v44, %v18049_v27  ;;  %v2424_v56 = vcombine.low %v18610_v26, %v18613_v59 }
 0x225   :  { %5118 = vrot.lane.b32.xlu1 %v18334_v38, %s17681_s15  ;;  %24383 = vst [vmem:[#allocation27_spill] sm:$0xff] %v18905_v22  ;;  %v2968_v38 = vcombine.low %v24384_v43, %v2775_v40  ;;  %24385 = vst [vmem:[#allocation37_spill] sm:$0xff] %v18910_v62  ;;  %v18927_v43 = vrot.slane %v1896_v36, %v18049_v27  ;;  %v2440_v53 = vcombine.low %v18616_v42, %v18619_v3  ;;  %v24391_v36 = vld [vmem:[#allocation7_spill] sm:$0xff] }
 0x226   :  { %5178 = vrot.lane.b32.xlu0 %v18095_v51, %s17681_s15  ;;  %v18913_v51 = vrot.slane %v2236_v18, %v18049_v27  ;;  %24387 = vst [vmem:[#allocation127_spill] sm:$0xff] %v18918_v63  ;;  %24388 = vst [vmem:[#allocation128_spill] sm:$0xff] %v18921_v39  ;;  %v18932_v18 = vrot.slane %v2288_v57, %v18049_v27  ;;  %v2983_v57 = vrot.slane %v2969_v9, %v18042_v14 }
 0x227   :  { %v2807_v12 = vpop.permute.xlu1 %2806  ;;  %24390 = vst [vmem:[#allocation130_spill] sm:$0xff] %v18935_v19  ;;  %v828_v3 = vcombine.low %v18313_v30, %v18816_v2 }
 0x228   :  { %24386 = vst [vmem:[#allocation19_spill] sm:$0xff] %v18913_v51  ;;  %v18915_v47 = vpop.permute.xlu0 %2746  ;;  %v2984_v40 = vcombine.low %v2743_v21, %v2807_v12  ;;  %v2985_v17 = vcombine.high %v2743_v21, %v2807_v12  ;;  %24389 = vst [vmem:[#allocation129_spill] sm:$0xff] %v18932_v18  ;;  %v2976_v21 = vrot.slane %v2968_v38, %v18042_v14 }
 0x229   :  { %5150 = vrot.lane.b32.xlu1 %v18389_v33, %s17681_s15  ;;  %v1812_v33 = vcombine.low %v18902_v23, %v18905_v22  ;;  %v18971_v12 = vrot.slane %v2424_v56, %v18049_v27  ;;  %v18974_v38 = vrot.slane %v2440_v53, %v18049_v27  ;;  %v836_v56 = vrot.slane %v828_v3, %v18042_v14  ;;  %v24405_v23 = vld [vmem:[#allocation87_spill] sm:$0xff] }
 0x22a   :  { %5080 = vrot.lane.b32.xlu0 %v24391_v36, %s17681_s15  ;;  %v2992_v44 = vrot.slane %v2984_v40, %v18042_v14  ;;  %v2999_v60 = vrot.slane %v2985_v17, %v18042_v14  ;;  %v1828_v36 = vcombine.low %v18918_v63, %v18921_v39  ;;  %v844_v17 = vcombine.low %v18769_v45, %v18794_v61  ;;  %v24394_v63 = vld [vmem:[#allocation46_spill] sm:$0xff] }
 0x22b   :  { %v2759_v59 = vpop.permute.xlu1 %2758  ;;  %v18968_v6 = vrot.slane %v1812_v33, %v18049_v27  ;;  %v829_v33 = vcombine.high %v18313_v30, %v18816_v2  ;;  %v24393_v30 = vld [vmem:[#allocation13_spill] sm:$0xff] }
 0x22c   :  { %v18953_v42 = vpop.permute.xlu0 %2810  ;;  %v3000_v9 = vcombine.low %v2976_v21, %v2992_v44  ;;  %v3001_v26 = vcombine.high %v2976_v21, %v2992_v44  ;;  %v3016_v40 = vcombine.low %v2983_v57, %v2999_v60  ;;  %v3017_v50 = vcombine.high %v2983_v57, %v2999_v60 }
 0x22d   :  { %5182 = vrot.lane.b32.xlu1 %v18366_v37, %s17681_s15  ;;  %v18988_v53 = vrot.slane %v1828_v36, %v18049_v27 }
 0x22e   :  { %5112 = vrot.lane.b32.xlu0 %v18190_v58, %s17681_s15  ;;  %v3008_v60 = vrot.slane %v3000_v9, %v18049_v27  ;;  %v3015_v21 = vrot.slane %v3001_v26, %v18049_v27  ;;  %v3024_v37 = vrot.slane %v3016_v40, %v18049_v27  ;;  %v3031_v57 = vrot.slane %v3017_v50, %v18049_v27  ;;  %v24392_v50 = vld [vmem:[#allocation12_spill] sm:$0xff] }
 0x22f   :  { %v2791_v44 = vpop.permute.xlu1 %2790  ;;  %v2016_v58 = vcombine.low %v18782_v52, %v18785_v24  ;;  %v845_v24 = vcombine.high %v18769_v45, %v18794_v61  ;;  %v852_v52 = vrot.slane %v844_v17, %v18042_v14  ;;  %v2032_v61 = vcombine.low %v18788_v54, %v18791_v11 }
 0x230   :  { %v18985_v55 = vpop.permute.xlu0 %2762  ;;  %v4056_v9 = vcombine.low %v3008_v60, %v3015_v21  ;;  %v16290_v26 = vcombine.high %v3008_v60, %v3015_v21  ;;  %v4072_v28 = vcombine.low %v3024_v37, %v3031_v57  ;;  %v16291_v40 = vcombine.high %v3024_v37, %v3031_v57 }
 0x231   :  { %5084 = vrot.lane.b32.xlu1 %v24392_v50, %s17681_s15  ;;  %v3512_v2 = vcombine.low %v24393_v30, %v2791_v44  ;;  %v3513_v3 = vcombine.high %v24393_v30, %v2791_v44  ;;  %v843_v17 = vrot.slane %v829_v33, %v18042_v14  ;;  %v861_v50 = vcombine.high %v836_v56, %v852_v52 }
 0x232   :  { %5144 = vrot.lane.b32.xlu0 %v24394_v63, %s17681_s15  ;;  %v19000_v60 = vrot.slane %v4056_v9, %v18042_v14  ;;  %v19003_v21 = vrot.slane %v16290_v26, %v18042_v14  ;;  %v19006_v37 = vrot.slane %v4072_v28, %v18042_v14  ;;  %v19009_v45 = vrot.slane %v16291_v40, %v18042_v14 }
 0x233   :  { %v2823_v36 = vpop.permute.xlu1 %2822  ;;  %v860_v9 = vcombine.low %v836_v56, %v852_v52  ;;  %v3520_v40 = vrot.slane %v3512_v2, %v18042_v14  ;;  %v3527_v30 = vrot.slane %v3513_v3, %v18042_v14  ;;  %v859_v52 = vrot.slane %v845_v24, %v18042_v14 }
 0x234   :  { %24395 = vst [vmem:[#allocation7_spill] sm:$0xff] %v19000_v60  ;;  %24396 = vst [vmem:[#allocation12_spill] sm:$0xff] %v19003_v21  ;;  %v3528_v57 = vcombine.low %v2759_v59, %v2823_v36  ;;  %v3529_v63 = vcombine.high %v2759_v59, %v2823_v36  ;;  %v19014_v44 = vpop.permute.xlu0 %2794  ;;  %v4088_v28 = vcombine.low %v19000_v60, %v19003_v21  ;;  %v24409_v21 = vld [vmem:[#allocation93_spill] sm:$0xff] }
 0x235   :  { %24397 = vst [vmem:[#allocation13_spill] sm:$0xff] %v19006_v37  ;;  %24398 = vst [vmem:[#allocation46_spill] sm:$0xff] %v19009_v45  ;;  %5116 = vrot.lane.b32.xlu1 %v18459_v16, %s17681_s15  ;;  %v4104_v26 = vcombine.low %v19006_v37, %v19009_v45  ;;  %v19032_v11 = vrot.slane %v2016_v58, %v18049_v27  ;;  %v19047_v58 = vrot.slane %v861_v50, %v18049_v27  ;;  %v24402_v50 = vld [vmem:[#allocation22_spill] sm:$0xff] }
 0x236   :  { %v3536_v33 = vrot.slane %v3528_v57, %v18042_v14  ;;  %v3543_v59 = vrot.slane %v3529_v63, %v18042_v14  ;;  %5176 = vrot.lane.b32.xlu0 %v18200_v35, %s17681_s15  ;;  %v4096_v56 = vrot.slane %v4088_v28, %v18049_v27  ;;  %v876_v63 = vcombine.low %v843_v17, %v859_v52 }
 0x237   :  { %v2741_v16 = vpop.permute.xlu1 %2740  ;;  %v4112_v36 = vrot.slane %v4104_v26, %v18049_v27  ;;  %24399 = vst [vmem:[#allocation131_spill] sm:$0xff] %v19032_v11  ;;  %v19041_v28 = vrot.slane %v2032_v61, %v18049_v27  ;;  %v19044_v26 = vrot.slane %v860_v9, %v18049_v27 }
 0x238   :  { %v3544_v2 = vcombine.low %v3520_v40, %v3536_v33  ;;  %v3545_v54 = vcombine.high %v3520_v40, %v3536_v33  ;;  %v3560_v3 = vcombine.low %v3527_v30, %v3543_v59  ;;  %v3561_v39 = vcombine.high %v3527_v30, %v3543_v59  ;;  %v19034_v57 = vpop.permute.xlu0 %2826  ;;  %v24401_v33 = vld [vmem:[#allocation24_spill] sm:$0xff] }
 0x239   :  { %5148 = vrot.lane.b32.xlu1 %v18521_v31, %s17681_s15  ;;  %v4120_v35 = vcombine.low %v4096_v56, %v4112_v36  ;;  %v19038_v24 = vcombine.high %v4096_v56, %v4112_v36  ;;  %24400 = vst [vmem:[#allocation132_spill] sm:$0xff] %v19041_v28  ;;  %v877_v40 = vcombine.high %v843_v17, %v859_v52 }
 0x23a   :  { %v3552_v30 = vrot.slane %v3544_v2, %v18049_v27  ;;  %5090 = vrot.lane.b32.xlu0 %v24401_v33, %s17681_s15  ;;  %v3559_v31 = vrot.slane %v3545_v54, %v18049_v27  ;;  %v3568_v59 = vrot.slane %v3560_v3, %v18049_v27  ;;  %v3575_v56 = vrot.slane %v3561_v39, %v18049_v27  ;;  %v24403_v3 = vld [vmem:[#allocation74_spill] sm:$0xff] }
 0x23b   :  { %16921 = vmatprep.subr.msk.mxu1 %vm7444_vm1, %v4120_v35  ;;  %v2805_v61 = vpop.permute.xlu1 %2804  ;;  %v2900_v17 = vcombine.low %v24402_v50, %v18885_v4  ;;  %v2901_v52 = vcombine.high %v24402_v50, %v18885_v4  ;;  %v19070_v2 = vrot.slane %v876_v63, %v18049_v27  ;;  %v24404_v33 = vld [vmem:[#allocation114_spill] sm:$0xff]  ;;  %v19081_v50 = vrot.slane %v877_v40, %v18049_v27 }
 0x23c   :  { %16922 = vmatpush3.xpose.msk.msra.mxu1 %vm7444_vm1, %v4120_v35  ;;  %v19063_v36 = vpop.permute.xlu0 %2776  ;;  %v2916_v63 = vcombine.low %v2741_v16, %v2805_v61  ;;  %v2917_v54 = vcombine.high %v2741_v16, %v2805_v61  ;;  %v16306_v22 = vcombine.high %v3552_v30, %v3559_v31  ;;  %v4616_v9 = vcombine.low %v3568_v59, %v3575_v56  ;;  %v24406_v16 = vld [vmem:[#allocation61_spill] sm:$0xff] }
 0x23d   :  { %5180 = vrot.lane.b32.xlu1 %v24403_v3, %s17681_s15  ;;  %v4600_v3 = vcombine.low %v3552_v30, %v3559_v31  ;;  %v16307_v8 = vcombine.high %v3568_v59, %v3575_v56  ;;  %v2908_v4 = vrot.slane %v2900_v17, %v18042_v14  ;;  %v2915_v35 = vrot.slane %v2901_v52, %v18042_v14  ;;  %v24407_v30 = vld [vmem:[#allocation118_spill] sm:$0xff] }
 0x23e   :  { %5122 = vrot.lane.b32.xlu0 %v24405_v23, %s17681_s15  ;;  %v2924_v40 = vrot.slane %v2916_v63, %v18042_v14  ;;  %v2931_v45 = vrot.slane %v2917_v54, %v18042_v14  ;;  %v1372_v61 = vcombine.low %v24406_v16, %v18831_v0  ;;  %v1373_v23 = vcombine.high %v24406_v16, %v18831_v0  ;;  %v24408_v56 = vld [vmem:[#allocation2_spill] sm:$0xff] }
 0x23f   :  { %v19087_v37 = vpop.permute.xlu1 %2756  ;;  %v1388_v31 = vcombine.low %v24407_v30, %v18833_v34  ;;  %v1389_v59 = vcombine.high %v24407_v30, %v18833_v34  ;;  %v19108_v32 = vrot.slane %v4600_v3, %v18042_v14  ;;  %v19111_v0 = vrot.slane %v16306_v22, %v18042_v14  ;;  %v24414_v30 = vld [vmem:[#allocation14_spill] sm:$0xff] }
 0x240   :  { %v19093_v39 = vpop.permute.xlu0 %2750  ;;  %v2932_v17 = vcombine.low %v2908_v4, %v2924_v40  ;;  %v2933_v52 = vcombine.high %v2908_v4, %v2924_v40  ;;  %v2948_v54 = vcombine.low %v2915_v35, %v2931_v45  ;;  %v2949_v63 = vcombine.high %v2915_v35, %v2931_v45 }
 0x241   :  { %5094 = vrot.lane.b32.xlu1 %v24408_v56, %s17681_s15  ;;  %24410 = vst [vmem:[#allocation24_spill] sm:$0xff] %v19108_v32  ;;  %24411 = vst [vmem:[#allocation22_spill] sm:$0xff] %v19111_v0  ;;  %v19114_v16 = vrot.slane %v4616_v9, %v18042_v14  ;;  %v19117_v34 = vrot.slane %v16307_v8, %v18042_v14  ;;  %v16268_v22 = vcombine.high %v19044_v26, %v19047_v58 }
 0x242   :  { %5154 = vrot.lane.b32.xlu0 %v24409_v21, %s17681_s15  ;;  %v2940_v4 = vrot.slane %v2932_v17, %v18049_v27  ;;  %v2947_v45 = vrot.slane %v2933_v52, %v18049_v27  ;;  %v2956_v35 = vrot.slane %v2948_v54, %v18049_v27  ;;  %v2963_v21 = vrot.slane %v2949_v63, %v18049_v27  ;;  %v24415_v63 = vld [vmem:[#allocation92_spill] sm:$0xff] }
 0x243   :  { %v2789_v60 = vpop.permute.xlu1 %2788  ;;  %24412 = vst [vmem:[#allocation74_spill] sm:$0xff] %v19114_v16  ;;  %24413 = vst [vmem:[#allocation87_spill] sm:$0xff] %v19117_v34  ;;  %v1932_v9 = vcombine.low %v19070_v2, %v19081_v50  ;;  %v16269_v8 = vcombine.high %v19070_v2, %v19081_v50  ;;  %v19132_v3 = vrot.slane %v1372_v61, %v18042_v14  ;;  %v24416_v50 = vld [vmem:[#allocation25_spill] sm:$0xff] }
 0x244   :  { %v19123_v40 = vpop.permute.xlu0 %2814  ;;  %v3988_v56 = vcombine.low %v2940_v4, %v2947_v45  ;;  %v16288_v17 = vcombine.high %v2940_v4, %v2947_v45  ;;  %v4004_v52 = vcombine.low %v2956_v35, %v2963_v21  ;;  %v16289_v54 = vcombine.high %v2956_v35, %v2963_v21 }
 0x245   :  { %5126 = vrot.lane.b32.xlu1 %v24414_v30, %s17681_s15  ;;  %v19139_v48 = vrot.slane %v1373_v23, %v18042_v14  ;;  %v1396_v5 = vrot.slane %v1388_v31, %v18042_v14  ;;  %v19143_v2 = vrot.slane %v1389_v59, %v18042_v14  ;;  %v3444_v61 = vcombine.low %v24416_v50, %v2789_v60  ;;  %v24417_v59 = vld [vmem:[#allocation16_spill] sm:$0xff] }
 0x246   :  { %5186 = vrot.lane.b32.xlu0 %v24415_v63, %s17681_s15  ;;  %v4632_v30 = vcombine.low %v19108_v32, %v19111_v0  ;;  %v4648_v4 = vcombine.low %v19114_v16, %v19117_v34  ;;  %v3445_v31 = vcombine.high %v24416_v50, %v2789_v60  ;;  %v19158_v21 = vrot.slane %v3988_v56, %v18042_v14 }
 0x247   :  { %v2821_v29 = vpop.permute.xlu1 %2820  ;;  %v19161_v63 = vrot.slane %v16288_v17, %v18042_v14  ;;  %v19164_v32 = vrot.slane %v4004_v52, %v18042_v14  ;;  %v19176_v56 = vrot.slane %v16289_v54, %v18042_v14  ;;  %v1404_v17 = vcombine.low %v19132_v3, %v1396_v5 }
 0x248   :  { %v3460_v45 = vcombine.low %v19087_v37, %v2821_v29  ;;  %v3461_v35 = vcombine.high %v19087_v37, %v2821_v29  ;;  %v19152_v23 = vpop.permute.xlu0 %2766  ;;  %24418 = vst [vmem:[#allocation61_spill] sm:$0xff] %v19158_v21  ;;  %v19167_v16 = vrot.slane %v4632_v30, %v18049_v27  ;;  %v19170_v29 = vrot.slane %v4648_v4, %v18049_v27  ;;  %v24423_v37 = vld [vmem:[#allocation36_spill] sm:$0xff] }
 0x249   :  { %5158 = vrot.lane.b32.xlu1 %v24417_v59, %s17681_s15  ;;  %24419 = vst [vmem:[#allocation118_spill] sm:$0xff] %v19161_v63  ;;  %24420 = vst [vmem:[#allocation2_spill] sm:$0xff] %v19164_v32  ;;  %v3452_v50 = vrot.slane %v3444_v61, %v18042_v14  ;;  %v24425_v30 = vcombine.low %v19044_v26, %v19047_v58  ;;  %v19187_v4 = vrot.slane %v16268_v22, %v18042_v14  ;;  %v24429_v22 = vld [vmem:[#allocation17_spill] sm:$0xff] }
 0x24a   :  { %24421 = vst [vmem:[#allocation93_spill] sm:$0xff] %v19167_v16  ;;  %24422 = vst [vmem:[#allocation14_spill] sm:$0xff] %v19170_v29  ;;  %v3468_v60 = vrot.slane %v3460_v45, %v18042_v14  ;;  %5088 = vrot.lane.b32.xlu0 %v24423_v37, %s17681_s15  ;;  %v1405_v45 = vcombine.high %v19132_v3, %v1396_v5  ;;  %v4664_v54 = vcombine.low %v19167_v16, %v19170_v29 }
 0x24b   :  { %24424 = vst [vmem:[#allocation92_spill] sm:$0xff] %v19176_v56  ;;  %v2779_v52 = vpop.permute.xlu1 %2778  ;;  %v19184_v59 = vrot.slane %v24425_v30, %v18042_v14  ;;  %24427 = vst [vmem:[#allocation16_spill] sm:$0xff] %v19187_v4  ;;  %v3475_v37 = vrot.slane %v3461_v35, %v18042_v14  ;;  %v4020_v61 = vcombine.low %v19158_v21, %v19161_v63  ;;  %v24428_v30 = vld [vmem:[#allocation35_spill] sm:$0xff] }
 0x24c   :  { %v2799_v34 = vpop.permute.xlu0 %2798  ;;  %v3476_v26 = vcombine.low %v3452_v50, %v3468_v60  ;;  %v3477_v58 = vcombine.high %v3452_v50, %v3468_v60  ;;  %v3104_v18 = vcombine.low %v24428_v30, %v2779_v52  ;;  %v3459_v3 = vrot.slane %v3445_v31, %v18042_v14  ;;  %16949 = vmatprep.subr.msk.mxu0 %vm7444_vm1, %v4664_v54 }
 0x24d   :  { %24426 = vst [vmem:[#allocation25_spill] sm:$0xff] %v19184_v59  ;;  %5190 = vrot.lane.b32.xlu1 %v24429_v22, %s17681_s15  ;;  %v3105_v35 = vcombine.high %v24428_v30, %v2779_v52  ;;  %v4036_v21 = vcombine.low %v19164_v32, %v19176_v56  ;;  %v3120_v60 = vcombine.low %v18915_v47, %v18953_v42  ;;  %v24432_v32 = vld [vmem:[#allocation102_spill] sm:$0xff] }
 0x24e   :  { %v3121_v50 = vcombine.high %v18915_v47, %v18953_v42  ;;  %16950 = vmatpush3.xpose.msk.msra.mxu0 %vm7444_vm1, %v4664_v54  ;;  %v19215_v5 = vrot.slane %v1932_v9, %v18042_v14  ;;  %v19218_v31 = vrot.slane %v16269_v8, %v18042_v14  ;;  %v19221_v52 = vrot.slane %v1404_v17, %v18049_v27  ;;  %v24434_v8 = vld [vmem:[#allocation75_spill] sm:$0xff]  ;;  %v24435_v17 = vld [vmem:[#allocation4_spill] sm:$0xff] }
 0x24f   :  { %v19212_v22 = vpop.permute.xlu1 %2744  ;;  %v3492_v30 = vcombine.low %v3459_v3, %v3475_v37  ;;  %v3493_v0 = vcombine.high %v3459_v3, %v3475_v37  ;;  %5120 = vrot.lane.b32.xlu0 %v24432_v32, %s17681_s15  ;;  %v19226_v42 = vrot.slane %v4020_v61, %v18049_v27  ;;  %v3484_v54 = vrot.slane %v3476_v26, %v18049_v27 }
 0x250   :  { %24430 = vst [vmem:[#allocation36_spill] sm:$0xff] %v19215_v5  ;;  %24431 = vst [vmem:[#allocation35_spill] sm:$0xff] %v19218_v31  ;;  %v2831_v47 = vpop.permute.xlu0 %2830  ;;  %v3491_v9 = vrot.slane %v3477_v58, %v18049_v27  ;;  %v3112_v56 = vrot.slane %v3104_v18, %v18042_v14  ;;  %v3784_v63 = vcombine.low %v24434_v8, %v2799_v34 }
 0x251   :  { %24433 = vst [vmem:[#allocation17_spill] sm:$0xff] %v19226_v42  ;;  %5092 = vrot.lane.b32.xlu1 %v24435_v17, %s17681_s15  ;;  %v3119_v37 = vrot.slane %v3105_v35, %v18042_v14  ;;  %v3785_v3 = vcombine.high %v24434_v8, %v2799_v34  ;;  %v19237_v32 = vrot.slane %v4036_v21, %v18049_v27  ;;  %v24437_v8 = vld [vmem:[#allocation104_spill] sm:$0xff] }
 0x252   :  { %v3800_v61 = vcombine.low %v19152_v23, %v2831_v47  ;;  %v19241_v26 = vrot.slane %v1405_v45, %v18049_v27  ;;  %v3128_v58 = vrot.slane %v3120_v60, %v18042_v14  ;;  %v3135_v18 = vrot.slane %v3121_v50, %v18042_v14 }
 0x253   :  { %24436 = vst [vmem:[#allocation102_spill] sm:$0xff] %v19237_v32  ;;  %v3801_v19 = vcombine.high %v19152_v23, %v2831_v47  ;;  %v2809_v16 = vpop.permute.xlu1 %2808  ;;  %v3500_v17 = vrot.slane %v3492_v30, %v18049_v27  ;;  %v3507_v35 = vrot.slane %v3493_v0, %v18049_v27  ;;  %v4052_v34 = vcombine.low %v19226_v42, %v19237_v32  ;;  %v24438_v30 = vld [vmem:[#allocation18_spill] sm:$0xff] }
 0x254   :  { %v3808_v21 = vrot.slane %v3800_v61, %v18042_v14  ;;  %5152 = vrot.lane.b32.xlu0 %v24437_v8, %s17681_s15  ;;  %v19253_v45 = vpop.permute.xlu0 %2780  ;;  %v3136_v60 = vcombine.low %v3112_v56, %v3128_v58  ;;  %v3137_v29 = vcombine.high %v3112_v56, %v3128_v58  ;;  %v3792_v50 = vrot.slane %v3784_v63, %v18042_v14  ;;  %v24439_v61 = vld [vmem:[#allocation47_spill] sm:$0xff] }
 0x255   :  { %v3815_v23 = vrot.slane %v3801_v19, %v18042_v14  ;;  %5124 = vrot.lane.b32.xlu1 %v24438_v30, %s17681_s15  ;;  %v4532_v0 = vcombine.low %v3484_v54, %v3491_v9  ;;  %v3152_v47 = vcombine.low %v3119_v37, %v3135_v18  ;;  %v3153_v51 = vcombine.high %v3119_v37, %v3135_v18  ;;  %v24440_v37 = vld [vmem:[#allocation106_spill] sm:$0xff] }
 0x256   :  { %v3799_v62 = vrot.slane %v3785_v3, %v18042_v14  ;;  %16923 = vmatprep.subr.msk.mxu1 %vm7444_vm1, %v4052_v34  ;;  %v3036_v8 = vcombine.low %v24439_v61, %v19063_v36  ;;  %v3816_v56 = vcombine.low %v3792_v50, %v3808_v21  ;;  %v3817_v58 = vcombine.high %v3792_v50, %v3808_v21  ;;  %v24441_v21 = vld [vmem:[#allocation20_spill] sm:$0xff] }
 0x257   :  { %16924 = vmatpush3.xpose.msk.msra.mxu1 %vm7444_vm1, %v4052_v34  ;;  %v3052_v63 = vcombine.low %v19212_v22, %v2809_v16  ;;  %v19265_v19 = vpop.permute.xlu1 %2760  ;;  %v16304_v28 = vcombine.high %v3484_v54, %v3491_v9  ;;  %v4548_v30 = vcombine.low %v3500_v17, %v3507_v35  ;;  %v16305_v3 = vcombine.high %v3500_v17, %v3507_v35 }
 0x258   :  { %v3832_v11 = vcombine.low %v3799_v62, %v3815_v23  ;;  %v3833_v42 = vcombine.high %v3799_v62, %v3815_v23  ;;  %5184 = vrot.lane.b32.xlu0 %v24440_v37, %s17681_s15  ;;  %v3144_v18 = vrot.slane %v3136_v60, %v18049_v27  ;;  %v3151_v32 = vrot.slane %v3137_v29, %v18049_v27  ;;  %v19286_v29 = vpop.permute.xlu0 %2754 }
 0x259   :  { %v3053_v34 = vcombine.high %v19212_v22, %v2809_v16  ;;  %5156 = vrot.lane.b32.xlu1 %v24441_v21, %s17681_s15  ;;  %v24442_v54 = vcombine.low %v19139_v48, %v19143_v2  ;;  %v3160_v62 = vrot.slane %v3152_v47, %v18049_v27  ;;  %v3167_v50 = vrot.slane %v3153_v51, %v18049_v27 }
 0x25a   :  { %v24443_v17 = vcombine.low %v24379_v49, %v24378_v13  ;;  %v19289_v16 = vrot.slane %v4532_v0, %v18042_v14  ;;  %v3037_v22 = vcombine.high %v24439_v61, %v19063_v36  ;;  %v3824_v35 = vrot.slane %v3816_v56, %v18049_v27 }
 0x25b   :  { %v19278_v9 = vrot.slane %v24442_v54, %v18049_v27  ;;  %v3831_v60 = vrot.slane %v3817_v58, %v18049_v27  ;;  %v3060_v23 = vrot.slane %v3052_v63, %v18042_v14  ;;  %v24445_v51 = vcombine.low %v18514_v20, %v18517_v1  ;;  %v19300_v47 = vpop.permute.xlu1 %2792  ;;  %v24449_v54 = vld [vmem:[#allocation21_spill] sm:$0xff] }
 0x25c   :  { %16926 = vmatmul.mubr.msk.f32.vlgmr.msra.gmra.mxu1 %vm7444_vm1, %v24443_v17  ;;  %24444 = vst [vmem:[#allocation75_spill] sm:$0xff] %v19289_v16  ;;  %v3044_v37 = vrot.slane %v3036_v8, %v18042_v14  ;;  %v3840_v0 = vrot.slane %v3832_v11, %v18049_v27  ;;  %v3847_v21 = vrot.slane %v3833_v42, %v18049_v27 }
 0x25d   :  { %16932 = vmatprep.mubr.msk.f32.mxu1 %vm7444_vm1, %v24445_v51  ;;  %v19306_v36 = vrot.slane %v16304_v28, %v18042_v14  ;;  %v4192_v61 = vcombine.low %v3144_v18, %v3151_v32  ;;  %v3067_v56 = vrot.slane %v3053_v34, %v18042_v14  ;;  %v19310_v58 = vrot.slane %v4548_v30, %v18042_v14 }
 0x25e   :  { %v19313_v63 = vrot.slane %v16305_v3, %v18042_v14  ;;  %5188 = vrot.lane.b32.xlu1 %v24449_v54, %s17681_s15  ;;  %v16294_v8 = vcombine.high %v3144_v18, %v3151_v32  ;;  %v4208_v17 = vcombine.low %v3160_v62, %v3167_v50  ;;  %v16295_v11 = vcombine.high %v3160_v62, %v3167_v50  ;;  %v19327_v32 = vpop.permute.xlu0 %2818 }
 0x25f   :  { %24446 = vst [vmem:[#allocation4_spill] sm:$0xff] %v19306_v36  ;;  %24447 = vst [vmem:[#allocation104_spill] sm:$0xff] %v19310_v58  ;;  %v4564_v42 = vcombine.low %v19289_v16, %v19306_v36  ;;  %v3051_v28 = vrot.slane %v3037_v22, %v18042_v14  ;;  %v4872_v51 = vcombine.low %v3824_v35, %v3831_v60  ;;  %v19322_v34 = vpop.permute.xlu1 %2824 }
 0x260   :  { %24448 = vst [vmem:[#allocation18_spill] sm:$0xff] %v19313_v63  ;;  %v3068_v1 = vcombine.low %v3044_v37, %v3060_v23  ;;  %v4580_v30 = vcombine.low %v19310_v58, %v19313_v63  ;;  %v16314_v3 = vcombine.high %v3824_v35, %v3831_v60  ;;  %v4888_v20 = vcombine.low %v3840_v0, %v3847_v21 }
 0x261   :  { %v3069_v13 = vcombine.high %v3044_v37, %v3060_v23  ;;  %v19325_v54 = vrot.slane %v4564_v42, %v18049_v27  ;;  %v16315_v18 = vcombine.high %v3840_v0, %v3847_v21  ;;  %v3084_v62 = vcombine.low %v3051_v28, %v3067_v56 }
 0x262   :  { %v19330_v50 = vrot.slane %v4580_v30, %v18049_v27  ;;  %v19333_v22 = vrot.slane %v4192_v61, %v18042_v14  ;;  %v3085_v16 = vcombine.high %v3051_v28, %v3067_v56  ;;  %v19336_v58 = vrot.slane %v16294_v8, %v18042_v14 }
 0x263   :  { %v19339_v35 = vrot.slane %v4208_v17, %v18042_v14  ;;  %v19342_v60 = vrot.slane %v16295_v11, %v18042_v14  ;;  %v24454_v23 = vcombine.high %v19139_v48, %v19143_v2  ;;  %v3664_v0 = vcombine.low %v18985_v55, %v19034_v57  ;;  %v2783_v56 = vpop.permute.xlu1 %2782 }
 0x264   :  { %24450 = vst [vmem:[#allocation47_spill] sm:$0xff] %v19333_v22  ;;  %24451 = vst [vmem:[#allocation106_spill] sm:$0xff] %v19336_v58  ;;  %v4596_v21 = vcombine.low %v19325_v54, %v19330_v50  ;;  %v19355_v61 = vrot.slane %v4872_v51, %v18042_v14  ;;  %v4224_v8 = vcombine.low %v19333_v22, %v19336_v58 }
 0x265   :  { %24452 = vst [vmem:[#allocation20_spill] sm:$0xff] %v19339_v35  ;;  %24453 = vst [vmem:[#allocation21_spill] sm:$0xff] %v19342_v60  ;;  %v19348_v37 = vrot.slane %v24454_v23, %v18049_v27  ;;  %v4240_v17 = vcombine.low %v19339_v35, %v19342_v60  ;;  %v19362_v48 = vrot.slane %v16314_v3, %v18042_v14 }
 0x266   :  { %24455 = vst [vmem:[#allocation133_spill] sm:$0xff] %v19355_v61  ;;  %v19365_v2 = vrot.slane %v4888_v20, %v18042_v14  ;;  %v3076_v11 = vrot.slane %v3068_v1, %v18049_v27  ;;  %v3083_v42 = vrot.slane %v3069_v13, %v18049_v27  ;;  %v3092_v28 = vrot.slane %v3084_v62, %v18049_v27  ;;  %v19382_v1 = vpop.permute.xlu0 %2770  ;;  %v24459_v62 = vld [vmem:[#allocation39_spill] sm:$0xff] }
 0x267   :  { %24456 = vst [vmem:[#allocation134_spill] sm:$0xff] %v19362_v48  ;;  %16951 = vmatprep.subr.msk.mxu0 %vm7444_vm1, %v4596_v21  ;;  %v19372_v51 = vrot.slane %v16315_v18, %v18042_v14  ;;  %v3099_v30 = vrot.slane %v3085_v16, %v18049_v27  ;;  %v19377_v3 = vrot.slane %v4224_v8, %v18049_v27 }
 0x268   :  { %24457 = vst [vmem:[#allocation135_spill] sm:$0xff] %v19365_v2  ;;  %16952 = vmatpush3.xpose.msk.msra.mxu0 %vm7444_vm1, %v4596_v21  ;;  %v19380_v20 = vrot.slane %v4240_v17, %v18049_v27  ;;  %v4904_v13 = vcombine.low %v19355_v61, %v19362_v48  ;;  %v3648_v23 = vcombine.low %v24459_v62, %v19014_v44  ;;  %v19392_v21 = vpop.permute.xlu1 %2748  ;;  %v24460_v48 = vld [vmem:[#allocation72_spill] sm:$0xff] }
 0x269   :  { %24458 = vst [vmem:[#allocation136_spill] sm:$0xff] %v19372_v51  ;;  %v3649_v18 = vcombine.high %v24459_v62, %v19014_v44  ;;  %v3665_v16 = vcombine.high %v18985_v55, %v19034_v57  ;;  %v1948_v8 = vcombine.low %v19184_v59, %v19187_v4  ;;  %v4920_v61 = vcombine.low %v19365_v2, %v19372_v51 }
 0x26a   :  { %v4256_v17 = vcombine.low %v19377_v3, %v19380_v20  ;;  %v19399_v35 = vrot.slane %v4904_v13, %v18049_v27  ;;  %v3240_v60 = vcombine.low %v24460_v48, %v2783_v56  ;;  %v3672_v44 = vrot.slane %v3664_v0, %v18042_v14 }
 0x26b   :  { %v3256_v55 = vcombine.low %v19093_v39, %v19123_v40  ;;  %v4124_v57 = vcombine.low %v3076_v11, %v3083_v42  ;;  %v24461_v62 = vcombine.low %v24381_v7, %v24380_v10  ;;  %v3241_v59 = vcombine.high %v24460_v48, %v2783_v56 }
 0x26c   :  { %v16292_v13 = vcombine.high %v3076_v11, %v3083_v42  ;;  %v4140_v4 = vcombine.low %v3092_v28, %v3099_v30  ;;  %16928 = vmatprep.subr.msk.mxu1 %vm7444_vm1, %v4256_v17  ;;  %v24462_v2 = vcombine.low %v24404_v33, %v18748_v25  ;;  %v19418_v0 = vrot.slane %v4920_v61, %v18049_v27  ;;  %v19424_v56 = vpop.permute.xlu1 %2812 }
 0x26d   :  { %16954 = vmatmul.mubr.msk.f32.vlgmr.msra.gmra.mxu0 %vm7444_vm1, %v24461_v62  ;;  %v3656_v51 = vrot.slane %v3648_v23, %v18042_v14  ;;  %v3257_v22 = vcombine.high %v19093_v39, %v19123_v40  ;;  %v16293_v62 = vcombine.high %v3092_v28, %v3099_v30  ;;  %16929 = vmatpush3.xpose.msk.msra.mxu1 %vm7444_vm1, %v4256_v17  ;;  %v19434_v23 = vpop.permute.xlu0 %2802 }
 0x26e   :  { %16967 = vmatprep.mubr.msk.f32.mxu0 %vm7444_vm1, %v24462_v2  ;;  %v1964_v48 = vcombine.low %v19215_v5, %v19218_v31  ;;  %v2460_v11 = vcombine.low %v19221_v52, %v19241_v26  ;;  %v3679_v2 = vrot.slane %v3665_v16, %v18042_v14  ;;  %v4936_v61 = vcombine.low %v19399_v35, %v19418_v0 }
 0x26f   :  { %v3248_v42 = vrot.slane %v3240_v60, %v18042_v14  ;;  %v3663_v39 = vrot.slane %v3649_v18, %v18042_v14  ;;  %v3680_v40 = vcombine.low %v3656_v51, %v3672_v44  ;;  %v3255_v28 = vrot.slane %v3241_v59, %v18042_v14 }
 0x270   :  { %v19439_v30 = vrot.slane %v4124_v57, %v18042_v14  ;;  %v3681_v17 = vcombine.high %v3656_v51, %v3672_v44  ;;  %v3264_v5 = vrot.slane %v3256_v55, %v18042_v14  ;;  %16963 = vmatprep.subr.msk.mxu0 %vm7444_vm1, %v4936_v61  ;;  %v19444_v16 = vrot.slane %v16292_v13, %v18042_v14  ;;  %v19458_v44 = vpop.permute.xlu1 %2764 }
 0x271   :  { %v19447_v60 = vrot.slane %v4140_v4, %v18042_v14  ;;  %v16284_v18 = vcombine.high %v19221_v52, %v19241_v26  ;;  %v2476_v59 = vcombine.low %v19278_v9, %v19348_v37  ;;  %v3271_v57 = vrot.slane %v3257_v22, %v18042_v14  ;;  %16964 = vmatpush3.xpose.msk.msra.mxu0 %vm7444_vm1, %v4936_v61 }
 0x272   :  { %24463 = vst [vmem:[#allocation39_spill] sm:$0xff] %v19439_v30  ;;  %24464 = vst [vmem:[#allocation72_spill] sm:$0xff] %v19444_v16  ;;  %v19456_v51 = vrot.slane %v16293_v62, %v18042_v14  ;;  %v3696_v55 = vcombine.low %v3663_v39, %v3679_v2  ;;  %v3272_v13 = vcombine.low %v3248_v42, %v3264_v5 }
 0x273   :  { %24465 = vst [vmem:[#allocation137_spill] sm:$0xff] %v19447_v60  ;;  %v3273_v31 = vcombine.high %v3248_v42, %v3264_v5  ;;  %v4156_v4 = vcombine.low %v19439_v30, %v19444_v16  ;;  %v3697_v58 = vcombine.high %v3663_v39, %v3679_v2  ;;  %v3288_v52 = vcombine.low %v3255_v28, %v3271_v57  ;;  %v19471_v5 = vpop.permute.xlu0 %2834 }
 0x274   :  { %24466 = vst [vmem:[#allocation138_spill] sm:$0xff] %v19456_v51  ;;  %v3289_v26 = vcombine.high %v3255_v28, %v3271_v57  ;;  %v4172_v63 = vcombine.low %v19447_v60, %v19456_v51  ;;  %v16285_v22 = vcombine.high %v19278_v9, %v19348_v37  ;;  %v3688_v62 = vrot.slane %v3680_v40, %v18049_v27 }
 0x275   :  { %v3695_v61 = vrot.slane %v3681_v17, %v18049_v27  ;;  %v19469_v36 = vrot.slane %v4156_v4, %v18049_v27  ;;  %v19477_v2 = vrot.slane %v1948_v8, %v18049_v27  ;;  %v19480_v39 = vrot.slane %v1964_v48, %v18049_v27  ;;  %v19492_v17 = vpop.permute.xlu1 %2796 }
 0x276   :  { %v19474_v42 = vrot.slane %v4172_v63, %v18049_v27  ;;  %v19483_v9 = vrot.slane %v2460_v11, %v18042_v14  ;;  %v19486_v37 = vrot.slane %v3696_v55, %v18049_v27  ;;  %v3280_v40 = vrot.slane %v3272_v13, %v18049_v27  ;;  %v24470_v13 = vld [vmem:[#allocation85_spill] sm:$0xff] }
 0x277   :  { %24467 = vst [vmem:[#allocation139_spill] sm:$0xff] %v19469_v36  ;;  %v3287_v28 = vrot.slane %v3273_v31, %v18049_v27  ;;  %v3188_v63 = vcombine.low %v19392_v21, %v19424_v56  ;;  %v19495_v8 = vrot.slane %v3697_v58, %v18049_v27  ;;  %v3296_v48 = vrot.slane %v3288_v52, %v18049_v27 }
 0x278   :  { %24468 = vst [vmem:[#allocation140_spill] sm:$0xff] %v19474_v42  ;;  %24469 = vst [vmem:[#allocation141_spill] sm:$0xff] %v19483_v9  ;;  %v3303_v11 = vrot.slane %v3289_v26, %v18049_v27  ;;  %v4188_v57 = vcombine.low %v19469_v36, %v19474_v42  ;;  %v4736_v55 = vcombine.low %v3688_v62, %v3695_v61 }
 0x279   :  { %v3172_v4 = vcombine.low %v24470_v13, %v19253_v45  ;;  %v3189_v31 = vcombine.high %v19392_v21, %v19424_v56  ;;  %v19506_v60 = vrot.slane %v16284_v18, %v18042_v14  ;;  %v3173_v58 = vcombine.high %v24470_v13, %v19253_v45  ;;  %v19521_v18 = vpop.permute.xlu0 %2752 }
 0x27a   :  { %16930 = vmatprep.subr.msk.mxu1 %vm7444_vm1, %v4188_v57  ;;  %v19514_v26 = vrot.slane %v2476_v59, %v18042_v14  ;;  %v19517_v51 = vrot.slane %v16285_v22, %v18042_v14  ;;  %v16310_v30 = vcombine.high %v3688_v62, %v3695_v61  ;;  %v4328_v16 = vcombine.low %v3280_v40, %v3287_v28 }
 0x27b   :  { %24471 = vst [vmem:[#allocation85_spill] sm:$0xff] %v19506_v60  ;;  %v16298_v21 = vcombine.high %v3280_v40, %v3287_v28  ;;  %16931 = vmatpush3.xpose.msk.msra.mxu1 %vm7444_vm1, %v4188_v57  ;;  %v3196_v56 = vrot.slane %v3188_v63, %v18042_v14  ;;  %v3596_v13 = vcombine.low %v19265_v19, %v19322_v34  ;;  %v2829_v40 = vpop.permute.xlu1 %2828  ;;  %v24474_v57 = vld [vmem:[#allocation52_spill] sm:$0xff] }
 0x27c   :  { %24472 = vst [vmem:[#allocation142_spill] sm:$0xff] %v19514_v26  ;;  %24473 = vst [vmem:[#allocation143_spill] sm:$0xff] %v19517_v51  ;;  %v4344_v59 = vcombine.low %v3296_v48, %v3303_v11  ;;  %v16299_v52 = vcombine.high %v3296_v48, %v3303_v11  ;;  %v3180_v62 = vrot.slane %v3172_v4, %v18042_v14 }
 0x27d   :  { %v3203_v61 = vrot.slane %v3189_v31, %v18042_v14  ;;  %v19532_v28 = vrot.slane %v4736_v55, %v18042_v14  ;;  %v3187_v63 = vrot.slane %v3173_v58, %v18042_v14  ;;  %v3580_v45 = vcombine.low %v24474_v57, %v19300_v47 }
 0x27e   :  { %v3581_v36 = vcombine.high %v24474_v57, %v19300_v47  ;;  %v3392_v48 = vcombine.low %v19286_v29, %v19327_v32  ;;  %v24475_v11 = vcombine.low %v18420_v46, %v18423_v15  ;;  %v3204_v4 = vcombine.low %v3180_v62, %v3196_v56  ;;  %v24482_v46 = vld [vmem:[#allocation100_spill] sm:$0xff] }
 0x27f   :  { %v3205_v31 = vcombine.high %v3180_v62, %v3196_v56  ;;  %v24476_v55 = vcombine.low %v18968_v6, %v18988_v53  ;;  %v19550_v58 = vrot.slane %v4328_v16, %v18042_v14  ;;  %v19553_v47 = vrot.slane %v16298_v21, %v18042_v14 }
 0x280   :  { %16933 = vmatmul.mubr.msk.f32.vlgmr.msra.gmra.mxu1 %vm7444_vm1, %v24475_v11  ;;  %v3597_v57 = vcombine.high %v19265_v19, %v19322_v34  ;;  %v3604_v22 = vrot.slane %v3596_v13, %v18042_v14  ;;  %v19559_v11 = vrot.slane %v4344_v59, %v18042_v14  ;;  %v19562_v56 = vrot.slane %v16299_v52, %v18042_v14 }
 0x281   :  { %16939 = vmatprep.mubr.msk.f32.mxu1 %vm7444_vm1, %v24476_v55  ;;  %24477 = vst [vmem:[#allocation52_spill] sm:$0xff] %v19550_v58  ;;  %24478 = vst [vmem:[#allocation144_spill] sm:$0xff] %v19553_v47  ;;  %v3220_v62 = vcombine.low %v3187_v63, %v3203_v61  ;;  %v3221_v15 = vcombine.high %v3187_v63, %v3203_v61  ;;  %v19564_v55 = vpop.permute.xlu0 %2784  ;;  %v4360_v16 = vcombine.low %v19550_v58, %v19553_v47  ;;  %v2787_v58 = vpop.permute.xlu1 %2786 }
 0x282   :  { %24479 = vst [vmem:[#allocation145_spill] sm:$0xff] %v19559_v11  ;;  %24480 = vst [vmem:[#allocation146_spill] sm:$0xff] %v19562_v56  ;;  %v19569_v21 = vrot.slane %v16310_v30, %v18042_v14  ;;  %v3588_v19 = vrot.slane %v3580_v45, %v18042_v14  ;;  %v19573_v34 = vrot.slane %v3581_v36, %v18042_v14 }
 0x283   :  { %v3393_v13 = vcombine.high %v19286_v29, %v19327_v32  ;;  %v4376_v52 = vcombine.low %v19559_v11, %v19562_v56  ;;  %v3212_v59 = vrot.slane %v3204_v4, %v18049_v27  ;;  %v3219_v61 = vrot.slane %v3205_v31, %v18049_v27 }
 0x284   :  { %v19582_v63 = vrot.slane %v4360_v16, %v18049_v27  ;;  %v3732_v30 = vcombine.low %v19458_v44, %v2829_v40  ;;  %v19586_v45 = vrot.slane %v3392_v48, %v18042_v14  ;;  %v19589_v36 = vrot.slane %v3597_v57, %v18042_v14  ;;  %v24481_v16 = vld [vmem:[#allocation86_spill] sm:$0xff] }
 0x285   :  { %v3612_v29 = vcombine.low %v3588_v19, %v3604_v22  ;;  %v19592_v32 = vrot.slane %v4376_v52, %v18049_v27  ;;  %v3228_v4 = vrot.slane %v3220_v62, %v18049_v27  ;;  %v3235_v31 = vrot.slane %v3221_v15, %v18049_v27  ;;  %v2817_v15 = vpop.permute.xlu0 %2816 }
 0x286   :  { %v3716_v11 = vcombine.low %v24481_v16, %v19492_v17  ;;  %v3733_v56 = vcombine.high %v19458_v44, %v2829_v40  ;;  %v19600_v47 = vrot.slane %v3393_v13, %v18042_v14  ;;  %v3613_v48 = vcombine.high %v3588_v19, %v3604_v22 }
 0x287   :  { %v4392_v57 = vcombine.low %v19582_v63, %v19592_v32  ;;  %v3376_v42 = vcombine.low %v24482_v46, %v2787_v58  ;;  %v4260_v52 = vcombine.low %v3212_v59, %v3219_v61  ;;  %v16296_v25 = vcombine.high %v3212_v59, %v3219_v61  ;;  %v24483_v61 = vld [vmem:[#allocation109_spill] sm:$0xff] }
 0x288   :  { %v3717_v62 = vcombine.high %v24481_v16, %v19492_v17  ;;  %v3740_v33 = vrot.slane %v3732_v30, %v18042_v14  ;;  %v19609_v10 = vrot.slane %v3612_v29, %v18049_v27  ;;  %v3628_v44 = vcombine.low %v19573_v34, %v19589_v36 }
 0x289   :  { %v3629_v22 = vcombine.high %v19573_v34, %v19589_v36  ;;  %16935 = vmatprep.subr.msk.mxu1 %vm7444_vm1, %v4392_v57  ;;  %v3377_v40 = vcombine.high %v24482_v46, %v2787_v58  ;;  %v4276_v19 = vcombine.low %v3228_v4, %v3235_v31  ;;  %v16297_v13 = vcombine.high %v3228_v4, %v3235_v31 }
 0x28a   :  { %v3724_v17 = vrot.slane %v3716_v11, %v18042_v14  ;;  %v3747_v59 = vrot.slane %v3733_v56, %v18042_v14  ;;  %16936 = vmatpush3.xpose.msk.msra.mxu1 %vm7444_vm1, %v4392_v57  ;;  %v3308_v30 = vcombine.low %v24483_v61, %v19564_v55  ;;  %v3324_v29 = vcombine.low %v19521_v18, %v2817_v15 }
 0x28b   :  { %v3325_v16 = vcombine.high %v19521_v18, %v2817_v15  ;;  %v3384_v34 = vrot.slane %v3376_v42, %v18042_v14  ;;  %v3731_v36 = vrot.slane %v3717_v62, %v18042_v14  ;;  %v19627_v58 = vrot.slane %v4260_v52, %v18042_v14 }
 0x28c   :  { %v3748_v46 = vcombine.low %v3724_v17, %v3740_v33  ;;  %v19630_v11 = vrot.slane %v16296_v25, %v18042_v14  ;;  %v19633_v56 = vrot.slane %v3613_v48, %v18049_v27  ;;  %v3309_v4 = vcombine.high %v24483_v61, %v19564_v55 }
 0x28d   :  { %24484 = vst [vmem:[#allocation86_spill] sm:$0xff] %v19627_v58  ;;  %v3749_v31 = vcombine.high %v3724_v17, %v3740_v33  ;;  %v3391_v18 = vrot.slane %v3377_v40, %v18042_v14  ;;  %v3764_v57 = vcombine.low %v3731_v36, %v3747_v59  ;;  %v3765_v42 = vcombine.high %v3731_v36, %v3747_v59 }
 0x28e   :  { %24485 = vst [vmem:[#allocation100_spill] sm:$0xff] %v19630_v11  ;;  %v19639_v62 = vrot.slane %v4276_v19, %v18042_v14  ;;  %v19642_v52 = vrot.slane %v16297_v13, %v18042_v14  ;;  %v3332_v25 = vrot.slane %v3324_v29, %v18042_v14  ;;  %v3408_v15 = vcombine.low %v3384_v34, %v19586_v45 }
 0x28f   :  { %v3409_v48 = vcombine.high %v3384_v34, %v19586_v45  ;;  %v4292_v55 = vcombine.low %v19627_v58, %v19630_v11  ;;  %v3316_v33 = vrot.slane %v3308_v30, %v18042_v14  ;;  %v3339_v40 = vrot.slane %v3325_v16, %v18042_v14  ;;  %v19685_v11 = vpop.permute.xlu0 %2768 }
 0x290   :  { %24486 = vst [vmem:[#allocation109_spill] sm:$0xff] %v19639_v62  ;;  %24487 = vst [vmem:[#allocation147_spill] sm:$0xff] %v19642_v52  ;;  %v3756_v17 = vrot.slane %v3748_v46, %v18049_v27  ;;  %v4308_v19 = vcombine.low %v19639_v62, %v19642_v52  ;;  %v3763_v13 = vrot.slane %v3749_v31, %v18049_v27 }
 0x291   :  { %v3424_v59 = vcombine.low %v3391_v18, %v19600_v47  ;;  %v3425_v61 = vcombine.high %v3391_v18, %v19600_v47  ;;  %v19658_v45 = vrot.slane %v4292_v55, %v18049_v27  ;;  %v3323_v29 = vrot.slane %v3309_v4, %v18042_v14 }
 0x292   :  { %v3772_v30 = vrot.slane %v3764_v57, %v18049_v27  ;;  %v3779_v16 = vrot.slane %v3765_v42, %v18049_v27  ;;  %v19664_v34 = vrot.slane %v4308_v19, %v18049_v27  ;;  %v3340_v36 = vcombine.low %v3316_v33, %v3332_v25  ;;  %v24488_v57 = vld [vmem:[#allocation105_spill] sm:$0xff] }
 0x293   :  { %v3341_v46 = vcombine.high %v3316_v33, %v3332_v25  ;;  %v3416_v31 = vrot.slane %v3408_v15, %v18049_v27  ;;  %v3423_v62 = vrot.slane %v3409_v48, %v18049_v27  ;;  %v19669_v47 = vrot.slane %v3628_v44, %v18049_v27 }
 0x294   :  { %v3356_v18 = vcombine.low %v3323_v29, %v3339_v40  ;;  %v3357_v55 = vcombine.high %v3323_v29, %v3339_v40  ;;  %v4324_v4 = vcombine.low %v19658_v45, %v19664_v34  ;;  %v3920_v42 = vcombine.low %v24488_v57, %v19434_v23 }
 0x295   :  { %v4804_v52 = vcombine.low %v3756_v17, %v3763_v13  ;;  %v3432_v19 = vrot.slane %v3424_v59, %v18049_v27  ;;  %v3439_v25 = vrot.slane %v3425_v61, %v18049_v27  ;;  %v19678_v15 = vrot.slane %v3629_v22, %v18049_v27 }
 0x296   :  { %v16312_v48 = vcombine.high %v3756_v17, %v3763_v13  ;;  %v4820_v33 = vcombine.low %v3772_v30, %v3779_v16  ;;  %16937 = vmatprep.subr.msk.mxu1 %vm7444_vm1, %v4324_v4  ;;  %v3348_v40 = vrot.slane %v3340_v36, %v18049_v27  ;;  %v3355_v29 = vrot.slane %v3341_v46, %v18049_v27 }
 0x297   :  { %v16313_v58 = vcombine.high %v3772_v30, %v3779_v16  ;;  %v4464_v59 = vcombine.low %v3416_v31, %v3423_v62  ;;  %16938 = vmatpush3.xpose.msk.msra.mxu1 %vm7444_vm1, %v4324_v4  ;;  %v3921_v22 = vcombine.high %v24488_v57, %v19434_v23  ;;  %v3364_v61 = vrot.slane %v3356_v18, %v18049_v27 }
 0x298   :  { %v3371_v17 = vrot.slane %v3357_v55, %v18049_v27  ;;  %v16302_v13 = vcombine.high %v3416_v31, %v3423_v62  ;;  %v3928_v44 = vrot.slane %v3920_v42, %v18042_v14  ;;  %v3936_v36 = vcombine.low %v19382_v1, %v19471_v5 }
 0x299   :  { %v4480_v46 = vcombine.low %v3432_v19, %v3439_v25  ;;  %v19696_v30 = vrot.slane %v4804_v52, %v18042_v14  ;;  %v3937_v16 = vcombine.high %v19382_v1, %v19471_v5  ;;  %v16303_v4 = vcombine.high %v3432_v19, %v3439_v25  ;;  %v2801_v19 = vpop.permute.xlu1 %2800 }
 0x29a   :  { %v24490_v23 = vcombine.low %v18924_v41, %v18927_v43  ;;  %v19705_v62 = vrot.slane %v16312_v48, %v18042_v14  ;;  %v19708_v31 = vrot.slane %v4820_v33, %v18042_v14  ;;  %v4396_v18 = vcombine.low %v3348_v40, %v3355_v29 }
 0x29b   :  { %24489 = vst [vmem:[#allocation105_spill] sm:$0xff] %v19696_v30  ;;  %v16300_v55 = vcombine.high %v3348_v40, %v3355_v29  ;;  %v24492_v52 = vcombine.low %v19477_v2, %v19480_v39  ;;  %v19715_v1 = vrot.slane %v16313_v58, %v18042_v14  ;;  %v19718_v5 = vrot.slane %v4464_v59, %v18042_v14  ;;  %v2833_v29 = vpop.permute.xlu0 %2832 }
 0x29c   :  { %16940 = vmatmul.mubr.msk.f32.vlgmr.msra.gmra.mxu1 %vm7444_vm1, %v24490_v23  ;;  %24491 = vst [vmem:[#allocation148_spill] sm:$0xff] %v19708_v31  ;;  %v19721_v57 = vrot.slane %v3921_v22, %v18042_v14  ;;  %v4412_v42 = vcombine.low %v3364_v61, %v3371_v17  ;;  %v4836_v25 = vcombine.low %v19696_v30, %v19705_v62 }
 0x29d   :  { %16946 = vmatprep.mubr.msk.f32.mxu1 %vm7444_vm1, %v24492_v52  ;;  %24493 = vst [vmem:[#allocation149_spill] sm:$0xff] %v19715_v1  ;;  %24494 = vst [vmem:[#allocation150_spill] sm:$0xff] %v19718_v5  ;;  %v19726_v48 = vrot.slane %v16302_v13, %v18042_v14  ;;  %v3944_v33 = vrot.slane %v3936_v36, %v18042_v14  ;;  %v16301_v40 = vcombine.high %v3364_v61, %v3371_v17  ;;  %v24498_v36 = vld [vmem:[#allocation113_spill] sm:$0xff] }
 0x29e   :  { %v4852_v58 = vcombine.low %v19708_v31, %v19715_v1  ;;  %v19732_v59 = vrot.slane %v4480_v46, %v18042_v14  ;;  %v3951_v22 = vrot.slane %v3937_v16, %v18042_v14  ;;  %v19736_v23 = vrot.slane %v4836_v25, %v18049_v27 }
 0x29f   :  { %24495 = vst [vmem:[#allocation151_spill] sm:$0xff] %v19726_v48  ;;  %v19739_v52 = vrot.slane %v16303_v4, %v18042_v14  ;;  %v4496_v13 = vcombine.low %v19718_v5, %v19726_v48  ;;  %v3852_v61 = vcombine.low %v24498_v36, %v2801_v19  ;;  %v19748_v31 = vrot.slane %v4396_v18, %v18042_v14 }
 0x2a0   :  { %24496 = vst [vmem:[#allocation152_spill] sm:$0xff] %v19732_v59  ;;  %v19745_v17 = vrot.slane %v4852_v58, %v18049_v27  ;;  %v19751_v46 = vrot.slane %v16300_v55, %v18042_v14  ;;  %v3868_v16 = vcombine.low %v19685_v11, %v2833_v29  ;;  %v19760_v5 = vrot.slane %v4412_v42, %v18042_v14 }
 0x2a1   :  { %24497 = vst [vmem:[#allocation153_spill] sm:$0xff] %v19739_v52  ;;  %24499 = vst [vmem:[#allocation113_spill] sm:$0xff] %v19748_v31  ;;  %v19755_v25 = vrot.slane %v4496_v13, %v18049_v27  ;;  %v4512_v4 = vcombine.low %v19732_v59, %v19739_v52  ;;  %v3853_v58 = vcombine.high %v24498_v36, %v2801_v19 }
 0x2a2   :  { %24500 = vst [vmem:[#allocation154_spill] sm:$0xff] %v19751_v46  ;;  %24501 = vst [vmem:[#allocation155_spill] sm:$0xff] %v19760_v5  ;;  %v4868_v18 = vcombine.low %v19736_v23, %v19745_v17  ;;  %v19766_v48 = vrot.slane %v16301_v40, %v18042_v14  ;;  %v4428_v55 = vcombine.low %v19748_v31, %v19751_v46  ;;  %v24508_v31 = vld [vmem:[#allocation44_spill] sm:$0xff] }
 0x2a3   :  { %v3952_v1 = vcombine.low %v3928_v44, %v3944_v33  ;;  %v3953_v13 = vcombine.high %v3928_v44, %v3944_v33  ;;  %v3869_v30 = vcombine.high %v19685_v11, %v2833_v29  ;;  %v19772_v59 = vrot.slane %v4512_v4, %v18049_v27 }
 0x2a4   :  { %24502 = vst [vmem:[#allocation156_spill] sm:$0xff] %v19766_v48  ;;  %v16308_v42 = vcombine.high %v19609_v10, %v19633_v56  ;;  %v3860_v19 = vrot.slane %v3852_v61, %v18042_v14  ;;  %16965 = vmatprep.subr.msk.mxu0 %vm7444_vm1, %v4868_v18  ;;  %v19779_v40 = vrot.slane %v4428_v55, %v18049_v27 }
 0x2a5   :  { %v4444_v36 = vcombine.low %v19760_v5, %v19766_v48  ;;  %v4684_v44 = vcombine.low %v19669_v47, %v19678_v15  ;;  %v16309_v11 = vcombine.high %v19669_v47, %v19678_v15  ;;  %v3968_v33 = vcombine.low %v19721_v57, %v3951_v22  ;;  %16966 = vmatpush3.xpose.msk.msra.mxu0 %vm7444_vm1, %v4868_v18 }
 0x2a6   :  { %v4528_v29 = vcombine.low %v19755_v25, %v19772_v59  ;;  %v3969_v61 = vcombine.high %v19721_v57, %v3951_v22  ;;  %v3876_v4 = vrot.slane %v3868_v16, %v18042_v14  ;;  %v3867_v55 = vrot.slane %v3853_v58, %v18042_v14  ;;  %16977 = vmatprep.subr.msk.mxu0 %vm7444_vm1, %v19038_v24 }
 0x2a7   :  { %v19797_v5 = vrot.slane %v4444_v36, %v18049_v27  ;;  %v19800_v47 = vrot.slane %v3952_v1, %v18049_v27  ;;  %v19803_v15 = vrot.slane %v3953_v13, %v18049_v27  ;;  %v3883_v18 = vrot.slane %v3869_v30, %v18042_v14  ;;  %v24505_v30 = vld [vmem:[#allocation102_spill] sm:$0xff]  ;;  %v24506_v13 = vld [vmem:[#allocation17_spill] sm:$0xff] }
 0x2a8   :  { %16942 = vmatprep.subr.msk.mxu1 %vm7444_vm1, %v4528_v29  ;;  %v24503_v57 = vcombine.low %v19486_v37, %v19495_v8  ;;  %v3884_v16 = vcombine.low %v3860_v19, %v3876_v4  ;;  %v24504_v58 = vcombine.low %v18971_v12, %v18974_v38  ;;  %v4053_v36 = vcombine.high %v24506_v13, %v24505_v30  ;;  %v24513_v13 = vld [vmem:[#allocation132_spill] sm:$0xff] }
 0x2a9   :  { %16943 = vmatpush3.xpose.msk.msra.mxu1 %vm7444_vm1, %v4528_v29  ;;  %v4460_v1 = vcombine.low %v19779_v40, %v19797_v5  ;;  %v3885_v48 = vcombine.high %v3860_v19, %v3876_v4  ;;  %v4768_v52 = vcombine.low %v19532_v28, %v19569_v21  ;;  %v3976_v30 = vrot.slane %v3968_v33, %v18049_v27 }
 0x2aa   :  { %v19811_v22 = vrot.slane %v24503_v57, %v18042_v14  ;;  %16968 = vmatmul.mubr.msk.f32.vlgmr.msra.gmra.mxu0 %vm7444_vm1, %v24504_v58  ;;  %v24507_v57 = vld [vmem:[#allocation43_spill] sm:$0xff]  ;;  %v24510_v58 = vcombine.high %v19486_v37, %v19495_v8  ;;  %v3900_v19 = vcombine.low %v3867_v55, %v3883_v18  ;;  %v3901_v4 = vcombine.high %v3867_v55, %v3883_v18 }
 0x2ab   :  { %16978 = vmatpush3.xpose.msk.msra.mxu0 %vm7444_vm1, %v19038_v24  ;;  %v24509_v46 = vcombine.high %v24507_v57, %v24508_v31  ;;  %16944 = vmatprep.subr.msk.mxu1 %vm7444_vm1, %v4460_v1  ;;  %v19840_v24 = vrot.slane %v4768_v52, %v18049_v27  ;;  %v24511_v37 = vcombine.low %v19609_v10, %v19633_v56 }
 0x2ac   :  { %v19832_v29 = vrot.slane %v24510_v58, %v18042_v14  ;;  %16979 = vmatprep.subr.msk.mxu0 %vm7444_vm1, %v4053_v36  ;;  %v3983_v33 = vrot.slane %v3969_v61, %v18049_v27  ;;  %v4393_v52 = vcombine.high %v19582_v63, %v19592_v32  ;;  %v19858_v55 = vrot.slane %v4684_v44, %v18042_v14 }
 0x2ad   :  { %16981 = vmatprep.mubr.msk.f32.mxu0 %vm7444_vm1, %v24509_v46  ;;  %v19848_v8 = vrot.slane %v24511_v37, %v18042_v14  ;;  %v19851_v46 = vrot.slane %v16308_v42, %v18042_v14  ;;  %16945 = vmatpush3.xpose.msk.msra.mxu1 %vm7444_vm1, %v4460_v1  ;;  %v19861_v18 = vrot.slane %v16309_v11, %v18042_v14  ;;  %v24512_v1 = vld [vmem:[#allocation131_spill] sm:$0xff] }
 0x2ae   :  { %v4784_v31 = vcombine.low %v19811_v22, %v19832_v29  ;;  %v3892_v10 = vrot.slane %v3884_v16, %v18049_v27  ;;  %v3899_v56 = vrot.slane %v3885_v48, %v18049_v27  ;;  %v5008_v63 = vcombine.low %v19800_v47, %v19803_v15 }
 0x2af   :  { %16980 = vmatpush3.xpose.msk.msra.mxu0 %vm7444_vm1, %v4053_v36  ;;  %v4700_v61 = vcombine.low %v19848_v8, %v19851_v46  ;;  %v3908_v32 = vrot.slane %v3900_v19, %v18049_v27  ;;  %v2492_v44 = vcombine.low %v19483_v9, %v19506_v60  ;;  %v2508_v48 = vcombine.low %v19514_v26, %v19517_v51  ;;  %v24517_v51 = vld [vmem:[#allocation37_spill] sm:$0xff]  ;;  %v24518_v9 = vld [vmem:[#allocation19_spill] sm:$0xff] }
 0x2b0   :  { %v19867_v42 = vrot.slane %v4784_v31, %v18049_v27  ;;  %16991 = vmatprep.subr.msk.mxu0 %vm7444_vm1, %v4393_v52  ;;  %v3915_v11 = vrot.slane %v3901_v4, %v18049_v27  ;;  %v24514_v36 = vcombine.low %v24512_v1, %v24513_v13  ;;  %v4716_v58 = vcombine.low %v19858_v55, %v19861_v18  ;;  %v24515_v4 = vld [vmem:[#allocation28_spill] sm:$0xff] }
 0x2b1   :  { %v19887_v57 = vrot.slane %v4700_v61, %v18049_v27  ;;  %v16318_v19 = vcombine.high %v19800_v47, %v19803_v15  ;;  %v5024_v31 = vcombine.low %v3976_v30, %v3983_v33  ;;  %v16319_v37 = vcombine.high %v3976_v30, %v3983_v33 }
 0x2b2   :  { %v4800_v16 = vcombine.low %v19840_v24, %v19867_v42  ;;  %16947 = vmatmul.mubr.msk.f32.vlgmr.msra.gmra.mxu1 %vm7444_vm1, %v24514_v36  ;;  %v24516_v26 = vcombine.high %v24379_v49, %v24515_v4  ;;  %v24519_v60 = vcombine.low %v24517_v51, %v24518_v9  ;;  %v4940_v61 = vcombine.low %v3892_v10, %v3899_v56 }
 0x2b3   :  { %v19904_v36 = vrot.slane %v4716_v58, %v18049_v27  ;;  %v4325_v47 = vcombine.high %v19658_v45, %v19664_v34  ;;  %v16316_v15 = vcombine.high %v3892_v10, %v3899_v56  ;;  %v24520_v49 = vcombine.high %v18968_v6, %v18988_v53  ;;  %v24525_v10 = vld [vmem:[#allocation14_spill] sm:$0xff]  ;;  %v24526_v56 = vld [vmem:[#allocation93_spill] sm:$0xff] }
 0x2b4   :  { %16982 = vmatmul.mubr.msk.f32.vlgmr.msra.gmra.mxu0 %vm7444_vm1, %v24516_v26  ;;  %16960 = vmatprep.mubr.msk.f32.mxu1 %vm7444_vm1, %v24519_v60  ;;  %v19914_v60 = vrot.slane %v2492_v44, %v18049_v27  ;;  %v19917_v26 = vrot.slane %v2508_v48, %v18049_v27  ;;  %v4956_v30 = vcombine.low %v3908_v32, %v3915_v11  ;;  %v24529_v58 = vld [vmem:[#allocation130_spill] sm:$0xff] }
 0x2b5   :  { %16956 = vmatprep.subr.msk.mxu1 %vm7444_vm1, %v4800_v16  ;;  %16992 = vmatpush3.xpose.msk.msra.mxu0 %vm7444_vm1, %v4393_v52  ;;  %v16317_v33 = vcombine.high %v3908_v32, %v3915_v11  ;;  %v4732_v52 = vcombine.low %v19887_v57, %v19904_v36  ;;  %v19923_v45 = vrot.slane %v5008_v63, %v18042_v14 }
 0x2b6   :  { %16957 = vmatpush3.xpose.msk.msra.mxu1 %vm7444_vm1, %v4800_v16  ;;  %16995 = vmatprep.mubr.msk.f32.mxu0 %vm7444_vm1, %v24520_v49  ;;  %v19926_v6 = vrot.slane %v16318_v19, %v18042_v14  ;;  %v19929_v53 = vrot.slane %v5024_v31, %v18042_v14  ;;  %v19932_v34 = vrot.slane %v16319_v37, %v18042_v14  ;;  %v24530_v19 = vld [vmem:[#allocation129_spill] sm:$0xff] }
 0x2b7   :  { %16993 = vmatprep.subr.msk.mxu0 %vm7444_vm1, %v4325_v47  ;;  %24521 = vst [vmem:[#allocation102_spill] sm:$0xff] %v19923_v45  ;;  %v4665_v32 = vcombine.high %v24526_v56, %v24525_v10  ;;  %16958 = vmatprep.subr.msk.mxu1 %vm7444_vm1, %v4732_v52  ;;  %v1913_v63 = vcombine.high %v18924_v41, %v18927_v43  ;;  %v24534_v49 = vld [vmem:[#allocation5_spill] sm:$0xff] }
 0x2b8   :  { %24522 = vst [vmem:[#allocation17_spill] sm:$0xff] %v19926_v6  ;;  %24523 = vst [vmem:[#allocation43_spill] sm:$0xff] %v19929_v53  ;;  %v19941_v44 = vrot.slane %v4940_v61, %v18042_v14  ;;  %v5040_v48 = vcombine.low %v19923_v45, %v19926_v6  ;;  %v5056_v11 = vcombine.low %v19929_v53, %v19932_v34 }
 0x2b9   :  { %24524 = vst [vmem:[#allocation44_spill] sm:$0xff] %v19932_v34  ;;  %16994 = vmatpush3.xpose.msk.msra.mxu0 %vm7444_vm1, %v4325_v47  ;;  %v19950_v16 = vrot.slane %v16316_v15, %v18042_v14  ;;  %v2320_v31 = vcombine.low %v24530_v19, %v24529_v58  ;;  %v19955_v41 = vrot.slane %v4956_v30, %v18042_v14  ;;  %v24533_v15 = vld [vmem:[#allocation119_spill] sm:$0xff] }
 0x2ba   :  { %24527 = vst [vmem:[#allocation131_spill] sm:$0xff] %v19941_v44  ;;  %16959 = vmatpush3.xpose.msk.msra.mxu1 %vm7444_vm1, %v4732_v52  ;;  %17005 = vmatprep.subr.msk.mxu0 %vm7444_vm1, %v4665_v32  ;;  %v19958_v43 = vrot.slane %v16317_v33, %v18042_v14  ;;  %v19961_v37 = vrot.slane %v5040_v48, %v18049_v27  ;;  %v24535_v52 = vld [vmem:[#allocation121_spill] sm:$0xff]  ;;  %v24536_v33 = vld [vmem:[#allocation120_spill] sm:$0xff]  ;;  %v19978_v48 = vpop.permute.xlu0 %5110 }
 0x2bb   :  { %24528 = vst [vmem:[#allocation132_spill] sm:$0xff] %v19950_v16  ;;  %24531 = vst [vmem:[#allocation28_spill] sm:$0xff] %v19955_v41  ;;  %v19964_v4 = vrot.slane %v5056_v11, %v18049_v27  ;;  %v2524_v61 = vcombine.low %v19914_v60, %v19917_v26  ;;  %v4972_v47 = vcombine.low %v19941_v44, %v19950_v16  ;;  %v24548_v44 = vld [vmem:[#allocation115_spill] sm:$0xff] }
 0x2bc   :  { %24532 = vst [vmem:[#allocation37_spill] sm:$0xff] %v19958_v43  ;;  %16996 = vmatmul.mubr.msk.f32.vlgmr.msra.gmra.mxu0 %vm7444_vm1, %v1913_v63  ;;  %v2560_v30 = vcombine.low %v24534_v49, %v24533_v15  ;;  %v2576_v10 = vcombine.low %v24536_v33, %v24535_v52  ;;  %v4597_v56 = vcombine.high %v19325_v54, %v19330_v50  ;;  %v19989_v33 = vpop.permute.xlu1 %5142  ;;  %v24538_v15 = vld [vmem:[#allocation54_spill] sm:$0xff]  ;;  %v24546_v49 = vld [vmem:[#allocation13_spill] sm:$0xff] }
 0x2bd   :  { %16961 = vmatmul.mubr.msk.f32.vlgmr.msra.gmra.mxu1 %vm7444_vm1, %v2320_v31  ;;  %v5072_v63 = vcombine.low %v19961_v37, %v19964_v4  ;;  %17006 = vmatpush3.xpose.msk.msra.mxu0 %vm7444_vm1, %v4665_v32  ;;  %v19985_v11 = vrot.slane %v4972_v47, %v18049_v27  ;;  %v4988_v52 = vcombine.low %v19955_v41, %v19958_v43  ;;  %v24537_v31 = vld [vmem:[#allocation53_spill] sm:$0xff]  ;;  %v24547_v43 = vld [vmem:[#allocation114_spill] sm:$0xff] }
 0x2be   :  { %16974 = vmatprep.mubr.msk.f32.mxu1 %vm7444_vm1, %v2524_v61  ;;  %v24539_v54 = vcombine.high %v24537_v31, %v24538_v15  ;;  %17007 = vmatprep.subr.msk.mxu0 %vm7444_vm1, %v4597_v56  ;;  %v20002_v32 = vrot.slane %v2560_v30, %v18049_v27  ;;  %v20005_v61 = vrot.slane %v2576_v10, %v18049_v27 }
 0x2bf   :  { %16970 = vmatprep.subr.msk.mxu1 %vm7444_vm1, %v5072_v63  ;;  %v19997_v50 = vrot.slane %v4988_v52, %v18049_v27  ;;  %v4937_v15 = vcombine.high %v19399_v35, %v19418_v0  ;;  %v20012_v52 = vpop.permute.xlu0 %5076  ;;  %v4869_v0 = vcombine.high %v19736_v23, %v19745_v17  ;;  %v24549_v16 = vcombine.high %v24547_v43, %v24548_v44  ;;  %v24551_v23 = vld [vmem:[#allocation139_spill] sm:$0xff] }
 0x2c0   :  { %17009 = vmatprep.mubr.msk.f32.mxu0 %vm7444_vm1, %v24539_v54  ;;  %16971 = vmatpush3.xpose.msk.msra.mxu1 %vm7444_vm1, %v5072_v63  ;;  %v4257_v63 = vcombine.high %v19377_v3, %v19380_v20  ;;  %v5175_v30 = vpop.permute.xlu1 %5174  ;;  %v2592_v10 = vcombine.low %v20002_v32, %v20005_v61  ;;  %v24542_v3 = vld [vmem:[#allocation7_spill] sm:$0xff]  ;;  %v24543_v20 = vld [vmem:[#allocation12_spill] sm:$0xff]  ;;  %v24600_v6 = vcombine.high %v24530_v19, %v24529_v58 }
 0x2c1   :  { %v5004_v47 = vcombine.low %v19985_v11, %v19997_v50  ;;  %17008 = vmatpush3.xpose.msk.msra.mxu0 %vm7444_vm1, %v4597_v56  ;;  %v24540_v56 = vld [vmem:[#allocation38_spill] sm:$0xff]  ;;  %v24544_v31 = vcombine.high %v24542_v3, %v24543_v20  ;;  %v24556_v3 = vld [vmem:[#allocation61_spill] sm:$0xff] }
 0x2c2   :  { %17019 = vmatprep.subr.msk.mxu0 %vm7444_vm1, %v4937_v15  ;;  %v24541_v35 = vcombine.high %v24381_v7, %v24540_v56  ;;  %v24550_v7 = vld [vmem:[#allocation140_spill] sm:$0xff] }
 0x2c3   :  { %16972 = vmatprep.subr.msk.mxu1 %vm7444_vm1, %v5004_v47  ;;  %v20032_v54 = vrot.slane %v24544_v31, %v18049_v27  ;;  %v4189_v17 = vcombine.high %v24551_v23, %v24550_v7  ;;  %v20053_v44 = vpop.permute.xlu0 %5140  ;;  %v24557_v31 = vld [vmem:[#allocation92_spill] sm:$0xff]  ;;  %v24559_v23 = vld [vmem:[#allocation49_spill] sm:$0xff] }
 0x2c4   :  { %16973 = vmatpush3.xpose.msk.msra.mxu1 %vm7444_vm1, %v5004_v47  ;;  %17010 = vmatmul.mubr.msk.f32.vlgmr.msra.gmra.mxu0 %vm7444_vm1, %v24541_v35  ;;  %v24545_v47 = vld [vmem:[#allocation46_spill] sm:$0xff]  ;;  %v24553_v35 = vld [vmem:[#allocation83_spill] sm:$0xff]  ;;  %v20058_v43 = vpop.permute.xlu1 %5108 }
 0x2c5   :  { %16984 = vmatprep.subr.msk.mxu1 %vm7444_vm1, %v4257_v63  ;;  %v4105_v41 = vcombine.high %v24546_v49, %v24545_v47  ;;  %17020 = vmatpush3.xpose.msk.msra.mxu0 %vm7444_vm1, %v4937_v15  ;;  %v24552_v49 = vld [vmem:[#allocation82_spill] sm:$0xff] }
 0x2c6   :  { %17023 = vmatprep.mubr.msk.f32.mxu0 %vm7444_vm1, %v24549_v16  ;;  %17021 = vmatprep.subr.msk.mxu0 %vm7444_vm1, %v4869_v0  ;;  %v24554_v15 = vcombine.high %v24552_v49, %v24553_v35  ;;  %v24558_v47 = vld [vmem:[#allocation2_spill] sm:$0xff]  ;;  %v24560_v49 = vld [vmem:[#allocation48_spill] sm:$0xff] }
 0x2c7   :  { %16975 = vmatmul.mubr.msk.f32.vlgmr.msra.gmra.mxu1 %vm7444_vm1, %v2592_v10  ;;  %v20046_v56 = vrot.slane %v4105_v41, %v18049_v27  ;;  %v4529_v41 = vcombine.high %v19755_v25, %v19772_v59  ;;  %v24555_v10 = vld [vmem:[#allocation118_spill] sm:$0xff]  ;;  %v4037_v7 = vcombine.high %v24558_v47, %v24557_v31  ;;  %v2085_v35 = vcombine.high %v24560_v49, %v24559_v23  ;;  %v20094_v47 = vpop.permute.xlu0 %5082  ;;  %v24566_v23 = vld [vmem:[#allocation67_spill] sm:$0xff] }
 0x2c8   :  { %16985 = vmatpush3.xpose.msk.msra.mxu1 %vm7444_vm1, %v4257_v63  ;;  %16988 = vmatprep.mubr.msk.f32.mxu1 %vm7444_vm1, %v24554_v15  ;;  %v2457_v63 = vcombine.high %v18971_v12, %v18974_v38  ;;  %v4021_v20 = vcombine.high %v24556_v3, %v24555_v10  ;;  %v5352_v25 = vcombine.low %v19978_v48, %v5175_v30  ;;  %v24562_v38 = vld [vmem:[#allocation63_spill] sm:$0xff] }
 0x2c9   :  { %16986 = vmatprep.subr.msk.mxu1 %vm7444_vm1, %v4189_v17  ;;  %v4122_v16 = vcombine.low %v20032_v54, %v20046_v56  ;;  %17022 = vmatpush3.xpose.msk.msra.mxu0 %vm7444_vm1, %v4869_v0  ;;  %v24561_v0 = vld [vmem:[#allocation122_spill] sm:$0xff]  ;;  %v1981_v12 = vcombine.high %v19477_v2, %v19480_v39  ;;  %v5353_v31 = vcombine.high %v19978_v48, %v5175_v30 }
 0x2ca   :  { %v5336_v15 = vcombine.low %v24561_v0, %v19989_v33  ;;  %v5337_v59 = vcombine.high %v24561_v0, %v19989_v33  ;;  %v20088_v3 = vrot.slane %v4021_v20, %v18049_v27  ;;  %v20091_v33 = vrot.slane %v4037_v7, %v18049_v27 }
 0x2cb   :  { %17033 = vmatprep.subr.msk.mxu0 %vm7444_vm1, %v4122_v16  ;;  %v4461_v39 = vcombine.high %v19779_v40, %v19797_v5  ;;  %v2253_v48 = vcombine.high %v24517_v51, %v24518_v9  ;;  %v20116_v5 = vrot.slane %v2085_v35, %v18049_v27  ;;  %v24568_v40 = vld [vmem:[#allocation51_spill] sm:$0xff]  ;;  %v24570_v51 = vld [vmem:[#allocation144_spill] sm:$0xff]  ;;  %v5367_v53 = vrot.slane %v5353_v31, %v18042_v14 }
 0x2cc   :  { %16987 = vmatpush3.xpose.msk.msra.mxu1 %vm7444_vm1, %v4189_v17  ;;  %17024 = vmatmul.mubr.msk.f32.vlgmr.msra.gmra.mxu0 %vm7444_vm1, %v2457_v63  ;;  %v24563_v17 = vld [vmem:[#allocation64_spill] sm:$0xff]  ;;  %v24565_v63 = vld [vmem:[#allocation66_spill] sm:$0xff]  ;;  %v4054_v20 = vcombine.low %v20088_v3, %v20091_v33  ;;  %v5344_v7 = vrot.slane %v5336_v15, %v18042_v14  ;;  %v5351_v49 = vrot.slane %v5337_v59, %v18042_v14  ;;  %v24575_v59 = vld [vmem:[#allocation9_spill] sm:$0xff] }
 0x2cd   :  { %16998 = vmatprep.subr.msk.mxu1 %vm7444_vm1, %v4529_v41  ;;  %17034 = vmatpush3.xpose.msk.msra.mxu0 %vm7444_vm1, %v4122_v16  ;;  %v24564_v10 = vcombine.low %v24562_v38, %v24563_v17  ;;  %v24567_v2 = vcombine.high %v24565_v63, %v24566_v23  ;;  %v20102_v16 = vpop.permute.xlu1 %5172  ;;  %v24571_v9 = vld [vmem:[#allocation52_spill] sm:$0xff]  ;;  %v24572_v63 = vld [vmem:[#allocation146_spill] sm:$0xff]  ;;  %v24573_v23 = vld [vmem:[#allocation145_spill] sm:$0xff]  ;;  %v5268_v35 = vcombine.low %v20012_v52, %v20053_v44 }
 0x2ce   :  { %17035 = vmatprep.subr.msk.mxu0 %vm7444_vm1, %v4054_v20  ;;  %v4377_v15 = vcombine.high %v24573_v23, %v24572_v63  ;;  %v24578_v63 = vld [vmem:[#allocation100_spill] sm:$0xff]  ;;  %v24579_v23 = vld [vmem:[#allocation86_spill] sm:$0xff] }
 0x2cf   :  { %17037 = vmatprep.mubr.msk.f32.mxu0 %vm7444_vm1, %v24564_v10  ;;  %16989 = vmatmul.mubr.msk.f32.vlgmr.msra.gmra.mxu1 %vm7444_vm1, %v24567_v2  ;;  %v4361_v10 = vcombine.high %v24571_v9, %v24570_v51  ;;  %v24574_v2 = vld [vmem:[#allocation27_spill] sm:$0xff] }
 0x2d0   :  { %16999 = vmatpush3.xpose.msk.msra.mxu1 %vm7444_vm1, %v4529_v41  ;;  %17002 = vmatprep.mubr.msk.f32.mxu1 %vm7444_vm1, %v1981_v12  ;;  %v24569_v41 = vld [vmem:[#allocation50_spill] sm:$0xff]  ;;  %v5360_v12 = vrot.slane %v5352_v25, %v18042_v14  ;;  %v1813_v30 = vcombine.high %v24575_v59, %v24574_v2  ;;  %v4801_v25 = vcombine.high %v19840_v24, %v19867_v42  ;;  %v20150_v42 = vpop.permute.xlu0 %5114  ;;  %v24581_v2 = vld [vmem:[#allocation109_spill] sm:$0xff] }
 0x2d1   :  { %17000 = vmatprep.subr.msk.mxu1 %vm7444_vm1, %v4461_v39  ;;  %v2101_v0 = vcombine.high %v24569_v41, %v24568_v40  ;;  %17036 = vmatpush3.xpose.msk.msra.mxu0 %vm7444_vm1, %v4054_v20  ;;  %v24576_v40 = vld [vmem:[#allocation128_spill] sm:$0xff]  ;;  %v24577_v41 = vld [vmem:[#allocation127_spill] sm:$0xff]  ;;  %v20138_v51 = vrot.slane %v4361_v10, %v18049_v27  ;;  %v20141_v9 = vrot.slane %v4377_v15, %v18049_v27 }
 0x2d2   :  { %v1829_v34 = vcombine.high %v24577_v41, %v24576_v40  ;;  %v20144_v31 = vrot.slane %v1813_v30, %v18049_v27  ;;  %v4293_v20 = vcombine.high %v24579_v23, %v24578_v63  ;;  %v5269_v24 = vcombine.high %v20012_v52, %v20053_v44  ;;  %v24580_v15 = vld [vmem:[#allocation147_spill] sm:$0xff]  ;;  %v20162_v41 = vpop.permute.xlu1 %5086  ;;  %v24583_v63 = vld [vmem:[#allocation56_spill] sm:$0xff] }
 0x2d3   :  { %v4309_v30 = vcombine.high %v24581_v2, %v24580_v15  ;;  %v5368_v59 = vcombine.low %v5344_v7, %v5360_v12  ;;  %v5284_v40 = vcombine.low %v20058_v43, %v20102_v16  ;;  %v4394_v52 = vcombine.low %v20138_v51, %v20141_v9  ;;  %v24582_v44 = vld [vmem:[#allocation55_spill] sm:$0xff] }
 0x2d4   :  { %17001 = vmatpush3.xpose.msk.msra.mxu1 %vm7444_vm1, %v4461_v39  ;;  %v2049_v39 = vcombine.high %v24512_v1, %v24513_v13  ;;  %v20156_v10 = vrot.slane %v1829_v34, %v18049_v27  ;;  %v24584_v23 = vcombine.low %v24582_v44, %v24583_v63  ;;  %v20171_v1 = vrot.slane %v4293_v20, %v18049_v27 }
 0x2d5   :  { %17012 = vmatprep.subr.msk.mxu1 %vm7444_vm1, %v4801_v25  ;;  %v5369_v13 = vcombine.high %v5344_v7, %v5360_v12  ;;  %v5384_v34 = vcombine.low %v5351_v49, %v5367_v53  ;;  %v5385_v15 = vcombine.high %v5351_v49, %v5367_v53  ;;  %v5285_v2 = vcombine.high %v20058_v43, %v20102_v16 }
 0x2d6   :  { %17038 = vmatmul.mubr.msk.f32.vlgmr.msra.gmra.mxu0 %vm7444_vm1, %v24584_v23  ;;  %24585 = vst [vmem:[#allocation19_spill] sm:$0xff] %v20171_v1  ;;  %17047 = vmatprep.subr.msk.mxu0 %vm7444_vm1, %v4394_v52  ;;  %v1846_v45 = vcombine.low %v20144_v31, %v20156_v10  ;;  %v4733_v23 = vcombine.high %v19887_v57, %v19904_v36 }
 0x2d7   :  { %17003 = vmatmul.mubr.msk.f32.vlgmr.msra.gmra.mxu1 %vm7444_vm1, %v2049_v39  ;;  %v20183_v20 = vrot.slane %v4309_v30, %v18049_v27  ;;  %v5276_v53 = vrot.slane %v5268_v35, %v18042_v14  ;;  %v5283_v7 = vrot.slane %v5269_v24, %v18042_v14  ;;  %17048 = vmatpush3.xpose.msk.msra.mxu0 %vm7444_vm1, %v4394_v52  ;;  %v24589_v35 = vld [vmem:[#allocation22_spill] sm:$0xff]  ;;  %v20216_v30 = vpop.permute.xlu1 %5118 }
 0x2d8   :  { %17013 = vmatpush3.xpose.msk.msra.mxu1 %vm7444_vm1, %v4801_v25  ;;  %17016 = vmatprep.mubr.msk.f32.mxu1 %vm7444_vm1, %v2253_v48  ;;  %v20190_v43 = vrot.slane %v2101_v0, %v18049_v27  ;;  %v20193_v16 = vrot.slane %v5368_v59, %v18049_v27  ;;  %v5292_v49 = vrot.slane %v5284_v40, %v18042_v14  ;;  %v20206_v0 = vpop.permute.xlu0 %5146  ;;  %v24590_v25 = vld [vmem:[#allocation24_spill] sm:$0xff]  ;;  %v24592_v59 = vld [vmem:[#allocation87_spill] sm:$0xff]  ;;  %v24593_v40 = vld [vmem:[#allocation74_spill] sm:$0xff] }
 0x2d9   :  { %17051 = vmatprep.mubr.msk.f32.mxu0 %vm7444_vm1, %v1846_v45  ;;  %17014 = vmatprep.subr.msk.mxu1 %vm7444_vm1, %v4733_v23  ;;  %v4326_v57 = vcombine.low %v20171_v1, %v20183_v20  ;;  %v20201_v36 = vrot.slane %v5369_v13, %v18049_v27  ;;  %v20204_v48 = vrot.slane %v5384_v34, %v18049_v27  ;;  %v24595_v13 = vld [vmem:[#allocation89_spill] sm:$0xff] }
 0x2da   :  { %24586 = vst [vmem:[#allocation14_spill] sm:$0xff] %v20193_v16  ;;  %v5073_v12 = vcombine.high %v19961_v37, %v19964_v4  ;;  %v4633_v24 = vcombine.high %v24590_v25, %v24589_v35  ;;  %v20213_v45 = vrot.slane %v5385_v15, %v18049_v27  ;;  %v5299_v39 = vrot.slane %v5285_v2, %v18042_v14  ;;  %v24594_v4 = vld [vmem:[#allocation88_spill] sm:$0xff]  ;;  %v24597_v2 = vld [vmem:[#allocation90_spill] sm:$0xff]  ;;  %v24598_v35 = vld [vmem:[#allocation91_spill] sm:$0xff] }
 0x2db   :  { %24587 = vst [vmem:[#allocation93_spill] sm:$0xff] %v20201_v36  ;;  %24588 = vst [vmem:[#allocation130_spill] sm:$0xff] %v20204_v48  ;;  %17049 = vmatprep.subr.msk.mxu0 %vm7444_vm1, %v4326_v57  ;;  %v4649_v52 = vcombine.high %v24593_v40, %v24592_v59  ;;  %v24596_v34 = vcombine.high %v24594_v4, %v24595_v13  ;;  %v5300_v59 = vcombine.low %v5276_v53, %v5292_v49  ;;  %v24625_v48 = vld [vmem:[#allocation11_spill] sm:$0xff]  ;;  %v24636_v16 = vld [vmem:[#allocation137_spill] sm:$0xff] }
 0x2dc   :  { %24591 = vst [vmem:[#allocation129_spill] sm:$0xff] %v20213_v45  ;;  %17015 = vmatpush3.xpose.msk.msra.mxu1 %vm7444_vm1, %v4733_v23  ;;  %17050 = vmatpush3.xpose.msk.msra.mxu0 %vm7444_vm1, %v4326_v57  ;;  %v20225_v37 = vrot.slane %v4633_v24, %v18049_v27  ;;  %v24599_v23 = vcombine.high %v24597_v2, %v24598_v35  ;;  %v24602_v2 = vld [vmem:[#allocation75_spill] sm:$0xff] }
 0x2dd   :  { %17026 = vmatprep.subr.msk.mxu1 %vm7444_vm1, %v5073_v12  ;;  %v20231_v15 = vrot.slane %v24596_v34, %v18049_v27  ;;  %v5301_v40 = vcombine.high %v5276_v53, %v5292_v49  ;;  %v20240_v57 = vrot.slane %v4649_v52, %v18049_v27  ;;  %v2525_v24 = vcombine.high %v19914_v60, %v19917_v26  ;;  %v24601_v34 = vld [vmem:[#allocation4_spill] sm:$0xff]  ;;  %v24603_v49 = vld [vmem:[#allocation18_spill] sm:$0xff]  ;;  %v5179_v26 = vpop.permute.xlu0 %5178 }
 0x2de   :  { %v20237_v25 = vrot.slane %v24599_v23, %v18049_v27  ;;  %v5005_v13 = vcombine.high %v19985_v11, %v19997_v50  ;;  %v4565_v53 = vcombine.high %v24602_v2, %v24601_v34  ;;  %v24604_v52 = vld [vmem:[#allocation104_spill] sm:$0xff]  ;;  %v5316_v23 = vcombine.low %v5283_v7, %v5299_v39 }
 0x2df   :  { %17017 = vmatmul.mubr.msk.f32.vlgmr.msra.gmra.mxu1 %vm7444_vm1, %v24600_v6  ;;  %v4581_v35 = vcombine.high %v24604_v52, %v24603_v49  ;;  %v5317_v1 = vcombine.high %v5283_v7, %v5299_v39  ;;  %v4666_v60 = vcombine.low %v20225_v37, %v20240_v57  ;;  %v2118_v6 = vcombine.low %v20116_v5, %v20190_v43  ;;  %v20280_v39 = vpop.permute.xlu1 %5150  ;;  %v24609_v52 = vld [vmem:[#allocation106_spill] sm:$0xff] }
 0x2e0   :  { %v1914_v4 = vcombine.low %v20231_v15, %v20237_v25  ;;  %17027 = vmatpush3.xpose.msk.msra.mxu1 %vm7444_vm1, %v5073_v12  ;;  %17030 = vmatprep.mubr.msk.f32.mxu1 %vm7444_vm1, %v2525_v24  ;;  %v20265_v58 = vrot.slane %v4565_v53, %v18049_v27  ;;  %v20273_v50 = vrot.slane %v5300_v59, %v18049_v27  ;;  %v24614_v24 = vld [vmem:[#allocation133_spill] sm:$0xff] }
 0x2e1   :  { %17028 = vmatprep.subr.msk.mxu1 %vm7444_vm1, %v5005_v13  ;;  %v20268_v19 = vrot.slane %v4581_v35, %v18049_v27  ;;  %v20276_v7 = vrot.slane %v5301_v40, %v18049_v27  ;;  %v5472_v12 = vcombine.low %v20094_v47, %v20206_v0  ;;  %17061 = vmatprep.subr.msk.mxu0 %vm7444_vm1, %v4666_v60  ;;  %v24610_v35 = vld [vmem:[#allocation47_spill] sm:$0xff]  ;;  %v24612_v40 = vld [vmem:[#allocation20_spill] sm:$0xff]  ;;  %v20318_v45 = vpop.permute.xlu0 %5080 }
 0x2e2   :  { %17052 = vmatmul.mubr.msk.f32.vlgmr.msra.gmra.mxu0 %vm7444_vm1, %v1914_v4  ;;  %24605 = vst [vmem:[#allocation53_spill] sm:$0xff] %v20273_v50  ;;  %v20294_v34 = vrot.slane %v5316_v23, %v18049_v27  ;;  %v20297_v2 = vrot.slane %v5317_v1, %v18049_v27  ;;  %v5473_v53 = vcombine.high %v20094_v47, %v20206_v0  ;;  %v24613_v23 = vld [vmem:[#allocation134_spill] sm:$0xff]  ;;  %v24621_v47 = vld [vmem:[#allocation77_spill] sm:$0xff] }
 0x2e3   :  { %24606 = vst [vmem:[#allocation54_spill] sm:$0xff] %v20276_v7  ;;  %17062 = vmatpush3.xpose.msk.msra.mxu0 %vm7444_vm1, %v4666_v60  ;;  %17065 = vmatprep.mubr.msk.f32.mxu0 %vm7444_vm1, %v2118_v6  ;;  %v4598_v59 = vcombine.low %v20265_v58, %v20268_v19  ;;  %v5488_v49 = vcombine.low %v20150_v42, %v5179_v26  ;;  %v24611_v6 = vld [vmem:[#allocation21_spill] sm:$0xff]  ;;  %v24623_v7 = vld [vmem:[#allocation79_spill] sm:$0xff]  ;;  %v24624_v50 = vld [vmem:[#allocation110_spill] sm:$0xff] }
 0x2e4   :  { %24607 = vst [vmem:[#allocation38_spill] sm:$0xff] %v20294_v34  ;;  %24608 = vst [vmem:[#allocation7_spill] sm:$0xff] %v20297_v2  ;;  %17029 = vmatpush3.xpose.msk.msra.mxu1 %vm7444_vm1, %v5005_v13  ;;  %v4225_v60 = vcombine.high %v24610_v35, %v24609_v52  ;;  %v4241_v4 = vcombine.high %v24612_v40, %v24611_v6  ;;  %v4905_v11 = vcombine.high %v24614_v24, %v24613_v23  ;;  %v24618_v35 = vld [vmem:[#allocation136_spill] sm:$0xff]  ;;  %v24619_v6 = vld [vmem:[#allocation135_spill] sm:$0xff] }
 0x2e5   :  { %17063 = vmatprep.subr.msk.mxu0 %vm7444_vm1, %v4598_v59  ;;  %v20315_v0 = vrot.slane %v5472_v12, %v18042_v14  ;;  %v5489_v13 = vcombine.high %v20150_v42, %v5179_v26  ;;  %v4921_v23 = vcombine.high %v24619_v6, %v24618_v35  ;;  %v5183_v12 = vpop.permute.xlu1 %5182  ;;  %v2593_v42 = vcombine.high %v20002_v32, %v20005_v61  ;;  %v24620_v26 = vld [vmem:[#allocation78_spill] sm:$0xff]  ;;  %v24626_v6 = vld [vmem:[#allocation112_spill] sm:$0xff]  ;;  %v24627_v32 = vld [vmem:[#allocation111_spill] sm:$0xff] }
 0x2e6   :  { %v20322_v40 = vrot.slane %v4225_v60, %v18049_v27  ;;  %v20325_v24 = vrot.slane %v4241_v4, %v18049_v27  ;;  %v20328_v52 = vrot.slane %v4905_v11, %v18049_v27  ;;  %v1677_v1 = vcombine.high %v24621_v47, %v24620_v26  ;;  %v24628_v47 = vld [vmem:[#allocation103_spill] sm:$0xff]  ;;  %v24629_v26 = vld [vmem:[#allocation33_spill] sm:$0xff] }
 0x2e7   :  { %17064 = vmatpush3.xpose.msk.msra.mxu0 %vm7444_vm1, %v4598_v59  ;;  %v24622_v59 = vld [vmem:[#allocation80_spill] sm:$0xff]  ;;  %v2357_v4 = vcombine.high %v24625_v48, %v24624_v50  ;;  %v20341_v36 = vrot.slane %v5488_v49, %v18042_v14  ;;  %v20346_v35 = vrot.slane %v4921_v23, %v18049_v27  ;;  %v2373_v61 = vcombine.high %v24627_v32, %v24626_v6 }
 0x2e8   :  { %24615 = vst [vmem:[#allocation12_spill] sm:$0xff] %v20322_v40  ;;  %24616 = vst [vmem:[#allocation46_spill] sm:$0xff] %v20325_v24  ;;  %v1693_v60 = vcombine.high %v24623_v7, %v24622_v59  ;;  %v4258_v11 = vcombine.low %v20322_v40, %v20325_v24  ;;  %17031 = vmatmul.mubr.msk.f32.vlgmr.msra.gmra.mxu1 %vm7444_vm1, %v2593_v42  ;;  %v24630_v7 = vcombine.low %v24628_v47, %v24629_v26 }
 0x2e9   :  { %24617 = vst [vmem:[#allocation13_spill] sm:$0xff] %v20328_v52  ;;  %v20356_v48 = vrot.slane %v1677_v1, %v18049_v27  ;;  %v20362_v49 = vrot.slane %v2357_v4, %v18049_v27  ;;  %v5624_v23 = vcombine.low %v20216_v30, %v5183_v12  ;;  %v5625_v59 = vcombine.high %v20216_v30, %v5183_v12  ;;  %v24634_v4 = vld [vmem:[#allocation39_spill] sm:$0xff]  ;;  %v24637_v30 = vld [vmem:[#allocation105_spill] sm:$0xff] }
 0x2ea   :  { %17066 = vmatmul.mubr.msk.f32.vlgmr.msra.gmra.mxu0 %vm7444_vm1, %v24630_v7  ;;  %v20359_v50 = vrot.slane %v1693_v60, %v18049_v27  ;;  %17040 = vmatprep.subr.msk.mxu1 %vm7444_vm1, %v4258_v11  ;;  %v4938_v42 = vcombine.low %v20328_v52, %v20346_v35  ;;  %v20370_v6 = vrot.slane %v2373_v61, %v18049_v27  ;;  %v24633_v60 = vld [vmem:[#allocation72_spill] sm:$0xff]  ;;  %v24635_v7 = vld [vmem:[#allocation138_spill] sm:$0xff]  ;;  %v20388_v52 = vpop.permute.xlu0 %5112 }
 0x2eb   :  { %24631 = vst [vmem:[#allocation114_spill] sm:$0xff] %v20362_v49  ;;  %17041 = vmatpush3.xpose.msk.msra.mxu1 %vm7444_vm1, %v4258_v11  ;;  %v4157_v32 = vcombine.high %v24634_v4, %v24633_v60  ;;  %v4173_v40 = vcombine.high %v24636_v16, %v24635_v7  ;;  %v4837_v12 = vcombine.high %v24637_v30, %v19705_v62  ;;  %v24644_v30 = vld [vmem:[#allocation148_spill] sm:$0xff] }
 0x2ec   :  { %24632 = vst [vmem:[#allocation115_spill] sm:$0xff] %v20370_v6  ;;  %v1710_v1 = vcombine.low %v20356_v48, %v20359_v50  ;;  %v20382_v24 = vrot.slane %v5489_v13, %v18042_v14  ;;  %v5608_v61 = vcombine.low %v20162_v41, %v20280_v39  ;;  %v5609_v11 = vcombine.high %v20162_v41, %v20280_v39 }
 0x2ed   :  { %17075 = vmatprep.subr.msk.mxu0 %vm7444_vm1, %v4938_v42  ;;  %v2390_v60 = vcombine.low %v20362_v49, %v20370_v6  ;;  %v5504_v16 = vcombine.low %v20315_v0, %v20341_v36  ;;  %v20398_v62 = vrot.slane %v4157_v32, %v18049_v27  ;;  %v20401_v13 = vrot.slane %v4173_v40, %v18049_v27  ;;  %v24643_v32 = vld [vmem:[#allocation149_spill] sm:$0xff] }
 0x2ee   :  { %24638 = vst [vmem:[#allocation140_spill] sm:$0xff] %v20382_v24  ;;  %17044 = vmatprep.mubr.msk.f32.mxu1 %vm7444_vm1, %v1710_v1  ;;  %17076 = vmatpush3.xpose.msk.msra.mxu0 %vm7444_vm1, %v4938_v42  ;;  %v20406_v39 = vrot.slane %v5473_v53, %v18042_v14  ;;  %v5632_v4 = vrot.slane %v5624_v23, %v18042_v14 }
 0x2ef   :  { %24639 = vst [vmem:[#allocation139_spill] sm:$0xff] %v20398_v62  ;;  %24640 = vst [vmem:[#allocation82_spill] sm:$0xff] %v20401_v13  ;;  %v5639_v7 = vrot.slane %v5625_v59, %v18042_v14  ;;  %17079 = vmatprep.mubr.msk.f32.mxu0 %vm7444_vm1, %v2390_v60  ;;  %v4190_v1 = vcombine.low %v20398_v62, %v20401_v13  ;;  %v20416_v40 = vrot.slane %v4837_v12, %v18049_v27 }
 0x2f0   :  { %24641 = vst [vmem:[#allocation83_spill] sm:$0xff] %v20406_v39  ;;  %v4853_v41 = vcombine.high %v24644_v30, %v24643_v32  ;;  %v5505_v53 = vcombine.high %v20315_v0, %v20341_v36  ;;  %v5520_v23 = vcombine.low %v20406_v39, %v20382_v24  ;;  %v5616_v59 = vrot.slane %v5608_v61, %v18042_v14  ;;  %v24647_v30 = vld [vmem:[#allocation151_spill] sm:$0xff]  ;;  %v24648_v36 = vld [vmem:[#allocation150_spill] sm:$0xff]  ;;  %v20437_v61 = vpop.permute.xlu0 %5144 }
 0x2f1   :  { %24642 = vst [vmem:[#allocation118_spill] sm:$0xff] %v20416_v40  ;;  %v5623_v60 = vrot.slane %v5609_v11, %v18042_v14  ;;  %v20427_v42 = vrot.slane %v5504_v16, %v18049_v27  ;;  %17042 = vmatprep.subr.msk.mxu1 %vm7444_vm1, %v4190_v1  ;;  %v4497_v0 = vcombine.high %v24648_v36, %v24647_v30  ;;  %v24649_v11 = vld [vmem:[#allocation153_spill] sm:$0xff]  ;;  %v24650_v16 = vld [vmem:[#allocation152_spill] sm:$0xff]  ;;  %v24652_v39 = vld [vmem:[#allocation58_spill] sm:$0xff] }
 0x2f2   :  { %v20433_v32 = vrot.slane %v4853_v41, %v18049_v27  ;;  %v5640_v62 = vcombine.low %v5616_v59, %v5632_v4  ;;  %v5641_v13 = vcombine.high %v5616_v59, %v5632_v4  ;;  %17043 = vmatpush3.xpose.msk.msra.mxu1 %vm7444_vm1, %v4190_v1  ;;  %v24651_v41 = vld [vmem:[#allocation57_spill] sm:$0xff]  ;;  %v24654_v4 = vld [vmem:[#allocation59_spill] sm:$0xff]  ;;  %v24655_v59 = vld [vmem:[#allocation60_spill] sm:$0xff] }
 0x2f3   :  { %24645 = vst [vmem:[#allocation61_spill] sm:$0xff] %v20427_v42  ;;  %v5656_v2 = vcombine.low %v5623_v60, %v5639_v7  ;;  %v4513_v42 = vcombine.high %v24650_v16, %v24649_v11  ;;  %v20445_v24 = vrot.slane %v4497_v0, %v18049_v27  ;;  %v24653_v30 = vcombine.high %v24651_v41, %v24652_v39  ;;  %v24657_v16 = vld [vmem:[#allocation96_spill] sm:$0xff]  ;;  %v24658_v0 = vld [vmem:[#allocation97_spill] sm:$0xff]  ;;  %v24660_v39 = vld [vmem:[#allocation98_spill] sm:$0xff] }
 0x2f4   :  { %24646 = vst [vmem:[#allocation92_spill] sm:$0xff] %v20433_v32  ;;  %v4870_v12 = vcombine.low %v20416_v40, %v20433_v32  ;;  %v24656_v34 = vcombine.high %v24654_v4, %v24655_v59  ;;  %v5657_v49 = vcombine.high %v5623_v60, %v5639_v7  ;;  %v24659_v40 = vcombine.high %v24657_v16, %v24658_v0  ;;  %v24661_v41 = vld [vmem:[#allocation99_spill] sm:$0xff]  ;;  %v24664_v60 = vld [vmem:[#allocation25_spill] sm:$0xff] }
 0x2f5   :  { %v20451_v36 = vrot.slane %v24653_v30, %v18049_v27  ;;  %v20460_v11 = vrot.slane %v4513_v42, %v18049_v27  ;;  %v24662_v30 = vcombine.high %v24660_v39, %v24661_v41  ;;  %v24663_v42 = vld [vmem:[#allocation16_spill] sm:$0xff]  ;;  %v24665_v59 = vld [vmem:[#allocation35_spill] sm:$0xff]  ;;  %v20484_v0 = vrot.slane %v5640_v62, %v18049_v27 }
 0x2f6   :  { %v20457_v1 = vrot.slane %v24656_v34, %v18049_v27  ;;  %v20466_v32 = vrot.slane %v24659_v40, %v18049_v27  ;;  %17077 = vmatprep.subr.msk.mxu0 %vm7444_vm1, %v4870_v12  ;;  %v4123_v34 = vcombine.high %v20032_v54, %v20046_v56  ;;  %v1949_v4 = vcombine.high %v24664_v60, %v24663_v42  ;;  %v24666_v40 = vld [vmem:[#allocation36_spill] sm:$0xff] }
 0x2f7   :  { %v20472_v6 = vrot.slane %v24662_v30, %v18049_v27  ;;  %v1965_v16 = vcombine.high %v24666_v40, %v24665_v59  ;;  %17078 = vmatpush3.xpose.msk.msra.mxu0 %vm7444_vm1, %v4870_v12  ;;  %v4530_v39 = vcombine.low %v20445_v24, %v20460_v11  ;;  %v1575_v56 = vcombine.high %v24562_v38, %v24563_v17  ;;  %v20510_v38 = vpop.permute.xlu0 %5176  ;;  %v24667_v17 = vld [vmem:[#allocation154_spill] sm:$0xff]  ;;  %v24670_v59 = vld [vmem:[#allocation155_spill] sm:$0xff] }
 0x2f8   :  { %v1778_v7 = vcombine.low %v20451_v36, %v20457_v1  ;;  %v20494_v41 = vrot.slane %v5641_v13, %v18049_v27  ;;  %17089 = vmatprep.subr.msk.mxu0 %vm7444_vm1, %v4123_v34  ;;  %v20499_v62 = vrot.slane %v1949_v4, %v18049_v27  ;;  %v20505_v30 = vrot.slane %v5656_v2, %v18049_v27  ;;  %v24668_v13 = vld [vmem:[#allocation113_spill] sm:$0xff] }
 0x2f9   :  { %v2458_v54 = vcombine.low %v20466_v32, %v20472_v6  ;;  %v20502_v12 = vrot.slane %v1965_v16, %v18049_v27  ;;  %v20508_v42 = vrot.slane %v5657_v49, %v18049_v27  ;;  %17054 = vmatprep.subr.msk.mxu1 %vm7444_vm1, %v4530_v39  ;;  %v4429_v60 = vcombine.high %v24668_v13, %v24667_v17 }
 0x2fa   :  { %17045 = vmatmul.mubr.msk.f32.vlgmr.msra.gmra.mxu1 %vm7444_vm1, %v1778_v7  ;;  %v24669_v7 = vld [vmem:[#allocation156_spill] sm:$0xff]  ;;  %v20518_v40 = vrot.slane %v5505_v53, %v18049_v27  ;;  %v5404_v2 = vcombine.low %v20318_v45, %v20437_v61  ;;  %v20527_v16 = vrot.slane %v5520_v23, %v18049_v27  ;;  %v5405_v17 = vcombine.high %v20318_v45, %v20437_v61  ;;  %v24702_v61 = vld [vmem:[#allocation5_spill] sm:$0xff] }
 0x2fb   :  { %v4445_v4 = vcombine.high %v24670_v59, %v24669_v7  ;;  %17080 = vmatmul.mubr.msk.f32.vlgmr.msra.gmra.mxu0 %vm7444_vm1, %v2458_v54  ;;  %17055 = vmatpush3.xpose.msk.msra.mxu1 %vm7444_vm1, %v4530_v39  ;;  %v1982_v49 = vcombine.low %v20499_v62, %v20502_v12  ;;  %v20534_v53 = vrot.slane %v4429_v60, %v18049_v27  ;;  %v24675_v39 = vld [vmem:[#allocation117_spill] sm:$0xff] }
 0x2fc   :  { %17090 = vmatpush3.xpose.msk.msra.mxu0 %vm7444_vm1, %v4123_v34  ;;  %17093 = vmatprep.mubr.msk.f32.mxu0 %vm7444_vm1, %v1575_v56  ;;  %v4055_v13 = vcombine.high %v20088_v3, %v20091_v33  ;;  %v4769_v60 = vcombine.high %v19532_v28, %v19569_v21  ;;  %v4785_v7 = vcombine.high %v19811_v22, %v19832_v29  ;;  %v24671_v22 = vld [vmem:[#allocation29_spill] sm:$0xff]  ;;  %v24672_v29 = vld [vmem:[#allocation3_spill] sm:$0xff]  ;;  %v24674_v34 = vld [vmem:[#allocation116_spill] sm:$0xff] }
 0x2fd   :  { %17058 = vmatprep.mubr.msk.f32.mxu1 %vm7444_vm1, %v1982_v49  ;;  %v20542_v23 = vrot.slane %v4445_v4, %v18049_v27  ;;  %v20555_v59 = vrot.slane %v5404_v2, %v18042_v14  ;;  %v4395_v33 = vcombine.high %v20138_v51, %v20141_v9  ;;  %v20564_v49 = vpop.permute.xlu0 %5090  ;;  %v24673_v2 = vcombine.high %v24671_v22, %v24672_v29  ;;  %v24679_v4 = vld [vmem:[#allocation126_spill] sm:$0xff]  ;;  %v24680_v22 = vld [vmem:[#allocation125_spill] sm:$0xff] }
 0x2fe   :  { %17091 = vmatprep.subr.msk.mxu0 %vm7444_vm1, %v4055_v13  ;;  %v20568_v28 = vrot.slane %v4769_v60, %v18049_v27  ;;  %v20571_v21 = vrot.slane %v4785_v7, %v18049_v27  ;;  %v24676_v51 = vcombine.high %v24674_v34, %v24675_v39  ;;  %v24677_v60 = vld [vmem:[#allocation124_spill] sm:$0xff]  ;;  %v24678_v7 = vld [vmem:[#allocation123_spill] sm:$0xff]  ;;  %v2237_v29 = vcombine.high %v24680_v22, %v24679_v4 }
 0x2ff   :  { %v4462_v3 = vcombine.low %v20534_v53, %v20542_v23  ;;  %v20577_v56 = vrot.slane %v24673_v2, %v18049_v27  ;;  %v2221_v54 = vcombine.high %v24678_v7, %v24677_v60  ;;  %v1847_v2 = vcombine.high %v20144_v31, %v20156_v10  ;;  %v24683_v31 = vld [vmem:[#allocation102_spill] sm:$0xff] }
 0x300   :  { %17092 = vmatpush3.xpose.msk.msra.mxu0 %vm7444_vm1, %v4055_v13  ;;  %v20583_v9 = vrot.slane %v24676_v51, %v18049_v27  ;;  %v1643_v13 = vcombine.high %v24582_v44, %v24583_v63  ;;  %v4802_v39 = vcombine.low %v20568_v28, %v20571_v21  ;;  %v4701_v44 = vcombine.high %v19848_v8, %v19851_v46  ;;  %v24681_v51 = vld [vmem:[#allocation19_spill] sm:$0xff]  ;;  %v24682_v46 = vld [vmem:[#allocation17_spill] sm:$0xff] }
 0x301   :  { %17056 = vmatprep.subr.msk.mxu1 %vm7444_vm1, %v4462_v3  ;;  %17103 = vmatprep.subr.msk.mxu0 %vm7444_vm1, %v4395_v33  ;;  %v20604_v63 = vrot.slane %v2221_v54, %v18049_v27  ;;  %v20607_v4 = vrot.slane %v2237_v29, %v18049_v27  ;;  %v4327_v60 = vcombine.high %v24681_v51, %v20183_v20  ;;  %v24684_v54 = vld [vmem:[#allocation44_spill] sm:$0xff] }
 0x302   :  { %17057 = vmatpush3.xpose.msk.msra.mxu1 %vm7444_vm1, %v4462_v3  ;;  %v2050_v34 = vcombine.low %v20577_v56, %v20583_v9  ;;  %v4717_v3 = vcombine.high %v19858_v55, %v19861_v18  ;;  %v20616_v8 = vrot.slane %v4701_v44, %v18049_v27  ;;  %v5041_v10 = vcombine.high %v24683_v31, %v24682_v46 }
 0x303   :  { %17094 = vmatmul.mubr.msk.f32.vlgmr.msra.gmra.mxu0 %vm7444_vm1, %v1643_v13  ;;  %17068 = vmatprep.subr.msk.mxu1 %vm7444_vm1, %v4802_v39  ;;  %v24685_v13 = vld [vmem:[#allocation43_spill] sm:$0xff]  ;;  %v2254_v55 = vcombine.low %v20604_v63, %v20607_v4  ;;  %v4667_v20 = vcombine.high %v20225_v37, %v20240_v57  ;;  %v24689_v57 = vld [vmem:[#allocation70_spill] sm:$0xff]  ;;  %v1915_v31 = vcombine.high %v20231_v15, %v20237_v25 }
 0x304   :  { %17104 = vmatpush3.xpose.msk.msra.mxu0 %vm7444_vm1, %v4395_v33  ;;  %v5057_v7 = vcombine.high %v24685_v13, %v24684_v54  ;;  %17107 = vmatprep.mubr.msk.f32.mxu0 %vm7444_vm1, %v1847_v2  ;;  %v20627_v18 = vrot.slane %v4717_v3, %v18049_v27  ;;  %v20631_v33 = vpop.permute.xlu0 %5122  ;;  %v20636_v22 = vrot.slane %v5041_v10, %v18049_v27  ;;  %v24687_v2 = vld [vmem:[#allocation69_spill] sm:$0xff] }
 0x305   :  { %17059 = vmatmul.mubr.msk.f32.vlgmr.msra.gmra.mxu1 %vm7444_vm1, %v2050_v34  ;;  %17105 = vmatprep.subr.msk.mxu0 %vm7444_vm1, %v4327_v60  ;;  %v24686_v34 = vld [vmem:[#allocation68_spill] sm:$0xff]  ;;  %v24692_v10 = vld [vmem:[#allocation85_spill] sm:$0xff]  ;;  %v4599_v45 = vcombine.high %v20265_v58, %v20268_v19  ;;  %v2187_v19 = vcombine.high %v24628_v47, %v24629_v26  ;;  %v24709_v47 = vld [vmem:[#allocation46_spill] sm:$0xff] }
 0x306   :  { %17069 = vmatpush3.xpose.msk.msra.mxu1 %vm7444_vm1, %v4802_v39  ;;  %v20639_v29 = vrot.slane %v5057_v7, %v18049_v27  ;;  %v24688_v44 = vcombine.high %v24686_v34, %v24687_v2  ;;  %17072 = vmatprep.mubr.msk.f32.mxu1 %vm7444_vm1, %v2254_v55  ;;  %v4734_v37 = vcombine.low %v20616_v8, %v20627_v18  ;;  %v24690_v39 = vld [vmem:[#allocation71_spill] sm:$0xff]  ;;  %v24693_v54 = vld [vmem:[#allocation141_spill] sm:$0xff]  ;;  %v24695_v2 = vld [vmem:[#allocation142_spill] sm:$0xff] }
 0x307   :  { %v24691_v51 = vcombine.high %v24689_v57, %v24690_v39  ;;  %v2493_v13 = vcombine.high %v24693_v54, %v24692_v10  ;;  %v5421_v7 = vcombine.high %v20388_v52, %v20510_v38  ;;  %v24694_v34 = vld [vmem:[#allocation143_spill] sm:$0xff]  ;;  %v24696_v57 = vld [vmem:[#allocation132_spill] sm:$0xff] }
 0x308   :  { %v20645_v3 = vrot.slane %v24688_v44, %v18049_v27  ;;  %17106 = vmatpush3.xpose.msk.msra.mxu0 %vm7444_vm1, %v4327_v60  ;;  %v5074_v55 = vcombine.low %v20636_v22, %v20639_v29  ;;  %v2509_v44 = vcombine.high %v24695_v2, %v24694_v34  ;;  %v24697_v39 = vld [vmem:[#allocation131_spill] sm:$0xff]  ;;  %17070 = vmatprep.subr.msk.mxu1 %vm7444_vm1, %v4734_v37  ;;  %v24698_v60 = vld [vmem:[#allocation37_spill] sm:$0xff]  ;;  %v24699_v10 = vld [vmem:[#allocation28_spill] sm:$0xff] }
 0x309   :  { %v20654_v46 = vrot.slane %v24691_v51, %v18049_v27  ;;  %v4973_v51 = vcombine.high %v24697_v39, %v24696_v57  ;;  %17117 = vmatprep.subr.msk.mxu0 %vm7444_vm1, %v4667_v20  ;;  %v20674_v25 = vrot.slane %v2493_v13, %v18049_v27  ;;  %v4989_v54 = vcombine.high %v24699_v10, %v24698_v60  ;;  %v24710_v26 = vld [vmem:[#allocation12_spill] sm:$0xff] }
 0x30a   :  { %v20682_v34 = vrot.slane %v5405_v17, %v18042_v14  ;;  %17071 = vmatpush3.xpose.msk.msra.mxu1 %vm7444_vm1, %v4734_v37  ;;  %v20686_v2 = vrot.slane %v2509_v44, %v18049_v27  ;;  %v2119_v57 = vcombine.high %v20116_v5, %v20190_v43  ;;  %v24703_v17 = vld [vmem:[#allocation119_spill] sm:$0xff]  ;;  %v20706_v5 = vpop.permute.xlu0 %5154  ;;  %v24708_v10 = vcombine.low %v20388_v52, %v20510_v38  ;;  %v24711_v52 = vld [vmem:[#allocation13_spill] sm:$0xff] }
 0x30b   :  { %v2322_v15 = vcombine.low %v20645_v3, %v20654_v46  ;;  %v20691_v13 = vrot.slane %v4973_v51, %v18049_v27  ;;  %17082 = vmatprep.subr.msk.mxu1 %vm7444_vm1, %v5074_v55  ;;  %17108 = vmatmul.mubr.msk.f32.vlgmr.msra.gmra.mxu0 %vm7444_vm1, %v1915_v31  ;;  %v20696_v39 = vrot.slane %v4989_v54, %v18049_v27  ;;  %v24705_v31 = vld [vmem:[#allocation120_spill] sm:$0xff]  ;;  %v24706_v51 = vld [vmem:[#allocation121_spill] sm:$0xff] }
 0x30c   :  { %v24704_v37 = vcombine.high %v24702_v61, %v24703_v17  ;;  %v2526_v43 = vcombine.low %v20674_v25, %v20686_v2  ;;  %17118 = vmatpush3.xpose.msk.msra.mxu0 %vm7444_vm1, %v4667_v20  ;;  %17121 = vmatprep.mubr.msk.f32.mxu0 %vm7444_vm1, %v2119_v57  ;;  %v24707_v60 = vcombine.high %v24705_v31, %v24706_v51  ;;  %v24712_v17 = vld [vmem:[#allocation14_spill] sm:$0xff] }
 0x30d   :  { %24700 = vst [vmem:[#allocation2_spill] sm:$0xff] %v20691_v13  ;;  %24701 = vst [vmem:[#allocation49_spill] sm:$0xff] %v20696_v39  ;;  %v20724_v54 = vrot.slane %v24708_v10, %v18042_v14  ;;  %v20727_v61 = vrot.slane %v5421_v7, %v18042_v14  ;;  %17073 = vmatmul.mubr.msk.f32.vlgmr.msra.gmra.mxu1 %vm7444_vm1, %v2322_v15  ;;  %v5006_v20 = vcombine.low %v20691_v13, %v20696_v39  ;;  %v24729_v13 = vld [vmem:[#allocation54_spill] sm:$0xff] }
 0x30e   :  { %v20704_v44 = vrot.slane %v24704_v37, %v18049_v27  ;;  %v20716_v58 = vrot.slane %v24707_v60, %v18049_v27  ;;  %17119 = vmatprep.subr.msk.mxu0 %vm7444_vm1, %v4599_v45  ;;  %17083 = vmatpush3.xpose.msk.msra.mxu1 %vm7444_vm1, %v5074_v55  ;;  %v4259_v57 = vcombine.high %v24710_v26, %v24709_v47  ;;  %v24713_v37 = vld [vmem:[#allocation93_spill] sm:$0xff] }
 0x30f   :  { %17086 = vmatprep.mubr.msk.f32.mxu1 %vm7444_vm1, %v2526_v43  ;;  %v4939_v38 = vcombine.high %v24711_v52, %v20346_v35  ;;  %17084 = vmatprep.subr.msk.mxu1 %vm7444_vm1, %v5006_v20  ;;  %v1711_v15 = vcombine.high %v20356_v48, %v20359_v50  ;;  %v24714_v55 = vcombine.low %v24712_v17, %v24713_v37  ;;  %v24718_v35 = vld [vmem:[#allocation130_spill] sm:$0xff]  ;;  %v24719_v60 = vld [vmem:[#allocation129_spill] sm:$0xff]  ;;  %v24722_v48 = vld [vmem:[#allocation115_spill] sm:$0xff] }
 0x310   :  { %v2594_v7 = vcombine.low %v20704_v44, %v20716_v58  ;;  %v24716_v43 = vcombine.high %v24712_v17, %v24713_v37  ;;  %v24720_v10 = vcombine.low %v24718_v35, %v24719_v60  ;;  %17120 = vmatpush3.xpose.msk.msra.mxu0 %vm7444_vm1, %v4599_v45  ;;  %v24723_v50 = vld [vmem:[#allocation114_spill] sm:$0xff]  ;;  %v24724_v52 = vcombine.high %v24718_v35, %v24719_v60 }
 0x311   :  { %v20748_v31 = vrot.slane %v24714_v55, %v18042_v14  ;;  %v2391_v26 = vcombine.high %v24723_v50, %v24722_v48  ;;  %v2459_v37 = vcombine.high %v20466_v32, %v20472_v6  ;;  %17131 = vmatprep.subr.msk.mxu0 %vm7444_vm1, %v4939_v38  ;;  %v24728_v50 = vld [vmem:[#allocation53_spill] sm:$0xff]  ;;  %v5187_v6 = vpop.permute.xlu0 %5186 }
 0x312   :  { %v20754_v51 = vrot.slane %v24716_v43, %v18042_v14  ;;  %v20760_v47 = vrot.slane %v24720_v10, %v18042_v14  ;;  %v20769_v55 = vrot.slane %v24724_v52, %v18042_v14  ;;  %v24726_v43 = vld [vmem:[#allocation92_spill] sm:$0xff]  ;;  %v24727_v10 = vld [vmem:[#allocation118_spill] sm:$0xff]  ;;  %v24730_v35 = vcombine.low %v24728_v50, %v24729_v13  ;;  %17085 = vmatpush3.xpose.msk.msra.mxu1 %vm7444_vm1, %v5006_v20 }
 0x313   :  { %24715 = vst [vmem:[#allocation48_spill] sm:$0xff] %v20748_v31  ;;  %v4871_v45 = vcombine.high %v24727_v10, %v24726_v43  ;;  %v24732_v52 = vcombine.high %v24728_v50, %v24729_v13  ;;  %v24734_v43 = vld [vmem:[#allocation38_spill] sm:$0xff]  ;;  %v24735_v10 = vld [vmem:[#allocation7_spill] sm:$0xff]  ;;  %v24740_v13 = vcombine.low %v20484_v0, %v20494_v41  ;;  %17096 = vmatprep.subr.msk.mxu1 %vm7444_vm1, %v4259_v57 }
 0x314   :  { %24717 = vst [vmem:[#allocation122_spill] sm:$0xff] %v20754_v51  ;;  %24721 = vst [vmem:[#allocation63_spill] sm:$0xff] %v20760_v47  ;;  %v6456_v48 = vcombine.low %v20748_v31, %v20754_v51  ;;  %v20784_v60 = vrot.slane %v24730_v35, %v18042_v14  ;;  %v6472_v32 = vcombine.low %v20760_v47, %v20769_v55  ;;  %17122 = vmatmul.mubr.msk.f32.vlgmr.msra.gmra.mxu0 %vm7444_vm1, %v2187_v19 }
 0x315   :  { %24725 = vst [vmem:[#allocation64_spill] sm:$0xff] %v20769_v55  ;;  %v20790_v17 = vrot.slane %v24732_v52, %v18042_v14  ;;  %v24736_v31 = vcombine.low %v24734_v43, %v24735_v10  ;;  %v24738_v35 = vcombine.high %v24734_v43, %v24735_v10  ;;  %v20811_v20 = vrot.slane %v24740_v13, %v18042_v14 }
 0x316   :  { %24731 = vst [vmem:[#allocation66_spill] sm:$0xff] %v20784_v60  ;;  %v20816_v50 = vrot.slane %v6456_v48, %v18049_v27  ;;  %v24743_v52 = vcombine.high %v20484_v0, %v20494_v41  ;;  %17132 = vmatpush3.xpose.msk.msra.mxu0 %vm7444_vm1, %v4939_v38  ;;  %17135 = vmatprep.mubr.msk.f32.mxu0 %vm7444_vm1, %v2391_v26  ;;  %v24748_v41 = vld [vmem:[#allocation82_spill] sm:$0xff]  ;;  %v24749_v38 = vld [vmem:[#allocation139_spill] sm:$0xff] }
 0x317   :  { %24733 = vst [vmem:[#allocation67_spill] sm:$0xff] %v20790_v17  ;;  %v20799_v51 = vrot.slane %v24736_v31, %v18042_v14  ;;  %v20805_v39 = vrot.slane %v24738_v35, %v18042_v14  ;;  %24741 = vst [vmem:[#allocation144_spill] sm:$0xff] %v20811_v20  ;;  %v6388_v31 = vcombine.low %v20784_v60, %v20790_v17  ;;  %17087 = vmatmul.mubr.msk.f32.vlgmr.msra.gmra.mxu1 %vm7444_vm1, %v2594_v7 }
 0x318   :  { %24742 = vst [vmem:[#allocation52_spill] sm:$0xff] %v20816_v50  ;;  %v20824_v43 = vrot.slane %v24743_v52, %v18042_v14  ;;  %v20829_v10 = vrot.slane %v6472_v32, %v18049_v27  ;;  %v24746_v48 = vcombine.low %v20505_v30, %v20508_v42  ;;  %v5760_v0 = vcombine.low %v20631_v33, %v5187_v6 }
 0x319   :  { %24737 = vst [vmem:[#allocation51_spill] sm:$0xff] %v20799_v51  ;;  %24739 = vst [vmem:[#allocation50_spill] sm:$0xff] %v20805_v39  ;;  %v6404_v19 = vcombine.low %v20799_v51, %v20805_v39  ;;  %v4191_v13 = vcombine.high %v24749_v38, %v24748_v41  ;;  %17133 = vmatprep.subr.msk.mxu0 %vm7444_vm1, %v4871_v45  ;;  %v24750_v26 = vcombine.high %v20505_v30, %v20508_v42  ;;  %v24755_v38 = vld [vmem:[#allocation140_spill] sm:$0xff] }
 0x31a   :  { %24744 = vst [vmem:[#allocation146_spill] sm:$0xff] %v20824_v43  ;;  %24745 = vst [vmem:[#allocation145_spill] sm:$0xff] %v20829_v10  ;;  %v20837_v35 = vrot.slane %v24746_v48, %v18042_v14  ;;  %v5761_v52 = vcombine.high %v20631_v33, %v5187_v6  ;;  %17097 = vmatpush3.xpose.msk.msra.mxu1 %vm7444_vm1, %v4259_v57  ;;  %17100 = vmatprep.mubr.msk.f32.mxu1 %vm7444_vm1, %v1711_v15 }
 0x31b   :  { %v20848_v32 = vrot.slane %v24750_v26, %v18042_v14  ;;  %v20854_v48 = vrot.slane %v6388_v31, %v18049_v27  ;;  %v6728_v7 = vcombine.low %v20811_v20, %v20824_v43  ;;  %17098 = vmatprep.subr.msk.mxu1 %vm7444_vm1, %v4191_v13  ;;  %v6488_v41 = vcombine.low %v20816_v50, %v20829_v10  ;;  %v21156_v43 = vpop.permute.xlu1 %5084 }
 0x31c   :  { %24747 = vst [vmem:[#allocation27_spill] sm:$0xff] %v20837_v35  ;;  %v20862_v30 = vrot.slane %v6404_v19, %v18049_v27  ;;  %v5436_v57 = vcombine.low %v20555_v59, %v20724_v54  ;;  %v5437_v15 = vcombine.high %v20555_v59, %v20724_v54  ;;  %v5744_v6 = vcombine.low %v20564_v49, %v20706_v5  ;;  %v24754_v19 = vld [vmem:[#allocation83_spill] sm:$0xff] }
 0x31d   :  { %24751 = vst [vmem:[#allocation9_spill] sm:$0xff] %v20848_v32  ;;  %24752 = vst [vmem:[#allocation128_spill] sm:$0xff] %v20854_v48  ;;  %v6744_v42 = vcombine.low %v20837_v35, %v20848_v32  ;;  %17134 = vmatpush3.xpose.msk.msra.mxu0 %vm7444_vm1, %v4871_v45  ;;  %v24756_v26 = vcombine.high %v24754_v19, %v24755_v38  ;;  %v5452_v33 = vcombine.low %v20682_v34, %v20727_v61 }
 0x31e   :  { %24753 = vst [vmem:[#allocation127_spill] sm:$0xff] %v20862_v30  ;;  %v5745_v59 = vcombine.high %v20564_v49, %v20706_v5  ;;  %v4531_v54 = vcombine.high %v20445_v24, %v20460_v11  ;;  %17145 = vmatprep.subr.mxu0 %v6488_v41  ;;  %v5768_v45 = vrot.slane %v5760_v0, %v18042_v14 }
 0x31f   :  { %v20881_v35 = vrot.slane %v24756_v26, %v18049_v27  ;;  %17099 = vmatpush3.xpose.msk.msra.mxu1 %vm7444_vm1, %v4191_v13  ;;  %v20892_v31 = vrot.slane %v6728_v7, %v18049_v27  ;;  %v20895_v19 = vrot.slane %v6744_v42, %v18049_v27  ;;  %v2595_v38 = vcombine.high %v20704_v44, %v20716_v58  ;;  %v20941_v26 = vld [vmem:[%s23840_s3 + $0x8] sm:$0xff] }
 0x320   :  { %v5453_v49 = vcombine.high %v20682_v34, %v20727_v61  ;;  %v5775_v5 = vrot.slane %v5761_v52, %v18042_v14  ;;  %17110 = vmatprep.subr.msk.mxu1 %vm7444_vm1, %v4531_v54  ;;  %17136 = vmatmul.mubr.msk.f32.vlgmr.msra.gmra.mxu0 %vm7444_vm1, %v2459_v37  ;;  %v6420_v24 = vcombine.low %v20854_v48, %v20862_v30  ;;  %v21338_v30 = vld [vmem:[%s23840_s3 + $0x30] sm:$0xff] }
 0x321   :  { %24757 = vst [vmem:[#allocation100_spill] sm:$0xff] %v20892_v31  ;;  %24758 = vst [vmem:[#allocation86_spill] sm:$0xff] %v20895_v19  ;;  %v5444_v11 = vrot.slane %v5436_v57, %v18049_v27  ;;  %v5451_v0 = vrot.slane %v5437_v15, %v18049_v27  ;;  %v5752_v13 = vrot.slane %v5744_v6, %v18042_v14  ;;  %17146 = vmatpush3.msra.mxu0 %v6488_v41 }
 0x322   :  { %v1983_v7 = vcombine.high %v20499_v62, %v20502_v12  ;;  %v5460_v34 = vrot.slane %v5452_v33, %v18049_v27  ;;  %v5759_v61 = vrot.slane %v5745_v59, %v18042_v14  ;;  %v24759_v37 = vcombine.high %v20451_v36, %v20457_v1  ;;  %17147 = vmatprep.subr.mxu0 %v6420_v24  ;;  %v24760_v1 = vld [vmem:[#allocation61_spill] sm:$0xff] }
 0x323   :  { %v4463_v52 = vcombine.high %v20534_v53, %v20542_v23  ;;  %v5776_v42 = vcombine.low %v5752_v13, %v5768_v45  ;;  %v5777_v57 = vcombine.high %v5752_v13, %v5768_v45  ;;  %v20923_v62 = vcombine.low %v20892_v31, %v20895_v19  ;;  %17148 = vmatpush3.msra.mxu0 %v6420_v24 }
 0x324   :  { %17101 = vmatmul.mubr.msk.f32.vlgmr.msra.gmra.mxu1 %vm7444_vm1, %v24759_v37  ;;  %v5467_v12 = vrot.slane %v5453_v49, %v18049_v27  ;;  %v5792_v41 = vcombine.low %v5759_v61, %v5775_v5  ;;  %v5793_v36 = vcombine.high %v5759_v61, %v5775_v5  ;;  %v6560_v53 = vcombine.low %v24760_v1, %v20518_v40 }
 0x325   :  { %17111 = vmatpush3.xpose.msk.msra.mxu1 %vm7444_vm1, %v4531_v54  ;;  %17114 = vmatprep.mubr.msk.f32.mxu1 %vm7444_vm1, %v1983_v7  ;;  %v16326_v23 = vcombine.high %v24760_v1, %v20518_v40  ;;  %v6576_v33 = vcombine.low %v20527_v16, %v20881_v35  ;;  %v16327_v15 = vcombine.high %v20527_v16, %v20881_v35 }
 0x326   :  { %17112 = vmatprep.subr.msk.mxu1 %vm7444_vm1, %v4463_v52  ;;  %17159 = vmatprep.subr.mxu0 %v20923_v62  ;;  %v4803_v6 = vcombine.high %v20568_v28, %v20571_v21  ;;  %v6492_v59 = vcombine.low %v5444_v11, %v5451_v0  ;;  %v5784_v54 = vrot.slane %v5776_v42, %v18049_v27  ;;  %v16927_v28 = vpop.f32.mrf.mxu1 }
 0x327   :  { %v5791_v45 = vrot.slane %v5777_v57, %v18049_v27  ;;  %v16324_v40 = vcombine.high %v5444_v11, %v5451_v0  ;;  %v6508_v49 = vcombine.low %v5460_v34, %v5467_v12  ;;  %v5800_v16 = vrot.slane %v5792_v41, %v18049_v27 }
 0x328   :  { %v5807_v35 = vrot.slane %v5793_v36, %v18049_v27  ;;  %v16325_v21 = vcombine.high %v5460_v34, %v5467_v12  ;;  %v2255_v5 = vcombine.high %v20604_v63, %v20607_v4  ;;  %v4735_v24 = vcombine.high %v20616_v8, %v20627_v18 }
 0x329   :  { %17113 = vmatpush3.xpose.msk.msra.mxu1 %vm7444_vm1, %v4463_v52  ;;  %v20954_v13 = vadd.f32 %v16927_v28, %v20941_v26  ;;  %v24761_v11 = vcombine.high %v20577_v56, %v20583_v9  ;;  %v20961_v0 = vrot.slane %v6560_v53, %v18042_v14  ;;  %v20964_v7 = vrot.slane %v16326_v23, %v18042_v14  ;;  %v24774_v23 = vld [vmem:[#allocation49_spill] sm:$0xff] }
 0x32a   :  { %17124 = vmatprep.subr.msk.mxu1 %vm7444_vm1, %v4803_v6  ;;  %v20967_v34 = vrot.slane %v6576_v33, %v18042_v14  ;;  %v20970_v63 = vrot.slane %v16327_v15, %v18042_v14  ;;  %v6832_v4 = vcombine.low %v5784_v54, %v5791_v45  ;;  %v16334_v9 = vcombine.high %v5784_v54, %v5791_v45  ;;  %v24775_v33 = vld [vmem:[#allocation2_spill] sm:$0xff] }
 0x32b   :  { %24762 = vst [vmem:[#allocation147_spill] sm:$0xff] %v20961_v0  ;;  %24763 = vst [vmem:[#allocation109_spill] sm:$0xff] %v20964_v7  ;;  %v10305_v56 = vsel %vm10301_vm2, %v20954_v13, -inf  ;;  %v6848_v8 = vcombine.low %v5800_v16, %v5807_v35  ;;  %v16335_v18 = vcombine.high %v5800_v16, %v5807_v35  ;;  %v5075_v61 = vcombine.high %v20636_v22, %v20639_v29  ;;  %v7523_v16 = vpop.f32.mrf.mxu1  ;;  %v21046_v35 = vld [vmem:[%s23840_s3] sm:$0xff] }
 0x32c   :  { %17115 = vmatmul.mubr.msk.f32.vlgmr.msra.gmra.mxu1 %vm7444_vm1, %v24761_v11  ;;  %24764 = vst [vmem:[#allocation55_spill] sm:$0xff] %v20967_v34  ;;  %24765 = vst [vmem:[#allocation56_spill] sm:$0xff] %v20970_v63  ;;  %10306 = vmax.xlane.f32.xlu1 %v10305_v56  ;;  %v20980_v37 = vrot.slane %v6492_v59, %v18042_v14  ;;  %v20983_v52 = vrot.slane %v16324_v40, %v18042_v14 }
 0x32d   :  { %17125 = vmatpush3.xpose.msk.msra.mxu1 %vm7444_vm1, %v4803_v6  ;;  %17128 = vmatprep.mubr.msk.f32.mxu1 %vm7444_vm1, %v2255_v5  ;;  %v6592_v42 = vcombine.low %v20961_v0, %v20964_v7  ;;  %v6608_v57 = vcombine.low %v20967_v34, %v20970_v63  ;;  %v20990_v12 = vrot.slane %v6508_v49, %v18042_v14  ;;  %v16955_v28 = vpop.f32.mrf.mxu0  ;;  %v21227_v34 = vld [vmem:[%s23840_s3 + $0x20] sm:$0xff] }
 0x32e   :  { %17126 = vmatprep.subr.msk.mxu1 %vm7444_vm1, %v4735_v24  ;;  %24766 = vst [vmem:[#allocation22_spill] sm:$0xff] %v20980_v37  ;;  %24767 = vst [vmem:[#allocation24_spill] sm:$0xff] %v20983_v52  ;;  %v20993_v41 = vrot.slane %v16325_v21, %v18042_v14  ;;  %v20998_v22 = vrot.slane %v6832_v4, %v18042_v14  ;;  %v21001_v29 = vrot.slane %v16334_v9, %v18042_v14 }
 0x32f   :  { %24768 = vst [vmem:[#allocation87_spill] sm:$0xff] %v20990_v12  ;;  %v21004_v36 = vrot.slane %v6848_v8, %v18042_v14  ;;  %v21007_v1 = vrot.slane %v16335_v18, %v18042_v14  ;;  %v2527_v53 = vcombine.high %v20674_v25, %v20686_v2  ;;  %v5007_v15 = vcombine.high %v24775_v33, %v24774_v23  ;;  %v7871_v9 = vpop.f32.mrf.mxu0 }
 0x330   :  { %24769 = vst [vmem:[#allocation74_spill] sm:$0xff] %v20993_v41  ;;  %24770 = vst [vmem:[#allocation88_spill] sm:$0xff] %v20998_v22  ;;  %v24776_v6 = vcombine.high %v20645_v3, %v20654_v46  ;;  %v21018_v59 = vrot.slane %v6592_v42, %v18049_v27  ;;  %v21021_v54 = vrot.slane %v6608_v57, %v18049_v27 }
 0x331   :  { %17127 = vmatpush3.xpose.msk.msra.mxu1 %vm7444_vm1, %v4735_v24  ;;  %24771 = vst [vmem:[#allocation89_spill] sm:$0xff] %v21001_v29  ;;  %24772 = vst [vmem:[#allocation90_spill] sm:$0xff] %v21004_v36  ;;  %v6524_v45 = vcombine.low %v20980_v37, %v20983_v52  ;;  %v6540_v25 = vcombine.low %v20990_v12, %v20993_v41  ;;  %v6864_v3 = vcombine.low %v20998_v22, %v21001_v29 }
 0x332   :  { %17138 = vmatprep.subr.msk.mxu1 %vm7444_vm1, %v5075_v61  ;;  %24773 = vst [vmem:[#allocation91_spill] sm:$0xff] %v21007_v1  ;;  %24777 = vst [vmem:[#allocation4_spill] sm:$0xff] %v21018_v59  ;;  %v6880_v46 = vcombine.low %v21004_v36, %v21007_v1  ;;  %v6624_v2 = vcombine.low %v21018_v59, %v21021_v54  ;;  %v21055_v24 = vadd.f32 %v16955_v28, %v20941_v26 }
 0x333   :  { %24778 = vst [vmem:[#allocation75_spill] sm:$0xff] %v21021_v54  ;;  %v21037_v40 = vrot.slane %v6524_v45, %v18049_v27  ;;  %v21040_v49 = vrot.slane %v6540_v25, %v18049_v27  ;;  %v21049_v21 = vrot.slane %v6864_v3, %v18049_v27  ;;  %v21064_v4 = vadd.f32 %v21046_v35, %v7523_v16 }
 0x334   :  { %17129 = vmatmul.mubr.msk.f32.vlgmr.msra.gmra.mxu1 %vm7444_vm1, %v24776_v6  ;;  %v21052_v5 = vrot.slane %v6880_v46, %v18049_v27  ;;  %v10329_v56 = vsel %vm10301_vm2, %v21055_v24, -inf  ;;  %v21074_v44 = vadd.f32 %v21046_v35, %v7871_v9 }
 0x335   :  { %17139 = vmatpush3.xpose.msk.msra.mxu1 %vm7444_vm1, %v5075_v61  ;;  %17142 = vmatprep.mubr.msk.f32.mxu1 %vm7444_vm1, %v2527_v53  ;;  %24779 = vst [vmem:[#allocation18_spill] sm:$0xff] %v21037_v40  ;;  %24780 = vst [vmem:[#allocation104_spill] sm:$0xff] %v21040_v49  ;;  %v6556_v11 = vcombine.low %v21037_v40, %v21040_v49  ;;  %v10302_v58 = vsel %vm10301_vm2, %v21064_v4, -inf }
 0x336   :  { %17140 = vmatprep.subr.msk.mxu1 %vm7444_vm1, %v5007_v15  ;;  %24781 = vst [vmem:[#allocation106_spill] sm:$0xff] %v21049_v21  ;;  %24782 = vst [vmem:[#allocation47_spill] sm:$0xff] %v21052_v5  ;;  %10330 = vmax.xlane.f32.xlu0 %v10329_v56  ;;  %v21070_v8 = vcombine.low %v21049_v21, %v21052_v5 }
 0x339   :  { %17141 = vmatpush3.xpose.msk.msra.mxu1 %vm7444_vm1, %v5007_v15 }
 0x33a   :  { %17152 = vmatprep.subr.mxu1 %v6624_v2  ;;  %10303 = vmax.xlane.f32.xlu0 %v10302_v58 }
 0x33c   :  { %17143 = vmatmul.mubr.msk.f32.vlgmr.msra.gmra.mxu1 %vm7444_vm1, %v2595_v38  ;;  %v10326_v38 = vsel %vm10301_vm2, %v21074_v44, -inf }
 0x33d   :  { %17153 = vmatpush3.msra.mxu1 %v6624_v2 }
 0x33e   :  { %17154 = vmatprep.subr.mxu1 %v6556_v11  ;;  %10327 = vmax.xlane.f32.xlu0 %v10326_v38 }
 0x33f   :  { %17155 = vmatpush3.msra.mxu1 %v6556_v11 }
 0x340   :  { %17166 = vmatprep.subr.mxu1 %v21070_v8  ;;  %v16934_v18 = vpop.f32.mrf.mxu1 }
 0x341   :  { %v21081_v61 = vadd.f32 %v16934_v18, %v20941_v26  ;;  %v21114_v18 = vld [vmem:[%s23840_s3 + $0x18] sm:$0xff] }
 0x342   :  { %v7610_v57 = vpop.f32.mrf.mxu1 }
 0x343   :  { %v10311_v42 = vsel %vm10301_vm2, %v21081_v61, -inf  ;;  %v21089_v15 = vadd.f32 %v21046_v35, %v7610_v57 }
 0x344   :  { %10312 = vmax.xlane.f32.xlu1 %v10311_v42 }
 0x345   :  { %v10308_v46 = vsel %vm10301_vm2, %v21089_v15, -inf }
 0x35c   :  { %v16941_v23 = vpop.f32.mrf.mxu1 }
 0x35d   :  { %v21107_v9 = vadd.f32 %v16941_v23, %v20941_v26 }
 0x35e   :  { %v7697_v25 = vpop.f32.mrf.mxu1 }
 0x36a   :  { %v16969_v53 = vpop.f32.mrf.mxu0 }
 0x36b   :  { %v21086_v33 = vadd.f32 %v16969_v53, %v20941_v26  ;;  %v10317_v53 = vsel %vm10301_vm2, %v21107_v9, -inf }
 0x36c   :  { %v8045_v45 = vpop.f32.mrf.mxu0 }
 0x36d   :  { %v10341_v6 = vsel %vm10301_vm2, %v21086_v33, -inf  ;;  %v21094_v3 = vadd.f32 %v21046_v35, %v8045_v45  ;;  %v21127_v45 = vadd.f32 %v21046_v35, %v7697_v25 }
 0x36e   :  { %10342 = vmax.xlane.f32.xlu0 %v10341_v6 }
 0x36f   :  { %v10338_v58 = vsel %vm10301_vm2, %v21094_v3, -inf }
 0x372   :  { %v16948_v2 = vpop.f32.mrf.mxu1  ;;  %10309 = vmax.xlane.f32.xlu0 %v10308_v46 }
 0x373   :  { %v21099_v16 = vadd.f32 %v16948_v2, %v20941_v26 }
 0x374   :  { %v7784_v28 = vpop.f32.mrf.mxu1  ;;  %v16983_v38 = vpop.f32.mrf.mxu0 }
 0x375   :  { %v21102_v11 = vadd.f32 %v21046_v35, %v7784_v28  ;;  %v10323_v56 = vsel %vm10301_vm2, %v21099_v16, -inf  ;;  %v21119_v57 = vadd.f32 %v16983_v38, %v21114_v18 }
 0x376   :  { %10324 = vmax.xlane.f32.xlu1 %v10323_v56  ;;  %10339 = vmax.xlane.f32.xlu0 %v10338_v58  ;;  %v8219_v28 = vpop.f32.mrf.mxu0  ;;  %v21134_v56 = vld [vmem:[%s23840_s3 + $0x10] sm:$0xff] }
 0x377   :  { %v10320_v42 = vsel %vm10301_vm2, %v21102_v11, -inf  ;;  %v10353_v2 = vsel %vm10301_vm2, %v21119_v57, -inf  ;;  %v21142_v25 = vadd.f32 %v21134_v56, %v8219_v28 }
 0x37a   :  { %10321 = vmax.xlane.f32.xlu1 %v10320_v42  ;;  %10318 = vmax.xlane.f32.xlu0 %v10317_v53  ;;  %v10314_v42 = vsel %vm10301_vm2, %v21127_v45, -inf }
 0x37c   :  { %v16997_v53 = vpop.f32.mrf.mxu0 }
 0x37d   :  { %v16962_v23 = vpop.f32.mrf.mxu1 }
 0x37e   :  { %v21124_v6 = vadd.f32 %v16962_v23, %v20941_v26  ;;  %10354 = vmax.xlane.f32.xlu0 %v10353_v2  ;;  %v10350_v2 = vsel %vm10301_vm2, %v21142_v25, -inf  ;;  %v8393_v32 = vpop.f32.mrf.mxu0 }
 0x37f   :  { %v7958_v46 = vpop.f32.mrf.mxu1 }
 0x380   :  { %v21137_v58 = vadd.f32 %v21046_v35, %v7958_v46  ;;  %v10335_v38 = vsel %vm10301_vm2, %v21124_v6, -inf  ;;  %v21149_v46 = vadd.f32 %v16997_v53, %v21114_v18 }
 0x381   :  { %10336 = vmax.xlane.f32.xlu1 %v10335_v38 }
 0x382   :  { %10315 = vmax.xlane.f32.xlu0 %v10314_v42  ;;  %v10332_v23 = vsel %vm10301_vm2, %v21137_v58, -inf  ;;  %v21159_v42 = vadd.f32 %v21134_v56, %v8393_v32  ;;  %v10365_v36 = vsel %vm10301_vm2, %v21149_v46, -inf }
 0x384   :  { %v17011_v1 = vpop.f32.mrf.mxu0  ;;  %v10362_v32 = vsel %vm10301_vm2, %v21159_v42, -inf }
 0x385   :  { %10333 = vmax.xlane.f32.xlu1 %v10332_v23 }
 0x386   :  { %10351 = vmax.xlane.f32.xlu0 %v10350_v2 }
 0x387   :  { %v16976_v38 = vpop.f32.mrf.mxu1 }
 0x388   :  { %v21154_v28 = vadd.f32 %v16976_v38, %v20941_v26  ;;  %v21169_v26 = vadd.f32 %v17011_v1, %v21114_v18  ;;  %v21175_v38 = vpop.permute.xlu1 %5116 }
 0x389   :  { %v8132_v20 = vpop.f32.mrf.mxu1 }
 0x38a   :  { %v21162_v23 = vadd.f32 %v21046_v35, %v8132_v20  ;;  %v10347_v53 = vsel %vm10301_vm2, %v21154_v28, -inf  ;;  %10366 = vmax.xlane.f32.xlu0 %v10365_v36  ;;  %v8567_v20 = vpop.f32.mrf.mxu0 }
 0x38b   :  { %10348 = vmax.xlane.f32.xlu1 %v10347_v53  ;;  %v21181_v36 = vadd.f32 %v21134_v56, %v8567_v20 }
 0x38c   :  { %v10344_v2 = vsel %vm10301_vm2, %v21162_v23, -inf  ;;  %v17025_v12 = vpop.f32.mrf.mxu0 }
 0x38e   :  { %10363 = vmax.xlane.f32.xlu0 %v10362_v32  ;;  %v21190_v32 = vpop.permute.xlu1 %5148  ;;  %v8741_v41 = vpop.f32.mrf.mxu0 }
 0x38f   :  { %10345 = vmax.xlane.f32.xlu1 %v10344_v2  ;;  %v16990_v35 = vpop.f32.mrf.mxu1  ;;  %v10377_v2 = vsel %vm10301_vm2, %v21169_v26, -inf }
 0x390   :  { %v21178_v22 = vadd.f32 %v16990_v35, %v21114_v18  ;;  %v21193_v35 = vadd.f32 %v17025_v12, %v21114_v18 }
 0x391   :  { %v8306_v53 = vpop.f32.mrf.mxu1 }
 0x392   :  { %v21184_v1 = vadd.f32 %v21134_v56, %v8306_v53  ;;  %v10359_v29 = vsel %vm10301_vm2, %v21178_v22, -inf  ;;  %10378 = vmax.xlane.f32.xlu0 %v10377_v2  ;;  %24783 = vst [vmem:[#allocation21_spill] sm:$0xff] %v21193_v35  ;;  %v10374_v53 = vsel %vm10301_vm2, %v21181_v36, -inf  ;;  %v21203_v2 = vadd.f32 %v21134_v56, %v8741_v41 }
 0x393   :  { %10360 = vmax.xlane.f32.xlu1 %v10359_v29  ;;  %v10389_v39 = vsel %vm10301_vm2, %v21193_v35, -inf }
 0x394   :  { %v10356_v20 = vsel %vm10301_vm2, %v21184_v1, -inf  ;;  %24785 = vst [vmem:[#allocation134_spill] sm:$0xff] %v21203_v2 }
 0x396   :  { %10375 = vmax.xlane.f32.xlu0 %v10374_v53  ;;  %v17039_v60 = vpop.f32.mrf.mxu0 }
 0x397   :  { %10357 = vmax.xlane.f32.xlu1 %v10356_v20  ;;  %v17004_v37 = vpop.f32.mrf.mxu1  ;;  %v21215_v20 = vld [vmem:[%s23840_s3 + $0x28] sm:$0xff] }
 0x398   :  { %v21200_v52 = vadd.f32 %v17004_v37, %v21114_v18  ;;  %v5181_v37 = vpop.permute.xlu1 %5180  ;;  %v21218_v41 = vadd.f32 %v17039_v60, %v21215_v20  ;;  %v8915_v17 = vpop.f32.mrf.mxu0 }
 0x399   :  { %v8480_v29 = vpop.f32.mrf.mxu1  ;;  %v21233_v60 = vadd.f32 %v21227_v34, %v8915_v17 }
 0x39a   :  { %24784 = vst [vmem:[#allocation20_spill] sm:$0xff] %v21200_v52  ;;  %v21206_v12 = vadd.f32 %v21134_v56, %v8480_v29  ;;  %v10371_v51 = vsel %vm10301_vm2, %v21200_v52, -inf  ;;  %10390 = vmax.xlane.f32.xlu0 %v10389_v39  ;;  %24786 = vst [vmem:[#allocation133_spill] sm:$0xff] %v21218_v41  ;;  %v10386_v29 = vsel %vm10301_vm2, %v21203_v2, -inf  ;;  %v10401_v47 = vsel %vm10301_vm2, %v21218_v41, -inf }
 0x39b   :  { %10372 = vmax.xlane.f32.xlu1 %v10371_v51  ;;  %24788 = vst [vmem:[#allocation135_spill] sm:$0xff] %v21233_v60 }
 0x39c   :  { %v10368_v53 = vsel %vm10301_vm2, %v21206_v12, -inf  ;;  %v21242_v55 = vpop.permute.xlu1 %5094 }
 0x39e   :  { %10387 = vmax.xlane.f32.xlu0 %v10386_v29  ;;  %v10398_v29 = vsel %vm10301_vm2, %v21233_v60, -inf }
 0x39f   :  { %10369 = vmax.xlane.f32.xlu1 %v10368_v53  ;;  %v17018_v63 = vpop.f32.mrf.mxu1 }
 0x3a0   :  { %v21230_v39 = vadd.f32 %v17018_v63, %v21114_v18  ;;  %v21251_v21 = vpop.permute.xlu1 %5126 }
 0x3a1   :  { %v8654_v51 = vpop.f32.mrf.mxu1 }
 0x3a2   :  { %24787 = vst [vmem:[#allocation136_spill] sm:$0xff] %v21230_v39  ;;  %v21236_v0 = vadd.f32 %v21134_v56, %v8654_v51  ;;  %v10383_v7 = vsel %vm10301_vm2, %v21230_v39, -inf  ;;  %v17053_v53 = vpop.f32.mrf.mxu0  ;;  %10402 = vmax.xlane.f32.xlu0 %v10401_v47 }
 0x3a3   :  { %10384 = vmax.xlane.f32.xlu1 %v10383_v7  ;;  %v21245_v63 = vadd.f32 %v17053_v53, %v21215_v20 }
 0x3a4   :  { %24789 = vst [vmem:[#allocation78_spill] sm:$0xff] %v21236_v0  ;;  %v10380_v17 = vsel %vm10301_vm2, %v21236_v0, -inf  ;;  %v9089_v51 = vpop.f32.mrf.mxu0  ;;  %v21271_v54 = vpop.permute.xlu1 %5158 }
 0x3a5   :  { %24790 = vst [vmem:[#allocation77_spill] sm:$0xff] %v21245_v63  ;;  %v21254_v5 = vadd.f32 %v21227_v34, %v9089_v51  ;;  %v10413_v47 = vsel %vm10301_vm2, %v21245_v63, -inf }
 0x3a6   :  { %10399 = vmax.xlane.f32.xlu0 %v10398_v29 }
 0x3a7   :  { %10381 = vmax.xlane.f32.xlu1 %v10380_v17  ;;  %24791 = vst [vmem:[#allocation80_spill] sm:$0xff] %v21254_v5  ;;  %v10410_v51 = vsel %vm10301_vm2, %v21254_v5, -inf }
 0x3a8   :  { %v17032_v40 = vpop.f32.mrf.mxu1 }
 0x3a9   :  { %v21259_v53 = vadd.f32 %v17032_v40, %v21114_v18 }
 0x3aa   :  { %v17067_v7 = vpop.f32.mrf.mxu0  ;;  %10414 = vmax.xlane.f32.xlu0 %v10413_v47  ;;  %v8828_v49 = vpop.f32.mrf.mxu1  ;;  %v5556_v47 = vcombine.low %v21175_v38, %v5181_v37 }
 0x3ab   :  { %24792 = vst [vmem:[#allocation79_spill] sm:$0xff] %v21259_v53  ;;  %v21262_v59 = vadd.f32 %v21134_v56, %v8828_v49  ;;  %v10395_v17 = vsel %vm10301_vm2, %v21259_v53, -inf  ;;  %v21267_v29 = vadd.f32 %v17067_v7, %v21215_v20  ;;  %v21280_v56 = vpop.permute.xlu0 %5088  ;;  %v5191_v7 = vpop.permute.xlu1 %5190 }
 0x3ac   :  { %10396 = vmax.xlane.f32.xlu1 %v10395_v17  ;;  %v9263_v63 = vpop.f32.mrf.mxu0  ;;  %v5540_v17 = vcombine.low %v21156_v43, %v21190_v32 }
 0x3ad   :  { %24793 = vst [vmem:[#allocation110_spill] sm:$0xff] %v21262_v59  ;;  %24794 = vst [vmem:[#allocation11_spill] sm:$0xff] %v21267_v29  ;;  %v10392_v40 = vsel %vm10301_vm2, %v21262_v59, -inf  ;;  %v21276_v49 = vadd.f32 %v21227_v34, %v9263_v63  ;;  %v10425_v18 = vsel %vm10301_vm2, %v21267_v29, -inf  ;;  %v5541_v63 = vcombine.high %v21156_v43, %v21190_v32 }
 0x3ae   :  { %10411 = vmax.xlane.f32.xlu0 %v10410_v51  ;;  %v5557_v51 = vcombine.high %v21175_v38, %v5181_v37  ;;  %v5548_v60 = vrot.slane %v5540_v17, %v18042_v14 }
 0x3af   :  { %24795 = vst [vmem:[#allocation112_spill] sm:$0xff] %v21276_v49  ;;  %v10422_v5 = vsel %vm10301_vm2, %v21276_v49, -inf  ;;  %v21291_v41 = vpop.permute.xlu0 %5120  ;;  %v21298_v2 = vpop.permute.xlu1 %5092 }
 0x3b0   :  { %10393 = vmax.xlane.f32.xlu1 %v10392_v40  ;;  %v5564_v40 = vrot.slane %v5556_v47, %v18042_v14  ;;  %v5571_v35 = vrot.slane %v5557_v51, %v18042_v14 }
 0x3b2   :  { %10426 = vmax.xlane.f32.xlu0 %v10425_v18  ;;  %v5572_v47 = vcombine.low %v5548_v60, %v5564_v40  ;;  %v5573_v49 = vcombine.high %v5548_v60, %v5564_v40  ;;  %v5896_v40 = vcombine.low %v21251_v21, %v5191_v7 }
 0x3b4   :  { %v5587_v60 = vrot.slane %v5573_v49, %v18049_v27  ;;  %v5880_v49 = vcombine.low %v21242_v55, %v21271_v54 }
 0x3b6   :  { %10423 = vmax.xlane.f32.xlu0 %v10422_v5  ;;  %v5888_v10 = vrot.slane %v5880_v49, %v18042_v14 }
 0x3ba   :  { %v17046_v29 = vpop.f32.mrf.mxu1 }
 0x3bb   :  { %v21294_v18 = vadd.f32 %v17046_v29, %v21215_v20  ;;  %v17081_v38 = vpop.f32.mrf.mxu0  ;;  %v5555_v29 = vrot.slane %v5541_v63, %v18042_v14  ;;  %v5580_v63 = vrot.slane %v5572_v47, %v18049_v27 }
 0x3bc   :  { %v9002_v37 = vpop.f32.mrf.mxu1  ;;  %v21301_v5 = vadd.f32 %v17081_v38, %v21215_v20 }
 0x3bd   :  { %24796 = vst [vmem:[#allocation111_spill] sm:$0xff] %v21294_v18  ;;  %v21304_v43 = vadd.f32 %v21227_v34, %v9002_v37  ;;  %v10407_v32 = vsel %vm10301_vm2, %v21294_v18, -inf  ;;  %v9437_v17 = vpop.f32.mrf.mxu0  ;;  %v5588_v38 = vcombine.low %v5555_v29, %v5571_v35  ;;  %v5589_v19 = vcombine.high %v5555_v29, %v5571_v35  ;;  %v21314_v37 = vpop.permute.xlu0 %5152 }
 0x3be   :  { %24797 = vst [vmem:[#allocation103_spill] sm:$0xff] %v21301_v5  ;;  %10408 = vmax.xlane.f32.xlu1 %v10407_v32  ;;  %v21310_v51 = vadd.f32 %v21227_v34, %v9437_v17  ;;  %v10437_v31 = vsel %vm10301_vm2, %v21301_v5, -inf  ;;  %v21324_v32 = vld [vmem:[%s23840_s3 + $0x38] sm:$0xff]  ;;  %v5897_v35 = vcombine.high %v21251_v21, %v5191_v7  ;;  %v6628_v7 = vcombine.low %v5580_v63, %v5587_v60  ;;  %s17682_s3 = smov 16  }
 0x3bf   :  { %24798 = vst [vmem:[#allocation33_spill] sm:$0xff] %v21304_v43  ;;  %10438 = vmax.xlane.f32.xlu0 %v10437_v31  ;;  %v10404_v48 = vsel %vm10301_vm2, %v21304_v43, -inf  ;;  %v21327_v31 = vpop.permute.xlu1 %5124  ;;  %v5596_v17 = vrot.slane %v5588_v38, %v18049_v27  ;;  %v5603_v47 = vrot.slane %v5589_v19, %v18049_v27  ;;  %v5904_v38 = vrot.slane %v5896_v40, %v18042_v14 }
 0x3c0   :  { %24799 = vst [vmem:[#allocation72_spill] sm:$0xff] %v21310_v51  ;;  %v10434_v29 = vsel %vm10301_vm2, %v21310_v51, -inf  ;;  %v5911_v18 = vrot.slane %v5897_v35, %v18042_v14  ;;  %v5676_v35 = vcombine.low %v21280_v56, %v21314_v37 }
 0x3c1   :  { %v5185_v0 = vpop.permute.xlu0 %5184 }
 0x3c2   :  { %10405 = vmax.xlane.f32.xlu1 %v10404_v48  ;;  %v5881_v48 = vcombine.high %v21242_v55, %v21271_v54  ;;  %v16328_v54 = vcombine.high %v5580_v63, %v5587_v60  ;;  %v5912_v63 = vcombine.low %v5888_v10, %v5904_v38  ;;  %v5692_v60 = vcombine.low %v21291_v41, %v5185_v0 }
 0x3c3   :  { %v17095_v5 = vpop.f32.mrf.mxu0  ;;  %10435 = vmax.xlane.f32.xlu0 %v10434_v29  ;;  %v16329_v29 = vcombine.high %v5596_v17, %v5603_v47  ;;  %v5684_v39 = vrot.slane %v5676_v35, %v18042_v14 }
 0x3c4   :  { %v21343_v21 = vadd.f32 %v17095_v5, %v21324_v32  ;;  %v6644_v5 = vcombine.low %v5596_v17, %v5603_v47  ;;  %v5895_v53 = vrot.slane %v5881_v48, %v18042_v14  ;;  %v5913_v17 = vcombine.high %v5888_v10, %v5904_v38 }
 0x3c5   :  { %v17060_v19 = vpop.f32.mrf.mxu1  ;;  %v9611_v51 = vpop.f32.mrf.mxu0  ;;  %v6643_v52 = vrot.slane %v16328_v54, %v18042_v14 }
 0x3c6   :  { %24800 = vst [vmem:[#allocation39_spill] sm:$0xff] %v21343_v21  ;;  %v21348_v43 = vadd.f32 %v17060_v19, %v21215_v20  ;;  %v21351_v50 = vadd.f32 %v21338_v30, %v9611_v51  ;;  %v10449_v55 = vsel %vm10301_vm2, %v21343_v21, -inf  ;;  %v21359_v19 = vpop.permute.xlu1 %5156  ;;  %v5928_v47 = vcombine.low %v5895_v53, %v5911_v18 }
 0x3c7   :  { %v9176_v40 = vpop.f32.mrf.mxu1  ;;  %10450 = vmax.xlane.f32.xlu0 %v10449_v55  ;;  %v5929_v49 = vcombine.high %v5895_v53, %v5911_v18  ;;  %v5677_v55 = vcombine.high %v21280_v56, %v21314_v37  ;;  %v6659_v18 = vrot.slane %v16329_v29, %v18042_v14  ;;  %v21382_v56 = vrot.slane %v5912_v63, %v18049_v27 }
 0x3c8   :  { %24801 = vst [vmem:[#allocation138_spill] sm:$0xff] %v21348_v43  ;;  %24802 = vst [vmem:[#allocation137_spill] sm:$0xff] %v21351_v50  ;;  %v21362_v51 = vadd.f32 %v21227_v34, %v9176_v40  ;;  %v10419_v21 = vsel %vm10301_vm2, %v21348_v43, -inf  ;;  %v10446_v48 = vsel %vm10301_vm2, %v21351_v50, -inf  ;;  %v6635_v40 = vrot.slane %v6628_v7, %v18042_v14 }
 0x3c9   :  { %10420 = vmax.xlane.f32.xlu1 %v10419_v21  ;;  %v6651_v43 = vrot.slane %v6644_v5, %v18042_v14  ;;  %v5700_v37 = vrot.slane %v5692_v60, %v18042_v14  ;;  %v5693_v5 = vcombine.high %v21291_v41, %v5185_v0  ;;  %v5927_v63 = vrot.slane %v5913_v17, %v18049_v27 }
 0x3ca   :  { %v10416_v53 = vsel %vm10301_vm2, %v21362_v51, -inf  ;;  %v6660_v38 = vcombine.low %v6635_v40, %v6643_v52  ;;  %v6661_v54 = vcombine.high %v6635_v40, %v6643_v52  ;;  %v5189_v35 = vpop.permute.xlu1 %5188  ;;  %v5936_v52 = vrot.slane %v5928_v47, %v18049_v27 }
 0x3cb   :  { %v17109_v59 = vpop.f32.mrf.mxu0  ;;  %10447 = vmax.xlane.f32.xlu0 %v10446_v48  ;;  %v6676_v29 = vcombine.low %v6651_v43, %v6659_v18  ;;  %v6677_v50 = vcombine.high %v6651_v43, %v6659_v18  ;;  %v5709_v17 = vcombine.high %v5684_v39, %v5700_v37  ;;  %v5943_v43 = vrot.slane %v5929_v49, %v18049_v27 }
 0x3cc   :  { %v21376_v10 = vadd.f32 %v17109_v59, %v21324_v32  ;;  %v21393_v60 = vrot.slane %v6660_v38, %v18049_v27  ;;  %v5691_v47 = vrot.slane %v5677_v55, %v18042_v14  ;;  %v5707_v18 = vrot.slane %v5693_v5, %v18042_v14 }
 0x3cd   :  { %10417 = vmax.xlane.f32.xlu1 %v10416_v53  ;;  %v17074_v21 = vpop.f32.mrf.mxu1  ;;  %v9785_v7 = vpop.f32.mrf.mxu0  ;;  %v6675_v53 = vrot.slane %v6661_v54, %v18049_v27  ;;  %v21403_v40 = vrot.slane %v6676_v29, %v18049_v27  ;;  %v6691_v54 = vrot.slane %v6677_v50, %v18049_v27  ;;  %v5812_v29 = vcombine.low %v21298_v2, %v21359_v19 }
 0x3ce   :  { %24803 = vst [vmem:[#allocation105_spill] sm:$0xff] %v21376_v10  ;;  %v21387_v59 = vadd.f32 %v21338_v30, %v9785_v7  ;;  %v10461_v48 = vsel %vm10301_vm2, %v21376_v10, -inf  ;;  %v21398_v0 = vadd.f32 %v17074_v21, %v21215_v20  ;;  %v5708_v7 = vcombine.low %v5684_v39, %v5700_v37 }
 0x3cf   :  { %10462 = vmax.xlane.f32.xlu0 %v10461_v48  ;;  %v5828_v48 = vcombine.low %v21327_v31, %v5189_v35  ;;  %v9350_v38 = vpop.f32.mrf.mxu1  ;;  %v5829_v21 = vcombine.high %v21327_v31, %v5189_v35  ;;  %v21415_v39 = vcombine.high %v21393_v60, %v21403_v40  ;;  %v21417_v37 = vcombine.low %v6675_v53, %v6691_v54 }
 0x3d0   :  { %24804 = vst [vmem:[#allocation149_spill] sm:$0xff] %v21387_v59  ;;  %24805 = vst [vmem:[#allocation148_spill] sm:$0xff] %v21398_v0  ;;  %v10458_v41 = vsel %vm10301_vm2, %v21387_v59, -inf  ;;  %v5813_v50 = vcombine.high %v21298_v2, %v21359_v19  ;;  %v21424_v49 = vadd.f32 %v21227_v34, %v9350_v38  ;;  %v10431_v55 = vsel %vm10301_vm2, %v21398_v0, -inf }
 0x3d1   :  { %10459 = vmax.xlane.f32.xlu1 %v10458_v41  ;;  %24806 = vst [vmem:[#allocation151_spill] sm:$0xff] %v21415_v39  ;;  %24807 = vst [vmem:[#allocation150_spill] sm:$0xff] %v21417_v37  ;;  %v21419_v41 = vcombine.high %v6675_v53, %v6691_v54  ;;  %v21432_v5 = vrot.slane %v5708_v7, %v18049_v27  ;;  %v21435_v35 = vrot.slane %v5709_v17, %v18049_v27  ;;  %v10331_v39 = vpop.xlane.xlu0 %10330 }
 0x3d2   :  { %24809 = vst [vmem:[#allocation152_spill] sm:$0xff] %v21424_v49  ;;  %v5836_v53 = vrot.slane %v5828_v48, %v18042_v14  ;;  %v5724_v2 = vcombine.low %v5691_v47, %v5707_v18  ;;  %v5725_v19 = vcombine.high %v5691_v47, %v5707_v18  ;;  %v5843_v38 = vrot.slane %v5829_v21, %v18042_v14 }
 0x3d3   :  { %24808 = vst [vmem:[#allocation153_spill] sm:$0xff] %v21419_v41  ;;  %v6968_v41 = vcombine.low %v21382_v56, %v5927_v63  ;;  %v16338_v37 = vcombine.high %v21382_v56, %v5927_v63  ;;  %v6984_v7 = vcombine.low %v5936_v52, %v5943_v43  ;;  %v5820_v59 = vrot.slane %v5812_v29, %v18042_v14 }
 0x3d4   :  { %v17123_v10 = vpop.f32.mrf.mxu0  ;;  %v16339_v0 = vcombine.high %v5936_v52, %v5943_v43  ;;  %v5827_v48 = vrot.slane %v5813_v50, %v18042_v14  ;;  %v10428_v47 = vsel %vm10301_vm2, %v21424_v49, -inf  ;;  %v5739_v56 = vrot.slane %v5725_v19, %v18049_v27 }
 0x3d5   :  { %v21427_v31 = vadd.f32 %v17123_v10, %v21324_v32  ;;  %10432 = vmax.xlane.f32.xlu1 %v10431_v55  ;;  %v5844_v18 = vcombine.low %v5820_v59, %v5836_v53  ;;  %v5845_v21 = vcombine.high %v5820_v59, %v5836_v53  ;;  %v6764_v63 = vcombine.low %v21432_v5, %v21435_v35 }
 0x3d6   :  { %v9959_v54 = vpop.f32.mrf.mxu0  ;;  %v5860_v29 = vcombine.low %v5827_v48, %v5843_v38  ;;  %v5861_v52 = vcombine.high %v5827_v48, %v5843_v38  ;;  %v6991_v49 = vrot.slane %v6984_v7, %v18042_v14  ;;  %v6999_v19 = vrot.slane %v16339_v0, %v18042_v14 }
 0x3d7   :  { %24810 = vst [vmem:[#allocation57_spill] sm:$0xff] %v21427_v31  ;;  %v10473_v10 = vsel %vm10301_vm2, %v21427_v31, -inf  ;;  %v17088_v17 = vpop.f32.mrf.mxu1  ;;  %v21446_v55 = vadd.f32 %v21338_v30, %v9959_v54  ;;  %v5732_v31 = vrot.slane %v5724_v2, %v18049_v27  ;;  %v6975_v54 = vrot.slane %v6968_v41, %v18042_v14 }
 0x3d8   :  { %10474 = vmax.xlane.f32.xlu0 %v10473_v10  ;;  %v6983_v10 = vrot.slane %v16338_v37, %v18042_v14  ;;  %v21458_v59 = vadd.f32 %v17088_v17, %v21215_v20  ;;  %v21467_v38 = vrot.slane %v5844_v18, %v18049_v27  ;;  %v21470_v41 = vrot.slane %v5845_v21, %v18049_v27 }
 0x3d9   :  { %24811 = vst [vmem:[#allocation58_spill] sm:$0xff] %v21446_v55  ;;  %10429 = vmax.xlane.f32.xlu1 %v10428_v47  ;;  %v9524_v43 = vpop.f32.mrf.mxu1  ;;  %v10470_v2 = vsel %vm10301_vm2, %v21446_v55, -inf  ;;  %v16332_v20 = vcombine.high %v21432_v5, %v21435_v35  ;;  %v7016_v0 = vcombine.low %v6991_v49, %v6999_v19  ;;  %v16333_v18 = vcombine.high %v5732_v31, %v5739_v56  ;;  %v10307_v55 = vpop.xlane.xlu1 %10306 }
 0x3da   :  { %24812 = vst [vmem:[#allocation59_spill] sm:$0xff] %v21458_v59  ;;  %v7000_v7 = vcombine.low %v6975_v54, %v6983_v10  ;;  %v7001_v48 = vcombine.high %v6975_v54, %v6983_v10  ;;  %v21483_v54 = vadd.f32 %v21227_v34, %v9524_v43  ;;  %v10443_v5 = vsel %vm10301_vm2, %v21458_v59, -inf }
 0x3db   :  { %v21488_v35 = vrot.slane %v7016_v0, %v18049_v27  ;;  %v10495_v43 = vsub.f32 %v20954_v13, %v10307_v55 }
 0x3dc   :  { %v21480_v21 = vrot.slane %v7000_v7, %v18049_v27  ;;  %24815 = vst [vmem:[#allocation97_spill] sm:$0xff] %v21483_v54  ;;  %v7015_v10 = vrot.slane %v7001_v48, %v18049_v27  ;;  %v6771_v48 = vrot.slane %v6764_v63, %v18042_v14  ;;  %v10440_v13 = vsel %vm10301_vm2, %v21483_v54, -inf }
 0x3dd   :  { %10471 = vmax.xlane.f32.xlu1 %v10470_v2  ;;  %v7017_v2 = vcombine.high %v6991_v49, %v6999_v19  ;;  %v16336_v49 = vcombine.high %v21467_v38, %v21470_v41 }
 0x3df   :  { %v7031_v34 = vrot.slane %v7017_v2, %v18049_v27  ;;  %v6795_v2 = vrot.slane %v16333_v18, %v18042_v14  ;;  %v10503_v18 = vsub.f32 %v21055_v24, %v10331_v39 }
 0x3e0   :  { %v17137_v50 = vpop.f32.mrf.mxu0 }
 0x3e1   :  { %v21461_v53 = vadd.f32 %v17137_v50, %v21324_v32  ;;  %v6780_v50 = vcombine.low %v5732_v31, %v5739_v56  ;;  %v5868_v31 = vrot.slane %v5860_v29, %v18049_v27  ;;  %v5875_v56 = vrot.slane %v5861_v52, %v18049_v27  ;;  %10444 = vmax.xlane.f32.xlu1 %v10443_v5  ;;  %v10304_v5 = vpop.xlane.xlu0 %10303 }
 0x3e2   :  { %v10133_v7 = vpop.f32.mrf.mxu0  ;;  %v21503_v29 = vcombine.high %v21480_v21, %v21488_v35  ;;  %v21514_v55 = vcombine.low %v7015_v10, %v7031_v34 }
 0x3e3   :  { %24813 = vst [vmem:[#allocation60_spill] sm:$0xff] %v21461_v53  ;;  %v10485_v47 = vsel %vm10301_vm2, %v21461_v53, -inf  ;;  %v6787_v0 = vrot.slane %v6780_v50, %v18042_v14  ;;  %v6916_v50 = vcombine.low %v5868_v31, %v5875_v56  ;;  %v16337_v59 = vcombine.high %v5868_v31, %v5875_v56 }
 0x3e4   :  { %v17102_v37 = vpop.f32.mrf.mxu1  ;;  %10486 = vmax.xlane.f32.xlu0 %v10485_v47  ;;  %v6779_v47 = vrot.slane %v16332_v20, %v18042_v14  ;;  %24817 = vst [vmem:[#allocation99_spill] sm:$0xff] %v21514_v55 }
 0x3e5   :  { %v21475_v17 = vadd.f32 %v17102_v37, %v21324_v32  ;;  %v6900_v37 = vcombine.low %v21467_v38, %v21470_v41  ;;  %v21510_v38 = vadd.f32 %v21338_v30, %v10133_v7  ;;  %v21516_v41 = vcombine.high %v7015_v10, %v7031_v34  ;;  %10441 = vmax.xlane.f32.xlu1 %v10440_v13 }
 0x3e6   :  { %v9698_v52 = vpop.f32.mrf.mxu1  ;;  %v6796_v63 = vcombine.low %v6771_v48, %v6779_v47  ;;  %v6812_v53 = vcombine.low %v6787_v0, %v6795_v2  ;;  %v6797_v20 = vcombine.high %v6771_v48, %v6779_v47  ;;  %v10328_v47 = vpop.xlane.xlu0 %10327 }
 0x3e7   :  { %24814 = vst [vmem:[#allocation96_spill] sm:$0xff] %v21475_v17  ;;  %v10455_v19 = vsel %vm10301_vm2, %v21475_v17, -inf  ;;  %24816 = vst [vmem:[#allocation98_spill] sm:$0xff] %v21510_v38  ;;  %v6813_v17 = vcombine.high %v6787_v0, %v6795_v2  ;;  %v21531_v48 = vadd.f32 %v21338_v30, %v9698_v52  ;;  %v10482_v24 = vsel %vm10301_vm2, %v21510_v38, -inf }
 0x3e8   :  { %10456 = vmax.xlane.f32.xlu0 %v10455_v19  ;;  %24818 = vst [vmem:[#allocation16_spill] sm:$0xff] %v21516_v41  ;;  %v21523_v54 = vrot.slane %v6796_v63, %v18049_v27  ;;  %v21526_v10 = vrot.slane %v6812_v53, %v18049_v27  ;;  %v6811_v34 = vrot.slane %v6797_v20, %v18049_v27  ;;  %v10560_v41 = vmul.f32 1.442695, %v10495_v43 }
 0x3e9   :  { %v6827_v13 = vrot.slane %v6813_v17, %v18049_v27  ;;  %24820 = vst [vmem:[#allocation35_spill] sm:$0xff] %v21531_v48  ;;  %10483 = vmax.xlane.f32.xlu1 %v10482_v24  ;;  %v10576_v17 = vmul.f32 1.442695, %v10503_v18  ;;  %v10494_v43 = vsub.f32 %v21064_v4, %v10304_v5  ;;  %v6907_v0 = vrot.slane %v6900_v37, %v18042_v14 }
 0x3ea   :  { %v21539_v53 = vcombine.high %v21523_v54, %v21526_v10  ;;  %v6915_v2 = vrot.slane %v16336_v49, %v18042_v14  ;;  %v6931_v63 = vrot.slane %v16337_v59, %v18042_v14  ;;  %17419 = vpow2.f32 %v10560_v41  ;;  %v10313_v59 = vpop.xlane.xlu1 %10312 }
 0x3eb   :  { %v21541_v56 = vcombine.low %v6811_v34, %v6827_v13  ;;  %v21544_v52 = vcombine.high %v6811_v34, %v6827_v13  ;;  %v10452_v18 = vsel %vm10301_vm2, %v21531_v48, -inf  ;;  %17421 = vpow2.f32 %v10576_v17 }
 0x3ec   :  { %v17116_v19 = vpop.f32.mrf.mxu1  ;;  %24821 = vst [vmem:[#allocation36_spill] sm:$0xff] %v21539_v53  ;;  %v6932_v4 = vcombine.low %v6907_v0, %v6915_v2  ;;  %v6933_v34 = vcombine.high %v6907_v0, %v6915_v2  ;;  %v10558_v37 = vmul.f32 1.442695, %v10494_v43  ;;  %v10502_v49 = vsub.f32 %v21074_v44, %v10328_v47 }
 0x3ed   :  { %v21520_v7 = vadd.f32 %v17116_v19, %v21324_v32  ;;  %24822 = vst [vmem:[#allocation154_spill] sm:$0xff] %v21541_v56  ;;  %24823 = vst [vmem:[#allocation113_spill] sm:$0xff] %v21544_v52  ;;  %v6923_v19 = vrot.slane %v6916_v50, %v18042_v14  ;;  %10453 = vmax.xlane.f32.xlu1 %v10452_v18 }
 0x3ee   :  { %v9872_v31 = vpop.f32.mrf.mxu1  ;;  %v6947_v18 = vrot.slane %v6933_v34, %v18049_v27  ;;  %17423 = vpow2.f32 %v10558_v37 }
 0x3ef   :  { %24819 = vst [vmem:[#allocation25_spill] sm:$0xff] %v21520_v7  ;;  %v10467_v39 = vsel %vm10301_vm2, %v21520_v7, -inf  ;;  %v21551_v20 = vadd.f32 %v21338_v30, %v9872_v31  ;;  %v6948_v5 = vcombine.low %v6923_v19, %v6931_v63  ;;  %v6949_v13 = vcombine.high %v6923_v19, %v6931_v63 }
 0x3f0   :  { %10468 = vmax.xlane.f32.xlu0 %v10467_v39  ;;  %v21560_v39 = vrot.slane %v6932_v4, %v18049_v27  ;;  %v10574_v19 = vmul.f32 1.442695, %v10502_v49  ;;  %v10497_v63 = vsub.f32 %v21081_v61, %v10313_v59 }
 0x3f1   :  { %24824 = vst [vmem:[#allocation156_spill] sm:$0xff] %v21551_v20  ;;  %v21563_v31 = vrot.slane %v6948_v5, %v18049_v27  ;;  %v6963_v0 = vrot.slane %v6949_v13, %v18049_v27  ;;  %v10464_v43 = vsel %vm10301_vm2, %v21551_v20, -inf }
 0x3f2   :  { %10465 = vmax.xlane.f32.xlu1 %v10464_v43  ;;  %17425 = vpow2.f32 %v10574_v19  ;;  %v10564_v34 = vmul.f32 1.442695, %v10497_v63 }
 0x3f3   :  { %v21576_v47 = vcombine.high %v21560_v39, %v21563_v31  ;;  %v21578_v2 = vcombine.low %v6947_v18, %v6963_v0 }
 0x3f4   :  { %v17130_v24 = vpop.f32.mrf.mxu1  ;;  %17427 = vpow2.f32 %v10564_v34 }
 0x3f5   :  { %v21557_v50 = vadd.f32 %v17130_v24, %v21324_v32  ;;  %24827 = vst [vmem:[#allocation3_spill] sm:$0xff] %v21576_v47  ;;  %24828 = vst [vmem:[#allocation116_spill] sm:$0xff] %v21578_v2  ;;  %v21581_v24 = vcombine.high %v6947_v18, %v6963_v0  ;;  %v24841_v47 = vld [vmem:[#allocation62_spill] sm:$0xff] }
 0x3f6   :  { %v10046_v41 = vpop.f32.mrf.mxu1 }
 0x3f7   :  { %24825 = vst [vmem:[#allocation155_spill] sm:$0xff] %v21557_v50  ;;  %v21568_v17 = vadd.f32 %v21338_v30, %v10046_v41  ;;  %v10479_v44 = vsel %vm10301_vm2, %v21557_v50, -inf  ;;  %24829 = vst [vmem:[#allocation117_spill] sm:$0xff] %v21581_v24  ;;  %v21593_v61 = vpop.eup %17419  ;;  %v10343_v49 = vpop.xlane.xlu0 %10342 }
 0x3f8   :  { %10480 = vmax.xlane.f32.xlu0 %v10479_v44  ;;  %v10507_v18 = vsub.f32 %v21086_v33, %v10343_v49  ;;  %v21598_v0 = vpop.eup %17421 }
 0x3f9   :  { %24826 = vst [vmem:[#allocation29_spill] sm:$0xff] %v21568_v17  ;;  %v10476_v4 = vsel %vm10301_vm2, %v21568_v17, -inf  ;;  %v10713_v19 = vsel %vm10301_vm2, %v21598_v0, 0.0 }
 0x3fa   :  { %10477 = vmax.xlane.f32.xlu1 %v10476_v4 }
 0x3fb   :  { %v10310_v43 = vpop.xlane.xlu0 %10309  ;;  %v21605_v4 = vpop.eup %17423 }
 0x3fc   :  { %v17144_v5 = vpop.f32.mrf.mxu1  ;;  %v10496_v63 = vsub.f32 %v21089_v15, %v10310_v43 }
 0x3fd   :  { %v21586_v13 = vadd.f32 %v17144_v5, %v21324_v32  ;;  %v10584_v32 = vmul.f32 1.442695, %v10507_v18 }
 0x3fe   :  { %v10220_v41 = vpop.f32.mrf.mxu1  ;;  %v10562_v5 = vmul.f32 1.442695, %v10496_v63 }
 0x3ff   :  { %24830 = vst [vmem:[#allocation124_spill] sm:$0xff] %v21586_v13  ;;  %v21589_v44 = vadd.f32 %v21338_v30, %v10220_v41  ;;  %v10491_v37 = vsel %vm10301_vm2, %v21586_v13, -inf  ;;  %v10689_v30 = vsel %vm10301_vm2, %v21593_v61, 0.0  ;;  %17429 = vpow2.f32 %v10584_v32  ;;  %v10325_v33 = vpop.xlane.xlu1 %10324  ;;  %v10340_v34 = vpop.xlane.xlu0 %10339 }
 0x400   :  { %10492 = vmax.xlane.f32.xlu0 %v10491_v37  ;;  %v10686_v41 = vsel %vm10301_vm2, %v21605_v4, 0.0  ;;  %17431 = vpow2.f32 %v10562_v5  ;;  %v10506_v37 = vsub.f32 %v21094_v3, %v10340_v34  ;;  %v21610_v49 = vpop.eup %17425 }
 0x401   :  { %24831 = vst [vmem:[#allocation123_spill] sm:$0xff] %v21589_v44  ;;  %v10488_v59 = vsel %vm10301_vm2, %v21589_v44, -inf  ;;  %v10710_v15 = vsel %vm10301_vm2, %v21610_v49, 0.0  ;;  %v21615_v43 = vpop.eup %17427 }
 0x402   :  { %10489 = vmax.xlane.f32.xlu1 %v10488_v59  ;;  %v10582_v59 = vmul.f32 1.442695, %v10506_v37  ;;  %v10695_v3 = vsel %vm10301_vm2, %v21615_v43, 0.0 }
 0x403   :  { %v10322_v18 = vpop.xlane.xlu1 %10321 }
 0x404   :  { %10690 = vadd.xlane.f32.xlu0 %v10689_v30  ;;  %v10319_v30 = vpop.xlane.xlu0 %10318  ;;  %17433 = vpow2.f32 %v10582_v59 }
 0x405   :  { %v10499_v32 = vsub.f32 %v21107_v9, %v10319_v30 }
 0x406   :  { %10714 = vadd.xlane.f32.xlu1 %v10713_v19 }
 0x407   :  { %v10568_v19 = vmul.f32 1.442695, %v10499_v32  ;;  %v10500_v32 = vsub.f32 %v21102_v11, %v10322_v18 }
 0x408   :  { %v10355_v63 = vpop.xlane.xlu0 %10354 }
 0x409   :  { %17435 = vpow2.f32 %v10568_v19  ;;  %v10511_v19 = vsub.f32 %v21119_v57, %v10355_v63 }
 0x40a   :  { %10687 = vadd.xlane.f32.xlu1 %v10686_v41  ;;  %v10337_v5 = vpop.xlane.xlu1 %10336  ;;  %v10501_v41 = vsub.f32 %v21099_v16, %v10325_v33 }
 0x40b   :  { %v10592_v11 = vmul.f32 1.442695, %v10511_v19 }
 0x40c   :  { %v21619_v34 = vpop.eup %17429  ;;  %v10316_v59 = vpop.xlane.xlu0 %10315 }
 0x40d   :  { %v10725_v37 = vsel %vm10301_vm2, %v21619_v34, 0.0  ;;  %v10498_v9 = vsub.f32 %v21127_v45, %v10316_v59  ;;  %v21625_v30 = vpop.eup %17431  ;;  %v10570_v45 = vmul.f32 1.442695, %v10500_v32 }
 0x40e   :  { %10711 = vadd.xlane.f32.xlu1 %v10710_v15  ;;  %v10572_v15 = vmul.f32 1.442695, %v10501_v41  ;;  %v10334_v24 = vpop.xlane.xlu1 %10333  ;;  %v10505_v41 = vsub.f32 %v21124_v6, %v10337_v5 }
 0x40f   :  { %v10566_v52 = vmul.f32 1.442695, %v10498_v9 }
 0x410   :  { %v10352_v16 = vpop.xlane.xlu0 %10351 }
 0x411   :  { %17437 = vpow2.f32 %v10566_v52  ;;  %v10510_v33 = vsub.f32 %v21142_v25, %v10352_v16  ;;  %v21632_v2 = vpop.eup %17433  ;;  %v10580_v25 = vmul.f32 1.442695, %v10505_v41  ;;  %v10504_v52 = vsub.f32 %v21137_v58, %v10334_v24 }
 0x412   :  { %10696 = vadd.xlane.f32.xlu1 %v10695_v3  ;;  %v10692_v3 = vsel %vm10301_vm2, %v21625_v30, 0.0  ;;  %17439 = vpow2.f32 %v10572_v15  ;;  %v10722_v57 = vsel %vm10301_vm2, %v21632_v2, 0.0 }
 0x413   :  { %v10590_v18 = vmul.f32 1.442695, %v10510_v33  ;;  %v10578_v15 = vmul.f32 1.442695, %v10504_v52 }
 0x414   :  { %v10349_v63 = vpop.xlane.xlu1 %10348 }
 0x415   :  { %17441 = vpow2.f32 %v10590_v18  ;;  %v10509_v58 = vsub.f32 %v21154_v28, %v10349_v63 }
 0x416   :  { %10726 = vadd.xlane.f32.xlu1 %v10725_v37  ;;  %v21637_v37 = vpop.xlane.xlu0 %10366  ;;  %v21639_v59 = vpop.eup %17435  ;;  %17443 = vpow2.f32 %v10570_v45 }
 0x417   :  { %17445 = vpow2.f32 %v10592_v11  ;;  %v10701_v6 = vsel %vm10301_vm2, %v21639_v59, 0.0 }
 0x418   :  { %v10346_v5 = vpop.xlane.xlu1 %10345  ;;  %10702 = vadd.xlane.f32.xlu0 %v10701_v6  ;;  %17447 = vpow2.f32 %v10580_v25 }
 0x419   :  { %v10508_v32 = vsub.f32 %v21162_v23, %v10346_v5  ;;  %17449 = vpow2.f32 %v10578_v15 }
 0x41a   :  { %10693 = vadd.xlane.f32.xlu1 %v10692_v3  ;;  %v21644_v9 = vpop.xlane.xlu0 %10363 }
 0x41b   :  { %v10586_v24 = vmul.f32 1.442695, %v10508_v32 }
 0x41c   :  { %v21647_v19 = vpop.xlane.xlu1 %10360 }
 0x41d   :  { %17451 = vpow2.f32 %v10586_v24 }
 0x41e   :  { %10723 = vadd.xlane.f32.xlu1 %v10722_v57  ;;  %v21649_v3 = vpop.xlane.xlu0 %10378  ;;  %v21651_v16 = vpop.eup %17437  ;;  %v10588_v57 = vmul.f32 1.442695, %v10509_v58 }
 0x41f   :  { %v21653_v33 = vpop.eup %17439  ;;  %v10698_v45 = vsel %vm10301_vm2, %v21651_v16, 0.0 }
 0x420   :  { %v21658_v41 = vpop.xlane.xlu1 %10357  ;;  %10699 = vadd.xlane.f32.xlu0 %v10698_v45  ;;  %v10707_v25 = vsel %vm10301_vm2, %v21653_v33, 0.0  ;;  %17453 = vpow2.f32 %v10588_v57 }
 0x422   :  { %v21660_v11 = vpop.xlane.xlu0 %10375  ;;  %v21662_v23 = vpop.eup %17441 }
 0x423   :  { %v21664_v18 = vpop.eup %17443  ;;  %v10734_v28 = vsel %vm10301_vm2, %v21662_v23, 0.0 }
 0x424   :  { %v21670_v63 = vpop.eup %17445  ;;  %v21672_v52 = vpop.xlane.xlu1 %10372  ;;  %10708 = vadd.xlane.f32.xlu0 %v10707_v25  ;;  %10735 = vadd.xlane.f32.xlu1 %v10734_v28  ;;  %v10704_v5 = vsel %vm10301_vm2, %v21664_v18, 0.0 }
 0x425   :  { %v10737_v15 = vsel %vm10301_vm2, %v21670_v63, 0.0  ;;  %v21680_v32 = vpop.eup %17447 }
 0x426   :  { %v21674_v6 = vpop.xlane.xlu0 %10390  ;;  %24832 = vst [vmem:[#allocation126_spill] sm:$0xff] %v21680_v32  ;;  %v10719_v45 = vsel %vm10301_vm2, %v21680_v32, 0.0  ;;  %v21688_v25 = vpop.eup %17449 }
 0x427   :  { %v10716_v55 = vsel %vm10301_vm2, %v21688_v25, 0.0 }
 0x428   :  { %v21682_v58 = vpop.xlane.xlu1 %10369  ;;  %10705 = vadd.xlane.f32.xlu0 %v10704_v5  ;;  %10738 = vadd.xlane.f32.xlu1 %v10737_v15 }
 0x42a   :  { %v21684_v24 = vpop.xlane.xlu0 %10387  ;;  %v21696_v56 = vpop.eup %17451 }
 0x42b   :  { %24834 = vst [vmem:[#allocation19_spill] sm:$0xff] %v21696_v56  ;;  %v10728_v53 = vsel %vm10301_vm2, %v21696_v56, 0.0 }
 0x42c   :  { %10720 = vadd.xlane.f32.xlu0 %v10719_v45  ;;  %v21692_v28 = vpop.xlane.xlu1 %10384 }
 0x42d   :  { %v21704_v13 = vpop.eup %17453 }
 0x42e   :  { %v21690_v57 = vpop.xlane.xlu0 %10402  ;;  %24836 = vst [vmem:[#allocation102_spill] sm:$0xff] %v21704_v13  ;;  %v10731_v50 = vsel %vm10301_vm2, %v21704_v13, 0.0  ;;  %v24844_v13 = vld [vmem:[#allocation73_spill] sm:$0xff] }
 0x42f   :  { %24833 = vst [vmem:[#allocation125_spill] sm:$0xff] %v21690_v57 }
 0x430   :  { %10717 = vadd.xlane.f32.xlu0 %v10716_v55  ;;  %v21700_v15 = vpop.xlane.xlu1 %10381  ;;  %v24839_v55 = vld [vmem:[#allocation10_spill] sm:$0xff] }
 0x432   :  { %v21698_v5 = vpop.xlane.xlu0 %10399 }
 0x433   :  { %24835 = vst [vmem:[#allocation17_spill] sm:$0xff] %v21698_v5 }
 0x434   :  { %10729 = vadd.xlane.f32.xlu0 %v10728_v53  ;;  %v24842_v53 = vld [vmem:[#allocation65_spill] sm:$0xff] }
 0x435   :  { %v21712_v44 = vpop.xlane.xlu1 %10396 }
 0x436   :  { %v21706_v45 = vpop.xlane.xlu0 %10414 }
 0x437   :  { %24837 = vst [vmem:[#allocation44_spill] sm:$0xff] %v21706_v45  ;;  %v10514_v45 = vsub.f32 %v21159_v42, %v21644_v9  ;;  %v24853_v42 = vld [vmem:[#allocation34_spill] sm:$0xff] }
 0x438   :  { %10732 = vadd.xlane.f32.xlu0 %v10731_v50 }
 0x439   :  { %5102 = vrot.lane.b32.xlu1 %v24839_v55, %s17681_s15  ;;  %v21720_v17 = vpop.xlane.xlu1 %10393 }
 0x43a   :  { %v21710_v7 = vpop.xlane.xlu0 %10411 }
 0x43b   :  { %24838 = vst [vmem:[#allocation43_spill] sm:$0xff] %v21710_v7  ;;  %v10598_v7 = vmul.f32 1.442695, %v10514_v45 }
 0x43d   :  { %5134 = vrot.lane.b32.xlu1 %v24841_v47, %s17681_s15  ;;  %v24847_v47 = vld [vmem:[#allocation6_spill] sm:$0xff]  ;;  %17455 = vpow2.f32 %v10598_v7 }
 0x43e   :  { %v21716_v38 = vpop.xlane.xlu0 %10426 }
 0x43f   :  { %24840 = vst [vmem:[#allocation68_spill] sm:$0xff] %v21716_v38 }
 0x441   :  { %5166 = vrot.lane.b32.xlu1 %v24842_v53, %s17681_s15 }
 0x442   :  { %v21724_v20 = vpop.xlane.xlu0 %10423 }
 0x443   :  { %24843 = vst [vmem:[#allocation69_spill] sm:$0xff] %v21724_v20  ;;  %v24848_v20 = vld [vmem:[#allocation30_spill] sm:$0xff] }
 0x445   :  { %5198 = vrot.lane.b32.xlu1 %v24844_v13, %s17681_s15 }
 0x447   :  { %v21726_v50 = vpop.xlane.xlu1 %10408 }
 0x448   :  { %v21730_v48 = vpop.xlane.xlu0 %10438 }
 0x449   :  { %24845 = vst [vmem:[#allocation70_spill] sm:$0xff] %v21730_v48  ;;  %v24850_v48 = vld [vmem:[#allocation31_spill] sm:$0xff] }
 0x44a   :  { %v21764_v32 = vpop.eup %17455 }
 0x44b   :  { %v21732_v55 = vpop.xlane.xlu1 %10405 }
 0x44c   :  { %v21734_v38 = vpop.xlane.xlu0 %10435 }
 0x44d   :  { %24846 = vst [vmem:[#allocation71_spill] sm:$0xff] %v21734_v38 }
 0x44e   :  { %5098 = vrot.lane.b32.xlu0 %v24847_v47, %s17681_s15 }
 0x450   :  { %v21744_v56 = vpop.xlane.xlu0 %10450 }
 0x451   :  { %24849 = vst [vmem:[#allocation85_spill] sm:$0xff] %v21744_v56 }
 0x452   :  { %v21740_v53 = vpop.xlane.xlu1 %10420  ;;  %5130 = vrot.lane.b32.xlu0 %v24848_v20, %s17681_s15  ;;  %v10512_v20 = vsub.f32 %v21184_v1, %v21658_v41 }
 0x454   :  { %v21752_v47 = vpop.xlane.xlu0 %10447  ;;  %v10594_v57 = vmul.f32 1.442695, %v10512_v20 }
 0x455   :  { %24852 = vst [vmem:[#allocation143_spill] sm:$0xff] %v21752_v47 }
 0x456   :  { %v21746_v13 = vpop.xlane.xlu1 %10417  ;;  %5162 = vrot.lane.b32.xlu0 %v24850_v48, %s17681_s15  ;;  %17457 = vpow2.f32 %v10594_v57 }
 0x458   :  { %v21760_v45 = vpop.xlane.xlu0 %10462 }
 0x459   :  { %24855 = vst [vmem:[#allocation132_spill] sm:$0xff] %v21760_v45 }
 0x45a   :  { %v21750_v38 = vpop.xlane.xlu1 %10459  ;;  %5194 = vrot.lane.b32.xlu0 %v24853_v42, %s17681_s15  ;;  %v10746_v42 = vsel %vm10301_vm2, %v21764_v32, 0.0 }
 0x45b   :  { %24851 = vst [vmem:[#allocation141_spill] sm:$0xff] %v21750_v38 }
 0x45e   :  { %v21756_v9 = vpop.xlane.xlu1 %10432 }
 0x45f   :  { %24854 = vst [vmem:[#allocation142_spill] sm:$0xff] %v21756_v9 }
 0x461   :  { %v21768_v48 = vpop.xlane.xlu0 %10474 }
 0x462   :  { %v21762_v56 = vpop.xlane.xlu1 %10429  ;;  %24858 = vst [vmem:[#allocation28_spill] sm:$0xff] %v21768_v48 }
 0x463   :  { %24856 = vst [vmem:[#allocation131_spill] sm:$0xff] %v21762_v56  ;;  %v21782_v45 = vpop.eup %17457 }
 0x464   :  { %24864 = vst [vmem:[#allocation12_spill] sm:$0xff] %v21782_v45  ;;  %v10740_v57 = vsel %vm10301_vm2, %v21782_v45, 0.0  ;;  %v24875_v45 = vld [vmem:[#allocation84_spill] sm:$0xff] }
 0x466   :  { %v21766_v7 = vpop.xlane.xlu1 %10471 }
 0x467   :  { %24857 = vst [vmem:[#allocation37_spill] sm:$0xff] %v21766_v7 }
 0x469   :  { %10747 = vadd.xlane.f32.xlu1 %v10746_v42  ;;  %v24868_v42 = vld [vmem:[#allocation15_spill] sm:$0xff] }
 0x46a   :  { %v21772_v47 = vpop.xlane.xlu1 %10444 }
 0x46b   :  { %24859 = vst [vmem:[#allocation5_spill] sm:$0xff] %v21772_v47 }
 0x46d   :  { %v21774_v38 = vpop.xlane.xlu0 %10486 }
 0x46e   :  { %24860 = vst [vmem:[#allocation119_spill] sm:$0xff] %v21774_v38  ;;  %v21776_v1 = vpop.xlane.xlu1 %10441 }
 0x46f   :  { %24861 = vst [vmem:[#allocation120_spill] sm:$0xff] %v21776_v1 }
 0x471   :  { %v21780_v20 = vpop.xlane.xlu0 %10456 }
 0x472   :  { %v21778_v41 = vpop.xlane.xlu1 %10483  ;;  %24863 = vst [vmem:[#allocation46_spill] sm:$0xff] %v21780_v20  ;;  %v24871_v20 = vld [vmem:[#allocation76_spill] sm:$0xff] }
 0x473   :  { %24862 = vst [vmem:[#allocation121_spill] sm:$0xff] %v21778_v41 }
 0x476   :  { %v21784_v7 = vpop.xlane.xlu1 %10453 }
 0x477   :  { %24865 = vst [vmem:[#allocation13_spill] sm:$0xff] %v21784_v7 }
 0x479   :  { %v21786_v48 = vpop.xlane.xlu0 %10468  ;;  %10741 = vadd.xlane.f32.xlu0 %v10740_v57 }
 0x47a   :  { %24866 = vst [vmem:[#allocation14_spill] sm:$0xff] %v21786_v48  ;;  %5100 = vrot.lane.b32.xlu1 %v24868_v42, %s17681_s15  ;;  %v24873_v48 = vld [vmem:[#allocation81_spill] sm:$0xff] }
 0x47b   :  { %v21790_v9 = vpop.xlane.xlu1 %10465 }
 0x47c   :  { %24867 = vst [vmem:[#allocation93_spill] sm:$0xff] %v21790_v9 }
 0x47e   :  { %5132 = vrot.lane.b32.xlu1 %v24871_v20, %s17681_s15  ;;  %v10515_v20 = vsub.f32 %v21149_v46, %v21637_v37  ;;  %v24879_v46 = vld [vmem:[#allocation45_spill] sm:$0xff]  ;;  %v6692_v37 = vcombine.low %v21393_v60, %v21403_v40 }
 0x481   :  { %v21796_v41 = vpop.xlane.xlu0 %10480 }
 0x482   :  { %24870 = vst [vmem:[#allocation129_spill] sm:$0xff] %v21796_v41  ;;  %5164 = vrot.lane.b32.xlu1 %v24873_v48, %s17681_s15  ;;  %v24876_v41 = vld [vmem:[#allocation8_spill] sm:$0xff]  ;;  %v24877_v48 = vld [vmem:[#allocation41_spill] sm:$0xff] }
 0x483   :  { %v21794_v38 = vpop.xlane.xlu1 %10477 }
 0x484   :  { %24869 = vst [vmem:[#allocation130_spill] sm:$0xff] %v21794_v38 }
 0x486   :  { %5196 = vrot.lane.b32.xlu1 %v24875_v45, %s17681_s15  ;;  %v24878_v45 = vld [vmem:[#allocation42_spill] sm:$0xff] }
 0x489   :  { %v21800_v47 = vpop.xlane.xlu0 %10492 }
 0x48a   :  { %24872 = vst [vmem:[#allocation115_spill] sm:$0xff] %v21800_v47 }
 0x48b   :  { %v21804_v7 = vpop.xlane.xlu1 %10489 }
 0x48c   :  { %24874 = vst [vmem:[#allocation114_spill] sm:$0xff] %v21804_v7  ;;  %v10600_v7 = vmul.f32 1.442695, %v10515_v20 }
 0x48d   :  { %v10691_v9 = vpop.xlane.xlu0 %10690 }
 0x48e   :  { %17459 = vrcp.f32 %v10691_v9 }
 0x48f   :  { %v10715_v57 = vpop.xlane.xlu1 %10714  ;;  %5096 = vrot.lane.b32.xlu0 %v24876_v41, %s17681_s15 }
 0x493   :  { %v10688_v42 = vpop.xlane.xlu1 %10687  ;;  %5128 = vrot.lane.b32.xlu0 %v24877_v48, %s17681_s15 }
 0x494   :  { %17461 = vrcp.f32 %v10688_v42 }
 0x495   :  { %17463 = vpow2.f32 %v10600_v7 }
 0x497   :  { %v10712_v38 = vpop.xlane.xlu1 %10711  ;;  %5160 = vrot.lane.b32.xlu0 %v24878_v45, %s17681_s15 }
 0x49b   :  { %v10697_v47 = vpop.xlane.xlu1 %10696  ;;  %v17460_v9 = vpop.eup %17459  ;;  %5192 = vrot.lane.b32.xlu0 %v24879_v46, %s17681_s15 }
 0x49c   :  { %17465 = vrcp.f32 %v10697_v47  ;;  %v10943_v41 = vmul.f32 %v17460_v9, %v21593_v61  ;;  %v7032_v61 = vcombine.low %v21480_v21, %v21488_v35  ;;  %v6828_v35 = vcombine.low %v21523_v54, %v21526_v10 }
 0x49f   :  { %v21814_v1 = vpop.xlane.xlu1 %10726 }
 0x4a1   :  { %v17462_v56 = vpop.eup %17461  ;;  %v10703_v47 = vpop.xlane.xlu0 %10702 }
 0x4a2   :  { %v10942_v42 = vmul.f32 %v17462_v56, %v21605_v4  ;;  %v10513_v56 = vsub.f32 %v21178_v22, %v21647_v19  ;;  %v21831_v7 = vpop.eup %17463 }
 0x4a3   :  { %v10694_v5 = vpop.xlane.xlu1 %10693  ;;  %v10749_v22 = vsel %vm10301_vm2, %v21831_v7, 0.0 }
 0x4a4   :  { %17149 = vmatprep.mubr.msk.f32.mxu0 %vm10301_vm2, %v10942_v42  ;;  %17467 = vrcp.f32 %v10694_v5  ;;  %v10596_v4 = vmul.f32 1.442695, %v10513_v56 }
 0x4a5   :  { %17150 = vmatmul.mubr.msk.f32.vlgmr.msra.gmra.mxu0 %vm10301_vm2, %v10943_v41 }
 0x4a6   :  { %17160 = vmatpush3.msra.mxu0 %v20923_v62  ;;  %17469 = vpow2.f32 %v10596_v4 }
 0x4a7   :  { %17161 = vmatprep.subr.mxu0 %v6692_v37  ;;  %17471 = vrcp.f32 %v10712_v38  ;;  %v10724_v60 = vpop.xlane.xlu1 %10723 }
 0x4a8   :  { %17162 = vmatpush3.msra.mxu0 %v6692_v37  ;;  %17473 = vrcp.f32 %v10703_v47 }
 0x4a9   :  { %17173 = vmatprep.subr.mxu0 %v7032_v61  ;;  %v17466_v5 = vpop.eup %17465  ;;  %v10700_v62 = vpop.xlane.xlu0 %10699 }
 0x4aa   :  { %17475 = vrcp.f32 %v10700_v62  ;;  %10750 = vadd.xlane.f32.xlu1 %v10749_v22  ;;  %v10945_v21 = vmul.f32 %v17466_v5, %v21615_v43  ;;  %v24880_v5 = vld [vmem:[#allocation94_spill] sm:$0xff]  ;;  %v24881_v22 = vld [vmem:[#allocation101_spill] sm:$0xff] }
 0x4ab   :  { %17477 = vrcp.f32 %v10715_v57 }
 0x4ac   :  { %17479 = vrcp.f32 %v10724_v60 }
 0x4ad   :  { %v21841_v38 = vpop.xlane.xlu1 %10735  ;;  %v10709_v19 = vpop.xlane.xlu0 %10708 }
 0x4ae   :  { %17481 = vrcp.f32 %v10709_v19 }
 0x4b1   :  { %v17468_v20 = vpop.eup %17467  ;;  %v10706_v48 = vpop.xlane.xlu0 %10705 }
 0x4b2   :  { %v10944_v40 = vmul.f32 %v17468_v20, %v21625_v30  ;;  %v21844_v30 = vpop.xlane.xlu1 %10738  ;;  %17483 = vrcp.f32 %v10706_v48 }
 0x4b3   :  { %v21846_v43 = vpop.eup %17469 }
 0x4b4   :  { %17156 = vmatprep.mubr.msk.f32.mxu1 %vm10301_vm2, %v10944_v40  ;;  %v17472_v57 = vpop.eup %17471 }
 0x4b5   :  { %17157 = vmatmul.mubr.msk.f32.vlgmr.msra.gmra.mxu1 %vm10301_vm2, %v10945_v21  ;;  %v21848_v9 = vpop.xlane.xlu0 %10720  ;;  %v17474_v54 = vpop.eup %17473  ;;  %v10950_v4 = vmul.f32 %v17472_v57, %v21610_v49 }
 0x4b6   :  { %17167 = vmatpush3.msra.mxu1 %v21070_v8  ;;  %v5103_v45 = vpop.permute.xlu1 %5102  ;;  %v10743_v8 = vsel %vm10301_vm2, %v21846_v43, 0.0  ;;  %v10947_v37 = vmul.f32 %v17474_v54, %v21639_v59 }
 0x4b7   :  { %17168 = vmatprep.subr.mxu1 %v6828_v35  ;;  %v17476_v10 = vpop.eup %17475 }
 0x4b8   :  { %17169 = vmatpush3.msra.mxu1 %v6828_v35  ;;  %v10946_v42 = vmul.f32 %v17476_v10, %v21651_v16  ;;  %v17478_v56 = vpop.eup %17477  ;;  %v6964_v16 = vcombine.low %v21560_v39, %v21563_v31 }
 0x4b9   :  { %v10718_v46 = vpop.xlane.xlu0 %10717  ;;  %v17480_v47 = vpop.eup %17479  ;;  %v10951_v60 = vmul.f32 %v17478_v56, %v21598_v0 }
 0x4ba   :  { %v5135_v41 = vpop.permute.xlu1 %5134  ;;  %17485 = vrcp.f32 %v10718_v46  ;;  %10744 = vadd.xlane.f32.xlu0 %v10743_v8  ;;  %17163 = vmatprep.mubr.msk.f32.mxu0 %vm10301_vm2, %v10946_v42  ;;  %v10954_v49 = vmul.f32 %v17480_v47, %v21632_v2  ;;  %v10518_v47 = vsub.f32 %v21181_v36, %v21660_v11 }
 0x4bb   :  { %5138 = vrot.lane.b32.xlu1 %v24880_v5, %s17681_s15  ;;  %17164 = vmatmul.mubr.msk.f32.vlgmr.msra.gmra.mxu0 %vm10301_vm2, %v10947_v37  ;;  %v17482_v62 = vpop.eup %17481 }
 0x4bc   :  { %17174 = vmatpush3.msra.mxu0 %v7032_v61  ;;  %17177 = vmatprep.mubr.msk.f32.mxu0 %vm10301_vm2, %v10950_v4  ;;  %v10949_v2 = vmul.f32 %v17482_v62, %v21653_v33  ;;  %v10606_v11 = vmul.f32 1.442695, %v10518_v47 }
 0x4bd   :  { %17175 = vmatprep.subr.mxu0 %v6964_v16  ;;  %v21862_v20 = vpop.xlane.xlu0 %10729 }
 0x4be   :  { %v5167_v59 = vpop.permute.xlu1 %5166  ;;  %17176 = vmatpush3.msra.mxu0 %v6964_v16  ;;  %17487 = vpow2.f32 %v10606_v11 }
 0x4bf   :  { %5202 = vrot.lane.b32.xlu1 %v24881_v22, %s17681_s15  ;;  %17178 = vmatmul.mubr.msk.f32.vlgmr.msra.gmra.mxu0 %vm10301_vm2, %v10951_v60  ;;  %v17484_v40 = vpop.eup %17483  ;;  %v6152_v39 = vcombine.low %v5103_v45, %v5167_v59  ;;  %v6153_v31 = vcombine.high %v5103_v45, %v5167_v59 }
 0x4c0   :  { %17191 = vmatprep.mubr.msk.f32.mxu0 %vm10301_vm2, %v10954_v49  ;;  %v10948_v35 = vmul.f32 %v17484_v40, %v21664_v18 }
 0x4c1   :  { %v21870_v21 = vpop.xlane.xlu0 %10732  ;;  %v6160_v48 = vrot.slane %v6152_v39, %v18042_v14  ;;  %v6167_v57 = vrot.slane %v6153_v31, %v18042_v14 }
 0x4c2   :  { %v5199_v61 = vpop.permute.xlu1 %5198  ;;  %17170 = vmatprep.mubr.msk.f32.mxu1 %vm10301_vm2, %v10948_v35 }
 0x4c3   :  { %v6168_v0 = vcombine.low %v5135_v41, %v5199_v61  ;;  %v6169_v19 = vcombine.high %v5135_v41, %v5199_v61  ;;  %17171 = vmatmul.mubr.msk.f32.vlgmr.msra.gmra.mxu1 %vm10301_vm2, %v10949_v2 }
 0x4c5   :  { %v6176_v54 = vrot.slane %v6168_v0, %v18042_v14  ;;  %v6183_v45 = vrot.slane %v6169_v19, %v18042_v14  ;;  %v5099_v10 = vpop.permute.xlu0 %5098  ;;  %v24884_v19 = vld [vmem:[#allocation26_spill] sm:$0xff] }
 0x4c7   :  { %v6184_v42 = vcombine.low %v6160_v48, %v6176_v54  ;;  %v6185_v46 = vcombine.high %v6160_v48, %v6176_v54  ;;  %v6200_v18 = vcombine.low %v6167_v57, %v6183_v45  ;;  %v6201_v8 = vcombine.high %v6167_v57, %v6183_v45  ;;  %v17486_v41 = vpop.eup %17485 }
 0x4c8   :  { %v10952_v16 = vmul.f32 %v17486_v41, %v21688_v25 }
 0x4c9   :  { %v6192_v33 = vrot.slane %v6184_v42, %v18049_v27  ;;  %v6199_v37 = vrot.slane %v6185_v46, %v18049_v27  ;;  %v6208_v56 = vrot.slane %v6200_v18, %v18049_v27  ;;  %v6215_v4 = vrot.slane %v6201_v8, %v18049_v27  ;;  %v5131_v5 = vpop.permute.xlu0 %5130 }
 0x4ca   :  { %17184 = vmatprep.mubr.msk.f32.mxu1 %vm10301_vm2, %v10952_v16 }
 0x4cb   :  { %v7240_v59 = vcombine.low %v6192_v33, %v6199_v37  ;;  %v16346_v60 = vcombine.high %v6192_v33, %v6199_v37  ;;  %v7256_v49 = vcombine.low %v6208_v56, %v6215_v4  ;;  %v16347_v62 = vcombine.high %v6208_v56, %v6215_v4  ;;  %v24885_v33 = vld [vmem:[#allocation95_spill] sm:$0xff] }
 0x4cd   :  { %v21889_v22 = vrot.slane %v7240_v59, %v18042_v14  ;;  %v21892_v40 = vrot.slane %v16346_v60, %v18042_v14  ;;  %v21895_v39 = vrot.slane %v7256_v49, %v18042_v14  ;;  %v21898_v36 = vrot.slane %v16347_v62, %v18042_v14  ;;  %v5163_v25 = vpop.permute.xlu0 %5162 }
 0x4ce   :  { %v6016_v35 = vcombine.low %v5099_v10, %v5163_v25  ;;  %v6017_v0 = vcombine.high %v5099_v10, %v5163_v25  ;;  %v10516_v49 = vsub.f32 %v21206_v12, %v21682_v58 }
 0x4cf   :  { %24882 = vst [vmem:[#allocation92_spill] sm:$0xff] %v21895_v39  ;;  %24883 = vst [vmem:[#allocation118_spill] sm:$0xff] %v21898_v36  ;;  %v7272_v31 = vcombine.low %v21889_v22, %v21892_v40  ;;  %v7288_v61 = vcombine.low %v21895_v39, %v21898_v36 }
 0x4d0   :  { %5106 = vrot.lane.b32.xlu0 %v24884_v19, %s17681_s15  ;;  %v6024_v18 = vrot.slane %v6016_v35, %v18042_v14  ;;  %v6031_v8 = vrot.slane %v6017_v0, %v18042_v14 }
 0x4d1   :  { %v7280_v2 = vrot.slane %v7272_v31, %v18049_v27  ;;  %v7296_v48 = vrot.slane %v7288_v61, %v18049_v27  ;;  %v5195_v57 = vpop.permute.xlu0 %5194 }
 0x4d2   :  { %v6032_v54 = vcombine.low %v5131_v5, %v5195_v57  ;;  %v6033_v45 = vcombine.high %v5131_v5, %v5195_v57 }
 0x4d3   :  { %v7304_v42 = vcombine.low %v7280_v2, %v7296_v48  ;;  %v21908_v46 = vcombine.high %v7280_v2, %v7296_v48  ;;  %v21934_v2 = vpop.eup %17487  ;;  %v10602_v48 = vmul.f32 1.442695, %v10516_v49 }
 0x4d4   :  { %v6040_v10 = vrot.slane %v6032_v54, %v18042_v14  ;;  %v6047_v41 = vrot.slane %v6033_v45, %v18042_v14  ;;  %5170 = vrot.lane.b32.xlu0 %v24885_v33, %s17681_s15  ;;  %v10758_v45 = vsel %vm10301_vm2, %v21934_v2, 0.0 }
 0x4d5   :  { %17187 = vmatprep.subr.mxu0 %v7304_v42  ;;  %17489 = vpow2.f32 %v10602_v48 }
 0x4d6   :  { %17188 = vmatpush3.msra.mxu0 %v7304_v42  ;;  %v6048_v37 = vcombine.low %v6024_v18, %v6040_v10  ;;  %v6049_v56 = vcombine.high %v6024_v18, %v6040_v10  ;;  %v6064_v4 = vcombine.low %v6031_v8, %v6047_v41  ;;  %v6065_v47 = vcombine.high %v6031_v8, %v6047_v41  ;;  %v24886_v41 = vld [vmem:[#allocation32_spill] sm:$0xff] }
 0x4d7   :  { %17491 = vrcp.f32 %v21814_v1 }
 0x4d8   :  { %v6056_v5 = vrot.slane %v6048_v37, %v18049_v27  ;;  %v6063_v16 = vrot.slane %v6049_v56, %v18049_v27  ;;  %v6072_v59 = vrot.slane %v6064_v4, %v18049_v27  ;;  %v6079_v60 = vrot.slane %v6065_v47, %v18049_v27  ;;  %v24887_v37 = vld [vmem:[#allocation107_spill] sm:$0xff] }
 0x4d9   :  { %v10519_v47 = vsub.f32 %v21169_v26, %v21649_v3  ;;  %17493 = vrcp.f32 %v21841_v38  ;;  %v24890_v38 = vld [vmem:[#allocation20_spill] sm:$0xff] }
 0x4da   :  { %v7104_v62 = vcombine.low %v6056_v5, %v6063_v16  ;;  %v16342_v11 = vcombine.high %v6056_v5, %v6063_v16  ;;  %v7120_v25 = vcombine.low %v6072_v59, %v6079_v60  ;;  %v16343_v31 = vcombine.high %v6072_v59, %v6079_v60 }
 0x4dc   :  { %v21923_v61 = vrot.slane %v7104_v62, %v18042_v14  ;;  %v21926_v35 = vrot.slane %v16342_v11, %v18042_v14  ;;  %v21929_v0 = vrot.slane %v7120_v25, %v18042_v14  ;;  %v21932_v19 = vrot.slane %v16343_v31, %v18042_v14 }
 0x4dd   :  { %v10608_v11 = vmul.f32 1.442695, %v10519_v47  ;;  %v10517_v47 = vsub.f32 %v24890_v38, %v21672_v52  ;;  %v24898_v38 = vld [vmem:[#allocation145_spill] sm:$0xff] }
 0x4de   :  { %v7136_v12 = vcombine.low %v21923_v61, %v21926_v35  ;;  %v7152_v58 = vcombine.low %v21929_v0, %v21932_v19 }
 0x4df   :  { %17495 = vpow2.f32 %v10608_v11 }
 0x4e0   :  { %v21941_v57 = vrot.slane %v7136_v12, %v18049_v27  ;;  %v21944_v54 = vrot.slane %v7152_v58, %v18049_v27  ;;  %17497 = vrcp.f32 %v21844_v30 }
 0x4e2   :  { %v7168_v42 = vcombine.low %v21941_v57, %v21944_v54  ;;  %v21950_v18 = vpop.eup %17489 }
 0x4e3   :  { %10759 = vadd.xlane.f32.xlu1 %v10758_v45  ;;  %v10752_v10 = vsel %vm10301_vm2, %v21950_v18, 0.0 }
 0x4e4   :  { %17180 = vmatprep.subr.mxu1 %v7168_v42 }
 0x4e5   :  { %17181 = vmatpush3.msra.mxu1 %v7168_v42 }
 0x4f2   :  { %v10748_v8 = vpop.xlane.xlu1 %10747 }
 0x4f3   :  { %10753 = vadd.xlane.f32.xlu0 %v10752_v10  ;;  %v24888_v10 = vld [vmem:[#allocation136_spill] sm:$0xff]  ;;  %17499 = vrcp.f32 %v10748_v8 }
 0x4f4   :  { %5136 = vrot.lane.b32.xlu1 %v24886_v41, %s17681_s15  ;;  %v10521_v41 = vsub.f32 %v24888_v10, %v21692_v28 }
 0x4f6   :  { %v5101_v33 = vpop.permute.xlu1 %5100 }
 0x4f8   :  { %5200 = vrot.lane.b32.xlu1 %v24887_v37, %s17681_s15 }
 0x4fa   :  { %v5133_v56 = vpop.permute.xlu1 %5132 }
 0x4fe   :  { %v5165_v4 = vpop.permute.xlu1 %5164 }
 0x4ff   :  { %v6084_v5 = vcombine.low %v5101_v33, %v5165_v4  ;;  %v6085_v16 = vcombine.high %v5101_v33, %v5165_v4  ;;  %v24889_v4 = vld [vmem:[#allocation40_spill] sm:$0xff] }
 0x501   :  { %v6092_v25 = vrot.slane %v6084_v5, %v18042_v14  ;;  %v6099_v31 = vrot.slane %v6085_v16, %v18042_v14  ;;  %v24891_v5 = vld [vmem:[#allocation110_spill] sm:$0xff] }
 0x502   :  { %v5197_v59 = vpop.permute.xlu1 %5196  ;;  %v21960_v60 = vpop.xlane.xlu0 %10741  ;;  %v10524_v16 = vsub.f32 %v24891_v5, %v21720_v17 }
 0x503   :  { %v6100_v49 = vcombine.low %v5133_v56, %v5197_v59  ;;  %v6101_v62 = vcombine.high %v5133_v56, %v5197_v59 }
 0x505   :  { %v6108_v48 = vrot.slane %v6100_v49, %v18042_v14  ;;  %v6115_v12 = vrot.slane %v6101_v62, %v18042_v14 }
 0x506   :  { %v5097_v26 = vpop.permute.xlu0 %5096 }
 0x507   :  { %v6116_v3 = vcombine.low %v6092_v25, %v6108_v48  ;;  %v6117_v58 = vcombine.high %v6092_v25, %v6108_v48  ;;  %v6132_v45 = vcombine.low %v6099_v31, %v6115_v12  ;;  %v6133_v42 = vcombine.high %v6099_v31, %v6115_v12  ;;  %v24892_v31 = vld [vmem:[#allocation108_spill] sm:$0xff] }
 0x508   :  { %v10612_v25 = vmul.f32 1.442695, %v10521_v41  ;;  %v10604_v12 = vmul.f32 1.442695, %v10517_v47  ;;  %v17492_v41 = vpop.eup %17491  ;;  %v24899_v47 = vld [vmem:[#allocation52_spill] sm:$0xff] }
 0x509   :  { %v6124_v1 = vrot.slane %v6116_v3, %v18049_v27  ;;  %v6131_v33 = vrot.slane %v6117_v58, %v18049_v27  ;;  %v6140_v37 = vrot.slane %v6132_v45, %v18049_v27  ;;  %v6147_v56 = vrot.slane %v6133_v42, %v18049_v27  ;;  %5104 = vrot.lane.b32.xlu0 %v24889_v4, %s17681_s15  ;;  %v24897_v42 = vld [vmem:[#allocation79_spill] sm:$0xff] }
 0x50a   :  { %v5129_v28 = vpop.permute.xlu0 %5128  ;;  %v10618_v58 = vmul.f32 1.442695, %v10524_v16  ;;  %17501 = vpow2.f32 %v10612_v25  ;;  %v10525_v10 = vsub.f32 %v24897_v42, %v21712_v44  ;;  %v6489_v5 = vcombine.high %v24899_v47, %v24898_v38  ;;  %v17494_v16 = vpop.eup %17493  ;;  %v24904_v38 = vld [vmem:[#allocation128_spill] sm:$0xff]  ;;  %v24905_v47 = vld [vmem:[#allocation86_spill] sm:$0xff] }
 0x50b   :  { %v7172_v59 = vcombine.low %v6124_v1, %v6131_v33  ;;  %v16344_v49 = vcombine.high %v6124_v1, %v6131_v33  ;;  %v7188_v62 = vcombine.low %v6140_v37, %v6147_v56  ;;  %v16345_v11 = vcombine.high %v6140_v37, %v6147_v56 }
 0x50c   :  { %17503 = vpow2.f32 %v10604_v12  ;;  %v10955_v25 = vmul.f32 %v17492_v41, %v21619_v34  ;;  %v10958_v34 = vmul.f32 %v17494_v16, %v21662_v23 }
 0x50d   :  { %5168 = vrot.lane.b32.xlu0 %v24892_v31, %s17681_s15  ;;  %v21984_v48 = vrot.slane %v7172_v59, %v18042_v14  ;;  %v21987_v52 = vrot.slane %v16344_v49, %v18042_v14  ;;  %v21990_v17 = vrot.slane %v7188_v62, %v18042_v14  ;;  %v21993_v30 = vrot.slane %v16345_v11, %v18042_v14  ;;  %v22015_v31 = vpop.eup %17495 }
 0x50e   :  { %v5161_v3 = vpop.permute.xlu0 %5160  ;;  %17505 = vpow2.f32 %v10618_v58  ;;  %v10620_v62 = vmul.f32 1.442695, %v10525_v10 }
 0x50f   :  { %24893 = vst [vmem:[#allocation53_spill] sm:$0xff] %v21984_v48  ;;  %24894 = vst [vmem:[#allocation54_spill] sm:$0xff] %v21987_v52  ;;  %v7204_v8 = vcombine.low %v21984_v48, %v21987_v52  ;;  %v7220_v45 = vcombine.low %v21990_v17, %v21993_v30  ;;  %v5948_v1 = vcombine.low %v5097_v26, %v5161_v3  ;;  %17507 = vrcp.f32 %v21848_v9  ;;  %v17498_v9 = vpop.eup %17497 }
 0x510   :  { %24895 = vst [vmem:[#allocation38_spill] sm:$0xff] %v21990_v17  ;;  %24896 = vst [vmem:[#allocation7_spill] sm:$0xff] %v21993_v30  ;;  %v5949_v33 = vcombine.high %v5097_v26, %v5161_v3  ;;  %v24900_v26 = vld [vmem:[#allocation33_spill] sm:$0xff]  ;;  %17509 = vrcp.f32 %v21862_v20  ;;  %v24906_v20 = vld [vmem:[#allocation100_spill] sm:$0xff] }
 0x511   :  { %v22002_v37 = vrot.slane %v7204_v8, %v18049_v27  ;;  %v22005_v56 = vrot.slane %v7220_v45, %v18049_v27  ;;  %v10528_v11 = vsub.f32 %v24900_v26, %v21732_v55  ;;  %v5956_v12 = vrot.slane %v5948_v1, %v18042_v14  ;;  %v24901_v8 = vld [vmem:[#allocation78_spill] sm:$0xff]  ;;  %v24902_v55 = vld [vmem:[#allocation111_spill] sm:$0xff]  ;;  %v24950_v30 = vld [vmem:[#allocation29_spill] sm:$0xff] }
 0x512   :  { %v5193_v4 = vpop.permute.xlu0 %5192  ;;  %v5963_v3 = vrot.slane %v5949_v33, %v18042_v14  ;;  %v10520_v45 = vsub.f32 %v24901_v8, %v21700_v15  ;;  %v10529_v42 = vsub.f32 %v24902_v55, %v21726_v50  ;;  %17511 = vpow2.f32 %v10620_v62  ;;  %v24903_v15 = vld [vmem:[#allocation127_spill] sm:$0xff]  ;;  %v24907_v62 = vld [vmem:[#allocation134_spill] sm:$0xff] }
 0x513   :  { %v5964_v59 = vcombine.low %v5129_v28, %v5193_v4  ;;  %v5965_v49 = vcombine.high %v5129_v28, %v5193_v4  ;;  %v7236_v44 = vcombine.low %v22002_v37, %v22005_v56  ;;  %v10626_v4 = vmul.f32 1.442695, %v10528_v11 }
 0x514   :  { %v6421_v50 = vcombine.high %v24904_v38, %v24903_v15  ;;  %v10522_v11 = vsub.f32 %v24907_v62, %v21684_v24  ;;  %v10761_v24 = vsel %vm10301_vm2, %v22015_v31, 0.0 }
 0x515   :  { %v5972_v58 = vrot.slane %v5964_v59, %v18042_v14  ;;  %v5979_v28 = vrot.slane %v5965_v49, %v18042_v14  ;;  %17189 = vmatprep.subr.mxu0 %v7236_v44  ;;  %v6761_v59 = vcombine.high %v24906_v20, %v24905_v47  ;;  %v17500_v49 = vpop.eup %17499  ;;  %17513 = vpow2.f32 %v10626_v4 }
 0x516   :  { %17190 = vmatpush3.msra.mxu0 %v7236_v44  ;;  %v22080_v20 = vcombine.high %v21941_v57, %v21944_v54 }
 0x517   :  { %v5980_v10 = vcombine.low %v5956_v12, %v5972_v58  ;;  %v5981_v41 = vcombine.high %v5956_v12, %v5972_v58  ;;  %v5996_v1 = vcombine.low %v5963_v3, %v5979_v28  ;;  %v5997_v33 = vcombine.high %v5963_v3, %v5979_v28  ;;  %17192 = vmatmul.mubr.msk.f32.vlgmr.msra.gmra.mxu0 %vm10301_vm2, %v10955_v25 }
 0x518   :  { %17201 = vmatprep.subr.mxu0 %v6489_v5  ;;  %17205 = vmatprep.mubr.msk.f32.mxu0 %vm10301_vm2, %v10958_v34  ;;  %v10610_v25 = vmul.f32 1.442695, %v10520_v45  ;;  %v10628_v12 = vmul.f32 1.442695, %v10529_v42  ;;  %v10959_v3 = vmul.f32 %v17498_v9, %v21670_v63  ;;  %v10532_v34 = vsub.f32 %v21362_v51, %v21746_v13  ;;  %v22046_v45 = vpop.eup %17501  ;;  %v24908_v13 = vld [vmem:[#allocation21_spill] sm:$0xff] }
 0x519   :  { %v5988_v23 = vrot.slane %v5980_v10, %v18049_v27  ;;  %v5995_v16 = vrot.slane %v5981_v41, %v18049_v27  ;;  %v6004_v44 = vrot.slane %v5996_v1, %v18049_v27  ;;  %v6011_v26 = vrot.slane %v5997_v33, %v18049_v27  ;;  %17202 = vmatpush3.msra.mxu0 %v6489_v5  ;;  %v22064_v41 = vpop.eup %17503  ;;  %v24910_v33 = vld [vmem:[#allocation138_spill] sm:$0xff] }
 0x51a   :  { %17203 = vmatprep.subr.mxu0 %v6421_v50  ;;  %v10962_v5 = vmul.f32 %v17500_v49, %v21764_v32  ;;  %v10523_v9 = vsub.f32 %v24908_v13, %v21674_v6  ;;  %17515 = vpow2.f32 %v10610_v25  ;;  %v24909_v32 = vld [vmem:[#allocation151_spill] sm:$0xff]  ;;  %v10614_v1 = vmul.f32 1.442695, %v10522_v11 }
 0x51b   :  { %v7036_v58 = vcombine.low %v5988_v23, %v5995_v16  ;;  %v16340_v28 = vcombine.high %v5988_v23, %v5995_v16  ;;  %v7052_v8 = vcombine.low %v6004_v44, %v6011_v26  ;;  %v16341_v55 = vcombine.high %v6004_v44, %v6011_v26  ;;  %17204 = vmatpush3.msra.mxu0 %v6421_v50  ;;  %v22071_v15 = vpop.eup %17505  ;;  %v24911_v44 = vld [vmem:[#allocation17_spill] sm:$0xff]  ;;  %v24912_v26 = vld [vmem:[#allocation135_spill] sm:$0xff] }
 0x51c   :  { %17206 = vmatmul.mubr.msk.f32.vlgmr.msra.gmra.mxu0 %vm10301_vm2, %v10959_v3  ;;  %17215 = vmatprep.subr.mxu0 %v6761_v59  ;;  %17517 = vpow2.f32 %v10628_v12  ;;  %v10533_v4 = vsub.f32 %v24910_v33, %v21740_v53  ;;  %v10634_v38 = vmul.f32 1.442695, %v10532_v34  ;;  %v10767_v50 = vsel %vm10301_vm2, %v22046_v45, 0.0  ;;  %v17508_v53 = vpop.eup %17507  ;;  %v24913_v25 = vld [vmem:[#allocation131_spill] sm:$0xff]  ;;  %v24914_v12 = vld [vmem:[#allocation152_spill] sm:$0xff]  ;;  %v24917_v34 = vld [vmem:[#allocation133_spill] sm:$0xff] }
 0x51d   :  { %10762 = vadd.xlane.f32.xlu1 %v10761_v24  ;;  %17216 = vmatpush3.msra.mxu0 %v6761_v59  ;;  %v22049_v63 = vrot.slane %v7036_v58, %v18042_v14  ;;  %v22052_v42 = vrot.slane %v16340_v28, %v18042_v14  ;;  %v22055_v51 = vrot.slane %v7052_v8, %v18042_v14  ;;  %v17510_v23 = vpop.eup %17509  ;;  %v10616_v16 = vmul.f32 1.442695, %v10523_v9  ;;  %v24915_v28 = vld [vmem:[#allocation126_spill] sm:$0xff]  ;;  %v24918_v13 = vld [vmem:[#allocation19_spill] sm:$0xff] }
 0x51e   :  { %17219 = vmatprep.mubr.msk.f32.mxu0 %vm10301_vm2, %v10962_v5  ;;  %17217 = vmatprep.subr.mxu0 %v24909_v32  ;;  %v22062_v10 = vrot.slane %v16341_v55, %v18042_v14  ;;  %17519 = vpow2.f32 %v10614_v1  ;;  %v10526_v62 = vsub.f32 %v24912_v26, %v24911_v44  ;;  %v10636_v11 = vmul.f32 1.442695, %v10533_v4  ;;  %v24916_v55 = vld [vmem:[#allocation125_spill] sm:$0xff]  ;;  %v24920_v1 = vld [vmem:[#allocation148_spill] sm:$0xff] }
 0x51f   :  { %17218 = vmatpush3.msra.mxu0 %v24909_v32  ;;  %v7068_v6 = vcombine.low %v22049_v63, %v22052_v42  ;;  %17521 = vpow2.f32 %v10634_v38  ;;  %v10536_v57 = vsub.f32 %v24914_v12, %v24913_v25  ;;  %v10776_v54 = vsel %vm10301_vm2, %v22071_v15, 0.0  ;;  %v22096_v58 = vpop.eup %17511  ;;  %v24919_v32 = vld [vmem:[#allocation142_spill] sm:$0xff]  ;;  %v24923_v44 = vld [vmem:[#allocation120_spill] sm:$0xff]  ;;  %v24924_v26 = vld [vmem:[#allocation97_spill] sm:$0xff] }
 0x520   :  { %17229 = vmatprep.subr.mxu0 %v21503_v29  ;;  %v7084_v47 = vcombine.low %v22055_v51, %v22062_v10  ;;  %v10953_v8 = vmul.f32 %v17508_v53, %v24915_v28  ;;  %17523 = vpow2.f32 %v10616_v16  ;;  %v10527_v24 = vsub.f32 %v24917_v34, %v24916_v55  ;;  %v24926_v28 = vld [vmem:[#allocation77_spill] sm:$0xff] }
 0x521   :  { %10768 = vadd.xlane.f32.xlu1 %v10767_v50  ;;  %v22083_v59 = vrot.slane %v7068_v6, %v18049_v27  ;;  %v10622_v5 = vmul.f32 1.442695, %v10526_v62  ;;  %v10956_v9 = vmul.f32 %v17510_v23, %v24918_v13  ;;  %17525 = vpow2.f32 %v10636_v11  ;;  %v24921_v50 = vld [vmem:[#allocation43_spill] sm:$0xff] }
 0x522   :  { %v22086_v49 = vrot.slane %v7084_v47, %v18049_v27  ;;  %v10537_v33 = vsub.f32 %v24920_v1, %v24919_v32  ;;  %v10642_v4 = vmul.f32 1.442695, %v10536_v57  ;;  %v10779_v6 = vsel %vm10301_vm2, %v22096_v58, 0.0  ;;  %v22107_v38 = vpop.eup %17513  ;;  %v24922_v47 = vld [vmem:[#allocation80_spill] sm:$0xff]  ;;  %v24928_v13 = vld [vmem:[#allocation59_spill] sm:$0xff] }
 0x523   :  { %v10530_v53 = vsub.f32 %v24922_v47, %v24921_v50  ;;  %v10624_v23 = vmul.f32 1.442695, %v10527_v24  ;;  %17527 = vpow2.f32 %v10622_v5  ;;  %v10540_v62 = vsub.f32 %v24924_v26, %v24923_v44  ;;  %v24927_v5 = vld [vmem:[#allocation5_spill] sm:$0xff] }
 0x524   :  { %v7100_v3 = vcombine.low %v22083_v59, %v22086_v49  ;;  %v10755_v11 = vsel %vm10301_vm2, %v22064_v41, 0.0  ;;  %v10644_v12 = vmul.f32 1.442695, %v10537_v33  ;;  %17529 = vpow2.f32 %v10642_v4  ;;  %v24929_v4 = vld [vmem:[#allocation69_spill] sm:$0xff] }
 0x525   :  { %10777 = vadd.xlane.f32.xlu1 %v10776_v54  ;;  %v10788_v57 = vsel %vm10301_vm2, %v22107_v38, 0.0  ;;  %v10630_v54 = vmul.f32 1.442695, %v10530_v53  ;;  %17531 = vpow2.f32 %v10624_v23  ;;  %v10650_v55 = vmul.f32 1.442695, %v10540_v62  ;;  %v24931_v26 = vld [vmem:[#allocation13_spill] sm:$0xff] }
 0x526   :  { %17182 = vmatprep.subr.mxu1 %v7100_v3  ;;  %17533 = vpow2.f32 %v10644_v12  ;;  %v24932_v62 = vld [vmem:[#allocation35_spill] sm:$0xff] }
 0x527   :  { %17183 = vmatpush3.msra.mxu1 %v7100_v3  ;;  %v22112_v16 = vpop.eup %17515  ;;  %v24925_v3 = vld [vmem:[#allocation44_spill] sm:$0xff]  ;;  %17535 = vpow2.f32 %v10630_v54 }
 0x528   :  { %17185 = vmatmul.mubr.msk.f32.vlgmr.msra.gmra.mxu1 %vm10301_vm2, %v10953_v8  ;;  %v10531_v8 = vsub.f32 %v24926_v28, %v24925_v3  ;;  %v10764_v34 = vsel %vm10301_vm2, %v22112_v16, 0.0  ;;  %17537 = vpow2.f32 %v10650_v55  ;;  %v24933_v54 = vld [vmem:[#allocation68_spill] sm:$0xff]  ;;  %v24934_v3 = vld [vmem:[#allocation11_spill] sm:$0xff]  ;;  %v24935_v55 = vld [vmem:[#allocation141_spill] sm:$0xff] }
 0x529   :  { %10780 = vadd.xlane.f32.xlu1 %v10779_v6  ;;  %17198 = vmatprep.mubr.msk.f32.mxu1 %vm10301_vm2, %v10956_v9  ;;  %v22118_v25 = vpop.eup %17517  ;;  %v10541_v9 = vsub.f32 %v24928_v13, %v24927_v5  ;;  %v24930_v6 = vld [vmem:[#allocation112_spill] sm:$0xff]  ;;  %v10535_v28 = vsub.f32 %v24934_v3, %v24933_v54 }
 0x52a   :  { %v10791_v32 = vsel %vm10301_vm2, %v22118_v25, 0.0  ;;  %v10632_v33 = vmul.f32 1.442695, %v10531_v8  ;;  %v10534_v50 = vsub.f32 %v24930_v6, %v24929_v4  ;;  %v22158_v6 = vcombine.high %v22002_v37, %v22005_v56 }
 0x52b   :  { %v22126_v24 = vpop.eup %17519  ;;  %v10652_v44 = vmul.f32 1.442695, %v10541_v9 }
 0x52c   :  { %10756 = vadd.xlane.f32.xlu0 %v10755_v11  ;;  %v22132_v1 = vpop.eup %17521  ;;  %v10770_v53 = vsel %vm10301_vm2, %v22126_v24, 0.0  ;;  %v10544_v11 = vsub.f32 %v24932_v62, %v24931_v26  ;;  %v10638_v8 = vmul.f32 1.442695, %v10534_v50  ;;  %v10640_v50 = vmul.f32 1.442695, %v10535_v28  ;;  %v24941_v28 = vld [vmem:[#allocation70_spill] sm:$0xff] }
 0x52d   :  { %10789 = vadd.xlane.f32.xlu1 %v10788_v57  ;;  %v22138_v23 = vpop.eup %17523  ;;  %v10800_v12 = vsel %vm10301_vm2, %v22132_v1, 0.0 }
 0x52e   :  { %v22144_v57 = vpop.eup %17525  ;;  %v10773_v13 = vsel %vm10301_vm2, %v22138_v23, 0.0 }
 0x52f   :  { %v10803_v4 = vsel %vm10301_vm2, %v22144_v57, 0.0 }
 0x530   :  { %10765 = vadd.xlane.f32.xlu0 %v10764_v34  ;;  %v24936_v34 = vld [vmem:[#allocation149_spill] sm:$0xff]  ;;  %v22152_v9 = vpop.eup %17527 }
 0x531   :  { %10792 = vadd.xlane.f32.xlu1 %v10791_v32  ;;  %v10546_v5 = vsub.f32 %v24936_v34, %v24935_v55  ;;  %v10658_v32 = vmul.f32 1.442695, %v10544_v11  ;;  %v10782_v54 = vsel %vm10301_vm2, %v22152_v9, 0.0 }
 0x533   :  { %v10751_v47 = vpop.xlane.xlu1 %10750  ;;  %v10662_v62 = vmul.f32 1.442695, %v10546_v5 }
 0x534   :  { %17539 = vrcp.f32 %v10751_v47  ;;  %10771 = vadd.xlane.f32.xlu0 %v10770_v53  ;;  %v24937_v47 = vld [vmem:[#allocation71_spill] sm:$0xff]  ;;  %v24938_v53 = vld [vmem:[#allocation72_spill] sm:$0xff] }
 0x535   :  { %10801 = vadd.xlane.f32.xlu1 %v10800_v12  ;;  %17541 = vpow2.f32 %v10632_v33  ;;  %v22160_v33 = vpop.eup %17529  ;;  %v10538_v26 = vsub.f32 %v24938_v53, %v24937_v47  ;;  %v24939_v12 = vld [vmem:[#allocation93_spill] sm:$0xff]  ;;  %v24945_v53 = vld [vmem:[#allocation58_spill] sm:$0xff] }
 0x536   :  { %17543 = vpow2.f32 %v10652_v44  ;;  %v24940_v44 = vld [vmem:[#allocation156_spill] sm:$0xff]  ;;  %v22168_v3 = vpop.eup %17531  ;;  %v10812_v37 = vsel %vm10301_vm2, %v22160_v33, 0.0  ;;  %v24944_v47 = vld [vmem:[#allocation37_spill] sm:$0xff] }
 0x537   :  { %17545 = vpow2.f32 %v10638_v8  ;;  %v10548_v11 = vsub.f32 %v24940_v44, %v24939_v12  ;;  %v22172_v56 = vpop.eup %17533  ;;  %v24942_v8 = vld [vmem:[#allocation103_spill] sm:$0xff]  ;;  %v10646_v34 = vmul.f32 1.442695, %v10538_v26  ;;  %v10550_v12 = vsub.f32 %v24945_v53, %v24944_v47 }
 0x538   :  { %10774 = vadd.xlane.f32.xlu0 %v10773_v13  ;;  %17547 = vpow2.f32 %v10658_v32  ;;  %v10539_v55 = vsub.f32 %v24942_v8, %v24941_v28  ;;  %v22176_v5 = vpop.eup %17535  ;;  %v10815_v44 = vsel %vm10301_vm2, %v22172_v56, 0.0 }
 0x539   :  { %10804 = vadd.xlane.f32.xlu1 %v10803_v4  ;;  %17549 = vpow2.f32 %v10640_v50  ;;  %v10666_v13 = vmul.f32 1.442695, %v10548_v11  ;;  %v10785_v4 = vsel %vm10301_vm2, %v22168_v3, 0.0  ;;  %v22180_v32 = vpop.eup %17537  ;;  %v24946_v11 = vld [vmem:[#allocation143_spill] sm:$0xff]  ;;  %v10794_v47 = vsel %vm10301_vm2, %v22176_v5, 0.0 }
 0x53a   :  { %17551 = vpow2.f32 %v10662_v62  ;;  %24943 = vst [vmem:[#allocation82_spill] sm:$0xff] %v22180_v32  ;;  %v10648_v26 = vmul.f32 1.442695, %v10539_v55  ;;  %v10670_v17 = vmul.f32 1.442695, %v10550_v12  ;;  %v10824_v55 = vsel %vm10301_vm2, %v22180_v32, 0.0 }
 0x53b   :  { %17553 = vpow2.f32 %v10646_v34  ;;  %v24952_v34 = vld [vmem:[#allocation85_spill] sm:$0xff] }
 0x53c   :  { %10783 = vadd.xlane.f32.xlu0 %v10782_v54  ;;  %v5139_v54 = vpop.permute.xlu1 %5138  ;;  %17555 = vpow2.f32 %v10666_v13  ;;  %v24953_v13 = vld [vmem:[#allocation39_spill] sm:$0xff] }
 0x53d   :  { %10813 = vadd.xlane.f32.xlu1 %v10812_v37  ;;  %v24947_v37 = vld [vmem:[#allocation137_spill] sm:$0xff]  ;;  %17557 = vpow2.f32 %v10648_v26 }
 0x53e   :  { %v10542_v28 = vsub.f32 %v24947_v37, %v24946_v11  ;;  %v24955_v11 = vld [vmem:[#allocation121_spill] sm:$0xff]  ;;  %17559 = vpow2.f32 %v10670_v17 }
 0x540   :  { %10786 = vadd.xlane.f32.xlu0 %v10785_v4  ;;  %v24949_v4 = vld [vmem:[#allocation130_spill] sm:$0xff]  ;;  %v10654_v12 = vmul.f32 1.442695, %v10542_v28 }
 0x541   :  { %v17540_v50 = vpop.eup %17539  ;;  %10816 = vadd.xlane.f32.xlu1 %v10815_v44  ;;  %v10552_v48 = vsub.f32 %v24950_v30, %v24949_v4  ;;  %v10543_v44 = vsub.f32 %v24953_v13, %v24952_v34  ;;  %v24956_v30 = vld [vmem:[#allocation98_spill] sm:$0xff]  ;;  %v5203_v4 = vpop.permute.xlu1 %5202  ;;  %v22213_v34 = vcombine.high %v22083_v59, %v22086_v49 }
 0x542   :  { %v10963_v62 = vmul.f32 %v17540_v50, %v21831_v7  ;;  %v22193_v53 = vpop.eup %17541  ;;  %v24954_v50 = vld [vmem:[#allocation3_spill] sm:$0xff]  ;;  %v10554_v37 = vsub.f32 %v24956_v30, %v24955_v11  ;;  %v24959_v11 = vld [vmem:[#allocation96_spill] sm:$0xff]  ;;  %v6304_v52 = vcombine.low %v5139_v54, %v5203_v4  ;;  %v6305_v59 = vcombine.high %v5139_v54, %v5203_v4 }
 0x543   :  { %v22189_v8 = vpop.xlane.xlu0 %10744  ;;  %24948 = vst [vmem:[#allocation139_spill] sm:$0xff] %v22193_v53  ;;  %v22200_v7 = vpop.eup %17543  ;;  %v10656_v13 = vmul.f32 1.442695, %v10543_v44  ;;  %17561 = vpow2.f32 %v10654_v12  ;;  %v24964_v54 = vld [vmem:[#allocation132_spill] sm:$0xff]  ;;  %v24965_v12 = vld [vmem:[#allocation105_spill] sm:$0xff] }
 0x544   :  { %10795 = vadd.xlane.f32.xlu0 %v10794_v47  ;;  %17220 = vmatmul.mubr.msk.f32.vlgmr.msra.gmra.mxu0 %vm10301_vm2, %v10963_v62  ;;  %24951 = vst [vmem:[#allocation83_spill] sm:$0xff] %v22200_v7  ;;  %v10797_v62 = vsel %vm10301_vm2, %v22193_v53, 0.0  ;;  %v10827_v26 = vsel %vm10301_vm2, %v22200_v7, 0.0  ;;  %v10678_v17 = vmul.f32 1.442695, %v10554_v37  ;;  %v24962_v53 = vld [vmem:[#allocation123_spill] sm:$0xff]  ;;  %v10547_v37 = vsub.f32 %v24965_v12, %v24964_v54 }
 0x545   :  { %10825 = vadd.xlane.f32.xlu1 %v10824_v55  ;;  %17230 = vmatpush3.msra.mxu0 %v21503_v29  ;;  %v22215_v55 = vpop.eup %17545  ;;  %v10674_v29 = vmul.f32 1.442695, %v10552_v48  ;;  %v24961_v48 = vld [vmem:[#allocation114_spill] sm:$0xff] }
 0x546   :  { %17231 = vmatprep.subr.mxu0 %v24954_v50  ;;  %v22220_v28 = vpop.eup %17547  ;;  %v10556_v32 = vsub.f32 %v24962_v53, %v24961_v48  ;;  %v6312_v53 = vrot.slane %v6304_v52, %v18042_v14 }
 0x547   :  { %17232 = vmatpush3.msra.mxu0 %v24954_v50  ;;  %v5107_v47 = vpop.permute.xlu0 %5106  ;;  %24957 = vst [vmem:[#allocation140_spill] sm:$0xff] %v22220_v28  ;;  %v24958_v50 = vld [vmem:[#allocation46_spill] sm:$0xff]  ;;  %v22224_v49 = vpop.eup %17549  ;;  %17563 = vpow2.f32 %v10674_v29 }
 0x548   :  { %17243 = vmatprep.subr.mxu0 %v21908_v46  ;;  %10798 = vadd.xlane.f32.xlu0 %v10797_v62  ;;  %v10545_v30 = vsub.f32 %v24959_v11, %v24958_v50  ;;  %24960 = vst [vmem:[#allocation61_spill] sm:$0xff] %v22224_v49  ;;  %v10806_v62 = vsel %vm10301_vm2, %v22215_v55, 0.0  ;;  %v22230_v7 = vpop.eup %17551  ;;  %17565 = vpow2.f32 %v10656_v13  ;;  %v6319_v50 = vrot.slane %v6305_v59, %v18042_v14 }
 0x549   :  { %10828 = vadd.xlane.f32.xlu1 %v10827_v26  ;;  %24963 = vst [vmem:[#allocation49_spill] sm:$0xff] %v22230_v7  ;;  %v10836_v26 = vsel %vm10301_vm2, %v22220_v28, 0.0  ;;  %v22240_v48 = vpop.eup %17553  ;;  %17567 = vpow2.f32 %v10678_v17  ;;  %v10809_v13 = vsel %vm10301_vm2, %v22224_v49, 0.0  ;;  %v10664_v28 = vmul.f32 1.442695, %v10547_v37 }
 0x54a   :  { %v10660_v4 = vmul.f32 1.442695, %v10545_v30  ;;  %v22246_v30 = vpop.eup %17555 }
 0x54b   :  { %v5171_v39 = vpop.permute.xlu0 %5170  ;;  %24966 = vst [vmem:[#allocation2_spill] sm:$0xff] %v22246_v30  ;;  %v22254_v49 = vpop.eup %17557 }
 0x54c   :  { %v6288_v44 = vcombine.low %v5107_v47, %v5171_v39  ;;  %v6289_v36 = vcombine.high %v5107_v47, %v5171_v39  ;;  %10807 = vadd.xlane.f32.xlu0 %v10806_v62  ;;  %v10682_v39 = vmul.f32 1.442695, %v10556_v32  ;;  %v10842_v47 = vsel %vm10301_vm2, %v22230_v7, 0.0 }
 0x54d   :  { %10837 = vadd.xlane.f32.xlu1 %v10836_v26  ;;  %17569 = vpow2.f32 %v10660_v4  ;;  %v10818_v4 = vsel %vm10301_vm2, %v22240_v48, 0.0 }
 0x54e   :  { %v6296_v11 = vrot.slane %v6288_v44, %v18042_v14  ;;  %v6303_v29 = vrot.slane %v6289_v36, %v18042_v14  ;;  %v24967_v44 = vld [vmem:[#allocation14_spill] sm:$0xff]  ;;  %v24968_v36 = vld [vmem:[#allocation25_spill] sm:$0xff]  ;;  %17571 = vpow2.f32 %v10682_v39 }
 0x54f   :  { %v10549_v54 = vsub.f32 %v24968_v36, %v24967_v44  ;;  %17573 = vpow2.f32 %v10664_v28 }
 0x550   :  { %v6320_v62 = vcombine.low %v6296_v11, %v6312_v53  ;;  %v6321_v52 = vcombine.high %v6296_v11, %v6312_v53  ;;  %v6336_v26 = vcombine.low %v6303_v29, %v6319_v50  ;;  %v6337_v59 = vcombine.high %v6303_v29, %v6319_v50  ;;  %10810 = vadd.xlane.f32.xlu0 %v10809_v13  ;;  %v22260_v13 = vpop.eup %17559 }
 0x551   :  { %10843 = vadd.xlane.f32.xlu1 %v10842_v47  ;;  %v10848_v53 = vsel %vm10301_vm2, %v22246_v30, 0.0  ;;  %24969 = vst [vmem:[#allocation10_spill] sm:$0xff] %v22260_v13 }
 0x552   :  { %v6328_v32 = vrot.slane %v6320_v62, %v18049_v27  ;;  %v6335_v17 = vrot.slane %v6321_v52, %v18049_v27  ;;  %v6344_v12 = vrot.slane %v6336_v26, %v18049_v27  ;;  %v6351_v7 = vrot.slane %v6337_v59, %v18049_v27  ;;  %v24970_v62 = vld [vmem:[#allocation28_spill] sm:$0xff]  ;;  %v24971_v52 = vld [vmem:[#allocation57_spill] sm:$0xff] }
 0x553   :  { %v10551_v26 = vsub.f32 %v24971_v52, %v24970_v62  ;;  %v10668_v59 = vmul.f32 1.442695, %v10549_v54 }
 0x554   :  { %v7376_v50 = vcombine.low %v6328_v32, %v6335_v17  ;;  %v16350_v11 = vcombine.high %v6328_v32, %v6335_v17  ;;  %v7392_v29 = vcombine.low %v6344_v12, %v6351_v7  ;;  %v16351_v47 = vcombine.high %v6344_v12, %v6351_v7  ;;  %10819 = vadd.xlane.f32.xlu0 %v10818_v4  ;;  %v22270_v32 = vpop.eup %17561 }
 0x555   :  { %10849 = vadd.xlane.f32.xlu1 %v10848_v53  ;;  %v10821_v7 = vsel %vm10301_vm2, %v22254_v49, 0.0  ;;  %v10854_v17 = vsel %vm10301_vm2, %v22260_v13, 0.0  ;;  %v22274_v53 = vpop.eup %17563  ;;  %17575 = vpow2.f32 %v10668_v59  ;;  %v10830_v52 = vsel %vm10301_vm2, %v22270_v32, 0.0 }
 0x556   :  { %v7383_v37 = vrot.slane %v7376_v50, %v18042_v14  ;;  %v7391_v39 = vrot.slane %v16350_v11, %v18042_v14  ;;  %v7399_v44 = vrot.slane %v7392_v29, %v18042_v14  ;;  %v7407_v36 = vrot.slane %v16351_v47, %v18042_v14  ;;  %24972 = vst [vmem:[#allocation62_spill] sm:$0xff] %v22274_v53  ;;  %v22276_v4 = vpop.eup %17565  ;;  %v24973_v29 = vld [vmem:[#allocation129_spill] sm:$0xff]  ;;  %v24974_v47 = vld [vmem:[#allocation155_spill] sm:$0xff] }
 0x557   :  { %v10672_v50 = vmul.f32 1.442695, %v10551_v26  ;;  %v10553_v62 = vsub.f32 %v24974_v47, %v24973_v29  ;;  %v22288_v13 = vpop.eup %17567  ;;  %v10860_v26 = vsel %vm10301_vm2, %v22274_v53, 0.0 }
 0x558   :  { %10822 = vadd.xlane.f32.xlu0 %v10821_v7  ;;  %v7408_v54 = vcombine.low %v7383_v37, %v7391_v39  ;;  %v7424_v12 = vcombine.low %v7399_v44, %v7407_v36  ;;  %v7069_v7 = vcombine.high %v22049_v63, %v22052_v42  ;;  %24975 = vst [vmem:[#allocation65_spill] sm:$0xff] %v22288_v13 }
 0x559   :  { %10855 = vadd.xlane.f32.xlu1 %v10854_v17  ;;  %v7085_v17 = vcombine.high %v22055_v51, %v22062_v10  ;;  %v7425_v63 = vcombine.high %v7399_v44, %v7407_v36  ;;  %17577 = vpow2.f32 %v10672_v50  ;;  %v24976_v51 = vld [vmem:[#allocation119_spill] sm:$0xff]  ;;  %v24977_v10 = vld [vmem:[#allocation60_spill] sm:$0xff]  ;;  %v10866_v50 = vsel %vm10301_vm2, %v22288_v13, 0.0 }
 0x55a   :  { %v7416_v28 = vrot.slane %v7408_v54, %v18049_v27  ;;  %v7432_v11 = vrot.slane %v7424_v12, %v18049_v27  ;;  %v7409_v12 = vcombine.high %v7383_v37, %v7391_v39  ;;  %v22295_v29 = vrot.slane %v7069_v7, %v18049_v27  ;;  %v22300_v42 = vpop.eup %17569  ;;  %v24979_v7 = vld [vmem:[#allocation115_spill] sm:$0xff] }
 0x55b   :  { %v22298_v47 = vrot.slane %v7085_v17, %v18049_v27  ;;  %v10555_v30 = vsub.f32 %v24977_v10, %v24976_v51  ;;  %v10833_v37 = vsel %vm10301_vm2, %v22276_v4, 0.0  ;;  %v7439_v44 = vrot.slane %v7425_v63, %v18049_v27  ;;  %v22314_v36 = vpop.eup %17571  ;;  %v24980_v17 = vld [vmem:[#allocation124_spill] sm:$0xff] }
 0x55c   :  { %10831 = vadd.xlane.f32.xlu0 %v10830_v52  ;;  %v7440_v59 = vcombine.low %v7416_v28, %v7432_v11  ;;  %v22292_v54 = vcombine.high %v7416_v28, %v7432_v11  ;;  %v22305_v52 = vrot.slane %v7409_v12, %v18049_v27  ;;  %v10676_v28 = vmul.f32 1.442695, %v10553_v62  ;;  %24978 = vst [vmem:[#allocation73_spill] sm:$0xff] %v22314_v36  ;;  %v22325_v12 = vpop.eup %17573 }
 0x55d   :  { %10861 = vadd.xlane.f32.xlu1 %v10860_v26  ;;  %v22311_v39 = vcombine.low %v22295_v29, %v22298_v47  ;;  %v10680_v62 = vmul.f32 1.442695, %v10555_v30  ;;  %v10557_v26 = vsub.f32 %v24980_v17, %v24979_v7  ;;  %v10872_v63 = vsel %vm10301_vm2, %v22314_v36, 0.0 }
 0x55e   :  { %17194 = vmatprep.subr.mxu1 %v7440_v59  ;;  %v22319_v11 = vcombine.low %v22305_v52, %v7439_v44  ;;  %17579 = vpow2.f32 %v10676_v28  ;;  %v10845_v30 = vsel %vm10301_vm2, %v22325_v12, 0.0 }
 0x55f   :  { %17195 = vmatpush3.msra.mxu1 %v7440_v59  ;;  %v10839_v59 = vsel %vm10301_vm2, %v22300_v42, 0.0  ;;  %17581 = vpow2.f32 %v10680_v62  ;;  %v10684_v10 = vmul.f32 1.442695, %v10557_v26 }
 0x560   :  { %10834 = vadd.xlane.f32.xlu0 %v10833_v37 }
 0x561   :  { %10867 = vadd.xlane.f32.xlu1 %v10866_v50  ;;  %17583 = vpow2.f32 %v10684_v10 }
 0x562   :  { %v22329_v51 = vpop.eup %17575 }
 0x563   :  { %24981 = vst [vmem:[#allocation6_spill] sm:$0xff] %v22329_v51  ;;  %v10851_v37 = vsel %vm10301_vm2, %v22329_v51, 0.0 }
 0x564   :  { %10840 = vadd.xlane.f32.xlu0 %v10839_v59 }
 0x565   :  { %10873 = vadd.xlane.f32.xlu1 %v10872_v63 }
 0x566   :  { %v22333_v28 = vpop.eup %17577 }
 0x567   :  { %24982 = vst [vmem:[#allocation30_spill] sm:$0xff] %v22333_v28  ;;  %v10857_v7 = vsel %vm10301_vm2, %v22333_v28, 0.0 }
 0x568   :  { %10846 = vadd.xlane.f32.xlu0 %v10845_v30 }
 0x56b   :  { %v22339_v17 = vpop.eup %17579 }
 0x56c   :  { %v10760_v50 = vpop.xlane.xlu1 %10759  ;;  %10852 = vadd.xlane.f32.xlu0 %v10851_v37  ;;  %24983 = vst [vmem:[#allocation31_spill] sm:$0xff] %v22339_v17  ;;  %v10863_v62 = vsel %vm10301_vm2, %v22339_v17, 0.0  ;;  %v22343_v26 = vpop.eup %17581 }
 0x56d   :  { %17585 = vrcp.f32 %v10760_v50  ;;  %24984 = vst [vmem:[#allocation34_spill] sm:$0xff] %v22343_v26  ;;  %v10869_v59 = vsel %vm10301_vm2, %v22343_v26, 0.0 }
 0x56e   :  { %v22347_v63 = vpop.eup %17583  ;;  %17587 = vrcp.f32 %v21870_v21  ;;  %v22365_v21 = vcombine.high %v22305_v52, %v7439_v44 }
 0x56f   :  { %24985 = vst [vmem:[#allocation15_spill] sm:$0xff] %v22347_v63  ;;  %v10875_v37 = vsel %vm10301_vm2, %v22347_v63, 0.0  ;;  %17589 = vrcp.f32 %v21960_v60 }
 0x570   :  { %10858 = vadd.xlane.f32.xlu0 %v10857_v7  ;;  %v5137_v10 = vpop.permute.xlu1 %5136  ;;  %17591 = vrcp.f32 %v22189_v8 }
 0x574   :  { %10864 = vadd.xlane.f32.xlu0 %v10863_v62  ;;  %v5201_v36 = vpop.permute.xlu1 %5200 }
 0x575   :  { %v6236_v62 = vcombine.low %v5137_v10, %v5201_v36  ;;  %v6237_v13 = vcombine.high %v5137_v10, %v5201_v36 }
 0x577   :  { %v6251_v51 = vrot.slane %v6237_v13, %v18042_v14 }
 0x578   :  { %10870 = vadd.xlane.f32.xlu0 %v10869_v59  ;;  %v6244_v59 = vrot.slane %v6236_v62, %v18042_v14 }
 0x57a   :  { %v17586_v30 = vpop.eup %17585 }
 0x57b   :  { %v10966_v50 = vmul.f32 %v17586_v30, %v21934_v2  ;;  %v22360_v30 = vcombine.high %v22295_v29, %v22298_v47 }
 0x57c   :  { %10876 = vadd.xlane.f32.xlu0 %v10875_v37  ;;  %v10754_v7 = vpop.xlane.xlu0 %10753 }
 0x57d   :  { %17233 = vmatprep.mubr.msk.f32.mxu0 %vm10301_vm2, %v10966_v50  ;;  %17593 = vrcp.f32 %v10754_v7 }
 0x580   :  { %v5105_v17 = vpop.permute.xlu0 %5104 }
 0x584   :  { %v5169_v28 = vpop.permute.xlu0 %5168 }
 0x585   :  { %v6220_v26 = vcombine.low %v5105_v17, %v5169_v28  ;;  %v6221_v53 = vcombine.high %v5105_v17, %v5169_v28 }
 0x587   :  { %v6228_v63 = vrot.slane %v6220_v26, %v18042_v14  ;;  %v6235_v2 = vrot.slane %v6221_v53, %v18042_v14 }
 0x589   :  { %v6252_v36 = vcombine.low %v6228_v63, %v6244_v59  ;;  %v6253_v10 = vcombine.high %v6228_v63, %v6244_v59  ;;  %v6268_v37 = vcombine.low %v6235_v2, %v6251_v51  ;;  %v6269_v28 = vcombine.high %v6235_v2, %v6251_v51 }
 0x58b   :  { %v6260_v13 = vrot.slane %v6252_v36, %v18049_v27  ;;  %v6267_v17 = vrot.slane %v6253_v10, %v18049_v27  ;;  %v6276_v53 = vrot.slane %v6268_v37, %v18049_v27  ;;  %v6283_v29 = vrot.slane %v6269_v28, %v18049_v27  ;;  %v17588_v36 = vpop.eup %17587 }
 0x58d   :  { %v7308_v47 = vcombine.low %v6260_v13, %v6267_v17  ;;  %v16348_v60 = vcombine.high %v6260_v13, %v6267_v17  ;;  %v7324_v26 = vcombine.low %v6276_v53, %v6283_v29  ;;  %v16349_v63 = vcombine.high %v6276_v53, %v6283_v29  ;;  %v17590_v13 = vpop.eup %17589 }
 0x58f   :  { %v7315_v51 = vrot.slane %v7308_v47, %v18042_v14  ;;  %v7323_v8 = vrot.slane %v16348_v60, %v18042_v14  ;;  %v7331_v52 = vrot.slane %v7324_v26, %v18042_v14  ;;  %v7339_v44 = vrot.slane %v16349_v63, %v18042_v14  ;;  %v17592_v47 = vpop.eup %17591  ;;  %v24986_v60 = vld [vmem:[#allocation102_spill] sm:$0xff]  ;;  %v24987_v63 = vld [vmem:[#allocation75_spill] sm:$0xff] }
 0x590   :  { %v10957_v26 = vmul.f32 %v17588_v36, %v24986_v60  ;;  %v24992_v36 = vld [vmem:[#allocation47_spill] sm:$0xff] }
 0x591   :  { %v7340_v50 = vcombine.low %v7315_v51, %v7323_v8  ;;  %v7356_v62 = vcombine.low %v7331_v52, %v7339_v44  ;;  %v7341_v59 = vcombine.high %v7315_v51, %v7323_v8  ;;  %v7357_v2 = vcombine.high %v7331_v52, %v7339_v44  ;;  %v24988_v51 = vld [vmem:[#allocation4_spill] sm:$0xff] }
 0x592   :  { %v6625_v8 = vcombine.high %v24988_v51, %v24987_v63  ;;  %v24989_v52 = vld [vmem:[#allocation12_spill] sm:$0xff]  ;;  %v24995_v63 = vld [vmem:[#allocation122_spill] sm:$0xff] }
 0x593   :  { %v22376_v10 = vrot.slane %v7340_v50, %v18049_v27  ;;  %v22379_v7 = vrot.slane %v7356_v62, %v18049_v27  ;;  %v7355_v37 = vrot.slane %v7341_v59, %v18049_v27  ;;  %v7371_v28 = vrot.slane %v7357_v2, %v18049_v27  ;;  %v17594_v50 = vpop.eup %17593  ;;  %v24990_v62 = vld [vmem:[#allocation104_spill] sm:$0xff]  ;;  %v24991_v59 = vld [vmem:[#allocation18_spill] sm:$0xff] }
 0x594   :  { %v10960_v44 = vmul.f32 %v17590_v13, %v24989_v52  ;;  %v6557_v2 = vcombine.high %v24991_v59, %v24990_v62  ;;  %v24994_v13 = vld [vmem:[#allocation36_spill] sm:$0xff]  ;;  %v24998_v52 = vld [vmem:[#allocation63_spill] sm:$0xff] }
 0x595   :  { %v7372_v17 = vcombine.low %v22376_v10, %v22379_v7  ;;  %v22385_v53 = vcombine.low %v7355_v37, %v7371_v28  ;;  %v22387_v29 = vcombine.high %v7355_v37, %v7371_v28  ;;  %v10961_v37 = vmul.f32 %v17592_v47, %v21846_v43  ;;  %v24993_v28 = vld [vmem:[#allocation106_spill] sm:$0xff]  ;;  %v24996_v51 = vld [vmem:[#allocation48_spill] sm:$0xff] }
 0x596   :  { %v6897_v60 = vcombine.high %v24993_v28, %v24992_v36 }
 0x597   :  { %17196 = vmatprep.subr.mxu1 %v7372_v17 }
 0x598   :  { %17197 = vmatpush3.msra.mxu1 %v7372_v17  ;;  %v10964_v17 = vmul.f32 %v17594_v50, %v21950_v18  ;;  %v24997_v18 = vld [vmem:[#allocation64_spill] sm:$0xff] }
 0x599   :  { %17199 = vmatmul.mubr.msk.f32.vlgmr.msra.gmra.mxu1 %vm10301_vm2, %v10957_v26  ;;  %17208 = vmatprep.subr.mxu1 %v6625_v8 }
 0x59a   :  { %17209 = vmatpush3.msra.mxu1 %v6625_v8  ;;  %17212 = vmatprep.mubr.msk.f32.mxu1 %vm10301_vm2, %v10960_v44  ;;  %v6457_v8 = vcombine.high %v24996_v51, %v24995_v63  ;;  %v6473_v44 = vcombine.high %v24998_v52, %v24997_v18  ;;  %v24999_v51 = vld [vmem:[#allocation109_spill] sm:$0xff]  ;;  %v25001_v18 = vld [vmem:[#allocation56_spill] sm:$0xff]  ;;  %v25002_v52 = vld [vmem:[#allocation55_spill] sm:$0xff] }
 0x59b   :  { %17210 = vmatprep.subr.mxu1 %v6557_v2 }
 0x59c   :  { %17211 = vmatpush3.msra.mxu1 %v6557_v2  ;;  %v22415_v36 = vrot.slane %v6473_v44, %v18049_v27  ;;  %v6609_v44 = vcombine.high %v25002_v52, %v25001_v18  ;;  %v25009_v18 = vld [vmem:[#allocation74_spill] sm:$0xff]  ;;  %v25010_v52 = vld [vmem:[#allocation87_spill] sm:$0xff] }
 0x59d   :  { %17213 = vmatmul.mubr.msk.f32.vlgmr.msra.gmra.mxu1 %vm10301_vm2, %v10961_v37  ;;  %17222 = vmatprep.subr.mxu1 %v6897_v60  ;;  %v22412_v37 = vrot.slane %v6457_v8, %v18049_v27  ;;  %v25000_v8 = vld [vmem:[#allocation147_spill] sm:$0xff]  ;;  %v6541_v14 = vcombine.high %v25010_v52, %v25009_v18 }
 0x59e   :  { %17223 = vmatpush3.msra.mxu1 %v6897_v60  ;;  %17226 = vmatprep.mubr.msk.f32.mxu1 %vm10301_vm2, %v10964_v17 }
 0x59f   :  { %17224 = vmatprep.subr.mxu1 %v24994_v13  ;;  %v22422_v60 = vcombine.low %v22412_v37, %v22415_v36 }
 0x5a0   :  { %17225 = vmatpush3.msra.mxu1 %v24994_v13 }
 0x5a1   :  { %17236 = vmatprep.subr.mxu1 %v22080_v20 }
 0x5a6   :  { %v10763_v26 = vpop.xlane.xlu1 %10762 }
 0x5a7   :  { %17595 = vrcp.f32 %v10763_v26 }
 0x5aa   :  { %v10769_v43 = vpop.xlane.xlu1 %10768 }
 0x5ae   :  { %v10778_v47 = vpop.xlane.xlu1 %10777 }
 0x5b2   :  { %v10781_v50 = vpop.xlane.xlu1 %10780 }
 0x5b4   :  { %v17596_v62 = vpop.eup %17595 }
 0x5b5   :  { %v10757_v59 = vpop.xlane.xlu0 %10756  ;;  %v10967_v2 = vmul.f32 %v17596_v62, %v22015_v31 }
 0x5b6   :  { %v10790_v28 = vpop.xlane.xlu1 %10789  ;;  %17597 = vrcp.f32 %v10757_v59 }
 0x5b7   :  { %17234 = vmatmul.mubr.msk.f32.vlgmr.msra.gmra.mxu0 %vm10301_vm2, %v10967_v2  ;;  %17599 = vrcp.f32 %v10769_v43 }
 0x5b8   :  { %17244 = vmatpush3.msra.mxu0 %v21908_v46  ;;  %17601 = vrcp.f32 %v10778_v47 }
 0x5b9   :  { %17245 = vmatprep.subr.mxu0 %v22158_v6  ;;  %v10766_v31 = vpop.xlane.xlu0 %10765 }
 0x5ba   :  { %17246 = vmatpush3.msra.mxu0 %v22158_v6  ;;  %v10793_v17 = vpop.xlane.xlu1 %10792  ;;  %17603 = vrcp.f32 %v10766_v31  ;;  %v6593_v6 = vcombine.high %v25000_v8, %v24999_v51  ;;  %v25004_v31 = vld [vmem:[#allocation66_spill] sm:$0xff] }
 0x5bb   :  { %17257 = vmatprep.subr.mxu0 %v22422_v60  ;;  %17605 = vrcp.f32 %v10781_v50  ;;  %v25008_v51 = vld [vmem:[#allocation22_spill] sm:$0xff] }
 0x5bc   :  { %17607 = vrcp.f32 %v10790_v28  ;;  %v25003_v28 = vld [vmem:[#allocation67_spill] sm:$0xff] }
 0x5bd   :  { %v10772_v13 = vpop.xlane.xlu0 %10771 }
 0x5be   :  { %v10802_v26 = vpop.xlane.xlu1 %10801  ;;  %17609 = vrcp.f32 %v10772_v13  ;;  %v25005_v13 = vld [vmem:[#allocation50_spill] sm:$0xff] }
 0x5bf   :  { %17611 = vrcp.f32 %v10793_v17  ;;  %v6389_v17 = vcombine.high %v25004_v31, %v25003_v28  ;;  %v22447_v28 = vrot.slane %v6609_v44, %v18049_v27 }
 0x5c1   :  { %v10775_v46 = vpop.xlane.xlu0 %10774 }
 0x5c2   :  { %v10805_v43 = vpop.xlane.xlu1 %10804  ;;  %17613 = vrcp.f32 %v10775_v46 }
 0x5c3   :  { %v17598_v47 = vpop.eup %17597  ;;  %17615 = vrcp.f32 %v10802_v26  ;;  %v25006_v26 = vld [vmem:[#allocation51_spill] sm:$0xff] }
 0x5c4   :  { %v10965_v63 = vmul.f32 %v17598_v47, %v22064_v41  ;;  %v17600_v62 = vpop.eup %17599  ;;  %v6405_v46 = vcombine.high %v25006_v26, %v25005_v13  ;;  %v25007_v47 = vld [vmem:[#allocation24_spill] sm:$0xff]  ;;  %v25011_v13 = vld [vmem:[#allocation89_spill] sm:$0xff] }
 0x5c5   :  { %v10784_v50 = vpop.xlane.xlu0 %10783  ;;  %v17602_v59 = vpop.eup %17601  ;;  %v6525_v8 = vcombine.high %v25008_v51, %v25007_v47  ;;  %v10969_v31 = vmul.f32 %v17600_v62, %v22046_v45  ;;  %v25012_v26 = vld [vmem:[#allocation88_spill] sm:$0xff]  ;;  %v25014_v51 = vld [vmem:[#allocation90_spill] sm:$0xff]  ;;  %v7373_v62 = vcombine.high %v22376_v10, %v22379_v7 }
 0x5c6   :  { %v10814_v2 = vpop.xlane.xlu1 %10813  ;;  %17617 = vrcp.f32 %v10784_v50  ;;  %17227 = vmatmul.mubr.msk.f32.vlgmr.msra.gmra.mxu1 %vm10301_vm2, %v10965_v63  ;;  %v22444_v50 = vrot.slane %v6593_v6, %v18049_v27  ;;  %v6865_v47 = vcombine.high %v25012_v26, %v25011_v13  ;;  %v10972_v6 = vmul.f32 %v17602_v59, %v22071_v15 }
 0x5c7   :  { %v17604_v41 = vpop.eup %17603  ;;  %17619 = vrcp.f32 %v10805_v43  ;;  %17237 = vmatpush3.msra.mxu1 %v22080_v20  ;;  %v22462_v45 = vrot.slane %v6405_v46, %v18049_v27  ;;  %v25016_v46 = vld [vmem:[#allocation144_spill] sm:$0xff] }
 0x5c8   :  { %17621 = vrcp.f32 %v10814_v2  ;;  %17238 = vmatprep.subr.mxu1 %v22213_v34  ;;  %v10968_v63 = vmul.f32 %v17604_v41, %v22112_v16  ;;  %v17606_v43 = vpop.eup %17605  ;;  %v25013_v2 = vld [vmem:[#allocation91_spill] sm:$0xff]  ;;  %v22468_v41 = vrot.slane %v6525_v8, %v18049_v27  ;;  %v6626_v59 = vcombine.low %v22444_v50, %v22447_v28 }
 0x5c9   :  { %17239 = vmatpush3.msra.mxu1 %v22213_v34  ;;  %v10787_v20 = vpop.xlane.xlu0 %10786  ;;  %v6881_v18 = vcombine.high %v25014_v51, %v25013_v2  ;;  %v17608_v52 = vpop.eup %17607  ;;  %v22459_v34 = vrot.slane %v6389_v17, %v18049_v27  ;;  %v25015_v17 = vld [vmem:[#allocation146_spill] sm:$0xff]  ;;  %v10973_v7 = vmul.f32 %v17606_v43, %v22096_v58  ;;  %v22482_v8 = vrot.slane %v6865_v47, %v18049_v27 }
 0x5ca   :  { %v10817_v16 = vpop.xlane.xlu1 %10816  ;;  %17250 = vmatprep.subr.mxu1 %v22292_v54  ;;  %17623 = vrcp.f32 %v10787_v20  ;;  %17240 = vmatprep.mubr.msk.f32.mxu1 %vm10301_vm2, %v10968_v63  ;;  %v22471_v63 = vrot.slane %v6541_v14, %v18049_v27  ;;  %v6729_v20 = vcombine.high %v25016_v46, %v25015_v17  ;;  %v10976_v2 = vmul.f32 %v17608_v52, %v22107_v38 }
 0x5cb   :  { %v17610_v44 = vpop.eup %17609  ;;  %17625 = vrcp.f32 %v10817_v16  ;;  %17241 = vmatmul.mubr.msk.f32.vlgmr.msra.gmra.mxu1 %vm10301_vm2, %v10969_v31  ;;  %v22485_v14 = vrot.slane %v6881_v18, %v18049_v27  ;;  %v25018_v31 = vld [vmem:[#allocation27_spill] sm:$0xff]  ;;  %v7137_v58 = vcombine.high %v21923_v61, %v21926_v35  ;;  %v7153_v43 = vcombine.high %v21929_v0, %v21932_v19 }
 0x5cc   :  { %17251 = vmatpush3.msra.mxu1 %v22292_v54  ;;  %17254 = vmatprep.mubr.msk.f32.mxu1 %vm10301_vm2, %v10972_v6  ;;  %v10970_v15 = vmul.f32 %v17610_v44, %v22126_v24  ;;  %v25017_v54 = vld [vmem:[#allocation9_spill] sm:$0xff]  ;;  %v17612_v24 = vpop.eup %17611  ;;  %v6558_v51 = vcombine.low %v22468_v41, %v22471_v63  ;;  %v6422_v35 = vcombine.low %v22459_v34, %v22462_v45 }
 0x5cd   :  { %17252 = vmatprep.subr.mxu1 %v7373_v62  ;;  %v10796_v10 = vpop.xlane.xlu0 %10795  ;;  %v6745_v13 = vcombine.high %v25018_v31, %v25017_v54  ;;  %v6898_v61 = vcombine.low %v22482_v8, %v22485_v14  ;;  %v22505_v0 = vrot.slane %v6729_v20, %v18049_v27  ;;  %v22513_v6 = vrot.slane %v7137_v58, %v18049_v27 }
 0x5ce   :  { %v10826_v26 = vpop.xlane.xlu1 %10825  ;;  %17253 = vmatpush3.msra.mxu1 %v7373_v62  ;;  %17627 = vrcp.f32 %v10796_v10  ;;  %17247 = vmatprep.mubr.msk.f32.mxu0 %vm10301_vm2, %v10970_v15  ;;  %v22516_v44 = vrot.slane %v7153_v43, %v18049_v27  ;;  %v25019_v10 = vld [vmem:[#allocation154_spill] sm:$0xff] }
 0x5cf   :  { %v17614_v47 = vpop.eup %17613  ;;  %17629 = vrcp.f32 %v10826_v26  ;;  %17264 = vmatprep.subr.mxu1 %v6626_v59  ;;  %17255 = vmatmul.mubr.msk.f32.vlgmr.msra.gmra.mxu1 %vm10301_vm2, %v10973_v7  ;;  %v22508_v19 = vrot.slane %v6745_v13, %v18049_v27  ;;  %v25020_v43 = vld [vmem:[#allocation118_spill] sm:$0xff] }
 0x5d0   :  { %17265 = vmatpush3.msra.mxu1 %v6626_v59  ;;  %17268 = vmatprep.mubr.msk.f32.mxu1 %vm10301_vm2, %v10976_v2  ;;  %v10971_v18 = vmul.f32 %v17614_v47, %v22138_v23  ;;  %v17616_v38 = vpop.eup %17615  ;;  %v10977_v23 = vmul.f32 %v17612_v24, %v22118_v25  ;;  %v7170_v7 = vcombine.low %v22513_v6, %v22516_v44  ;;  %v25021_v47 = vld [vmem:[#allocation92_spill] sm:$0xff] }
 0x5d1   :  { %17266 = vmatprep.subr.mxu1 %v6558_v51  ;;  %v10799_v52 = vpop.xlane.xlu0 %10798  ;;  %v10980_v59 = vmul.f32 %v17616_v38, %v22132_v1  ;;  %v6762_v46 = vcombine.low %v22505_v0, %v22508_v19  ;;  %v25023_v38 = vld [vmem:[#allocation82_spill] sm:$0xff] }
 0x5d2   :  { %v10829_v16 = vpop.xlane.xlu1 %10828  ;;  %17267 = vmatpush3.msra.mxu1 %v6558_v51  ;;  %17631 = vrcp.f32 %v10799_v52  ;;  %17248 = vmatmul.mubr.msk.f32.vlgmr.msra.gmra.mxu0 %vm10301_vm2, %v10971_v18  ;;  %v7289_v51 = vcombine.high %v25021_v47, %v25020_v43 }
 0x5d3   :  { %v17618_v62 = vpop.eup %17617  ;;  %17633 = vrcp.f32 %v10829_v16  ;;  %17258 = vmatpush3.msra.mxu0 %v22422_v60  ;;  %17278 = vmatprep.subr.mxu1 %v6898_v61 }
 0x5d4   :  { %v17620_v15 = vpop.eup %17619  ;;  %17259 = vmatprep.subr.mxu0 %v6422_v35  ;;  %17269 = vmatmul.mubr.msk.f32.vlgmr.msra.gmra.mxu1 %vm10301_vm2, %v10977_v23  ;;  %v10974_v17 = vmul.f32 %v17618_v62, %v22152_v9  ;;  %v22560_v23 = vrot.slane %v7289_v51, %v18049_v27  ;;  %v25026_v62 = vld [vmem:[#allocation83_spill] sm:$0xff] }
 0x5d5   :  { %v17622_v25 = vpop.eup %17621  ;;  %17279 = vmatpush3.msra.mxu1 %v6898_v61  ;;  %17260 = vmatpush3.msra.mxu0 %v6422_v35  ;;  %v10808_v20 = vpop.xlane.xlu0 %10807  ;;  %v10981_v1 = vmul.f32 %v17620_v15, %v22144_v57  ;;  %v25025_v61 = vld [vmem:[#allocation139_spill] sm:$0xff]  ;;  %v25027_v15 = vld [vmem:[#allocation54_spill] sm:$0xff] }
 0x5d6   :  { %17280 = vmatprep.subr.mxu1 %v25019_v10  ;;  %17282 = vmatprep.mubr.msk.f32.mxu1 %vm10301_vm2, %v10980_v59  ;;  %v10838_v60 = vpop.xlane.xlu1 %10837  ;;  %17635 = vrcp.f32 %v10808_v20  ;;  %v10984_v31 = vmul.f32 %v17622_v25, %v22160_v33  ;;  %v25028_v59 = vld [vmem:[#allocation53_spill] sm:$0xff]  ;;  %v25029_v25 = vld [vmem:[#allocation7_spill] sm:$0xff] }
 0x5d7   :  { %v17624_v54 = vpop.eup %17623  ;;  %17637 = vrcp.f32 %v10838_v60  ;;  %17271 = vmatprep.subr.mxu0 %v6762_v46  ;;  %17281 = vmatpush3.msra.mxu1 %v25019_v10 }
 0x5d8   :  { %v17626_v9 = vpop.eup %17625  ;;  %17261 = vmatprep.mubr.msk.f32.mxu0 %vm10301_vm2, %v10974_v17  ;;  %17292 = vmatprep.subr.mxu1 %v7170_v7  ;;  %v10975_v13 = vmul.f32 %v17624_v54, %v22168_v3  ;;  %v7273_v3 = vcombine.high %v21889_v22, %v21892_v40  ;;  %v6627_v22 = vcombine.high %v22444_v50, %v22447_v28 }
 0x5d9   :  { %17283 = vmatmul.mubr.msk.f32.vlgmr.msra.gmra.mxu1 %vm10301_vm2, %v10981_v1  ;;  %v10811_v24 = vpop.xlane.xlu0 %10810  ;;  %v10985_v26 = vmul.f32 %v17626_v9, %v22172_v56  ;;  %v25022_v56 = vld [vmem:[#allocation150_spill] sm:$0xff]  ;;  %v7205_v17 = vcombine.high %v25028_v59, %v25027_v15  ;;  %v22581_v9 = vcombine.high %v22482_v8, %v22485_v14  ;;  %v25033_v8 = vld [vmem:[#allocation61_spill] sm:$0xff] }
 0x5da   :  { %17293 = vmatpush3.msra.mxu1 %v7170_v7  ;;  %17296 = vmatprep.mubr.msk.f32.mxu1 %vm10301_vm2, %v10984_v31  ;;  %17639 = vrcp.f32 %v10811_v24  ;;  %v10844_v58 = vpop.xlane.xlu1 %10843  ;;  %v22557_v16 = vrot.slane %v7273_v3, %v18049_v27  ;;  %v25031_v7 = vld [vmem:[#allocation116_spill] sm:$0xff]  ;;  %v6491_v3 = vcombine.high %v22412_v37, %v22415_v36  ;;  %v6423_v37 = vcombine.high %v22459_v34, %v22462_v45  ;;  %v25038_v59 = vld [vmem:[#allocation113_spill] sm:$0xff] }
 0x5db   :  { %v17628_v2 = vpop.eup %17627  ;;  %17294 = vmatprep.subr.mxu1 %v22311_v39  ;;  %17262 = vmatmul.mubr.msk.f32.vlgmr.msra.gmra.mxu0 %vm10301_vm2, %v10975_v13  ;;  %v25032_v13 = vld [vmem:[#allocation140_spill] sm:$0xff] }
 0x5dc   :  { %v17630_v57 = vpop.eup %17629  ;;  %17295 = vmatpush3.msra.mxu1 %v22311_v39  ;;  %17272 = vmatpush3.msra.mxu0 %v6762_v46  ;;  %v10978_v33 = vmul.f32 %v17628_v2, %v22176_v5  ;;  %v25024_v5 = vld [vmem:[#allocation99_spill] sm:$0xff]  ;;  %v25030_v46 = vld [vmem:[#allocation38_spill] sm:$0xff]  ;;  %v7306_v54 = vcombine.low %v22557_v16, %v22560_v23 }
 0x5dd   :  { %17306 = vmatprep.subr.mxu1 %v22319_v11  ;;  %17273 = vmatprep.subr.mxu0 %v25022_v56  ;;  %v10820_v18 = vpop.xlane.xlu0 %10819  ;;  %v10988_v52 = vmul.f32 %v17630_v57, %v25023_v38  ;;  %v7221_v20 = vcombine.high %v25030_v46, %v25029_v25  ;;  %v6763_v38 = vcombine.high %v22505_v0, %v22508_v19  ;;  %v25035_v0 = vld [vmem:[#allocation153_spill] sm:$0xff]  ;;  %v25039_v46 = vld [vmem:[#allocation10_spill] sm:$0xff] }
 0x5de   :  { %17297 = vmatmul.mubr.msk.f32.vlgmr.msra.gmra.mxu1 %vm10301_vm2, %v10985_v26  ;;  %17274 = vmatpush3.msra.mxu0 %v25022_v56  ;;  %17641 = vrcp.f32 %v10820_v18  ;;  %v10850_v28 = vpop.xlane.xlu1 %10849 }
 0x5df   :  { %v17632_v39 = vpop.eup %17631  ;;  %17307 = vmatpush3.msra.mxu1 %v22319_v11  ;;  %17285 = vmatprep.subr.mxu0 %v25024_v5 }
 0x5e0   :  { %v17634_v40 = vpop.eup %17633  ;;  %17308 = vmatprep.subr.mxu1 %v22385_v53  ;;  %17275 = vmatprep.mubr.msk.f32.mxu0 %vm10301_vm2, %v10978_v33  ;;  %v10979_v35 = vmul.f32 %v17632_v39, %v25025_v61 }
 0x5e1   :  { %17309 = vmatpush3.msra.mxu1 %v22385_v53  ;;  %17310 = vmatprep.mubr.msk.f32.mxu1 %vm10301_vm2, %v10988_v52  ;;  %v10823_v11 = vpop.xlane.xlu0 %10822  ;;  %v10989_v50 = vmul.f32 %v17634_v40, %v25026_v62  ;;  %v6559_v53 = vcombine.high %v22468_v41, %v22471_v63  ;;  %v22585_v41 = vrot.slane %v7205_v17, %v18049_v27 }
 0x5e2   :  { %17320 = vmatprep.subr.mxu1 %v6627_v22  ;;  %17643 = vrcp.f32 %v10823_v11  ;;  %17276 = vmatmul.mubr.msk.f32.vlgmr.msra.gmra.mxu0 %vm10301_vm2, %v10979_v35  ;;  %v22588_v63 = vrot.slane %v7221_v20, %v18049_v27  ;;  %v10856_v26 = vpop.xlane.xlu1 %10855  ;;  %v25036_v11 = vld [vmem:[#allocation2_spill] sm:$0xff] }
 0x5e3   :  { %v17636_v10 = vpop.eup %17635  ;;  %17286 = vmatpush3.msra.mxu0 %v25024_v5  ;;  %17311 = vmatmul.mubr.msk.f32.vlgmr.msra.gmra.mxu1 %vm10301_vm2, %v10989_v50 }
 0x5e4   :  { %v17638_v60 = vpop.eup %17637  ;;  %17321 = vmatpush3.msra.mxu1 %v6627_v22  ;;  %17287 = vmatprep.subr.mxu0 %v25031_v7  ;;  %v10982_v1 = vmul.f32 %v17636_v10, %v22215_v55  ;;  %v7238_v57 = vcombine.low %v22585_v41, %v22588_v63  ;;  %v25034_v22 = vld [vmem:[#allocation49_spill] sm:$0xff] }
 0x5e5   :  { %17322 = vmatprep.subr.mxu1 %v6559_v53  ;;  %17288 = vmatpush3.msra.mxu0 %v25031_v7  ;;  %v10832_v31 = vpop.xlane.xlu0 %10831  ;;  %v10992_v24 = vmul.f32 %v17638_v60, %v25032_v13  ;;  %v25040_v60 = vld [vmem:[#allocation117_spill] sm:$0xff]  ;;  %v25043_v13 = vld [vmem:[#allocation30_spill] sm:$0xff] }
 0x5e6   :  { %17323 = vmatpush3.msra.mxu1 %v6559_v53  ;;  %17299 = vmatprep.subr.mxu0 %v7306_v54  ;;  %17645 = vrcp.f32 %v10832_v31  ;;  %v10862_v51 = vpop.xlane.xlu1 %10861 }
 0x5e7   :  { %v17640_v55 = vpop.eup %17639  ;;  %17334 = vmatprep.subr.mxu1 %v22581_v9  ;;  %17289 = vmatprep.mubr.msk.f32.mxu0 %vm10301_vm2, %v10982_v1  ;;  %17647 = vrcp.f32 %v10844_v58 }
 0x5e8   :  { %17324 = vmatprep.mubr.msk.f32.mxu1 %vm10301_vm2, %v10992_v24  ;;  %v10983_v14 = vmul.f32 %v17640_v55, %v25033_v8 }
 0x5e9   :  { %v10835_v2 = vpop.xlane.xlu0 %10834 }
 0x5ea   :  { %17649 = vrcp.f32 %v10835_v2  ;;  %17290 = vmatmul.mubr.msk.f32.vlgmr.msra.gmra.mxu0 %vm10301_vm2, %v10983_v14  ;;  %v10868_v36 = vpop.xlane.xlu1 %10867  ;;  %v25045_v14 = vld [vmem:[#allocation31_spill] sm:$0xff] }
 0x5eb   :  { %v17642_v33 = vpop.eup %17641  ;;  %17300 = vmatpush3.msra.mxu0 %v7306_v54  ;;  %17651 = vrcp.f32 %v10850_v28  ;;  %v25037_v28 = vld [vmem:[#allocation16_spill] sm:$0xff]  ;;  %v25042_v54 = vld [vmem:[#allocation62_spill] sm:$0xff] }
 0x5ec   :  { %17301 = vmatprep.subr.mxu0 %v7238_v57  ;;  %v10986_v43 = vmul.f32 %v17642_v33, %v22240_v48 }
 0x5ed   :  { %17302 = vmatpush3.msra.mxu0 %v7238_v57  ;;  %v10841_v47 = vpop.xlane.xlu0 %10840  ;;  %v25046_v57 = vld [vmem:[#allocation73_spill] sm:$0xff] }
 0x5ee   :  { %17313 = vmatprep.subr.mxu0 %v6491_v3  ;;  %17653 = vrcp.f32 %v10841_v47  ;;  %17303 = vmatprep.mubr.msk.f32.mxu0 %vm10301_vm2, %v10986_v43  ;;  %v10874_v35 = vpop.xlane.xlu1 %10873  ;;  %v25048_v43 = vld [vmem:[#allocation15_spill] sm:$0xff] }
 0x5ef   :  { %v17644_v58 = vpop.eup %17643  ;;  %17655 = vrcp.f32 %v10856_v26  ;;  %v7239_v26 = vcombine.high %v22585_v41, %v22588_v63  ;;  %v25047_v41 = vld [vmem:[#allocation34_spill] sm:$0xff] }
 0x5f0   :  { %v10987_v56 = vmul.f32 %v17644_v58, %v22254_v49  ;;  %v17158_v58 = vpop.f32.mrf.mxu1 }
 0x5f1   :  { %v10847_v18 = vpop.xlane.xlu0 %10846 }
 0x5f2   :  { %17657 = vrcp.f32 %v10847_v18  ;;  %17304 = vmatmul.mubr.msk.f32.vlgmr.msra.gmra.mxu0 %vm10301_vm2, %v10987_v56 }
 0x5f3   :  { %v17646_v48 = vpop.eup %17645  ;;  %17314 = vmatpush3.msra.mxu0 %v6491_v3  ;;  %17659 = vrcp.f32 %v10862_v51  ;;  %v22658_v51 = vpop.f32.mrf.mxu0 }
 0x5f4   :  { %17315 = vmatprep.subr.mxu0 %v6423_v37  ;;  %v10990_v52 = vmul.f32 %v17646_v48, %v22270_v32  ;;  %v17648_v39 = vpop.eup %17647 }
 0x5f5   :  { %17316 = vmatpush3.msra.mxu0 %v6423_v37  ;;  %v10853_v49 = vpop.xlane.xlu0 %10852  ;;  %v10994_v40 = vmul.f32 %v17648_v39, %v25034_v22  ;;  %v22660_v56 = vpop.f32.mrf.mxu0 }
 0x5f6   :  { %17327 = vmatprep.subr.mxu0 %v6763_v38  ;;  %17661 = vrcp.f32 %v10853_v49  ;;  %17317 = vmatprep.mubr.msk.f32.mxu0 %vm10301_vm2, %v10990_v52 }
 0x5f7   :  { %v17650_v5 = vpop.eup %17649  ;;  %17663 = vrcp.f32 %v10868_v36  ;;  %v22662_v18 = vpop.f32.mrf.mxu0 }
 0x5f8   :  { %v10991_v34 = vmul.f32 %v17650_v5, %v22276_v4  ;;  %v17652_v61 = vpop.eup %17651 }
 0x5f9   :  { %v10859_v45 = vpop.xlane.xlu0 %10858  ;;  %v10996_v62 = vmul.f32 %v17652_v61, %v25036_v11  ;;  %v22664_v48 = vpop.f32.mrf.mxu0 }
 0x5fa   :  { %17665 = vrcp.f32 %v10859_v45  ;;  %17318 = vmatmul.mubr.msk.f32.vlgmr.msra.gmra.mxu0 %vm10301_vm2, %v10991_v34 }
 0x5fb   :  { %v17654_v32 = vpop.eup %17653  ;;  %17328 = vmatpush3.msra.mxu0 %v6763_v38  ;;  %17331 = vmatprep.mubr.msk.f32.mxu0 %vm10301_vm2, %v10994_v40  ;;  %17667 = vrcp.f32 %v10874_v35  ;;  %v22670_v38 = vpop.f32.mrf.mxu0 }
 0x5fc   :  { %17329 = vmatprep.subr.mxu0 %v25035_v0  ;;  %v10993_v19 = vmul.f32 %v17654_v32, %v22300_v42  ;;  %v17656_v50 = vpop.eup %17655  ;;  %v7171_v42 = vcombine.high %v22513_v6, %v22516_v44  ;;  %v25041_v6 = vld [vmem:[#allocation6_spill] sm:$0xff] }
 0x5fd   :  { %17330 = vmatpush3.msra.mxu0 %v25035_v0  ;;  %v10865_v4 = vpop.xlane.xlu0 %10864  ;;  %v10998_v20 = vmul.f32 %v17656_v50, %v25039_v46  ;;  %v22674_v49 = vpop.f32.mrf.mxu0 }
 0x5fe   :  { %17341 = vmatprep.subr.mxu0 %v25037_v28  ;;  %17669 = vrcp.f32 %v10865_v4  ;;  %17325 = vmatmul.mubr.msk.f32.vlgmr.msra.gmra.mxu1 %vm10301_vm2, %v10993_v19 }
 0x5ff   :  { %v17658_v15 = vpop.eup %17657  ;;  %17335 = vmatpush3.msra.mxu1 %v22581_v9  ;;  %17338 = vmatprep.mubr.msk.f32.mxu1 %vm10301_vm2, %v10996_v62  ;;  %v22678_v5 = vpop.f32.mrf.mxu0 }
 0x600   :  { %17336 = vmatprep.subr.mxu1 %v25038_v59  ;;  %v10995_v17 = vmul.f32 %v17658_v15, %v22325_v12  ;;  %v17660_v10 = vpop.eup %17659  ;;  %v7307_v12 = vcombine.high %v22557_v16, %v22560_v23  ;;  %v25044_v23 = vld [vmem:[#allocation65_spill] sm:$0xff] }
 0x601   :  { %17337 = vmatpush3.msra.mxu1 %v25038_v59  ;;  %v10871_v25 = vpop.xlane.xlu0 %10870  ;;  %v11000_v1 = vmul.f32 %v17660_v10, %v25042_v54  ;;  %v22682_v45 = vpop.f32.mrf.mxu0 }
 0x602   :  { %17348 = vmatprep.subr.mxu1 %v7171_v42  ;;  %17671 = vrcp.f32 %v10871_v25  ;;  %17332 = vmatmul.mubr.msk.f32.vlgmr.msra.gmra.mxu0 %vm10301_vm2, %v10995_v17 }
 0x603   :  { %v17662_v53 = vpop.eup %17661  ;;  %17342 = vmatpush3.msra.mxu0 %v25037_v28  ;;  %17345 = vmatprep.mubr.msk.f32.mxu0 %vm10301_vm2, %v10998_v20  ;;  %v22686_v40 = vpop.f32.mrf.mxu0 }
 0x604   :  { %17343 = vmatprep.subr.mxu0 %v25040_v60  ;;  %v10997_v44 = vmul.f32 %v17662_v53, %v25041_v6  ;;  %v17664_v9 = vpop.eup %17663 }
 0x605   :  { %17344 = vmatpush3.msra.mxu0 %v25040_v60  ;;  %v10877_v7 = vpop.xlane.xlu0 %10876  ;;  %v11002_v24 = vmul.f32 %v17664_v9, %v25044_v23  ;;  %v22690_v35 = vpop.f32.mrf.mxu0 }
 0x606   :  { %17355 = vmatprep.subr.mxu0 %v7307_v12  ;;  %17673 = vrcp.f32 %v10877_v7  ;;  %17339 = vmatmul.mubr.msk.f32.vlgmr.msra.gmra.mxu1 %vm10301_vm2, %v10997_v44 }
 0x607   :  { %v17666_v31 = vpop.eup %17665  ;;  %17349 = vmatpush3.msra.mxu1 %v7171_v42  ;;  %17352 = vmatprep.mubr.msk.f32.mxu1 %vm10301_vm2, %v11000_v1  ;;  %v22694_v0 = vpop.f32.mrf.mxu0 }
 0x608   :  { %17350 = vmatprep.subr.mxu1 %v22360_v30  ;;  %v10999_v16 = vmul.f32 %v17666_v31, %v25043_v13  ;;  %v17668_v55 = vpop.eup %17667 }
 0x609   :  { %17351 = vmatpush3.msra.mxu1 %v22360_v30  ;;  %v11004_v30 = vmul.f32 %v17668_v55, %v25046_v57  ;;  %v22698_v4 = vpop.f32.mrf.mxu0 }
 0x60a   :  { %17362 = vmatprep.subr.mxu1 %v22365_v21  ;;  %17346 = vmatmul.mubr.msk.f32.vlgmr.msra.gmra.mxu0 %vm10301_vm2, %v10999_v16 }
 0x60b   :  { %v17670_v8 = vpop.eup %17669  ;;  %17356 = vmatpush3.msra.mxu0 %v7307_v12  ;;  %17359 = vmatprep.mubr.msk.f32.mxu0 %vm10301_vm2, %v11002_v24 }
 0x60c   :  { %17357 = vmatprep.subr.mxu0 %v7239_v26  ;;  %v11001_v2 = vmul.f32 %v17670_v8, %v25045_v14  ;;  %v25051_v8 = vld [vmem:[#allocation23_spill] sm:$0xff] }
 0x60d   :  { %17358 = vmatpush3.msra.mxu0 %v7239_v26 }
 0x60e   :  { %17353 = vmatmul.mubr.msk.f32.vlgmr.msra.gmra.mxu1 %vm10301_vm2, %v11001_v2 }
 0x60f   :  { %v17672_v33 = vpop.eup %17671  ;;  %17363 = vmatpush3.msra.mxu1 %v22365_v21  ;;  %17366 = vmatprep.mubr.msk.f32.mxu1 %vm10301_vm2, %v11004_v30  ;;  %v11159_v21 = vpop.f32.mrf.mxu1 }
 0x610   :  { %17364 = vmatprep.subr.mxu1 %v22387_v29  ;;  %v11003_v63 = vmul.f32 %v17672_v33, %v25047_v41 }
 0x611   :  { %17365 = vmatpush3.msra.mxu1 %v22387_v29  ;;  %v17172_v37 = vpop.f32.mrf.mxu1 }
 0x612   :  { %17360 = vmatmul.mubr.msk.f32.vlgmr.msra.gmra.mxu0 %vm10301_vm2, %v11003_v63 }
 0x613   :  { %v17674_v3 = vpop.eup %17673  ;;  %v22666_v36 = vpop.f32.mrf.mxu1 }
 0x614   :  { %v11005_v47 = vmul.f32 %v17674_v3, %v25048_v43 }
 0x615   :  { %v22668_v29 = vpop.f32.mrf.mxu1 }
 0x616   :  { %17367 = vmatmul.mubr.msk.f32.vlgmr.msra.gmra.mxu1 %vm10301_vm2, %v11005_v47 }
 0x617   :  { %v22672_v52 = vpop.f32.mrf.mxu1 }
 0x659   :  { %v22676_v39 = vpop.f32.mrf.mxu1 }
 0x65b   :  { %v22680_v34 = vpop.f32.mrf.mxu1 }
 0x65d   :  { %v22684_v22 = vpop.f32.mrf.mxu1 }
 0x65f   :  { %v22688_v61 = vpop.f32.mrf.mxu1 }
 0x677   :  { %v22700_v11 = vpop.f32.mrf.mxu0 }
 0x679   :  { %v22704_v50 = vpop.f32.mrf.mxu0 }
 0x686   :  { %v22692_v32 = vpop.f32.mrf.mxu1 }
 0x688   :  { %v22696_v19 = vpop.f32.mrf.mxu1 }
 0x68b   :  { %v22702_v62 = vpop.f32.mrf.mxu1 }
 0x68d   :  { %v22706_v28 = vpop.f32.mrf.mxu1 }
 0x68f   :  { %v22710_v59 = vpop.f32.mrf.mxu1 }
 0x690   :  { %25049 = vst [vmem:[#allocation76_spill] sm:$0xff] %v22710_v59 }
 0x691   :  { %v22714_v17 = vpop.f32.mrf.mxu1 }
 0x692   :  { %v22708_v15 = vpop.f32.mrf.mxu0  ;;  %25050 = vst [vmem:[#allocation81_spill] sm:$0xff] %v22714_v17 }
 0x694   :  { %v22712_v42 = vpop.f32.mrf.mxu0  ;;  %v17270_v46 = vpop.f32.mrf.mxu1 }
 0x695   :  { %v13802_v1 = vcombine.low %v17158_v58, %v17270_v46  ;;  %v13803_v31 = vcombine.high %v17158_v58, %v17270_v46 }
 0x696   :  { %v12455_v53 = vpop.f32.mrf.mxu1 }
 0x697   :  { %v13734_v13 = vcombine.low %v11159_v21, %v12455_v53  ;;  %v13735_v16 = vcombine.high %v11159_v21, %v12455_v53  ;;  %v22728_v14 = vrot.slane %v13802_v1, %v25051_v8  ;;  %v22733_v41 = vrot.slane %v13803_v31, %v25051_v8 }
 0x699   :  { %v17284_v12 = vpop.f32.mrf.mxu1  ;;  %v22736_v63 = vrot.slane %v13734_v13, %v25051_v8  ;;  %v22741_v47 = vrot.slane %v13735_v16, %v25051_v8 }
 0x69a   :  { %v14074_v23 = vcombine.low %v17172_v37, %v17284_v12  ;;  %v14075_v55 = vcombine.high %v17172_v37, %v17284_v12 }
 0x69b   :  { %v17263_v25 = vpop.f32.mrf.mxu0  ;;  %v12617_v44 = vpop.f32.mrf.mxu1 }
 0x69c   :  { %v14006_v26 = vcombine.low %v22666_v36, %v12617_v44  ;;  %v14007_v2 = vcombine.high %v22666_v36, %v12617_v44  ;;  %v13666_v57 = vcombine.low %v22658_v51, %v17263_v25  ;;  %v13667_v3 = vcombine.high %v22658_v51, %v17263_v25 }
 0x69d   :  { %v12374_v20 = vpop.f32.mrf.mxu0  ;;  %v22744_v58 = vrot.slane %v14074_v23, %v25051_v8  ;;  %v22749_v46 = vrot.slane %v14075_v55, %v25051_v8 }
 0x69e   :  { %v17298_v9 = vpop.f32.mrf.mxu1  ;;  %v13598_v43 = vcombine.low %v22660_v56, %v12374_v20  ;;  %v13599_v37 = vcombine.high %v22660_v56, %v12374_v20  ;;  %v22752_v53 = vrot.slane %v14006_v26, %v25051_v8  ;;  %v22757_v12 = vrot.slane %v14007_v2, %v25051_v8 }
 0x69f   :  { %v14346_v21 = vcombine.low %v22668_v29, %v17298_v9  ;;  %v14347_v51 = vcombine.high %v22668_v29, %v17298_v9  ;;  %v13674_v44 = vrot.slane %v13666_v57, %v25051_v8  ;;  %v13681_v31 = vrot.slane %v13667_v3, %v25051_v8 }
 0x6a0   :  { %v12779_v30 = vpop.f32.mrf.mxu1  ;;  %v13606_v13 = vrot.slane %v13598_v43, %v25051_v8  ;;  %v22770_v23 = vrot.slane %v13599_v37, %v25051_v8 }
 0x6a1   :  { %v14278_v1 = vcombine.low %v22672_v52, %v12779_v30  ;;  %v14279_v56 = vcombine.high %v22672_v52, %v12779_v30  ;;  %v22767_v9 = vrot.slane %v14346_v21, %v25051_v8  ;;  %v22775_v2 = vrot.slane %v14347_v51, %v25051_v8 }
 0x6a2   :  { %v17277_v10 = vpop.f32.mrf.mxu0 }
 0x6a3   :  { %v17312_v36 = vpop.f32.mrf.mxu1  ;;  %v13938_v16 = vcombine.low %v22662_v18, %v17277_v10  ;;  %v13939_v55 = vcombine.high %v22662_v18, %v17277_v10  ;;  %v22784_v3 = vrot.slane %v14279_v56, %v25051_v8 }
 0x6a4   :  { %v22716_v60 = vpop.f32.mrf.mxu0  ;;  %v14618_v26 = vcombine.low %v22676_v39, %v17312_v36  ;;  %v14619_v57 = vcombine.high %v22676_v39, %v17312_v36 }
 0x6a5   :  { %v12941_v52 = vpop.f32.mrf.mxu1  ;;  %v13870_v18 = vcombine.low %v22664_v48, %v22716_v60  ;;  %v13871_v10 = vcombine.high %v22664_v48, %v22716_v60  ;;  %v22791_v43 = vrot.slane %v13938_v16, %v25051_v8  ;;  %v22797_v36 = vrot.slane %v13939_v55, %v25051_v8 }
 0x6a6   :  { %v14550_v39 = vcombine.low %v22680_v34, %v12941_v52  ;;  %v14551_v21 = vcombine.high %v22680_v34, %v12941_v52  ;;  %v22800_v51 = vrot.slane %v14618_v26, %v25051_v8  ;;  %v22806_v60 = vrot.slane %v14619_v57, %v25051_v8 }
 0x6a7   :  { %v22810_v16 = vrot.slane %v13870_v18, %v25051_v8 }
 0x6a8   :  { %25052 = vst [vmem:[#allocation84_spill] sm:$0xff] %v22800_v51  ;;  %25053 = vst [vmem:[#allocation8_spill] sm:$0xff] %v22806_v60 }
 0x6aa   :  { %v22718_v6 = vpop.f32.mrf.mxu0 }
 0x6ab   :  { %v14211_v55 = vcombine.high %v22670_v38, %v22718_v6 }
 0x6ac   :  { %v22720_v7 = vpop.f32.mrf.mxu0 }
 0x6ad   :  { %v14142_v26 = vcombine.low %v22674_v49, %v22720_v7 }
 0x6b2   :  { %v22722_v54 = vpop.f32.mrf.mxu0 }
 0x6b4   :  { %v22724_v24 = vpop.f32.mrf.mxu0 }
 0x6ba   :  { %v17319_v33 = vpop.f32.mrf.mxu0 }
 0x6bb   :  { %v13682_v25 = vcombine.low %v22686_v40, %v17319_v33  ;;  %v13683_v29 = vcombine.high %v22686_v40, %v17319_v33  ;;  %v22781_v33 = vrot.slane %v14278_v1, %v25051_v8 }
 0x6bc   :  { %v13022_v20 = vpop.f32.mrf.mxu0 }
 0x6bd   :  { %v13690_v30 = vrot.slane %v13682_v25, %v25051_v8  ;;  %v13614_v40 = vcombine.low %v22690_v35, %v13022_v20  ;;  %v13697_v37 = vrot.slane %v13683_v29, %v25051_v8  ;;  %v14210_v25 = vcombine.low %v22670_v38, %v22718_v6 }
 0x6be   :  { %v13615_v48 = vcombine.high %v22690_v35, %v13022_v20  ;;  %v22813_v29 = vrot.slane %v13871_v10, %v25051_v8  ;;  %v22820_v35 = vrot.slane %v14550_v39, %v25051_v8  ;;  %v22823_v20 = vrot.slane %v14551_v21, %v25051_v8  ;;  %v17326_v57 = vpop.f32.mrf.mxu1 }
 0x6bf   :  { %v13698_v1 = vcombine.low %v13674_v44, %v13690_v30  ;;  %v13699_v56 = vcombine.high %v13674_v44, %v13690_v30  ;;  %v13622_v34 = vrot.slane %v13614_v40, %v25051_v8  ;;  %v13714_v44 = vcombine.low %v13681_v31, %v13697_v37 }
 0x6c0   :  { %25054 = vst [vmem:[#allocation41_spill] sm:$0xff] %v22820_v35  ;;  %25055 = vst [vmem:[#allocation42_spill] sm:$0xff] %v22823_v20  ;;  %v13715_v52 = vcombine.high %v13681_v31, %v13697_v37  ;;  %v22826_v30 = vrot.slane %v14210_v25, %v25051_v8  ;;  %v14143_v40 = vcombine.high %v22674_v49, %v22720_v7 }
 0x6c1   :  { %v14482_v38 = vcombine.low %v22678_v5, %v22722_v54  ;;  %v13629_v6 = vrot.slane %v13615_v48, %v25051_v8  ;;  %v13706_v18 = vrot.slane %v13698_v1, %v18049_v27  ;;  %v13713_v10 = vrot.slane %v13699_v56, %v18049_v27  ;;  %v13103_v56 = vpop.f32.mrf.mxu1 }
 0x6c2   :  { %v13630_v39 = vcombine.low %v13606_v13, %v13622_v34  ;;  %v13631_v21 = vcombine.high %v13606_v13, %v13622_v34  ;;  %v22836_v31 = vrot.slane %v14211_v55, %v25051_v8  ;;  %v22839_v37 = vrot.slane %v14142_v26, %v25051_v8 }
 0x6c3   :  { %v14483_v49 = vcombine.high %v22678_v5, %v22722_v54  ;;  %v13818_v7 = vcombine.low %v22684_v22, %v17326_v57  ;;  %v14414_v25 = vcombine.low %v22682_v45, %v22724_v24  ;;  %v13722_v48 = vrot.slane %v13714_v44, %v18049_v27 }
 0x6c4   :  { %v13729_v1 = vrot.slane %v13715_v52, %v18049_v27  ;;  %v13819_v13 = vcombine.high %v22684_v22, %v17326_v57  ;;  %v22850_v34 = vrot.slane %v14143_v40, %v25051_v8  ;;  %v22853_v55 = vrot.slane %v14482_v38, %v25051_v8  ;;  %v17333_v22 = vpop.f32.mrf.mxu0 }
 0x6c5   :  { %v13646_v5 = vcombine.low %v22770_v23, %v13629_v6  ;;  %v13647_v54 = vcombine.high %v22770_v23, %v13629_v6  ;;  %v14415_v26 = vcombine.high %v22682_v45, %v22724_v24  ;;  %v14754_v60 = vcombine.low %v13706_v18, %v13713_v10 }
 0x6c6   :  { %v13638_v44 = vrot.slane %v13630_v39, %v18049_v27  ;;  %v13645_v52 = vrot.slane %v13631_v21, %v18049_v27  ;;  %v22862_v57 = vrot.slane %v14483_v49, %v25051_v8  ;;  %v16546_v40 = vcombine.high %v13706_v18, %v13713_v10 }
 0x6c7   :  { %v13826_v38 = vrot.slane %v13818_v7, %v25051_v8  ;;  %v13750_v20 = vcombine.low %v22688_v61, %v13103_v56  ;;  %v22867_v51 = vrot.slane %v14414_v25, %v25051_v8  ;;  %v14770_v23 = vcombine.low %v13722_v48, %v13729_v1 }
 0x6c8   :  { %v13833_v45 = vrot.slane %v13819_v13, %v25051_v8  ;;  %v13751_v24 = vcombine.high %v22688_v61, %v13103_v56  ;;  %v16547_v6 = vcombine.high %v13722_v48, %v13729_v1  ;;  %v13654_v39 = vrot.slane %v13646_v5, %v18049_v27  ;;  %v13184_v56 = vpop.f32.mrf.mxu0 }
 0x6c9   :  { %v13661_v21 = vrot.slane %v13647_v54, %v18049_v27  ;;  %v13954_v49 = vcombine.low %v22694_v0, %v17333_v22  ;;  %v22875_v18 = vrot.slane %v14415_v26, %v25051_v8  ;;  %v22878_v10 = vrot.slane %v14754_v60, %v25051_v8 }
 0x6ca   :  { %v14686_v7 = vcombine.low %v13638_v44, %v13645_v52  ;;  %v13955_v25 = vcombine.high %v22694_v0, %v17333_v22  ;;  %v22882_v13 = vrot.slane %v16546_v40, %v25051_v8  ;;  %v13834_v61 = vcombine.low %v22728_v14, %v13826_v38 }
 0x6cb   :  { %v13835_v48 = vcombine.high %v22728_v14, %v13826_v38  ;;  %v13758_v1 = vrot.slane %v13750_v20, %v25051_v8  ;;  %v22888_v5 = vrot.slane %v14770_v23, %v25051_v8  ;;  %v13850_v54 = vcombine.low %v22733_v41, %v13833_v45 }
 0x6cc   :  { %v13851_v60 = vcombine.high %v22733_v41, %v13833_v45  ;;  %v13765_v26 = vrot.slane %v13751_v24, %v25051_v8  ;;  %v22894_v0 = vrot.slane %v16547_v6, %v25051_v8  ;;  %v16544_v22 = vcombine.high %v13638_v44, %v13645_v52 }
 0x6cd   :  { %v14702_v40 = vcombine.low %v13654_v39, %v13661_v21  ;;  %v13962_v35 = vrot.slane %v13954_v49, %v25051_v8  ;;  %v22898_v14 = vrot.slane %v14686_v7, %v25051_v8  ;;  %v16545_v20 = vcombine.high %v13654_v39, %v13661_v21 }
 0x6ce   :  { %v13969_v38 = vrot.slane %v13955_v25, %v25051_v8  ;;  %v13886_v23 = vcombine.low %v22698_v4, %v13184_v56  ;;  %v13842_v59 = vrot.slane %v13834_v61, %v18049_v27  ;;  %v13849_v41 = vrot.slane %v13835_v48, %v18049_v27 }
 0x6cf   :  { %v13766_v45 = vcombine.low %v22736_v63, %v13758_v1  ;;  %v13767_v24 = vcombine.high %v22736_v63, %v13758_v1  ;;  %v13858_v44 = vrot.slane %v13850_v54, %v18049_v27  ;;  %v13865_v52 = vrot.slane %v13851_v60, %v18049_v27 }
 0x6d0   :  { %v13782_v6 = vcombine.low %v22741_v47, %v13765_v26  ;;  %v13783_v39 = vcombine.high %v22741_v47, %v13765_v26  ;;  %v22911_v21 = vrot.slane %v16544_v22, %v25051_v8  ;;  %v13970_v49 = vcombine.low %v22791_v43, %v13962_v35 }
 0x6d1   :  { %v13971_v7 = vcombine.high %v22791_v43, %v13962_v35  ;;  %v13887_v25 = vcombine.high %v22698_v4, %v13184_v56  ;;  %v22917_v61 = vrot.slane %v14702_v40, %v25051_v8  ;;  %v13986_v63 = vcombine.low %v22797_v36, %v13969_v38 }
 0x6d2   :  { %v13987_v48 = vcombine.high %v22797_v36, %v13969_v38  ;;  %v13894_v1 = vrot.slane %v13886_v23, %v25051_v8  ;;  %v14890_v54 = vcombine.low %v13842_v59, %v13849_v41  ;;  %v16550_v47 = vcombine.high %v13842_v59, %v13849_v41  ;;  %v17340_v59 = vpop.f32.mrf.mxu1 }
 0x6d3   :  { %v13774_v60 = vrot.slane %v13766_v45, %v18049_v27  ;;  %v13781_v26 = vrot.slane %v13767_v24, %v18049_v27  ;;  %v22925_v22 = vrot.slane %v16545_v20, %v25051_v8  ;;  %v14906_v43 = vcombine.low %v13858_v44, %v13865_v52 }
 0x6d4   :  { %v13790_v4 = vrot.slane %v13782_v6, %v18049_v27  ;;  %v13797_v35 = vrot.slane %v13783_v39, %v18049_v27  ;;  %v16551_v56 = vcombine.high %v13858_v44, %v13865_v52  ;;  %v13978_v40 = vrot.slane %v13970_v49, %v18049_v27 }
 0x6d5   :  { %v13985_v36 = vrot.slane %v13971_v7, %v18049_v27  ;;  %v13901_v38 = vrot.slane %v13887_v25, %v25051_v8  ;;  %v13994_v23 = vrot.slane %v13986_v63, %v18049_v27  ;;  %v14001_v41 = vrot.slane %v13987_v48, %v18049_v27 }
 0x6d6   :  { %v13902_v20 = vcombine.low %v22810_v16, %v13894_v1  ;;  %v13903_v45 = vcombine.high %v22810_v16, %v13894_v1  ;;  %v22937_v24 = vrot.slane %v14890_v54, %v25051_v8  ;;  %v22940_v44 = vrot.slane %v16550_v47, %v25051_v8 }
 0x6d7   :  { %v14822_v52 = vcombine.low %v13774_v60, %v13781_v26  ;;  %v16548_v6 = vcombine.high %v13774_v60, %v13781_v26  ;;  %v22943_v39 = vrot.slane %v14906_v43, %v25051_v8  ;;  %v14838_v49 = vcombine.low %v13790_v4, %v13797_v35 }
 0x6d8   :  { %25056 = vst [vmem:[#allocation45_spill] sm:$0xff] %v22937_v24  ;;  %v16549_v7 = vcombine.high %v13790_v4, %v13797_v35  ;;  %v14090_v25 = vcombine.low %v22692_v32, %v17340_v59  ;;  %v15026_v63 = vcombine.low %v13978_v40, %v13985_v36  ;;  %v16554_v48 = vcombine.high %v13978_v40, %v13985_v36  ;;  %v13265_v40 = vpop.f32.mrf.mxu1 }
 0x6d9   :  { %25057 = vst [vmem:[#allocation94_spill] sm:$0xff] %v22943_v39  ;;  %v13918_v17 = vcombine.low %v22813_v29, %v13901_v38  ;;  %v13919_v16 = vcombine.high %v22813_v29, %v13901_v38  ;;  %v15042_v1 = vcombine.low %v13994_v23, %v14001_v41  ;;  %v16555_v54 = vcombine.high %v13994_v23, %v14001_v41 }
 0x6da   :  { %v13910_v47 = vrot.slane %v13902_v20, %v18049_v27  ;;  %v13917_v24 = vrot.slane %v13903_v45, %v18049_v27  ;;  %v22951_v60 = vrot.slane %v16551_v56, %v25051_v8  ;;  %v22954_v26 = vrot.slane %v14822_v52, %v25051_v8 }
 0x6db   :  { %v22957_v43 = vrot.slane %v16548_v6, %v25051_v8  ;;  %v14091_v4 = vcombine.high %v22692_v32, %v17340_v59  ;;  %v22961_v35 = vrot.slane %v14838_v49, %v25051_v8  ;;  %v22964_v29 = vrot.slane %v16549_v7, %v25051_v8  ;;  %v17347_v6 = vpop.f32.mrf.mxu0 }
 0x6dc   :  { %25058 = vst [vmem:[#allocation101_spill] sm:$0xff] %v22951_v60  ;;  %v14787_v36 = vcombine.high %v22878_v10, %v22882_v13  ;;  %v14803_v56 = vcombine.high %v22888_v5, %v22894_v0  ;;  %v22971_v38 = vrot.slane %v15026_v63, %v25051_v8  ;;  %v13926_v23 = vrot.slane %v13918_v17, %v18049_v27 }
 0x6dd   :  { %v13933_v32 = vrot.slane %v13919_v16, %v18049_v27  ;;  %v14098_v59 = vrot.slane %v14090_v25, %v25051_v8  ;;  %v22977_v41 = vrot.slane %v16554_v48, %v25051_v8  ;;  %v22980_v20 = vrot.slane %v15042_v1, %v25051_v8  ;;  %v13346_v60 = vpop.f32.mrf.mxu0 }
 0x6de   :  { %v22983_v45 = vrot.slane %v16555_v54, %v25051_v8  ;;  %v14958_v52 = vcombine.low %v13910_v47, %v13917_v24  ;;  %v16552_v49 = vcombine.high %v13910_v47, %v13917_v24  ;;  %v14105_v7 = vrot.slane %v14091_v4, %v25051_v8 }
 0x6df   :  { %v14022_v17 = vcombine.low %v22696_v19, %v13265_v40  ;;  %v14023_v63 = vcombine.high %v22696_v19, %v13265_v40  ;;  %v14801_v25 = vrot.slane %v14787_v36, %v18049_v27  ;;  %v14817_v48 = vrot.slane %v14803_v56, %v18049_v27 }
 0x6e0   :  { %v14786_v16 = vcombine.low %v22878_v10, %v22882_v13  ;;  %v14802_v1 = vcombine.low %v22888_v5, %v22894_v0  ;;  %v14974_v54 = vcombine.low %v13926_v23, %v13933_v32  ;;  %v16553_v39 = vcombine.high %v13926_v23, %v13933_v32 }
 0x6e1   :  { %v14106_v24 = vcombine.low %v22744_v58, %v14098_v59  ;;  %v14107_v47 = vcombine.high %v22744_v58, %v14098_v59  ;;  %v14226_v4 = vcombine.low %v22700_v11, %v17347_v6  ;;  %v14820_v19 = vcombine.low %v14801_v25, %v14817_v48 }
 0x6e2   :  { %v22998_v40 = vrot.slane %v14786_v16, %v18049_v27  ;;  %v23001_v36 = vrot.slane %v14802_v1, %v18049_v27  ;;  %v23004_v10 = vrot.slane %v14958_v52, %v25051_v8  ;;  %v14122_v13 = vcombine.low %v22749_v46, %v14105_v7 }
 0x6e3   :  { %v14123_v5 = vcombine.high %v22749_v46, %v14105_v7  ;;  %v14227_v0 = vcombine.high %v22700_v11, %v17347_v6  ;;  %v23010_v58 = vrot.slane %v16552_v49, %v25051_v8  ;;  %v14030_v56 = vrot.slane %v14022_v17, %v25051_v8  ;;  %15856 = vrot.lane.b32.xlu1 %v14820_v19, %s17682_s3 }
 0x6e4   :  { %25059 = vst [vmem:[#allocation26_spill] sm:$0xff] %v22998_v40  ;;  %25060 = vst [vmem:[#allocation95_spill] sm:$0xff] %v23001_v36  ;;  %v14037_v23 = vrot.slane %v14023_v63, %v25051_v8  ;;  %v14819_v32 = vcombine.high %v22998_v40, %v23001_v36  ;;  %v23018_v59 = vrot.slane %v14974_v54, %v25051_v8 }
 0x6e5   :  { %v14114_v46 = vrot.slane %v14106_v24, %v18049_v27  ;;  %v14121_v11 = vrot.slane %v14107_v47, %v18049_v27  ;;  %v14158_v52 = vcombine.low %v22704_v50, %v13346_v60  ;;  %v14234_v6 = vrot.slane %v14226_v4, %v25051_v8 }
 0x6e6   :  { %15792 = vrot.lane.b32.xlu0 %v14819_v32, %s17683_s8  ;;  %v14821_v49 = vcombine.high %v14801_v25, %v14817_v48  ;;  %v14719_v7 = vcombine.high %v22898_v14, %v22911_v21  ;;  %v14735_v17 = vcombine.high %v22917_v61, %v22925_v22  ;;  %v14130_v63 = vrot.slane %v14122_v13, %v18049_v27 }
 0x6e7   :  { %v14137_v16 = vrot.slane %v14123_v5, %v18049_v27  ;;  %v14241_v1 = vrot.slane %v14227_v0, %v25051_v8  ;;  %v14159_v54 = vcombine.high %v22704_v50, %v13346_v60  ;;  %v23034_v24 = vrot.slane %v16553_v39, %v25051_v8 }
 0x6e8   :  { %v14038_v47 = vcombine.low %v22752_v53, %v14030_v56  ;;  %v14039_v25 = vcombine.high %v22752_v53, %v14030_v56  ;;  %v14054_v48 = vcombine.low %v22757_v12, %v14037_v23  ;;  %15920 = vrot.lane.b32.xlu1 %v14821_v49, %s17684_s9  ;;  %v15162_v4 = vcombine.low %v14114_v46, %v14121_v11 }
 0x6e9   :  { %v16558_v19 = vcombine.high %v14114_v46, %v14121_v11  ;;  %v14055_v13 = vcombine.high %v22757_v12, %v14037_v23  ;;  %v14166_v5 = vrot.slane %v14158_v52, %v25051_v8  ;;  %v14242_v50 = vcombine.low %v22826_v30, %v14234_v6 }
 0x6ea   :  { %v14243_v39 = vcombine.high %v22826_v30, %v14234_v6  ;;  %v23045_v60 = vrot.slane %v14719_v7, %v18049_v27  ;;  %v23048_v53 = vrot.slane %v14735_v17, %v18049_v27  ;;  %v15178_v0 = vcombine.low %v14130_v63, %v14137_v16 }
 0x6eb   :  { %v14258_v56 = vcombine.low %v22836_v31, %v14241_v1  ;;  %v14259_v32 = vcombine.high %v22836_v31, %v14241_v1  ;;  %v14173_v46 = vrot.slane %v14159_v54, %v25051_v8  ;;  %v16559_v12 = vcombine.high %v14130_v63, %v14137_v16  ;;  %v17354_v16 = vpop.f32.mrf.mxu1 }
 0x6ec   :  { %v14046_v23 = vrot.slane %v14038_v47, %v18049_v27  ;;  %v14053_v11 = vrot.slane %v14039_v25, %v18049_v27  ;;  %v14062_v30 = vrot.slane %v14054_v48, %v18049_v27  ;;  %v23057_v52 = vrot.slane %v15162_v4, %v25051_v8 }
 0x6ed   :  { %v14069_v6 = vrot.slane %v14055_v13, %v18049_v27  ;;  %v14174_v49 = vcombine.low %v22839_v37, %v14166_v5  ;;  %v14175_v7 = vcombine.high %v22839_v37, %v14166_v5  ;;  %v23063_v31 = vrot.slane %v16558_v19, %v25051_v8  ;;  %v16018_v37 = vld [vmem:[%s23841_s4 + $0x18] sm:$0xff] }
 0x6ee   :  { %v14250_v17 = vrot.slane %v14242_v50, %v18049_v27  ;;  %v14257_v63 = vrot.slane %v14243_v39, %v18049_v27  ;;  %v14753_v1 = vcombine.high %v23045_v60, %v23048_v53  ;;  %v14266_v54 = vrot.slane %v14258_v56, %v18049_v27  ;;  %v16017_v50 = vld [vmem:[%s23841_s4 + $0x10] sm:$0xff]  ;;  %17369 = vmatprep.subr.mxu0 %v16018_v37 }
 0x6ef   :  { %v14273_v47 = vrot.slane %v14259_v32, %v18049_v27  ;;  %v14190_v25 = vcombine.low %v22850_v34, %v14173_v46  ;;  %v14191_v48 = vcombine.high %v22850_v34, %v14173_v46  ;;  %v23077_v4 = vrot.slane %v15178_v0, %v25051_v8  ;;  %17370 = vmatpush3.msra.mxu0 %v16018_v37 }
 0x6f0   :  { %v23080_v19 = vrot.slane %v16559_v12, %v25051_v8  ;;  %v15094_v13 = vcombine.low %v14046_v23, %v14053_v11  ;;  %v16556_v5 = vcombine.high %v14046_v23, %v14053_v11  ;;  %15918 = vrot.lane.b32.xlu0 %v14753_v1, %s17684_s9  ;;  %v14182_v34 = vrot.slane %v14174_v49, %v18049_v27  ;;  %v13427_v11 = vpop.f32.mrf.mxu1  ;;  %v23092_v1 = vpop.f32.mrf.mxu0 }
 0x6f1   :  { %v14189_v39 = vrot.slane %v14175_v7, %v18049_v27  ;;  %v14718_v56 = vcombine.low %v22898_v14, %v22911_v21  ;;  %v14734_v0 = vcombine.low %v22917_v61, %v22925_v22  ;;  %v15110_v32 = vcombine.low %v14062_v30, %v14069_v6  ;;  %17371 = vmatprep.subr.mxu0 %v16017_v50 }
 0x6f2   :  { %v16557_v46 = vcombine.high %v14062_v30, %v14069_v6  ;;  %v15298_v12 = vcombine.low %v14250_v17, %v14257_v63  ;;  %v16562_v23 = vcombine.high %v14250_v17, %v14257_v63  ;;  %v15314_v40 = vcombine.low %v14266_v54, %v14273_v47  ;;  %17372 = vmatpush3.msra.mxu0 %v16017_v50  ;;  %v16016_v30 = vld [vmem:[%s23841_s4 + $0x8] sm:$0xff]  ;;  %v16015_v6 = vld [vmem:[%s23841_s4] sm:$0xff]  ;;  %v13508_v37 = vpop.f32.mrf.mxu0 }
 0x6f3   :  { %v14198_v49 = vrot.slane %v14190_v25, %v18049_v27  ;;  %v14205_v7 = vrot.slane %v14191_v48, %v18049_v27  ;;  %v14362_v36 = vcombine.low %v22702_v62, %v17354_v16  ;;  %v23098_v14 = vrot.slane %v15094_v13, %v25051_v8  ;;  %17373 = vmatprep.subr.mxu0 %v16016_v30 }
 0x6f4   :  { %v23101_v21 = vrot.slane %v16556_v5, %v25051_v8  ;;  %v16563_v61 = vcombine.high %v14266_v54, %v14273_v47  ;;  %v14363_v22 = vcombine.high %v22702_v62, %v17354_v16  ;;  %v15230_v17 = vcombine.low %v14182_v34, %v14189_v39  ;;  %17374 = vmatpush3.msra.mxu0 %v16016_v30 }
 0x6f5   :  { %v14294_v63 = vcombine.low %v22706_v28, %v13427_v11  ;;  %v23112_v25 = vrot.slane %v14718_v56, %v18049_v27  ;;  %v23115_v48 = vrot.slane %v14734_v0, %v18049_v27  ;;  %v23118_v62 = vrot.slane %v15110_v32, %v25051_v8  ;;  %17375 = vmatprep.subr.mxu0 %v16015_v6 }
 0x6f6   :  { %v23121_v16 = vrot.slane %v16557_v46, %v25051_v8  ;;  %v23124_v54 = vrot.slane %v15298_v12, %v25051_v8  ;;  %v16560_v47 = vcombine.high %v14182_v34, %v14189_v39  ;;  %v23127_v13 = vrot.slane %v16562_v23, %v25051_v8  ;;  %17376 = vmatpush3.msra.mxu0 %v16015_v6 }
 0x6f7   :  { %v23130_v5 = vrot.slane %v15314_v40, %v25051_v8  ;;  %v15246_v50 = vcombine.low %v14198_v49, %v14205_v7  ;;  %v14370_v56 = vrot.slane %v14362_v36, %v25051_v8  ;;  %v23134_v0 = vrot.slane %v16563_v61, %v25051_v8 }
 0x6f8   :  { %v16561_v32 = vcombine.high %v14198_v49, %v14205_v7  ;;  %v14377_v46 = vrot.slane %v14363_v22, %v25051_v8  ;;  %v14295_v34 = vcombine.high %v22706_v28, %v13427_v11  ;;  %v23139_v39 = vrot.slane %v15230_v17, %v25051_v8 }
 0x6f9   :  { %v14302_v12 = vrot.slane %v14294_v63, %v25051_v8  ;;  %v14430_v40 = vcombine.low %v22712_v42, %v13508_v37  ;;  %v14751_v36 = vcombine.high %v23112_v25, %v23115_v48  ;;  %v23146_v23 = vrot.slane %v16560_v47, %v25051_v8 }
 0x6fa   :  { %v14498_v49 = vcombine.low %v22708_v15, %v23092_v1  ;;  %v14431_v7 = vcombine.high %v22712_v42, %v13508_v37  ;;  %v14990_v28 = vcombine.low %v23004_v10, %v23010_v58  ;;  %v23154_v11 = vrot.slane %v15246_v50, %v25051_v8 }
 0x6fb   :  { %v14378_v61 = vcombine.low %v22767_v9, %v14370_v56  ;;  %v14499_v22 = vcombine.high %v22708_v15, %v23092_v1  ;;  %15790 = vrot.lane.b32.xlu1 %v14751_v36, %s17683_s8  ;;  %v15006_v30 = vcombine.low %v23018_v59, %v23034_v24  ;;  %v14379_v6 = vcombine.high %v22767_v9, %v14370_v56 }
 0x6fc   :  { %v14394_v42 = vcombine.low %v22775_v2, %v14377_v46  ;;  %v23165_v17 = vrot.slane %v14295_v34, %v25051_v8  ;;  %v23168_v63 = vrot.slane %v14990_v28, %v18049_v27  ;;  %v14395_v47 = vcombine.high %v22775_v2, %v14377_v46 }
 0x6fd   :  { %v14310_v37 = vcombine.low %v22781_v33, %v14302_v12  ;;  %v14438_v15 = vrot.slane %v14430_v40, %v25051_v8  ;;  %v23174_v1 = vrot.slane %v15006_v30, %v18049_v27  ;;  %v23177_v50 = vrot.slane %v16561_v32, %v25051_v8 }
 0x6fe   :  { %v14506_v9 = vrot.slane %v14498_v49, %v25051_v8  ;;  %v14445_v56 = vrot.slane %v14431_v7, %v25051_v8  ;;  %v14752_v34 = vcombine.low %v23045_v60, %v23048_v53  ;;  %v23184_v36 = vrot.slane %v14378_v61, %v18049_v27 }
 0x6ff   :  { %v14311_v2 = vcombine.high %v22781_v33, %v14302_v12  ;;  %v14513_v46 = vrot.slane %v14499_v22, %v25051_v8  ;;  %v15023_v40 = vcombine.high %v23168_v63, %v23174_v1  ;;  %v23191_v32 = vrot.slane %v14379_v6, %v18049_v27 }
 0x700   :  { %v23194_v49 = vrot.slane %v14394_v42, %v18049_v27  ;;  %v14326_v7 = vcombine.low %v22784_v3, %v23165_v17  ;;  %v14327_v60 = vcombine.high %v22784_v3, %v23165_v17  ;;  %15854 = vrot.lane.b32.xlu1 %v14752_v34, %s17682_s3  ;;  %v23202_v33 = vrot.slane %v14395_v47, %v18049_v27 }
 0x701   :  { %v23205_v53 = vrot.slane %v14310_v37, %v18049_v27  ;;  %v14446_v12 = vcombine.low %v22867_v51, %v14438_v15  ;;  %v14447_v28 = vcombine.high %v22867_v51, %v14438_v15  ;;  %15798 = vrot.lane.b32.xlu0 %v15023_v40, %s17683_s8  ;;  %v14514_v61 = vcombine.low %v22853_v55, %v14506_v9 }
 0x702   :  { %v14515_v22 = vcombine.high %v22853_v55, %v14506_v9  ;;  %v14462_v30 = vcombine.low %v22875_v18, %v14445_v56  ;;  %v14463_v6 = vcombine.high %v22875_v18, %v14445_v56  ;;  %v14530_v42 = vcombine.low %v22862_v57, %v14513_v46 }
 0x703   :  { %v14991_v47 = vcombine.high %v23004_v10, %v23010_v58  ;;  %v15007_v37 = vcombine.high %v23018_v59, %v23034_v24  ;;  %v15058_v51 = vcombine.low %v22971_v38, %v22977_v41  ;;  %v23222_v15 = vrot.slane %v14311_v2, %v18049_v27 }
 0x704   :  { %v14531_v55 = vcombine.high %v22862_v57, %v14513_v46  ;;  %v15074_v9 = vcombine.low %v22980_v20, %v22983_v45  ;;  %v15059_v18 = vcombine.high %v22971_v38, %v22977_v41  ;;  %v14454_v56 = vrot.slane %v14446_v12, %v18049_v27 }
 0x705   :  { %v14461_v10 = vrot.slane %v14447_v28, %v18049_v27  ;;  %v15005_v58 = vrot.slane %v14991_v47, %v18049_v27  ;;  %v15021_v59 = vrot.slane %v15007_v37, %v18049_v27  ;;  %v14470_v24 = vrot.slane %v14462_v30, %v18049_v27 }
 0x706   :  { %v14477_v34 = vrot.slane %v14463_v6, %v18049_v27  ;;  %v23236_v57 = vrot.slane %v15058_v51, %v18049_v27  ;;  %v23239_v2 = vrot.slane %v15074_v9, %v18049_v27  ;;  %v14522_v38 = vrot.slane %v14514_v61, %v18049_v27 }
 0x707   :  { %v14529_v41 = vrot.slane %v14515_v22, %v18049_v27  ;;  %v14538_v46 = vrot.slane %v14530_v42, %v18049_v27  ;;  %v15024_v40 = vcombine.low %v15005_v58, %v15021_v59  ;;  %v15073_v28 = vrot.slane %v15059_v18, %v18049_v27 }
 0x708   :  { %v15091_v12 = vcombine.high %v23236_v57, %v23239_v2  ;;  %v15075_v30 = vcombine.high %v22980_v20, %v22983_v45  ;;  %v15262_v6 = vcombine.low %v23139_v39, %v23146_v23  ;;  %v14545_v47 = vrot.slane %v14531_v55, %v18049_v27 }
 0x709   :  { %v15502_v37 = vcombine.low %v14454_v56, %v14461_v10  ;;  %v16568_v61 = vcombine.high %v14454_v56, %v14461_v10  ;;  %15862 = vrot.lane.b32.xlu0 %v15024_v40, %s17682_s3  ;;  %v15278_v22 = vcombine.low %v23154_v11, %v23177_v50  ;;  %v15518_v42 = vcombine.low %v14470_v24, %v14477_v34 }
 0x70a   :  { %v16569_v51 = vcombine.high %v14470_v24, %v14477_v34  ;;  %15800 = vrot.lane.b32.xlu1 %v15091_v12, %s17683_s8  ;;  %v15025_v9 = vcombine.high %v15005_v58, %v15021_v59  ;;  %v15089_v18 = vrot.slane %v15075_v30, %v18049_v27  ;;  %v23258_v20 = vrot.slane %v15262_v6, %v18049_v27  ;;  %v23280_v6 = vpop.f32.mrf.mxu1 }
 0x70b   :  { %v23261_v45 = vrot.slane %v15278_v22, %v18049_v27  ;;  %v15263_v55 = vcombine.high %v23139_v39, %v23146_v23  ;;  %v15279_v56 = vcombine.high %v23154_v11, %v23177_v50  ;;  %v15434_v10 = vcombine.low %v23184_v36, %v23191_v32 }
 0x70c   :  { %v15092_v24 = vcombine.low %v15073_v28, %v15089_v18  ;;  %v15330_v58 = vcombine.low %v23124_v54, %v23127_v13  ;;  %v15346_v59 = vcombine.low %v23130_v5, %v23134_v0  ;;  %v15570_v34 = vcombine.low %v14522_v38, %v14529_v41 }
 0x70d   :  { %v16570_v40 = vcombine.high %v14522_v38, %v14529_v41  ;;  %v15586_v12 = vcombine.low %v14538_v46, %v14545_v47  ;;  %v16571_v30 = vcombine.high %v14538_v46, %v14545_v47  ;;  %15926 = vrot.lane.b32.xlu0 %v15025_v9, %s17684_s9  ;;  %v23275_v39 = vrot.slane %v15502_v37, %v25051_v8 }
 0x70e   :  { %v15517_v23 = vrot.slane %v16568_v61, %v25051_v8  ;;  %v15525_v11 = vrot.slane %v15518_v42, %v25051_v8  ;;  %v15533_v50 = vrot.slane %v16569_v51, %v25051_v8  ;;  %15864 = vrot.lane.b32.xlu1 %v15092_v24, %s17682_s3  ;;  %v15295_v38 = vcombine.high %v23258_v20, %v23261_v45 }
 0x70f   :  { %v15277_v41 = vrot.slane %v15263_v55, %v18049_v27  ;;  %v15293_v46 = vrot.slane %v15279_v56, %v18049_v27  ;;  %v15331_v47 = vcombine.high %v23124_v54, %v23127_v13  ;;  %v15093_v37 = vcombine.high %v15073_v28, %v15089_v18  ;;  %v13589_v28 = vpop.f32.mrf.mxu1 }
 0x710   :  { %v23290_v61 = vrot.slane %v15330_v58, %v18049_v27  ;;  %v23293_v22 = vrot.slane %v15346_v59, %v18049_v27  ;;  %v15347_v42 = vcombine.high %v23130_v5, %v23134_v0  ;;  %v16566_v51 = vcombine.high %v23184_v36, %v23191_v32  ;;  %v25063_v59 = vld [vmem:[#allocation81_spill] sm:$0xff] }
 0x711   :  { %v15450_v9 = vcombine.low %v23194_v49, %v23202_v33  ;;  %v14334_v54 = vrot.slane %v14326_v7, %v18049_v27  ;;  %v14341_v13 = vrot.slane %v14327_v60, %v18049_v27  ;;  %15806 = vrot.lane.b32.xlu0 %v15295_v38, %s17683_s8  ;;  %v16567_v5 = vcombine.high %v23194_v49, %v23202_v33 }
 0x712   :  { %v15366_v0 = vcombine.low %v23205_v53, %v23222_v15  ;;  %v15577_v36 = vrot.slane %v15570_v34, %v25051_v8  ;;  %v15585_v32 = vrot.slane %v16570_v40, %v25051_v8  ;;  %15928 = vrot.lane.b32.xlu1 %v15093_v37, %s17684_s9  ;;  %v15593_v7 = vrot.slane %v15586_v12, %v25051_v8  ;;  %v25064_v12 = vld [vmem:[#allocation76_spill] sm:$0xff] }
 0x713   :  { %v15296_v18 = vcombine.low %v15277_v41, %v15293_v46  ;;  %v15534_v3 = vcombine.low %v23275_v39, %v15517_v23  ;;  %v15550_v17 = vcombine.low %v15525_v11, %v15533_v50  ;;  %v15601_v60 = vrot.slane %v16571_v30, %v25051_v8 }
 0x714   :  { %v15363_v49 = vcombine.high %v23290_v61, %v23293_v22  ;;  %v15345_v33 = vrot.slane %v15331_v47, %v18049_v27  ;;  %v15361_v55 = vrot.slane %v15347_v42, %v18049_v27  ;;  %v23325_v56 = vrot.slane %v15434_v10, %v25051_v8 }
 0x715   :  { %v23328_v24 = vrot.slane %v16566_v51, %v25051_v8  ;;  %v16564_v58 = vcombine.high %v23205_v53, %v23222_v15  ;;  %v14566_v34 = vcombine.low %v25063_v59, %v13589_v28  ;;  %15870 = vrot.lane.b32.xlu0 %v15296_v18, %s17682_s3  ;;  %v15382_v40 = vcombine.low %v14334_v54, %v14341_v13 }
 0x716   :  { %25061 = vst [vmem:[#allocation32_spill] sm:$0xff] %v23325_v56  ;;  %v14634_v30 = vcombine.low %v25064_v12, %v23280_v6  ;;  %v14567_v38 = vcombine.high %v25063_v59, %v13589_v28  ;;  %15808 = vrot.lane.b32.xlu1 %v15363_v49, %s17683_s8  ;;  %v15297_v10 = vcombine.high %v15277_v41, %v15293_v46  ;;  %v25065_v59 = vld [vmem:[#allocation41_spill] sm:$0xff] }
 0x717   :  { %25062 = vst [vmem:[#allocation107_spill] sm:$0xff] %v23328_v24  ;;  %v23339_v47 = vrot.slane %v15534_v3, %v18049_v27  ;;  %v23342_v37 = vrot.slane %v15550_v17, %v18049_v27  ;;  %v15535_v53 = vcombine.high %v23275_v39, %v15517_v23  ;;  %v15551_v15 = vcombine.high %v15525_v11, %v15533_v50 }
 0x718   :  { %v16565_v42 = vcombine.high %v14334_v54, %v14341_v13  ;;  %v15364_v51 = vcombine.low %v15345_v33, %v15361_v55  ;;  %v15602_v18 = vcombine.low %v15577_v36, %v15585_v32  ;;  %v15618_v56 = vcombine.low %v15593_v7, %v15601_v60 }
 0x719   :  { %v23346_v24 = vrot.slane %v15450_v9, %v25051_v8  ;;  %v23349_v28 = vrot.slane %v16567_v5, %v25051_v8  ;;  %v14635_v41 = vcombine.high %v25064_v12, %v23280_v6  ;;  %v14574_v46 = vrot.slane %v14566_v34, %v25051_v8  ;;  %15934 = vrot.lane.b32.xlu0 %v15297_v10, %s17684_s9 }
 0x71a   :  { %v23356_v39 = vrot.slane %v15366_v0, %v25051_v8  ;;  %v23359_v23 = vrot.slane %v16564_v58, %v25051_v8  ;;  %v23362_v11 = vrot.slane %v14634_v30, %v25051_v8  ;;  %v14581_v50 = vrot.slane %v14567_v38, %v25051_v8  ;;  %15872 = vrot.lane.b32.xlu1 %v15364_v51, %s17682_s3 }
 0x71b   :  { %v15567_v6 = vcombine.high %v23339_v47, %v23342_v37  ;;  %v15549_v9 = vrot.slane %v15535_v53, %v18049_v27  ;;  %v15565_v54 = vrot.slane %v15551_v15, %v18049_v27  ;;  %v15603_v13 = vcombine.high %v15577_v36, %v15585_v32  ;;  %v25066_v32 = vld [vmem:[#allocation84_spill] sm:$0xff] }
 0x71c   :  { %v15365_v5 = vcombine.high %v15345_v33, %v15361_v55  ;;  %v23371_v0 = vrot.slane %v15602_v18, %v18049_v27  ;;  %v23374_v3 = vrot.slane %v15618_v56, %v18049_v27  ;;  %v15619_v17 = vcombine.high %v15593_v7, %v15601_v60  ;;  %v25067_v55 = vld [vmem:[#allocation42_spill] sm:$0xff]  ;;  %v25068_v18 = vld [vmem:[#allocation8_spill] sm:$0xff] }
 0x71d   :  { %v23377_v49 = vrot.slane %v15382_v40, %v25051_v8  ;;  %v23380_v58 = vrot.slane %v14635_v41, %v25051_v8  ;;  %v14582_v34 = vcombine.low %v25065_v59, %v14574_v46  ;;  %v14583_v12 = vcombine.high %v25065_v59, %v14574_v46  ;;  %15814 = vrot.lane.b32.xlu0 %v15567_v6, %s17683_s8  ;;  %v25070_v6 = vld [vmem:[#allocation101_spill] sm:$0xff] }
 0x71e   :  { %v23386_v36 = vrot.slane %v16565_v42, %v25051_v8  ;;  %v14650_v33 = vcombine.low %v25066_v32, %v23362_v11  ;;  %v14598_v7 = vcombine.low %v25067_v55, %v14581_v50  ;;  %v14599_v60 = vcombine.high %v25067_v55, %v14581_v50  ;;  %15936 = vrot.lane.b32.xlu1 %v15365_v5, %s17684_s9 }
 0x71f   :  { %v15568_v56 = vcombine.low %v15549_v9, %v15565_v54  ;;  %v15617_v40 = vrot.slane %v15603_v13, %v18049_v27  ;;  %v14854_v30 = vcombine.low %v22954_v26, %v22957_v43  ;;  %v14870_v38 = vcombine.low %v22961_v35, %v22964_v29  ;;  %v25071_v13 = vld [vmem:[#allocation94_spill] sm:$0xff] }
 0x720   :  { %v15635_v10 = vcombine.high %v23371_v0, %v23374_v3  ;;  %v15633_v53 = vrot.slane %v15619_v17, %v18049_v27  ;;  %v14855_v15 = vcombine.high %v22954_v26, %v22957_v43  ;;  %v14871_v42 = vcombine.high %v22961_v35, %v22964_v29  ;;  %v25069_v35 = vld [vmem:[#allocation45_spill] sm:$0xff] }
 0x721   :  { %v14651_v51 = vcombine.high %v25066_v32, %v23362_v11  ;;  %v14666_v41 = vcombine.low %v25068_v18, %v23380_v58  ;;  %v23410_v46 = vrot.slane %v14582_v34, %v18049_v27  ;;  %v23413_v50 = vrot.slane %v14583_v12, %v18049_v27  ;;  %15878 = vrot.lane.b32.xlu0 %v15568_v56, %s17682_s3  ;;  %v25072_v32 = vld [vmem:[#allocation107_spill] sm:$0xff] }
 0x722   :  { %v14667_v26 = vcombine.high %v25068_v18, %v23380_v58  ;;  %v23419_v43 = vrot.slane %v14598_v7, %v18049_v27  ;;  %15816 = vrot.lane.b32.xlu1 %v15635_v10, %s17683_s8  ;;  %v14922_v29 = vcombine.low %v25069_v35, %v22940_v44  ;;  %v14938_v5 = vcombine.low %v25071_v13, %v25070_v6 }
 0x723   :  { %v23427_v17 = vrot.slane %v14599_v60, %v18049_v27  ;;  %v15569_v59 = vcombine.high %v15549_v9, %v15565_v54  ;;  %v23430_v34 = vrot.slane %v14854_v30, %v18049_v27  ;;  %v23433_v58 = vrot.slane %v14870_v38, %v18049_v27 }
 0x724   :  { %v15636_v12 = vcombine.low %v15617_v40, %v15633_v53  ;;  %v14869_v55 = vrot.slane %v14855_v15, %v18049_v27  ;;  %v14885_v7 = vrot.slane %v14871_v42, %v18049_v27  ;;  %v15126_v56 = vcombine.low %v23098_v14, %v23101_v21 }
 0x725   :  { %v15638_v10 = vcombine.low %v23410_v46, %v23413_v50  ;;  %15942 = vrot.lane.b32.xlu0 %v15569_v59, %s17684_s9  ;;  %v15142_v9 = vcombine.low %v23118_v62, %v23121_v16  ;;  %v15194_v54 = vcombine.low %v23057_v52, %v23063_v31  ;;  %v15210_v60 = vcombine.low %v23077_v4, %v23080_v19 }
 0x726   :  { %v16572_v30 = vcombine.high %v23410_v46, %v23413_v50  ;;  %15880 = vrot.lane.b32.xlu1 %v15636_v12, %s17682_s3  ;;  %v23452_v38 = vrot.slane %v14922_v29, %v18049_v27  ;;  %v23455_v15 = vrot.slane %v14938_v5, %v18049_v27  ;;  %v14923_v42 = vcombine.high %v25069_v35, %v22940_v44 }
 0x727   :  { %v15654_v18 = vcombine.low %v23419_v43, %v23427_v17  ;;  %v16573_v59 = vcombine.high %v23419_v43, %v23427_v17  ;;  %v14887_v46 = vcombine.high %v23430_v34, %v23433_v58  ;;  %v15637_v50 = vcombine.high %v15617_v40, %v15633_v53 }
 0x728   :  { %v14888_v12 = vcombine.low %v14869_v55, %v14885_v7  ;;  %v14939_v29 = vcombine.high %v25071_v13, %v25070_v6  ;;  %v23468_v5 = vrot.slane %v15126_v56, %v18049_v27  ;;  %v15398_v44 = vcombine.low %v23356_v39, %v23359_v23 }
 0x729   :  { %15794 = vrot.lane.b32.xlu0 %v14887_v46, %s17683_s8  ;;  %v23474_v35 = vrot.slane %v15142_v9, %v18049_v27  ;;  %v23477_v43 = vrot.slane %v15194_v54, %v18049_v27  ;;  %v23480_v40 = vrot.slane %v15210_v60, %v18049_v27  ;;  %v15414_v53 = vcombine.low %v23377_v49, %v23386_v36 }
 0x72a   :  { %15944 = vrot.lane.b32.xlu1 %v15637_v50, %s17684_s9  ;;  %v14955_v6 = vcombine.high %v23452_v38, %v23455_v15  ;;  %v14937_v13 = vrot.slane %v14923_v42, %v18049_v27  ;;  %v14750_v17 = vcombine.low %v23112_v25, %v23115_v48  ;;  %v14953_v42 = vrot.slane %v14939_v29, %v18049_v27 }
 0x72b   :  { %v23502_v50 = vrot.slane %v15398_v44, %v18049_v27  ;;  %v23510_v54 = vrot.slane %v15414_v53, %v18049_v27  ;;  %v14658_v56 = vrot.slane %v14650_v33, %v18049_v27  ;;  %v14665_v46 = vrot.slane %v14651_v51, %v18049_v27  ;;  %v25073_v33 = vld [vmem:[#allocation32_spill] sm:$0xff] }
 0x72c   :  { %v14681_v53 = vrot.slane %v14667_v26, %v18049_v27  ;;  %v14889_v60 = vcombine.high %v14869_v55, %v14885_v7  ;;  %v15127_v29 = vcombine.high %v23098_v14, %v23101_v21  ;;  %v15143_v44 = vcombine.high %v23118_v62, %v23121_v16 }
 0x72d   :  { %15858 = vrot.lane.b32.xlu0 %v14888_v12, %s17682_s3  ;;  %v14674_v12 = vrot.slane %v14666_v41, %v18049_v27  ;;  %v23531_v9 = vrot.slane %v15638_v10, %v25051_v8  ;;  %v14956_v11 = vcombine.low %v14937_v13, %v14953_v42  ;;  %v15466_v51 = vcombine.low %v25073_v33, %v25072_v32 }
 0x72e   :  { %15796 = vrot.lane.b32.xlu1 %v14955_v6, %s17683_s8  ;;  %v15482_v41 = vcombine.low %v23346_v24, %v23349_v28  ;;  %v23538_v26 = vrot.slane %v16572_v30, %v25051_v8  ;;  %v23541_v55 = vrot.slane %v15654_v18, %v25051_v8  ;;  %v23544_v14 = vrot.slane %v16573_v59, %v25051_v8 }
 0x72f   :  { %v15706_v62 = vcombine.low %v14658_v56, %v14665_v46  ;;  %v16574_v16 = vcombine.high %v14658_v56, %v14665_v46  ;;  %v15722_v7 = vcombine.low %v14674_v12, %v14681_v53  ;;  %v16575_v10 = vcombine.high %v14674_v12, %v14681_v53 }
 0x730   :  { %v15159_v30 = vcombine.high %v23468_v5, %v23474_v35  ;;  %v15141_v18 = vrot.slane %v15127_v29, %v18049_v27  ;;  %v15157_v6 = vrot.slane %v15143_v44, %v18049_v27  ;;  %v15195_v59 = vcombine.high %v23057_v52, %v23063_v31 }
 0x731   :  { %15922 = vrot.lane.b32.xlu0 %v14889_v60, %s17684_s9  ;;  %v14957_v60 = vcombine.high %v14937_v13, %v14953_v42  ;;  %v15211_v21 = vcombine.high %v23077_v4, %v23080_v19  ;;  %v23559_v56 = vrot.slane %v15466_v51, %v18049_v27  ;;  %v23562_v46 = vrot.slane %v15482_v41, %v18049_v27 }
 0x732   :  { %15860 = vrot.lane.b32.xlu1 %v14956_v11, %s17682_s3  ;;  %v15670_v29 = vcombine.low %v23531_v9, %v23538_v26  ;;  %v15686_v44 = vcombine.low %v23541_v55, %v23544_v14  ;;  %v15713_v52 = vrot.slane %v15706_v62, %v25051_v8  ;;  %v15721_v31 = vrot.slane %v16574_v16, %v25051_v8 }
 0x733   :  { %v15729_v4 = vrot.slane %v15722_v7, %v25051_v8  ;;  %v15737_v19 = vrot.slane %v16575_v10, %v25051_v8  ;;  %v15160_v13 = vcombine.low %v15141_v18, %v15157_v6  ;;  %v15227_v42 = vcombine.high %v23477_v43, %v23480_v40 }
 0x734   :  { %v15209_v12 = vrot.slane %v15195_v59, %v18049_v27  ;;  %v15225_v53 = vrot.slane %v15211_v21, %v18049_v27  ;;  %v15498_v11 = vcombine.low %v23559_v56, %v23562_v46  ;;  %v23582_v51 = vrot.slane %v15670_v29, %v18049_v27 }
 0x735   :  { %15802 = vrot.lane.b32.xlu0 %v15159_v30, %s17683_s8  ;;  %v23585_v41 = vrot.slane %v15686_v44, %v18049_v27  ;;  %v15161_v8 = vcombine.high %v15141_v18, %v15157_v6  ;;  %v15399_v62 = vcombine.high %v23356_v39, %v23359_v23  ;;  %v15415_v21 = vcombine.high %v23377_v49, %v23386_v36 }
 0x736   :  { %15924 = vrot.lane.b32.xlu1 %v14957_v60, %s17684_s9  ;;  %v15228_v16 = vcombine.low %v15209_v12, %v15225_v53  ;;  %v15738_v7 = vcombine.low %v15713_v52, %v15721_v31  ;;  %v15754_v10 = vcombine.low %v15729_v4, %v15737_v19  ;;  %v15431_v59 = vcombine.high %v23502_v50, %v23510_v54 }
 0x737   :  { %v15702_v30 = vcombine.low %v23582_v51, %v23585_v41  ;;  %v15229_v18 = vcombine.high %v15209_v12, %v15225_v53  ;;  %v15413_v6 = vrot.slane %v15399_v62, %v18049_v27  ;;  %v15429_v39 = vrot.slane %v15415_v21, %v18049_v27 }
 0x738   :  { %v15467_v23 = vcombine.high %v25073_v33, %v25072_v32  ;;  %v15483_v49 = vcombine.high %v23346_v24, %v23349_v28  ;;  %v23605_v36 = vrot.slane %v15738_v7, %v18049_v27  ;;  %v23608_v60 = vrot.slane %v15754_v10, %v18049_v27 }
 0x739   :  { %15866 = vrot.lane.b32.xlu0 %v15160_v13, %s17682_s3  ;;  %v15432_v29 = vcombine.low %v15413_v6, %v15429_v39  ;;  %v15499_v44 = vcombine.high %v23559_v56, %v23562_v46  ;;  %v15433_v28 = vcombine.high %v15413_v6, %v15429_v39  ;;  %v15671_v33 = vcombine.high %v23531_v9, %v23538_v26  ;;  %v25074_v6 = vld [vmem:[#allocation95_spill] sm:$0xff]  ;;  %v25075_v39 = vld [vmem:[#allocation26_spill] sm:$0xff] }
 0x73a   :  { %15804 = vrot.lane.b32.xlu1 %v15227_v42, %s17683_s8  ;;  %v15481_v13 = vrot.slane %v15467_v23, %v18049_v27  ;;  %v15497_v32 = vrot.slane %v15483_v49, %v18049_v27  ;;  %v15770_v24 = vcombine.low %v23605_v36, %v23608_v60  ;;  %v15687_v42 = vcombine.high %v23541_v55, %v23544_v14 }
 0x73b   :  { %v15703_v53 = vcombine.high %v23582_v51, %v23585_v41  ;;  %v15755_v7 = vcombine.high %v15729_v4, %v15737_v19  ;;  %v15771_v26 = vcombine.high %v23605_v36, %v23608_v60  ;;  %v25086_v46 = vcombine.low %v23371_v0, %v23374_v3 }
 0x73c   :  { %v15500_v12 = vcombine.low %v15481_v13, %v15497_v32  ;;  %v15701_v62 = vrot.slane %v15687_v42, %v18049_v27  ;;  %v15501_v21 = vcombine.high %v15481_v13, %v15497_v32 }
 0x73d   :  { %15930 = vrot.lane.b32.xlu0 %v15161_v8, %s17684_s9  ;;  %v15685_v8 = vrot.slane %v15671_v33, %v18049_v27  ;;  %v15769_v14 = vrot.slane %v15755_v7, %v18049_v27 }
 0x73e   :  { %15868 = vrot.lane.b32.xlu1 %v15228_v16, %s17682_s3  ;;  %v15739_v16 = vcombine.high %v15713_v52, %v15721_v31 }
 0x73f   :  { %v15704_v9 = vcombine.low %v15685_v8, %v15701_v62  ;;  %v15705_v10 = vcombine.high %v15685_v8, %v15701_v62 }
 0x740   :  { %v15753_v55 = vrot.slane %v15739_v16, %v18049_v27  ;;  %v14818_v27 = vcombine.low %v25075_v39, %v25074_v6 }
 0x741   :  { %15810 = vrot.lane.b32.xlu0 %v15431_v59, %s17683_s8 }
 0x742   :  { %15932 = vrot.lane.b32.xlu1 %v15229_v18, %s17684_s9  ;;  %v15772_v59 = vcombine.low %v15753_v55, %v15769_v14  ;;  %v15773_v52 = vcombine.high %v15753_v55, %v15769_v14 }
 0x745   :  { %15874 = vrot.lane.b32.xlu0 %v15432_v29, %s17682_s3 }
 0x746   :  { %15812 = vrot.lane.b32.xlu1 %v15499_v44, %s17683_s8 }
 0x749   :  { %15938 = vrot.lane.b32.xlu0 %v15433_v28, %s17684_s9 }
 0x74a   :  { %15876 = vrot.lane.b32.xlu1 %v15500_v12, %s17682_s3 }
 0x74d   :  { %15818 = vrot.lane.b32.xlu0 %v15703_v53, %s17683_s8 }
 0x74e   :  { %15940 = vrot.lane.b32.xlu1 %v15501_v21, %s17684_s9 }
 0x751   :  { %15882 = vrot.lane.b32.xlu0 %v15704_v9, %s17682_s3 }
 0x752   :  { %15820 = vrot.lane.b32.xlu1 %v15771_v26, %s17683_s8 }
 0x755   :  { %15946 = vrot.lane.b32.xlu0 %v15705_v10, %s17684_s9  ;;  %v15857_v31 = vpop.permute.xlu1 %15856 }
 0x756   :  { %15884 = vrot.lane.b32.xlu1 %v15772_v59, %s17682_s3 }
 0x758   :  { %v15793_v19 = vpop.permute.xlu0 %15792 }
 0x759   :  { %v15967_v23 = vsel %vm7444_vm1, %v14818_v27, %v15793_v19 }
 0x75a   :  { %15948 = vrot.lane.b32.xlu1 %v15773_v52, %s17684_s9  ;;  %v15921_v4 = vpop.permute.xlu1 %15920  ;;  %v15983_v32 = vsel %vm10301_vm2, %v15967_v23, %v15857_v31 }
 0x75b   :  { %v16000_v33 = vsel %vm15998_vm3, %v15983_v32, %v15921_v4  ;;  %v25078_v32 = vcombine.low %v23168_v63, %v23174_v1 }
 0x762   :  { %v15919_v49 = vpop.permute.xlu0 %15918 }
 0x76d   :  { %v15791_v18 = vpop.permute.xlu1 %15790 }
 0x76e   :  { %v15966_v29 = vsel %vm7444_vm1, %v14750_v17, %v15791_v18  ;;  %v25076_v18 = vcombine.low %v23430_v34, %v23433_v58 }
 0x772   :  { %v15855_v44 = vpop.permute.xlu1 %15854 }
 0x773   :  { %v15982_v13 = vsel %vm10301_vm2, %v15966_v29, %v15855_v44  ;;  %v15799_v42 = vpop.permute.xlu0 %15798  ;;  %v25077_v29 = vcombine.low %v23452_v38, %v23455_v15  ;;  %v25079_v38 = vcombine.low %v23236_v57, %v23239_v2 }
 0x774   :  { %v15999_v28 = vsel %vm15998_vm3, %v15982_v13, %v15919_v49  ;;  %v15970_v34 = vsel %vm7444_vm1, %v25078_v32, %v15799_v42 }
 0x775   :  { %17377 = vmatprep.mubr.msk.f32.mxu0 %vm50_vm0, %v15999_v28 }
 0x776   :  { %17378 = vmatmul.mubr.msk.f32.vlgmr.msra.gmra.mxu0 %vm50_vm0, %v16000_v33 }
 0x77b   :  { %v15863_v12 = vpop.permute.xlu0 %15862 }
 0x77c   :  { %v15801_v53 = vpop.permute.xlu1 %15800  ;;  %v15986_v33 = vsel %vm10301_vm2, %v15970_v34, %v15863_v12  ;;  %v25080_v12 = vcombine.low %v23468_v5, %v23474_v35  ;;  %v25082_v5 = vcombine.low %v23258_v20, %v23261_v45 }
 0x77d   :  { %v15971_v15 = vsel %vm7444_vm1, %v25079_v38, %v15801_v53 }
 0x77f   :  { %v15927_v8 = vpop.permute.xlu0 %15926 }
 0x780   :  { %v15865_v25 = vpop.permute.xlu1 %15864 }
 0x781   :  { %v15987_v63 = vsel %vm10301_vm2, %v15971_v15, %v15865_v25  ;;  %v25081_v25 = vcombine.low %v23477_v43, %v23480_v40  ;;  %v25083_v43 = vcombine.low %v23290_v61, %v23293_v22 }
 0x783   :  { %v15807_v48 = vpop.permute.xlu0 %15806 }
 0x784   :  { %v15929_v17 = vpop.permute.xlu1 %15928  ;;  %v15974_v35 = vsel %vm7444_vm1, %v25082_v5, %v15807_v48 }
 0x785   :  { %v16004_v42 = vsel %vm15998_vm3, %v15987_v63, %v15929_v17 }
 0x787   :  { %v15871_v62 = vpop.permute.xlu0 %15870 }
 0x788   :  { %v15809_v21 = vpop.permute.xlu1 %15808 }
 0x789   :  { %v15975_v40 = vsel %vm7444_vm1, %v25083_v43, %v15809_v21 }
 0x78b   :  { %v15935_v16 = vpop.permute.xlu0 %15934 }
 0x78c   :  { %v15873_v7 = vpop.permute.xlu1 %15872 }
 0x78d   :  { %v15991_v20 = vsel %vm10301_vm2, %v15975_v40, %v15873_v7 }
 0x78f   :  { %v23654_v9 = vpop.permute.xlu0 %15814 }
 0x790   :  { %v15937_v26 = vpop.permute.xlu1 %15936 }
 0x791   :  { %v16008_v48 = vsel %vm15998_vm3, %v15991_v20, %v15937_v26 }
 0x793   :  { %v23656_v55 = vpop.permute.xlu0 %15878 }
 0x794   :  { %v23658_v14 = vpop.permute.xlu1 %15816 }
 0x797   :  { %v23660_v10 = vpop.permute.xlu0 %15942 }
 0x798   :  { %v23662_v59 = vpop.permute.xlu1 %15880 }
 0x79b   :  { %v15795_v52 = vpop.permute.xlu0 %15794 }
 0x79c   :  { %v23664_v31 = vpop.permute.xlu1 %15944  ;;  %v15968_v6 = vsel %vm7444_vm1, %v25076_v18, %v15795_v52 }
 0x79f   :  { %v15859_v4 = vpop.permute.xlu0 %15858 }
 0x7a0   :  { %v15797_v19 = vpop.permute.xlu1 %15796  ;;  %v15984_v39 = vsel %vm10301_vm2, %v15968_v6, %v15859_v4  ;;  %v16003_v4 = vsel %vm15998_vm3, %v15986_v33, %v15927_v8 }
 0x7a1   :  { %v15969_v44 = vsel %vm7444_vm1, %v25077_v29, %v15797_v19 }
 0x7a3   :  { %v15923_v27 = vpop.permute.xlu0 %15922 }
 0x7a4   :  { %v16001_v23 = vsel %vm15998_vm3, %v15984_v39, %v15923_v27  ;;  %v15861_v49 = vpop.permute.xlu1 %15860 }
 0x7a5   :  { %17380 = vmatprep.mubr.msk.f32.mxu0 %vm50_vm0, %v16001_v23  ;;  %v15985_v58 = vsel %vm10301_vm2, %v15969_v44, %v15861_v49  ;;  %v15990_v23 = vsel %vm10301_vm2, %v15974_v35, %v15871_v62  ;;  %v25084_v62 = vcombine.low %v23502_v50, %v23510_v54  ;;  %v25085_v54 = vcombine.low %v23339_v47, %v23342_v37 }
 0x7a6   :  { %v16007_v29 = vsel %vm15998_vm3, %v15990_v23, %v15935_v16  ;;  %v15979_v47 = vsel %vm7444_vm1, %v25086_v46, %v23658_v14 }
 0x7a7   :  { %v15803_v13 = vpop.permute.xlu0 %15802  ;;  %v15978_v50 = vsel %vm7444_vm1, %v25085_v54, %v23654_v9 }
 0x7a8   :  { %v15925_v28 = vpop.permute.xlu1 %15924  ;;  %v15972_v8 = vsel %vm7444_vm1, %v25080_v12, %v15803_v13 }
 0x7a9   :  { %v16002_v52 = vsel %vm15998_vm3, %v15985_v58, %v15925_v28  ;;  %v15994_v58 = vsel %vm10301_vm2, %v15978_v50, %v23656_v55 }
 0x7aa   :  { %17381 = vmatmul.mubr.msk.f32.gmra.mxu0 %vm50_vm0, %v16002_v52  ;;  %v16011_v56 = vsel %vm15998_vm3, %v15994_v58, %v23660_v10 }
 0x7ab   :  { %v15867_v19 = vpop.permute.xlu0 %15866  ;;  %17383 = vmatprep.mubr.msk.f32.mxu0 %vm50_vm0, %v16003_v4 }
 0x7ac   :  { %v15805_v1 = vpop.permute.xlu1 %15804  ;;  %v15988_v18 = vsel %vm10301_vm2, %v15972_v8, %v15867_v19 }
 0x7ad   :  { %v15973_v17 = vsel %vm7444_vm1, %v25081_v25, %v15805_v1 }
 0x7ae   :  { %17384 = vmatmul.mubr.msk.f32.gmra.mxu0 %vm50_vm0, %v16004_v42 }
 0x7af   :  { %v15931_v57 = vpop.permute.xlu0 %15930 }
 0x7b0   :  { %v16005_v2 = vsel %vm15998_vm3, %v15988_v18, %v15931_v57  ;;  %v15869_v53 = vpop.permute.xlu1 %15868 }
 0x7b1   :  { %17386 = vmatprep.mubr.msk.f32.mxu0 %vm50_vm0, %v16005_v2  ;;  %v15989_v39 = vsel %vm10301_vm2, %v15973_v17, %v15869_v53 }
 0x7b3   :  { %v15811_v6 = vpop.permute.xlu0 %15810 }
 0x7b4   :  { %v15933_v27 = vpop.permute.xlu1 %15932  ;;  %v15976_v16 = vsel %vm7444_vm1, %v25084_v62, %v15811_v6 }
 0x7b5   :  { %v16006_v49 = vsel %vm15998_vm3, %v15989_v39, %v15933_v27 }
 0x7b6   :  { %17387 = vmatmul.mubr.msk.f32.gmra.mxu0 %vm50_vm0, %v16006_v49 }
 0x7b7   :  { %v15875_v44 = vpop.permute.xlu0 %15874  ;;  %17389 = vmatprep.mubr.msk.f32.mxu0 %vm50_vm0, %v16007_v29 }
 0x7b8   :  { %v15813_v45 = vpop.permute.xlu1 %15812  ;;  %v15992_v13 = vsel %vm10301_vm2, %v15976_v16, %v15875_v44 }
 0x7b9   :  { %v15977_v7 = vsel %vm7444_vm1, %v15498_v11, %v15813_v45  ;;  %v15995_v11 = vsel %vm10301_vm2, %v15979_v47, %v23662_v59 }
 0x7ba   :  { %17390 = vmatmul.mubr.msk.f32.gmra.mxu0 %vm50_vm0, %v16008_v48  ;;  %v16012_v55 = vsel %vm15998_vm3, %v15995_v11, %v23664_v31 }
 0x7bb   :  { %v15939_v61 = vpop.permute.xlu0 %15938 }
 0x7bc   :  { %v16009_v22 = vsel %vm15998_vm3, %v15992_v13, %v15939_v61  ;;  %v15877_v21 = vpop.permute.xlu1 %15876 }
 0x7bd   :  { %17392 = vmatprep.mubr.msk.f32.mxu0 %vm50_vm0, %v16009_v22  ;;  %v15993_v32 = vsel %vm10301_vm2, %v15977_v7, %v15877_v21 }
 0x7bf   :  { %v15819_v26 = vpop.permute.xlu0 %15818 }
 0x7c0   :  { %v15941_v34 = vpop.permute.xlu1 %15940  ;;  %v15980_v10 = vsel %vm7444_vm1, %v15702_v30, %v15819_v26  ;;  %v16576_v30 = vld [vmem:[%s23842_s5] ss:$0 sm:$0xff] }
 0x7c1   :  { %v16010_v28 = vsel %vm15998_vm3, %v15993_v32, %v15941_v34 }
 0x7c2   :  { %17393 = vmatmul.mubr.msk.f32.gmra.mxu0 %vm50_vm0, %v16010_v28 }
 0x7c3   :  { %v15883_v37 = vpop.permute.xlu0 %15882  ;;  %17395 = vmatprep.mubr.msk.f32.mxu0 %vm50_vm0, %v16011_v56 }
 0x7c4   :  { %v15821_v9 = vpop.permute.xlu1 %15820  ;;  %v15996_v0 = vsel %vm10301_vm2, %v15980_v10, %v15883_v37 }
 0x7c5   :  { %v15981_v59 = vsel %vm7444_vm1, %v15770_v24, %v15821_v9 }
 0x7c6   :  { %17396 = vmatmul.mubr.msk.f32.gmra.mxu0 %vm50_vm0, %v16012_v55 }
 0x7c7   :  { %v15947_v3 = vpop.permute.xlu0 %15946 }
 0x7c8   :  { %v16013_v14 = vsel %vm15998_vm3, %v15996_v0, %v15947_v3  ;;  %v15885_v33 = vpop.permute.xlu1 %15884 }
 0x7c9   :  { %17398 = vmatprep.mubr.msk.f32.mxu0 %vm50_vm0, %v16013_v14  ;;  %v15997_v31 = vsel %vm10301_vm2, %v15981_v59, %v15885_v33 }
 0x7cc   :  { %v15949_v51 = vpop.permute.xlu1 %15948 }
 0x7cd   :  { %v16014_v41 = vsel %vm15998_vm3, %v15997_v31, %v15949_v51 }
 0x7ce   :  { %17399 = vmatmul.mubr.msk.f32.gmra.mxu0 %vm50_vm0, %v16014_v41 }
 0x836   :  { %v17379_v52 = vpop.f32.mrf.mxu0 }
 0x837   :  { %v16146_v4 = vadd.f32 %v17379_v52, %v16576_v30 }
 0x838   :  { %v16140_v38 = vpop.f32.mrf.mxu0 }
 0x839   :  { %16220 = vst.msk [vmem:[%s23843_s6 + $0x8] sm:$0xff] %vm50_vm0, %v16146_v4  ;;  %v16141_v36 = vadd.f32 %v16576_v30, %v16140_v38 }
 0x83b   :  { %16219 = vst.msk [vmem:[%s23843_s6] sm:$0xff] %vm50_vm0, %v16141_v36 }
 0x86a   :  { %v17382_v60 = vpop.f32.mrf.mxu0 }
 0x86b   :  { %v16156_v24 = vadd.f32 %v17382_v60, %v16576_v30 }
 0x86c   :  { %v16150_v15 = vpop.f32.mrf.mxu0 }
 0x86d   :  { %16222 = vst.msk [vmem:[%s23843_s6 + $0x18] sm:$0xff] %vm50_vm0, %v16156_v24  ;;  %v16151_v19 = vadd.f32 %v16576_v30, %v16150_v15 }
 0x86e   :  { %v17385_v63 = vpop.f32.mrf.mxu0 }
 0x86f   :  { %16221 = vst.msk [vmem:[%s23843_s6 + $0x10] sm:$0xff] %vm50_vm0, %v16151_v19  ;;  %v16166_v1 = vadd.f32 %v17385_v63, %v16576_v30 }
 0x870   :  { %v16160_v42 = vpop.f32.mrf.mxu0 }
 0x871   :  { %16224 = vst.msk [vmem:[%s23843_s6 + $0x28] sm:$0xff] %vm50_vm0, %v16166_v1  ;;  %v16161_v12 = vadd.f32 %v16576_v30, %v16160_v42 }
 0x873   :  { %16223 = vst.msk [vmem:[%s23843_s6 + $0x20] sm:$0xff] %vm50_vm0, %v16161_v12 }
 0x876   :  { %v17388_v8 = vpop.f32.mrf.mxu0 }
 0x877   :  { %v16176_v18 = vadd.f32 %v17388_v8, %v16576_v30 }
 0x878   :  { %v16170_v57 = vpop.f32.mrf.mxu0 }
 0x879   :  { %16226 = vst.msk [vmem:[%s23843_s6 + $0x38] sm:$0xff] %vm50_vm0, %v16176_v18  ;;  %v16171_v2 = vadd.f32 %v16576_v30, %v16170_v57 }
 0x87a   :  { %v17391_v53 = vpop.f32.mrf.mxu0 }
 0x87b   :  { %16225 = vst.msk [vmem:[%s23843_s6 + $0x30] sm:$0xff] %vm50_vm0, %v16171_v2  ;;  %v16186_v25 = vadd.f32 %v17391_v53, %v16576_v30 }
 0x87c   :  { %v16180_v17 = vpop.f32.mrf.mxu0 }
 0x87d   :  { %16228 = vst.msk [vmem:[%s23843_s6 + $0x48] sm:$0xff] %vm50_vm0, %v16186_v25  ;;  %v16181_v6 = vadd.f32 %v16576_v30, %v16180_v17 }
 0x87f   :  { %16227 = vst.msk [vmem:[%s23843_s6 + $0x40] sm:$0xff] %vm50_vm0, %v16181_v6 }
 0x882   :  { %v17394_v5 = vpop.f32.mrf.mxu0 }
 0x883   :  { %v16196_v35 = vadd.f32 %v17394_v5, %v16576_v30 }
 0x884   :  { %v16190_v39 = vpop.f32.mrf.mxu0 }
 0x885   :  { %16230 = vst.msk [vmem:[%s23843_s6 + $0x58] sm:$0xff] %vm50_vm0, %v16196_v35  ;;  %v16191_v27 = vadd.f32 %v16576_v30, %v16190_v39 }
 0x886   :  { %v17397_v23 = vpop.f32.mrf.mxu0 }
 0x887   :  { %16229 = vst.msk [vmem:[%s23843_s6 + $0x50] sm:$0xff] %vm50_vm0, %v16191_v27  ;;  %v16206_v49 = vadd.f32 %v17397_v23, %v16576_v30 }
 0x888   :  { %v16200_v29 = vpop.f32.mrf.mxu0 }
 0x889   :  { %16232 = vst.msk [vmem:[%s23843_s6 + $0x68] sm:$0xff] %vm50_vm0, %v16206_v49  ;;  %v16201_v43 = vadd.f32 %v16576_v30, %v16200_v29 }
 0x88b   :  { %16231 = vst.msk [vmem:[%s23843_s6 + $0x60] sm:$0xff] %vm50_vm0, %v16201_v43 }
 0x88e   :  { %v17400_v40 = vpop.f32.mrf.mxu0 }
 0x88f   :  { %v16216_v44 = vadd.f32 %v17400_v40, %v16576_v30 }
 0x890   :  { %v16210_v20 = vpop.f32.mrf.mxu0 }
 0x891   :  { %16234 = vst.msk [vmem:[%s23843_s6 + $0x78] sm:$0xff] %vm50_vm0, %v16216_v44  ;;  %v16211_v45 = vadd.f32 %v16576_v30, %v16210_v20 }
 0x893   :  { %16233 = vst.msk [vmem:[%s23843_s6 + $0x70] sm:$0xff] %vm50_vm0, %v16211_v45 }

</bundles_post_ra>
